<compile_context>
chip_gen: v7x
topology: tpu7x:2x2x1
jax: 0.10.0
libtpu: 0.0.40
codegen_flags: <defaults>
</compile_context>

<pallas_src>
import functools

import jax
import jax.numpy as jnp
import numpy as np
from jax import lax
from jax.experimental import pallas as pl
from jax.experimental.pallas import tpu as pltpu

_EPS = 1e-5


def _halo(W):
    """Zero-halo rows above/below the image in the flat pad scratch.

    Must be >= W+1 (max |flat shift| of a 3x3 tap) and a multiple of 16 so the
    bf16 interior / halo bulk stores stay packed-sublane aligned.
    """
    return ((W + 1 + 15) // 16) * 16


# ----------------------------------------------------------------------------
# In-kernel conv helper (operates on values + the two VMEM scratch refs)
# ----------------------------------------------------------------------------
def _conv3x3_im2col(pad_ref, col_ref, act_bf16, w_flat, mask_l, mask_r, *, W):
    """3x3 / stride-1 conv on a spatially flattened activation via im2col.

    act_bf16 : (HW, Cin) bf16, BN+ReLU'd, unpadded.
    w_flat   : (9*Cin, Cout) bf16, rows ordered ((dy*3 + dx)*Cin + c).
    mask_l/r : (HW, 1) bf16 {0,1}; zero where the dx=0 / dx=2 tap would wrap
               across image rows in the flat layout.
    pad_ref  : (halo + HW + halo, Cin) bf16 scratch — flat zero-padded copy.
    col_ref  : (HW, 9*Cin) bf16 scratch — im2col slab.
    Returns  : (HW, Cout) f32 from a single MXU matmul (K = 9*Cin).
    """
    HW, Cin = act_bf16.shape
    hp = _halo(W)
    # Zero only the halo rows (the interior is fully overwritten below).
    # Done every grid step so megacore grid sharding stays correct.
    zeros = jnp.zeros((hp, Cin), jnp.bfloat16)
    pad_ref[pl.ds(0, hp), :] = zeros            # rows "above" the image
    pad_ref[pl.ds(hp + HW, hp), :] = zeros      # rows "below" the image
    pad_ref[pl.ds(hp, HW), :] = act_bf16        # single aligned bulk store (bf16)

    base = hp - (W + 1)
    for dy in range(3):
        for dx in range(3):
            # Activation shifted by (dy-1, dx-1); H-border zeros come from the
            # halo rows, W-border wrap is killed by the precomputed masks.
            slab = pad_ref[pl.ds(base + dy * W + dx, HW), :]
            if dx == 0:
                slab = slab * mask_l
            elif dx == 2:
                slab = slab * mask_r
            t = dy * 3 + dx
            col_ref[:, t * Cin:(t + 1) * Cin] = slab

    # One large matmul: K = 9*Cin, f32 accumulation stays inside the MXU path.
    return jnp.dot(col_ref[...], w_flat, preferred_element_type=jnp.float32)


# ----------------------------------------------------------------------------
# Kernels (one grid step == one batch image)
# ----------------------------------------------------------------------------
def _stage1_proj_kernel(x_ref, scale_ref, bias_ref, ml_ref, mr_ref, w_ref, wsc_ref,
                        out_ref, sc_ref, sum_ref, ssq_ref, pad_ref, col_ref, *, W):
    act = jnp.maximum(x_ref[0] * scale_ref[...] + bias_ref[...], 0.0)   # (HW, Cin) f32
    act_bf = act.astype(jnp.bfloat16)                                   # cast once
    o1 = _conv3x3_im2col(pad_ref, col_ref, act_bf, w_ref[...],
                         ml_ref[...], mr_ref[...], W=W)
    out_ref[0] = o1.astype(out_ref.dtype)                               # bf16 store
    # BN2 batch statistics (f32) while o1 is still in VMEM.
    sum_ref[0] = jnp.sum(o1, axis=0, keepdims=True)
    ssq_ref[0] = jnp.sum(o1 * o1, axis=0, keepdims=True)
    # Fused 1x1 projection shortcut on relu(bn1(x)).
    sc_ref[0] = jnp.dot(act_bf, wsc_ref[...],
                        preferred_element_type=jnp.float32).astype(sc_ref.dtype)


def _stage1_plain_kernel(x_ref, scale_ref, bias_ref, ml_ref, mr_ref, w_ref,
                         out_ref, sum_ref, ssq_ref, pad_ref, col_ref, *, W):
    act = jnp.maximum(x_ref[0] * scale_ref[...] + bias_ref[...], 0.0)
    act_bf = act.astype(jnp.bfloat16)
    o1 = _conv3x3_im2col(pad_ref, col_ref, act_bf, w_ref[...],
                         ml_ref[...], mr_ref[...], W=W)
    out_ref[0] = o1.astype(out_ref.dtype)
    sum_ref[0] = jnp.sum(o1, axis=0, keepdims=True)
    ssq_ref[0] = jnp.sum(o1 * o1, axis=0, keepdims=True)


def _stage2_kernel(x_ref, scale_ref, bias_ref, ml_ref, mr_ref, w_ref, res_ref,
                   out_ref, pad_ref, col_ref, *, W):
    act = jnp.maximum(x_ref[0].astype(jnp.float32) * scale_ref[...] + bias_ref[...], 0.0)
    o2 = _conv3x3_im2col(pad_ref, col_ref, act.astype(jnp.bfloat16), w_ref[...],
                         ml_ref[...], mr_ref[...], W=W)
    out_ref[0] = (o2 + res_ref[0].astype(jnp.float32)).astype(out_ref.dtype)


# ----------------------------------------------------------------------------
# pallas_call wrappers
# ----------------------------------------------------------------------------
def _cparams():
    return pltpu.CompilerParams(dimension_semantics=("parallel",),
                                vmem_limit_bytes=64 * 1024 * 1024)


def _conv_scratch(HW, Cin, W):
    hp = _halo(W)
    return [pltpu.VMEM((hp + HW + hp, Cin), jnp.bfloat16),   # flat zero-padded act
            pltpu.VMEM((HW, 9 * Cin), jnp.bfloat16)]         # im2col slab


def _call_stage1(x_flat, scale, bias, mask_l, mask_r, w_flat, W, wsc=None):
    N, HW, Cin = x_flat.shape
    Cout = w_flat.shape[-1]
    img_in = pl.BlockSpec((1, HW, Cin), lambda n: (n, 0, 0))
    chan = pl.BlockSpec((1, Cin), lambda n: (0, 0))
    mask = pl.BlockSpec((HW, 1), lambda n: (0, 0))
    w_spec = pl.BlockSpec((9 * Cin, Cout), lambda n: (0, 0))
    img_out = pl.BlockSpec((1, HW, Cout), lambda n: (n, 0, 0))
    stat_out = pl.BlockSpec((1, 1, Cout), lambda n: (n, 0, 0))
    scratch = _conv_scratch(HW, Cin, W)

    if wsc is not None:
        return pl.pallas_call(
            functools.partial(_stage1_proj_kernel, W=W),
            out_shape=(jax.ShapeDtypeStruct((N, HW, Cout), jnp.bfloat16),  # conv1 out
                       jax.ShapeDtypeStruct((N, HW, Cout), jnp.bfloat16),  # shortcut
                       jax.ShapeDtypeStruct((N, 1, Cout), jnp.float32),    # sum
                       jax.ShapeDtypeStruct((N, 1, Cout), jnp.float32)),   # sum of sq
            grid=(N,),
            in_specs=[img_in, chan, chan, mask, mask, w_spec,
                      pl.BlockSpec((Cin, Cout), lambda n: (0, 0))],
            out_specs=(img_out, img_out, stat_out, stat_out),
            scratch_shapes=scratch,
            compiler_params=_cparams(),
        )(x_flat, scale, bias, mask_l, mask_r, w_flat, wsc)

    return pl.pallas_call(
        functools.partial(_stage1_plain_kernel, W=W),
        out_shape=(jax.ShapeDtypeStruct((N, HW, Cout), jnp.bfloat16),
                   jax.ShapeDtypeStruct((N, 1, Cout), jnp.float32),
                   jax.ShapeDtypeStruct((N, 1, Cout), jnp.float32)),
        grid=(N,),
        in_specs=[img_in, chan, chan, mask, mask, w_spec],
        out_specs=(img_out, stat_out, stat_out),
        scratch_shapes=scratch,
        compiler_params=_cparams(),
    )(x_flat, scale, bias, mask_l, mask_r, w_flat)


def _call_stage2(out1, scale, bias, mask_l, mask_r, w_flat, residual, W):
    N, HW, Cmid = out1.shape
    Cout = w_flat.shape[-1]
    return pl.pallas_call(
        functools.partial(_stage2_kernel, W=W),
        out_shape=jax.ShapeDtypeStruct((N, HW, Cout), jnp.float32),
        grid=(N,),
        in_specs=[
            pl.BlockSpec((1, HW, Cmid), lambda n: (n, 0, 0)),
            pl.BlockSpec((1, Cmid), lambda n: (0, 0)),
            pl.BlockSpec((1, Cmid), lambda n: (0, 0)),
            pl.BlockSpec((HW, 1), lambda n: (0, 0)),
            pl.BlockSpec((HW, 1), lambda n: (0, 0)),
            pl.BlockSpec((9 * Cmid, Cout), lambda n: (0, 0)),
            pl.BlockSpec((1, HW, Cout), lambda n: (n, 0, 0)),   # residual (f32 or bf16)
        ],
        out_specs=pl.BlockSpec((1, HW, Cout), lambda n: (n, 0, 0)),
        scratch_shapes=_conv_scratch(HW, Cmid, W),
        compiler_params=_cparams(),
    )(out1, scale, bias, mask_l, mask_r, w_flat, residual)


# ----------------------------------------------------------------------------
# Glue (BN folding, weight prep, layout) + full block forward
# ----------------------------------------------------------------------------
def _fold_bn(mean, var, gamma, beta):
    scale = gamma / jnp.sqrt(var + _EPS)
    bias = beta - mean * scale
    return (scale.reshape(1, -1).astype(jnp.float32),
            bias.reshape(1, -1).astype(jnp.float32))


def _prep_w3(w):
    """PyTorch OIHW (Cout, Cin, 3, 3) -> im2col-packed (9*Cin, Cout) bf16.

    Row order is ((dy*3 + dx)*Cin + c), matching the im2col slab columns.
    """
    cout, cin = w.shape[0], w.shape[1]
    return jnp.transpose(w, (2, 3, 1, 0)).reshape(9 * cin, cout).astype(jnp.bfloat16)


def _col_masks(H, W):
    col = jnp.arange(H * W, dtype=jnp.int32) % W
    ml = (col != 0).astype(jnp.bfloat16).reshape(H * W, 1)      # kills dx=0 wrap
    mr = (col != W - 1).astype(jnp.bfloat16).reshape(H * W, 1)  # kills dx=2 wrap
    return ml, mr


@functools.partial(jax.jit, static_argnames=("stride",))
def preact_block_forward(x_nchw, params, stride=1):
    if stride != 1:
        # TODO(synk): strided 3x3 conv + strided 1x1 shortcut not implemented.
        raise NotImplementedError("stride != 1 not supported in this Pallas port")
    x = jnp.transpose(x_nchw, (0, 2, 3, 1)).astype(jnp.float32)        # NHWC
    N, H, W, Cin = x.shape
    x_flat = x.reshape(N, H * W, Cin)                                  # free reshape

    # BN1 batch stats (training mode) in ONE fused pass over x.
    cnt = N * H * W
    s_in = jnp.sum(x_flat, axis=(0, 1))
    ss_in = jnp.sum(x_flat * x_flat, axis=(0, 1))
    mean1 = s_in / cnt
    var1 = jnp.maximum(ss_in / cnt - mean1 * mean1, 0.0)
    scale1, bias1 = _fold_bn(mean1, var1, params["bn1_gamma"], params["bn1_beta"])

    mask_l, mask_r = _col_masks(H, W)
    w1 = _prep_w3(params["conv1_w"])
    Cout = params["conv1_w"].shape[0]

    if "shortcut_w" in params:
        wsc = params["shortcut_w"][:, :, 0, 0].T.astype(jnp.bfloat16)  # (Cin, Cout)
        out1, residual, s1, sq1 = _call_stage1(
            x_flat, scale1, bias1, mask_l, mask_r, w1, W, wsc=wsc)
    else:
        out1, s1, sq1 = _call_stage1(x_flat, scale1, bias1, mask_l, mask_r, w1, W)
        residual = x_flat                       # identity shortcut (raw x, f32)

    # BN2 from the per-image sums emitted by stage 1 (no extra HBM pass).
    mean2 = jnp.sum(s1, axis=(0, 1)) / cnt
    var2 = jnp.maximum(jnp.sum(sq1, axis=(0, 1)) / cnt - mean2 * mean2, 0.0)
    scale2, bias2 = _fold_bn(mean2, var2, params["bn2_gamma"], params["bn2_beta"])

    w2 = _prep_w3(params["conv2_w"])
    y = _call_stage2(out1, scale2, bias2, mask_l, mask_r, w2, residual, W)
    return jnp.transpose(y.reshape(N, H, W, Cout), (0, 3, 1, 2))       # NCHW out


# ----------------------------------------------------------------------------
# Pure-JAX reference (for validation)
# ----------------------------------------------------------------------------
def reference_forward(x_nchw, params):
    def bn_train(x, gamma, beta):
        mean = jnp.mean(x, axis=(0, 2, 3), keepdims=True)
        var = jnp.mean(jnp.square(x - mean), axis=(0, 2, 3), keepdims=True)
        g = gamma.reshape(1, -1, 1, 1)
        b = beta.reshape(1, -1, 1, 1)
        return g * (x - mean) / jnp.sqrt(var + _EPS) + b

    def conv(x, w, pad):
        return lax.conv_general_dilated(
            x, w, (1, 1), [(pad, pad), (pad, pad)],
            dimension_numbers=("NCHW", "OIHW", "NCHW"))

    out = jax.nn.relu(bn_train(x_nchw, params["bn1_gamma"], params["bn1_beta"]))
    if "shortcut_w" in params:
        shortcut = conv(out, params["shortcut_w"], pad=0)
    else:
        shortcut = x_nchw
    out = conv(out, params["conv1_w"], pad=1)
    out = jax.nn.relu(bn_train(out, params["bn2_gamma"], params["bn2_beta"]))
    out = conv(out, params["conv2_w"], pad=1)
    return out + shortcut


# ----------------------------------------------------------------------------
# Demo
# ----------------------------------------------------------------------------
def _make_params(key, cin, cout):
    ks = jax.random.split(key, 7)
    p = {
        "bn1_gamma": 1.0 + 0.1 * jax.random.normal(ks[0], (cin,), jnp.float32),
        "bn1_beta": 0.1 * jax.random.normal(ks[1], (cin,), jnp.float32),
        "conv1_w": 0.1 * jax.random.normal(ks[2], (cout, cin, 3, 3), jnp.float32),
        "bn2_gamma": 1.0 + 0.1 * jax.random.normal(ks[3], (cout,), jnp.float32),
        "bn2_beta": 0.1 * jax.random.normal(ks[4], (cout,), jnp.float32),
        "conv2_w": 0.1 * jax.random.normal(ks[5], (cout, cout, 3, 3), jnp.float32),
    }
    if cin != cout:  # stride == 1 everywhere in this demo
        p["shortcut_w"] = 0.1 * jax.random.normal(ks[6], (cout, cin, 1, 1), jnp.float32)
    return p


if __name__ == "__main__":
    key = jax.random.PRNGKey(0)
    k_x1, k_p1, k_x2, k_p2 = jax.random.split(key, 4)

    # Config 1: projection shortcut (in_planes != planes) — x: (2, 4, 16, 16)
    x1 = jax.random.normal(k_x1, (2, 4, 16, 16), jnp.float32)
    p1 = _make_params(k_p1, cin=4, cout=8)
    y1 = jax.block_until_ready(preact_block_forward(x1, p1))
    np.testing.assert_allclose(np.asarray(y1), np.asarray(reference_forward(x1, p1)),
                               rtol=2e-2, atol=2e-2)

    # Config 2: identity shortcut (in_planes == planes) — x: (2, 4, 16, 16)
    x2 = jax.random.normal(k_x2, (2, 4, 16, 16), jnp.float32)
    p2 = _make_params(k_p2, cin=4, cout=4)
    y2 = jax.block_until_ready(preact_block_forward(x2, p2))
    np.testing.assert_allclose(np.asarray(y2), np.asarray(reference_forward(x2, p2)),
                               rtol=2e-2, atol=2e-2)

    print("KERNEL_OK")
</pallas_src>

<mosaic_0001>
module attributes {stable_mosaic.version = 11 : i64} {
  func.func @_stage1_proj_kernel(%arg0: i32, %arg1: memref<1x256x4xf32, #tpu.memory_space<vmem>>, %arg2: memref<1x4xf32, #tpu.memory_space<vmem>>, %arg3: memref<1x4xf32, #tpu.memory_space<vmem>>, %arg4: memref<256x1xbf16, #tpu.memory_space<vmem>>, %arg5: memref<256x1xbf16, #tpu.memory_space<vmem>>, %arg6: memref<36x8xbf16, #tpu.memory_space<vmem>>, %arg7: memref<4x8xbf16, #tpu.memory_space<vmem>>, %arg8: memref<1x256x8xbf16, #tpu.memory_space<vmem>>, %arg9: memref<1x256x8xbf16, #tpu.memory_space<vmem>>, %arg10: memref<1x1x8xf32, #tpu.memory_space<vmem>>, %arg11: memref<1x1x8xf32, #tpu.memory_space<vmem>>, %arg12: memref<320x4xbf16, #tpu.memory_space<vmem>>, %arg13: memref<256x36xbf16, #tpu.memory_space<vmem>>) attributes {dimension_semantics = [#tpu.dimension_semantics<parallel>], iteration_bounds = array<i64: 2>, scalar_prefetch = 0 : i64, scratch_operands = 2 : i64, tpu.core_type = #tpu.core_type<tc>, window_params = [{transform_indices = @transform_0, window_bounds = array<i64: 1, 256, 4>}, {pipeline_mode = #tpu.pipeline_mode<synchronous>, transform_indices = @transform_1, window_bounds = array<i64: 1, 4>}, {pipeline_mode = #tpu.pipeline_mode<synchronous>, transform_indices = @transform_2, window_bounds = array<i64: 1, 4>}, {pipeline_mode = #tpu.pipeline_mode<synchronous>, transform_indices = @transform_3, window_bounds = array<i64: 256, 1>}, {pipeline_mode = #tpu.pipeline_mode<synchronous>, transform_indices = @transform_4, window_bounds = array<i64: 256, 1>}, {pipeline_mode = #tpu.pipeline_mode<synchronous>, transform_indices = @transform_5, window_bounds = array<i64: 36, 8>}, {pipeline_mode = #tpu.pipeline_mode<synchronous>, transform_indices = @transform_6, window_bounds = array<i64: 4, 8>}, {transform_indices = @transform_7, window_bounds = array<i64: 1, 256, 8>}, {transform_indices = @transform_8, window_bounds = array<i64: 1, 256, 8>}, {transform_indices = @transform_9, window_bounds = array<i64: 1, 1, 8>}, {transform_indices = @transform_10, window_bounds = array<i64: 1, 1, 8>}]} {
    %c0 = arith.constant 0 : index
    %c0_0 = arith.constant 0 : index
    %c0_1 = arith.constant 0 : index
    %0 = vector.load %arg1[%c0, %c0_0, %c0_1] : memref<1x256x4xf32, #tpu.memory_space<vmem>>, vector<1x256x4xf32>
    %1 = vector.shape_cast %0 : vector<1x256x4xf32> to vector<256x4xf32>
    %c0_2 = arith.constant 0 : index
    %c0_3 = arith.constant 0 : index
    %2 = vector.load %arg2[%c0_2, %c0_3] : memref<1x4xf32, #tpu.memory_space<vmem>>, vector<1x4xf32>
    %3 = vector.broadcast %2 : vector<1x4xf32> to vector<256x4xf32>
    %4 = arith.mulf %1, %3 : vector<256x4xf32>
    %c0_4 = arith.constant 0 : index
    %c0_5 = arith.constant 0 : index
    %5 = vector.load %arg3[%c0_4, %c0_5] : memref<1x4xf32, #tpu.memory_space<vmem>>, vector<1x4xf32>
    %6 = vector.broadcast %5 : vector<1x4xf32> to vector<256x4xf32>
    %7 = arith.addf %4, %6 : vector<256x4xf32>
    %cst = arith.constant 0.000000e+00 : f32
    %8 = vector.broadcast %cst : f32 to vector<256x4xf32>
    %9 = arith.maximumf %7, %8 : vector<256x4xf32>
    %10 = arith.truncf %9 : vector<256x4xf32> to vector<256x4xbf16>
    %c0_6 = arith.constant 0 : index
    %c0_7 = arith.constant 0 : index
    %11 = vector.load %arg6[%c0_6, %c0_7] : memref<36x8xbf16, #tpu.memory_space<vmem>>, vector<36x8xbf16>
    %c0_8 = arith.constant 0 : index
    %c0_9 = arith.constant 0 : index
    %12 = vector.load %arg4[%c0_8, %c0_9] : memref<256x1xbf16, #tpu.memory_space<vmem>>, vector<256x1xbf16>
    %c0_10 = arith.constant 0 : index
    %c0_11 = arith.constant 0 : index
    %13 = vector.load %arg5[%c0_10, %c0_11] : memref<256x1xbf16, #tpu.memory_space<vmem>>, vector<256x1xbf16>
    %cst_12 = arith.constant 0.000000e+00 : bf16
    %14 = vector.broadcast %cst_12 : bf16 to vector<32x4xbf16>
    %c0_13 = arith.constant 0 : index
    %c0_14 = arith.constant 0 : index
    %15 = vector.load %arg12[%c0_13, %c0_14] : memref<320x4xbf16, #tpu.memory_space<vmem>>, vector<32x4xbf16>
    tpu.vector_store %arg12[%c0_13, %c0_14], %14 {strides = array<i32>} : memref<320x4xbf16, #tpu.memory_space<vmem>>, vector<32x4xbf16>,
    %c288 = arith.constant 288 : index
    %c0_15 = arith.constant 0 : index
    %16 = vector.load %arg12[%c288, %c0_15] : memref<320x4xbf16, #tpu.memory_space<vmem>>, vector<32x4xbf16>
    tpu.vector_store %arg12[%c288, %c0_15], %14 {strides = array<i32>} : memref<320x4xbf16, #tpu.memory_space<vmem>>, vector<32x4xbf16>,
    %c32 = arith.constant 32 : index
    %c0_16 = arith.constant 0 : index
    %17 = vector.load %arg12[%c32, %c0_16] : memref<320x4xbf16, #tpu.memory_space<vmem>>, vector<256x4xbf16>
    tpu.vector_store %arg12[%c32, %c0_16], %10 {strides = array<i32>} : memref<320x4xbf16, #tpu.memory_space<vmem>>, vector<256x4xbf16>,
    %c15 = arith.constant 15 : index
    %c0_17 = arith.constant 0 : index
    %18 = vector.load %arg12[%c15, %c0_17] : memref<320x4xbf16, #tpu.memory_space<vmem>>, vector<256x4xbf16>
    %19 = vector.broadcast %12 : vector<256x1xbf16> to vector<256x4xbf16>
    %20 = arith.mulf %18, %19 : vector<256x4xbf16>
    %c0_18 = arith.constant 0 : index
    %c0_19 = arith.constant 0 : index
    %21 = vector.load %arg13[%c0_18, %c0_19] : memref<256x36xbf16, #tpu.memory_space<vmem>>, vector<256x4xbf16>
    tpu.vector_store %arg13[%c0_18, %c0_19], %20 {strides = array<i32>} : memref<256x36xbf16, #tpu.memory_space<vmem>>, vector<256x4xbf16>,
    %c16 = arith.constant 16 : index
    %c0_20 = arith.constant 0 : index
    %22 = vector.load %arg12[%c16, %c0_20] : memref<320x4xbf16, #tpu.memory_space<vmem>>, vector<256x4xbf16>
    %c0_21 = arith.constant 0 : index
    %c4 = arith.constant 4 : index
    %23 = vector.load %arg13[%c0_21, %c4] : memref<256x36xbf16, #tpu.memory_space<vmem>>, vector<256x4xbf16>
    tpu.vector_store %arg13[%c0_21, %c4], %22 {strides = array<i32>} : memref<256x36xbf16, #tpu.memory_space<vmem>>, vector<256x4xbf16>,
    %c17 = arith.constant 17 : index
    %c0_22 = arith.constant 0 : index
    %24 = vector.load %arg12[%c17, %c0_22] : memref<320x4xbf16, #tpu.memory_space<vmem>>, vector<256x4xbf16>
    %25 = vector.broadcast %13 : vector<256x1xbf16> to vector<256x4xbf16>
    %26 = arith.mulf %24, %25 : vector<256x4xbf16>
    %c0_23 = arith.constant 0 : index
    %c8 = arith.constant 8 : index
    %27 = vector.load %arg13[%c0_23, %c8] : memref<256x36xbf16, #tpu.memory_space<vmem>>, vector<256x4xbf16>
    tpu.vector_store %arg13[%c0_23, %c8], %26 {strides = array<i32>} : memref<256x36xbf16, #tpu.memory_space<vmem>>, vector<256x4xbf16>,
    %c31 = arith.constant 31 : index
    %c0_24 = arith.constant 0 : index
    %28 = vector.load %arg12[%c31, %c0_24] : memref<320x4xbf16, #tpu.memory_space<vmem>>, vector<256x4xbf16>
    %29 = vector.broadcast %12 : vector<256x1xbf16> to vector<256x4xbf16>
    %30 = arith.mulf %28, %29 : vector<256x4xbf16>
    %c0_25 = arith.constant 0 : index
    %c12 = arith.constant 12 : index
    %31 = vector.load %arg13[%c0_25, %c12] : memref<256x36xbf16, #tpu.memory_space<vmem>>, vector<256x4xbf16>
    tpu.vector_store %arg13[%c0_25, %c12], %30 {strides = array<i32>} : memref<256x36xbf16, #tpu.memory_space<vmem>>, vector<256x4xbf16>,
    %c32_26 = arith.constant 32 : index
    %c0_27 = arith.constant 0 : index
    %32 = vector.load %arg12[%c32_26, %c0_27] : memref<320x4xbf16, #tpu.memory_space<vmem>>, vector<256x4xbf16>
    %c0_28 = arith.constant 0 : index
    %c16_29 = arith.constant 16 : index
    %33 = vector.load %arg13[%c0_28, %c16_29] : memref<256x36xbf16, #tpu.memory_space<vmem>>, vector<256x4xbf16>
    tpu.vector_store %arg13[%c0_28, %c16_29], %32 {strides = array<i32>} : memref<256x36xbf16, #tpu.memory_space<vmem>>, vector<256x4xbf16>,
    %c33 = arith.constant 33 : index
    %c0_30 = arith.constant 0 : index
    %34 = vector.load %arg12[%c33, %c0_30] : memref<320x4xbf16, #tpu.memory_space<vmem>>, vector<256x4xbf16>
    %35 = vector.broadcast %13 : vector<256x1xbf16> to vector<256x4xbf16>
    %36 = arith.mulf %34, %35 : vector<256x4xbf16>
    %c0_31 = arith.constant 0 : index
    %c20 = arith.constant 20 : index
    %37 = vector.load %arg13[%c0_31, %c20] : memref<256x36xbf16, #tpu.memory_space<vmem>>, vector<256x4xbf16>
    tpu.vector_store %arg13[%c0_31, %c20], %36 {strides = array<i32>} : memref<256x36xbf16, #tpu.memory_space<vmem>>, vector<256x4xbf16>,
    %c47 = arith.constant 47 : index
    %c0_32 = arith.constant 0 : index
    %38 = vector.load %arg12[%c47, %c0_32] : memref<320x4xbf16, #tpu.memory_space<vmem>>, vector<256x4xbf16>
    %39 = vector.broadcast %12 : vector<256x1xbf16> to vector<256x4xbf16>
    %40 = arith.mulf %38, %39 : vector<256x4xbf16>
    %c0_33 = arith.constant 0 : index
    %c24 = arith.constant 24 : index
    %41 = vector.load %arg13[%c0_33, %c24] : memref<256x36xbf16, #tpu.memory_space<vmem>>, vector<256x4xbf16>
    tpu.vector_store %arg13[%c0_33, %c24], %40 {strides = array<i32>} : memref<256x36xbf16, #tpu.memory_space<vmem>>, vector<256x4xbf16>,
    %c48 = arith.constant 48 : index
    %c0_34 = arith.constant 0 : index
    %42 = vector.load %arg12[%c48, %c0_34] : memref<320x4xbf16, #tpu.memory_space<vmem>>, vector<256x4xbf16>
    %c0_35 = arith.constant 0 : index
    %c28 = arith.constant 28 : index
    %43 = vector.load %arg13[%c0_35, %c28] : memref<256x36xbf16, #tpu.memory_space<vmem>>, vector<256x4xbf16>
    tpu.vector_store %arg13[%c0_35, %c28], %42 {strides = array<i32>} : memref<256x36xbf16, #tpu.memory_space<vmem>>, vector<256x4xbf16>,
    %c49 = arith.constant 49 : index
    %c0_36 = arith.constant 0 : index
    %44 = vector.load %arg12[%c49, %c0_36] : memref<320x4xbf16, #tpu.memory_space<vmem>>, vector<256x4xbf16>
    %45 = vector.broadcast %13 : vector<256x1xbf16> to vector<256x4xbf16>
    %46 = arith.mulf %44, %45 : vector<256x4xbf16>
    %c0_37 = arith.constant 0 : index
    %c32_38 = arith.constant 32 : index
    %47 = vector.load %arg13[%c0_37, %c32_38] : memref<256x36xbf16, #tpu.memory_space<vmem>>, vector<256x4xbf16>
    tpu.vector_store %arg13[%c0_37, %c32_38], %46 {strides = array<i32>} : memref<256x36xbf16, #tpu.memory_space<vmem>>, vector<256x4xbf16>,
    %c0_39 = arith.constant 0 : index
    %c0_40 = arith.constant 0 : index
    %48 = vector.load %arg13[%c0_39, %c0_40] : memref<256x36xbf16, #tpu.memory_space<vmem>>, vector<256x36xbf16>
    %cst_41 = arith.constant dense<0.000000e+00> : vector<256x8xf32>
    %49 = tpu.matmul %48, %11, %cst_41 {dimension_numbers = #tpu.dot_dimension_numbers<[1], [0], [0], [1], [0, 0, 1, 1], [], []>} : vector<256x36xbf16>, vector<36x8xbf16>, vector<256x8xf32> -> vector<256x8xf32>
    %50 = arith.truncf %49 : vector<256x8xf32> to vector<256x8xbf16>
    %c0_42 = arith.constant 0 : index
    %c0_43 = arith.constant 0 : index
    %c0_44 = arith.constant 0 : index
    %51 = vector.load %arg8[%c0_42, %c0_43, %c0_44] : memref<1x256x8xbf16, #tpu.memory_space<vmem>>, vector<1x256x8xbf16>
    %52 = vector.shape_cast %51 : vector<1x256x8xbf16> to vector<256x8xbf16>
    %53 = vector.shape_cast %50 : vector<256x8xbf16> to vector<1x256x8xbf16>
    tpu.vector_store %arg8[%c0_42, %c0_43, %c0_44], %53 {strides = array<i32>} : memref<1x256x8xbf16, #tpu.memory_space<vmem>>, vector<1x256x8xbf16>,
    %cst_45 = arith.constant dense<0.000000e+00> : vector<8xf32>
    %54 = vector.multi_reduction <add>, %49, %cst_45 [0] : vector<256x8xf32> to vector<8xf32>
    %55 = vector.shape_cast %54 : vector<8xf32> to vector<1x8xf32>
    %c0_46 = arith.constant 0 : index
    %c0_47 = arith.constant 0 : index
    %c0_48 = arith.constant 0 : index
    %56 = vector.load %arg10[%c0_46, %c0_47, %c0_48] : memref<1x1x8xf32, #tpu.memory_space<vmem>>, vector<1x1x8xf32>
    %57 = vector.shape_cast %56 : vector<1x1x8xf32> to vector<1x8xf32>
    %58 = vector.shape_cast %55 : vector<1x8xf32> to vector<1x1x8xf32>
    tpu.vector_store %arg10[%c0_46, %c0_47, %c0_48], %58 {strides = array<i32>} : memref<1x1x8xf32, #tpu.memory_space<vmem>>, vector<1x1x8xf32>,
    %59 = arith.mulf %49, %49 : vector<256x8xf32>
    %cst_49 = arith.constant dense<0.000000e+00> : vector<8xf32>
    %60 = vector.multi_reduction <add>, %59, %cst_49 [0] : vector<256x8xf32> to vector<8xf32>
    %61 = vector.shape_cast %60 : vector<8xf32> to vector<1x8xf32>
    %c0_50 = arith.constant 0 : index
    %c0_51 = arith.constant 0 : index
    %c0_52 = arith.constant 0 : index
    %62 = vector.load %arg11[%c0_50, %c0_51, %c0_52] : memref<1x1x8xf32, #tpu.memory_space<vmem>>, vector<1x1x8xf32>
    %63 = vector.shape_cast %62 : vector<1x1x8xf32> to vector<1x8xf32>
    %64 = vector.shape_cast %61 : vector<1x8xf32> to vector<1x1x8xf32>
    tpu.vector_store %arg11[%c0_50, %c0_51, %c0_52], %64 {strides = array<i32>} : memref<1x1x8xf32, #tpu.memory_space<vmem>>, vector<1x1x8xf32>,
    %c0_53 = arith.constant 0 : index
    %c0_54 = arith.constant 0 : index
    %65 = vector.load %arg7[%c0_53, %c0_54] : memref<4x8xbf16, #tpu.memory_space<vmem>>, vector<4x8xbf16>
    %cst_55 = arith.constant dense<0.000000e+00> : vector<256x8xf32>
    %66 = tpu.matmul %10, %65, %cst_55 {dimension_numbers = #tpu.dot_dimension_numbers<[1], [0], [0], [1], [0, 0, 1, 1], [], []>} : vector<256x4xbf16>, vector<4x8xbf16>, vector<256x8xf32> -> vector<256x8xf32>
    %67 = arith.truncf %66 : vector<256x8xf32> to vector<256x8xbf16>
    %c0_56 = arith.constant 0 : index
    %c0_57 = arith.constant 0 : index
    %c0_58 = arith.constant 0 : index
    %68 = vector.load %arg9[%c0_56, %c0_57, %c0_58] : memref<1x256x8xbf16, #tpu.memory_space<vmem>>, vector<1x256x8xbf16>
    %69 = vector.shape_cast %68 : vector<1x256x8xbf16> to vector<256x8xbf16>
    %70 = vector.shape_cast %67 : vector<256x8xbf16> to vector<1x256x8xbf16>
    tpu.vector_store %arg9[%c0_56, %c0_57, %c0_58], %70 {strides = array<i32>} : memref<1x256x8xbf16, #tpu.memory_space<vmem>>, vector<1x256x8xbf16>,
    return
  }
  func.func @transform_0(%arg0: i32) -> (i32, i32, i32) {
    %c0_i32 = arith.constant 0 : i32
    %c0_i32_0 = arith.constant 0 : i32
    %c0_i32_1 = arith.constant 0 : i32
    return %arg0, %c0_i32, %c0_i32_0 : i32, i32, i32
  }
  func.func @transform_1(%arg0: i32) -> (i32, i32) {
    %c0_i32 = arith.constant 0 : i32
    %c0_i32_0 = arith.constant 0 : i32
    %c0_i32_1 = arith.constant 0 : i32
    return %c0_i32, %c0_i32_0 : i32, i32
  }
  func.func @transform_2(%arg0: i32) -> (i32, i32) {
    %c0_i32 = arith.constant 0 : i32
    %c0_i32_0 = arith.constant 0 : i32
    %c0_i32_1 = arith.constant 0 : i32
    return %c0_i32, %c0_i32_0 : i32, i32
  }
  func.func @transform_3(%arg0: i32) -> (i32, i32) {
    %c0_i32 = arith.constant 0 : i32
    %c0_i32_0 = arith.constant 0 : i32
    %c0_i32_1 = arith.constant 0 : i32
    return %c0_i32, %c0_i32_0 : i32, i32
  }
  func.func @transform_4(%arg0: i32) -> (i32, i32) {
    %c0_i32 = arith.constant 0 : i32
    %c0_i32_0 = arith.constant 0 : i32
    %c0_i32_1 = arith.constant 0 : i32
    return %c0_i32, %c0_i32_0 : i32, i32
  }
  func.func @transform_5(%arg0: i32) -> (i32, i32) {
    %c0_i32 = arith.constant 0 : i32
    %c0_i32_0 = arith.constant 0 : i32
    %c0_i32_1 = arith.constant 0 : i32
    return %c0_i32, %c0_i32_0 : i32, i32
  }
  func.func @transform_6(%arg0: i32) -> (i32, i32) {
    %c0_i32 = arith.constant 0 : i32
    %c0_i32_0 = arith.constant 0 : i32
    %c0_i32_1 = arith.constant 0 : i32
    return %c0_i32, %c0_i32_0 : i32, i32
  }
  func.func @transform_7(%arg0: i32) -> (i32, i32, i32) {
    %c0_i32 = arith.constant 0 : i32
    %c0_i32_0 = arith.constant 0 : i32
    %c0_i32_1 = arith.constant 0 : i32
    return %arg0, %c0_i32, %c0_i32_0 : i32, i32, i32
  }
  func.func @transform_8(%arg0: i32) -> (i32, i32, i32) {
    %c0_i32 = arith.constant 0 : i32
    %c0_i32_0 = arith.constant 0 : i32
    %c0_i32_1 = arith.constant 0 : i32
    return %arg0, %c0_i32, %c0_i32_0 : i32, i32, i32
  }
  func.func @transform_9(%arg0: i32) -> (i32, i32, i32) {
    %c0_i32 = arith.constant 0 : i32
    %c0_i32_0 = arith.constant 0 : i32
    %c0_i32_1 = arith.constant 0 : i32
    return %arg0, %c0_i32, %c0_i32_0 : i32, i32, i32
  }
  func.func @transform_10(%arg0: i32) -> (i32, i32, i32) {
    %c0_i32 = arith.constant 0 : i32
    %c0_i32_0 = arith.constant 0 : i32
    %c0_i32_1 = arith.constant 0 : i32
    return %arg0, %c0_i32, %c0_i32_0 : i32, i32, i32
  }
}

module attributes {stable_mosaic.version = 11 : i64} {
  func.func @_stage2_kernel(%arg0: i32, %arg1: memref<1x256x8xbf16, #tpu.memory_space<vmem>>, %arg2: memref<1x8xf32, #tpu.memory_space<vmem>>, %arg3: memref<1x8xf32, #tpu.memory_space<vmem>>, %arg4: memref<256x1xbf16, #tpu.memory_space<vmem>>, %arg5: memref<256x1xbf16, #tpu.memory_space<vmem>>, %arg6: memref<72x8xbf16, #tpu.memory_space<vmem>>, %arg7: memref<1x256x8xbf16, #tpu.memory_space<vmem>>, %arg8: memref<1x256x8xf32, #tpu.memory_space<vmem>>, %arg9: memref<320x8xbf16, #tpu.memory_space<vmem>>, %arg10: memref<256x72xbf16, #tpu.memory_space<vmem>>) attributes {dimension_semantics = [#tpu.dimension_semantics<parallel>], iteration_bounds = array<i64: 2>, scalar_prefetch = 0 : i64, scratch_operands = 2 : i64, tpu.core_type = #tpu.core_type<tc>, window_params = [{transform_indices = @transform_0, window_bounds = array<i64: 1, 256, 8>}, {pipeline_mode = #tpu.pipeline_mode<synchronous>, transform_indices = @transform_1, window_bounds = array<i64: 1, 8>}, {pipeline_mode = #tpu.pipeline_mode<synchronous>, transform_indices = @transform_2, window_bounds = array<i64: 1, 8>}, {pipeline_mode = #tpu.pipeline_mode<synchronous>, transform_indices = @transform_3, window_bounds = array<i64: 256, 1>}, {pipeline_mode = #tpu.pipeline_mode<synchronous>, transform_indices = @transform_4, window_bounds = array<i64: 256, 1>}, {pipeline_mode = #tpu.pipeline_mode<synchronous>, transform_indices = @transform_5, window_bounds = array<i64: 72, 8>}, {transform_indices = @transform_6, window_bounds = array<i64: 1, 256, 8>}, {transform_indices = @transform_7, window_bounds = array<i64: 1, 256, 8>}]} {
    %c0 = arith.constant 0 : index
    %c0_0 = arith.constant 0 : index
    %c0_1 = arith.constant 0 : index
    %0 = vector.load %arg1[%c0, %c0_0, %c0_1] : memref<1x256x8xbf16, #tpu.memory_space<vmem>>, vector<1x256x8xbf16>
    %1 = vector.shape_cast %0 : vector<1x256x8xbf16> to vector<256x8xbf16>
    %2 = arith.extf %1 : vector<256x8xbf16> to vector<256x8xf32>
    %c0_2 = arith.constant 0 : index
    %c0_3 = arith.constant 0 : index
    %3 = vector.load %arg2[%c0_2, %c0_3] : memref<1x8xf32, #tpu.memory_space<vmem>>, vector<1x8xf32>
    %4 = vector.broadcast %3 : vector<1x8xf32> to vector<256x8xf32>
    %5 = arith.mulf %2, %4 : vector<256x8xf32>
    %c0_4 = arith.constant 0 : index
    %c0_5 = arith.constant 0 : index
    %6 = vector.load %arg3[%c0_4, %c0_5] : memref<1x8xf32, #tpu.memory_space<vmem>>, vector<1x8xf32>
    %7 = vector.broadcast %6 : vector<1x8xf32> to vector<256x8xf32>
    %8 = arith.addf %5, %7 : vector<256x8xf32>
    %cst = arith.constant 0.000000e+00 : f32
    %9 = vector.broadcast %cst : f32 to vector<256x8xf32>
    %10 = arith.maximumf %8, %9 : vector<256x8xf32>
    %11 = arith.truncf %10 : vector<256x8xf32> to vector<256x8xbf16>
    %c0_6 = arith.constant 0 : index
    %c0_7 = arith.constant 0 : index
    %12 = vector.load %arg6[%c0_6, %c0_7] : memref<72x8xbf16, #tpu.memory_space<vmem>>, vector<72x8xbf16>
    %c0_8 = arith.constant 0 : index
    %c0_9 = arith.constant 0 : index
    %13 = vector.load %arg4[%c0_8, %c0_9] : memref<256x1xbf16, #tpu.memory_space<vmem>>, vector<256x1xbf16>
    %c0_10 = arith.constant 0 : index
    %c0_11 = arith.constant 0 : index
    %14 = vector.load %arg5[%c0_10, %c0_11] : memref<256x1xbf16, #tpu.memory_space<vmem>>, vector<256x1xbf16>
    %cst_12 = arith.constant 0.000000e+00 : bf16
    %15 = vector.broadcast %cst_12 : bf16 to vector<32x8xbf16>
    %c0_13 = arith.constant 0 : index
    %c0_14 = arith.constant 0 : index
    %16 = vector.load %arg9[%c0_13, %c0_14] : memref<320x8xbf16, #tpu.memory_space<vmem>>, vector<32x8xbf16>
    tpu.vector_store %arg9[%c0_13, %c0_14], %15 {strides = array<i32>} : memref<320x8xbf16, #tpu.memory_space<vmem>>, vector<32x8xbf16>,
    %c288 = arith.constant 288 : index
    %c0_15 = arith.constant 0 : index
    %17 = vector.load %arg9[%c288, %c0_15] : memref<320x8xbf16, #tpu.memory_space<vmem>>, vector<32x8xbf16>
    tpu.vector_store %arg9[%c288, %c0_15], %15 {strides = array<i32>} : memref<320x8xbf16, #tpu.memory_space<vmem>>, vector<32x8xbf16>,
    %c32 = arith.constant 32 : index
    %c0_16 = arith.constant 0 : index
    %18 = vector.load %arg9[%c32, %c0_16] : memref<320x8xbf16, #tpu.memory_space<vmem>>, vector<256x8xbf16>
    tpu.vector_store %arg9[%c32, %c0_16], %11 {strides = array<i32>} : memref<320x8xbf16, #tpu.memory_space<vmem>>, vector<256x8xbf16>,
    %c15 = arith.constant 15 : index
    %c0_17 = arith.constant 0 : index
    %19 = vector.load %arg9[%c15, %c0_17] : memref<320x8xbf16, #tpu.memory_space<vmem>>, vector<256x8xbf16>
    %20 = vector.broadcast %13 : vector<256x1xbf16> to vector<256x8xbf16>
    %21 = arith.mulf %19, %20 : vector<256x8xbf16>
    %c0_18 = arith.constant 0 : index
    %c0_19 = arith.constant 0 : index
    %22 = vector.load %arg10[%c0_18, %c0_19] : memref<256x72xbf16, #tpu.memory_space<vmem>>, vector<256x8xbf16>
    tpu.vector_store %arg10[%c0_18, %c0_19], %21 {strides = array<i32>} : memref<256x72xbf16, #tpu.memory_space<vmem>>, vector<256x8xbf16>,
    %c16 = arith.constant 16 : index
    %c0_20 = arith.constant 0 : index
    %23 = vector.load %arg9[%c16, %c0_20] : memref<320x8xbf16, #tpu.memory_space<vmem>>, vector<256x8xbf16>
    %c0_21 = arith.constant 0 : index
    %c8 = arith.constant 8 : index
    %24 = vector.load %arg10[%c0_21, %c8] : memref<256x72xbf16, #tpu.memory_space<vmem>>, vector<256x8xbf16>
    tpu.vector_store %arg10[%c0_21, %c8], %23 {strides = array<i32>} : memref<256x72xbf16, #tpu.memory_space<vmem>>, vector<256x8xbf16>,
    %c17 = arith.constant 17 : index
    %c0_22 = arith.constant 0 : index
    %25 = vector.load %arg9[%c17, %c0_22] : memref<320x8xbf16, #tpu.memory_space<vmem>>, vector<256x8xbf16>
    %26 = vector.broadcast %14 : vector<256x1xbf16> to vector<256x8xbf16>
    %27 = arith.mulf %25, %26 : vector<256x8xbf16>
    %c0_23 = arith.constant 0 : index
    %c16_24 = arith.constant 16 : index
    %28 = vector.load %arg10[%c0_23, %c16_24] : memref<256x72xbf16, #tpu.memory_space<vmem>>, vector<256x8xbf16>
    tpu.vector_store %arg10[%c0_23, %c16_24], %27 {strides = array<i32>} : memref<256x72xbf16, #tpu.memory_space<vmem>>, vector<256x8xbf16>,
    %c31 = arith.constant 31 : index
    %c0_25 = arith.constant 0 : index
    %29 = vector.load %arg9[%c31, %c0_25] : memref<320x8xbf16, #tpu.memory_space<vmem>>, vector<256x8xbf16>
    %30 = vector.broadcast %13 : vector<256x1xbf16> to vector<256x8xbf16>
    %31 = arith.mulf %29, %30 : vector<256x8xbf16>
    %c0_26 = arith.constant 0 : index
    %c24 = arith.constant 24 : index
    %32 = vector.load %arg10[%c0_26, %c24] : memref<256x72xbf16, #tpu.memory_space<vmem>>, vector<256x8xbf16>
    tpu.vector_store %arg10[%c0_26, %c24], %31 {strides = array<i32>} : memref<256x72xbf16, #tpu.memory_space<vmem>>, vector<256x8xbf16>,
    %c32_27 = arith.constant 32 : index
    %c0_28 = arith.constant 0 : index
    %33 = vector.load %arg9[%c32_27, %c0_28] : memref<320x8xbf16, #tpu.memory_space<vmem>>, vector<256x8xbf16>
    %c0_29 = arith.constant 0 : index
    %c32_30 = arith.constant 32 : index
    %34 = vector.load %arg10[%c0_29, %c32_30] : memref<256x72xbf16, #tpu.memory_space<vmem>>, vector<256x8xbf16>
    tpu.vector_store %arg10[%c0_29, %c32_30], %33 {strides = array<i32>} : memref<256x72xbf16, #tpu.memory_space<vmem>>, vector<256x8xbf16>,
    %c33 = arith.constant 33 : index
    %c0_31 = arith.constant 0 : index
    %35 = vector.load %arg9[%c33, %c0_31] : memref<320x8xbf16, #tpu.memory_space<vmem>>, vector<256x8xbf16>
    %36 = vector.broadcast %14 : vector<256x1xbf16> to vector<256x8xbf16>
    %37 = arith.mulf %35, %36 : vector<256x8xbf16>
    %c0_32 = arith.constant 0 : index
    %c40 = arith.constant 40 : index
    %38 = vector.load %arg10[%c0_32, %c40] : memref<256x72xbf16, #tpu.memory_space<vmem>>, vector<256x8xbf16>
    tpu.vector_store %arg10[%c0_32, %c40], %37 {strides = array<i32>} : memref<256x72xbf16, #tpu.memory_space<vmem>>, vector<256x8xbf16>,
    %c47 = arith.constant 47 : index
    %c0_33 = arith.constant 0 : index
    %39 = vector.load %arg9[%c47, %c0_33] : memref<320x8xbf16, #tpu.memory_space<vmem>>, vector<256x8xbf16>
    %40 = vector.broadcast %13 : vector<256x1xbf16> to vector<256x8xbf16>
    %41 = arith.mulf %39, %40 : vector<256x8xbf16>
    %c0_34 = arith.constant 0 : index
    %c48 = arith.constant 48 : index
    %42 = vector.load %arg10[%c0_34, %c48] : memref<256x72xbf16, #tpu.memory_space<vmem>>, vector<256x8xbf16>
    tpu.vector_store %arg10[%c0_34, %c48], %41 {strides = array<i32>} : memref<256x72xbf16, #tpu.memory_space<vmem>>, vector<256x8xbf16>,
    %c48_35 = arith.constant 48 : index
    %c0_36 = arith.constant 0 : index
    %43 = vector.load %arg9[%c48_35, %c0_36] : memref<320x8xbf16, #tpu.memory_space<vmem>>, vector<256x8xbf16>
    %c0_37 = arith.constant 0 : index
    %c56 = arith.constant 56 : index
    %44 = vector.load %arg10[%c0_37, %c56] : memref<256x72xbf16, #tpu.memory_space<vmem>>, vector<256x8xbf16>
    tpu.vector_store %arg10[%c0_37, %c56], %43 {strides = array<i32>} : memref<256x72xbf16, #tpu.memory_space<vmem>>, vector<256x8xbf16>,
    %c49 = arith.constant 49 : index
    %c0_38 = arith.constant 0 : index
    %45 = vector.load %arg9[%c49, %c0_38] : memref<320x8xbf16, #tpu.memory_space<vmem>>, vector<256x8xbf16>
    %46 = vector.broadcast %14 : vector<256x1xbf16> to vector<256x8xbf16>
    %47 = arith.mulf %45, %46 : vector<256x8xbf16>
    %c0_39 = arith.constant 0 : index
    %c64 = arith.constant 64 : index
    %48 = vector.load %arg10[%c0_39, %c64] : memref<256x72xbf16, #tpu.memory_space<vmem>>, vector<256x8xbf16>
    tpu.vector_store %arg10[%c0_39, %c64], %47 {strides = array<i32>} : memref<256x72xbf16, #tpu.memory_space<vmem>>, vector<256x8xbf16>,
    %c0_40 = arith.constant 0 : index
    %c0_41 = arith.constant 0 : index
    %49 = vector.load %arg10[%c0_40, %c0_41] : memref<256x72xbf16, #tpu.memory_space<vmem>>, vector<256x72xbf16>
    %cst_42 = arith.constant dense<0.000000e+00> : vector<256x8xf32>
    %50 = tpu.matmul %49, %12, %cst_42 {dimension_numbers = #tpu.dot_dimension_numbers<[1], [0], [0], [1], [0, 0, 1, 1], [], []>} : vector<256x72xbf16>, vector<72x8xbf16>, vector<256x8xf32> -> vector<256x8xf32>
    %c0_43 = arith.constant 0 : index
    %c0_44 = arith.constant 0 : index
    %c0_45 = arith.constant 0 : index
    %51 = vector.load %arg7[%c0_43, %c0_44, %c0_45] : memref<1x256x8xbf16, #tpu.memory_space<vmem>>, vector<1x256x8xbf16>
    %52 = vector.shape_cast %51 : vector<1x256x8xbf16> to vector<256x8xbf16>
    %53 = arith.extf %52 : vector<256x8xbf16> to vector<256x8xf32>
    %54 = arith.addf %50, %53 : vector<256x8xf32>
    %c0_46 = arith.constant 0 : index
    %c0_47 = arith.constant 0 : index
    %c0_48 = arith.constant 0 : index
    %55 = vector.load %arg8[%c0_46, %c0_47, %c0_48] : memref<1x256x8xf32, #tpu.memory_space<vmem>>, vector<1x256x8xf32>
    %56 = vector.shape_cast %55 : vector<1x256x8xf32> to vector<256x8xf32>
    %57 = vector.shape_cast %54 : vector<256x8xf32> to vector<1x256x8xf32>
    tpu.vector_store %arg8[%c0_46, %c0_47, %c0_48], %57 {strides = array<i32>} : memref<1x256x8xf32, #tpu.memory_space<vmem>>, vector<1x256x8xf32>,
    return
  }
  func.func @transform_0(%arg0: i32) -> (i32, i32, i32) {
    %c0_i32 = arith.constant 0 : i32
    %c0_i32_0 = arith.constant 0 : i32
    %c0_i32_1 = arith.constant 0 : i32
    return %arg0, %c0_i32, %c0_i32_0 : i32, i32, i32
  }
  func.func @transform_1(%arg0: i32) -> (i32, i32) {
    %c0_i32 = arith.constant 0 : i32
    %c0_i32_0 = arith.constant 0 : i32
    %c0_i32_1 = arith.constant 0 : i32
    return %c0_i32, %c0_i32_0 : i32, i32
  }
  func.func @transform_2(%arg0: i32) -> (i32, i32) {
    %c0_i32 = arith.constant 0 : i32
    %c0_i32_0 = arith.constant 0 : i32
    %c0_i32_1 = arith.constant 0 : i32
    return %c0_i32, %c0_i32_0 : i32, i32
  }
  func.func @transform_3(%arg0: i32) -> (i32, i32) {
    %c0_i32 = arith.constant 0 : i32
    %c0_i32_0 = arith.constant 0 : i32
    %c0_i32_1 = arith.constant 0 : i32
    return %c0_i32, %c0_i32_0 : i32, i32
  }
  func.func @transform_4(%arg0: i32) -> (i32, i32) {
    %c0_i32 = arith.constant 0 : i32
    %c0_i32_0 = arith.constant 0 : i32
    %c0_i32_1 = arith.constant 0 : i32
    return %c0_i32, %c0_i32_0 : i32, i32
  }
  func.func @transform_5(%arg0: i32) -> (i32, i32) {
    %c0_i32 = arith.constant 0 : i32
    %c0_i32_0 = arith.constant 0 : i32
    %c0_i32_1 = arith.constant 0 : i32
    return %c0_i32, %c0_i32_0 : i32, i32
  }
  func.func @transform_6(%arg0: i32) -> (i32, i32, i32) {
    %c0_i32 = arith.constant 0 : i32
    %c0_i32_0 = arith.constant 0 : i32
    %c0_i32_1 = arith.constant 0 : i32
    return %arg0, %c0_i32, %c0_i32_0 : i32, i32, i32
  }
  func.func @transform_7(%arg0: i32) -> (i32, i32, i32) {
    %c0_i32 = arith.constant 0 : i32
    %c0_i32_0 = arith.constant 0 : i32
    %c0_i32_1 = arith.constant 0 : i32
    return %arg0, %c0_i32, %c0_i32_0 : i32, i32, i32
  }
}

</mosaic_0001>

<bundles_post_ra>
// kernel: preact_block_forward.3
= control target key start
LH: loop header
LB: loop body
LE: loop exit
PB: predicated region body
PF: predicated region fallthrough
CT: control target
= control target key end

     0   :  { %s7049_s0 = inlined_call_operand.hbm [shape: bf16[2,256,8], index: 0, kind: input, shape index: {}]   ;;  %s7050_s1 = inlined_call_operand.hbm [shape: f32[1,8], index: 1, kind: input, shape index: {}]   ;;  %s7051_s2 = inlined_call_operand.hbm [shape: f32[1,8], index: 2, kind: input, shape index: {}]   ;;  %s7052_s3 = inlined_call_operand.hbm [shape: bf16[256,1], index: 3, kind: input, shape index: {}]   ;;  %s7053_s4 = inlined_call_operand.hbm [shape: bf16[256,1], index: 4, kind: input, shape index: {}]   ;;  %s7054_s5 = inlined_call_operand.hbm [shape: bf16[72,8], index: 5, kind: input, shape index: {}]   ;;  %s7055_s6 = inlined_call_operand.hbm [shape: bf16[2,256,8], index: 6, kind: input, shape index: {}]   ;;  %s7056_s7 = inlined_call_operand.hbm [shape: f32[2,256,8], index: 7, kind: output, shape index: {}]  }
   0x1   :  { %7130 = sst [smem:[#allocation69_spill]] %s7049_s0 }
   0x2   :  { %7131 = sst [smem:[#allocation70_spill]] %s7050_s1 }
   0x3   :  { %7132 = sst [smem:[#allocation71_spill]] %s7052_s3 }
   0x4   :  { %12 = vsyncpa [#allocation5], 0 }
   0x5   :  { %14 = vsyncpa [#allocation5 + $0x1], 0 }
   0x6   :  { %15 = vsyncpa [#allocation8], 0 }
   0x7   :  { %16 = vsyncpa [#allocation11], 0 }
   0x8   :  { %17 = vsyncpa [#allocation14], 0 }
   0x9   :  { %18 = vsyncpa [#allocation6], 0 }
   0xa   :  { %20 = vsyncpa [#allocation6 + $0x1], 0  ;;  %s4847_s24 = smov 0   ;;  %s4849_s25 = smov 0  }
   0xb   :  { %s4851_s26 = smov 0   ;;  %s4853_s27 = smov 0  }
   0xc LB: > { %7133 = sst [smem:[#allocation23_spill]] %s4772_s24  ;;  %s4786_s28 = smov [#allocation7]   ;;  %s4784_s27 = sphi %s4853_s27, %s7313_s27   ;;  %s4780_s26 = sphi %s4851_s26, %s7315_s26   ;;  %s4776_s25 = sphi %s4849_s25, %s7317_s25   ;;  %s4772_s24 = sphi %s4847_s24, %s7316_s24  }
   0xd   : > { %7134 = sst [smem:[#allocation24_spill]] %s4780_s26  ;;  %s227_s29 = sshll.u32 %s4786_s28, 4  ;;  %s228_s29 = int_to_ptr.vmem [resolvable:$true] %s227_s29 }
   0xe   : > { %7135 = sst [smem:[#allocation25_spill]] %s4784_s27  ;;  %s4868_s30 = sadd.s32 4294967295, %s4784_s27  }
   0xf   : > { %p4059_p0 = scmp.ge.s32.totalorder %s4784_s27, 1  ;;  %p7057_p1 = scmp.eq.s32.totalorder %s4868_s30, 0 }
  0x10   : > { %p214_p2 = scmp.lt.s32.totalorder %s4784_s27, 3  ;;  %s4787_s9 = smov [#allocation10]  }
  0x11   : > { %s248_s10 = sshll.u32 %s4787_s9, 4  ;;  %s7138_s1 = sld [smem:[#allocation70_spill]]  ;;  %s4880_s10 = int_to_ptr.vmem [resolvable:$true] %s248_s10 }
  0x12   : > { %p4873_p3 = pnand %p4059_p0, %p214_p2 }
  0x14   : > { %s7136_s8 = scalar_select %p4873_p3, 1, 0 }
  0x15   : > { %p4403_p5 = pneg %p4873_p3 }
  0x17   : > { %p4884_p6 = pnand %p4403_p5, %p7057_p1  ;;  %s4502_s14 = scalar_lea.hbm %s7138_s1, 16 }
  0x18   : > { %p4503_p7 = scmp.ne.s32.totalorder %s7138_s1, %s4502_s14  ;;  %p4509_p11 = scmp.lt.u32.totalorder %s4502_s14, %s7138_s1 }
  0x19   : > { %s7137_s11 = scalar_select %p4884_p6, 1, 0 }
  0x1a   : > { %p4896_p8 = pneg %p4884_p6 }
  0x1c   : > { %p4505_p9 = pnand %p4896_p8, %p4503_p7 }
  0x1e   : > { %p4506_p10 = pneg %p4505_p9 }
  0x20   : > { %p4511_p12 = pnand %p4509_p11, %p4506_p10 }
  0x22   : > { %4514 = shalt.err (!%p4511_p12)
}
  0x23   : > { %s4515_s20 = scalar_lea.vmem %s228_s29, 16  ;;  %s4522_s21 = scalar_lea.vmem %s228_s29, 32 }
  0x24   : > { %p4516_p13 = scmp.ne.s32.totalorder %s228_s29, %s4515_s20  ;;  %p4523_p5 = scmp.lt.s32.totalorder %s228_s29, %s228_s29 }
  0x25   : > { %p4524_p4 = scmp.lt.s32.totalorder %s4522_s21, %s4515_s20 }
  0x26   : > { %p4518_p0 = pnand %p4516_p13, %p4896_p8 }
  0x27   : > { %p4525_p1 = por %p4524_p4, %p4523_p5 }
  0x28   : > { %p4519_p2 = pneg %p4518_p0 }
  0x2a   : > { %p4526_p3 = pnand %p4525_p1, %p4519_p2 }
  0x2c   : > { %4529 = shalt.err (!%p4526_p3)
}
  0x2d   : > { %4406 = dma.hbm_to_vmem [thread:$0]  (!%p4884_p6), %s7138_s1, 16, %s228_s29, [#allocation8]  }
  0x2e   : > { %s7140_s3 = sld [smem:[#allocation71_spill]] }
  0x34   : > { %s4530_s12 = scalar_lea.hbm %s7140_s3, 2048 }
  0x35   : > { %p4531_p7 = scmp.ne.s32.totalorder %s7140_s3, %s4530_s12  ;;  %p4537_p1 = scmp.lt.u32.totalorder %s4530_s12, %s7140_s3 }
  0x37   : > { %p4533_p9 = pnand %p4531_p7, %p4896_p8 }
  0x39   : > { %p4534_p4 = pneg %p4533_p9 }
  0x3b   : > { %p4539_p3 = pnand %p4537_p1, %p4534_p4 }
  0x3d   : > { %4542 = shalt.err (!%p4539_p3)
}
  0x3e   : > { %s4543_s29 = scalar_lea.vmem %s4880_s10, 2048  ;;  %p4551_p13 = scmp.lt.s32.totalorder %s4880_s10, %s4880_s10 }
  0x3f   : > { %p4544_p10 = scmp.ne.s32.totalorder %s4880_s10, %s4543_s29  ;;  %p4552_p0 = scmp.lt.s32.totalorder %s4543_s29, %s4543_s29 }
  0x41   : > { %p4546_p11 = pnand %p4544_p10, %p4896_p8  ;;  %p4553_p2 = por %p4552_p0, %p4551_p13 }
  0x43   : > { %p4547_p12 = pneg %p4546_p11 }
  0x45   : > { %p4554_p5 = pnand %p4553_p2, %p4547_p12 }
  0x47   : > { %4557 = shalt.err (!%p4554_p5)
}
  0x48   : > { %s7059_s18 = smov 64   ;;  %s7061_s19 = smov 4  }
  0x49   : > { %4412 = dma.hbm_to_vmem [thread:$0]  (!%p4884_p6), %s7140_s3, 2048, %s4880_s10, [#allocation11], %s7059_s18, %s7059_s18, %s7061_s19  }
  0x4a   : > { %s4058_s22 = sadd.s32 4294967294, %s4784_s27   ;;  %s4940_s23 = sadd.s32 1, %s4784_s27  }
  0x4b   : > { %7141 = sst [smem:[#allocation26_spill]] %s4940_s23  ;;  %s30_s28 = ssub.s32 %s4784_s27, %s4940_s23 }
  0x4c   : > { %s33_s9 = sadd.s32 1, %s4780_s26  ;;  %p31_p7 = scmp.eq.s32.totalorder %s30_s28, 0 }
  0x4d   : > { %p40_p9 = scmp.ne.s32.totalorder %s4780_s26, %s4776_s25  ;;  %p41_p4 = scmp.eq.s32.totalorder %s4784_s27, 0 }
  0x4e   : > { %p46_p1 = scmp.ne.s32.totalorder %s4776_s25, %s4772_s24  ;;  %p7144_p10 = scmp.eq.s32.totalorder %s4868_s30, 0 }
  0x4f   : > { %s4951_s12 = scalar_select %p31_p7, %s4780_s26, %s33_s9  }
  0x50   : > { %p4953_p3 = por %p41_p4, %p40_p9  ;;  %p4959_p11 = por %p7144_p10, %p46_p1 }
  0x51   : > { %7142 = sst [smem:[#allocation27_spill]] %s4951_s12  ;;  %p201_p12 = scmp.eq.s32.totalorder %s4868_s30, 1 }
  0x52   : > { %s7145_s10 = scalar_select %p4959_p11, 1, 0 }
  0x53   : > { %p207_p13 = scmp.eq.s32.totalorder %s4058_s22, 1  ;;  %p4435_p0 = scmp.lt.s32.totalorder %s4784_s27, 2 }
  0x54   : > { %s288_s14 = sand.u32 1, %s4784_s27   ;;  %p4966_p2 = por %p201_p12, %p40_p9 }
  0x55   : > { %p4970_p5 = por %p207_p13, %p46_p1  ;;  %s290_s29 = sand.u32 1, %s4780_s26  }
  0x56   : > { %s7146_s15 = scalar_select %p4966_p2, 1, 0 }
  0x57   : > { %s7147_s16 = scalar_select %p4970_p5, 1, 0 }
  0x58   : > { %s4975_s20 = sshll.u32 %s290_s29, 7  ;;  %s4141_s21 = sshll.u32 %s4784_s27, 11 }
  0x59   : > { %7148 = sst [smem:[#allocation28_spill]] %s7147_s16  ;;  %s292_s22 = scalar_lea.vmem [#allocation4], %s4975_s20 }
  0x5a   : > { %s7149_s0 = sld [smem:[#allocation69_spill]]  ;;  %s299_s19 = sshll.u32 %s292_s22, 4  ;;  %s4990_s19 = int_to_ptr.vmem [resolvable:$true] %s299_s19 }
  0x5b   : > { %p4986_p7 = pnand %p4435_p0, %p4953_p3  ;;  %s4995_s28 = scalar_lea.hbm %s7055_s6, %s4141_s21 }
  0x5c   : > { %s4997_s9 = scalar_lea.sflag [#allocation5], %s288_s14 }
  0x5d   : > { %s7150_s1 = scalar_select %p4986_p7, 1, 0 }
  0x5e   : > { %p7072_p4 = pneg %p4986_p7 }
  0x60   : > { %s4981_s18 = scalar_lea.hbm %s7149_s0, %s4141_s21  ;;  %s4563_s26 = scalar_lea.hbm %s7149_s0, 4096 }
  0x61   : > { %s4558_s12 = scalar_lea.hbm %s4981_s18, 2048  ;;  %p4564_p10 = scmp.lt.u32.totalorder %s4981_s18, %s7149_s0 }
  0x62   : > { %p4559_p9 = scmp.ne.s32.totalorder %s4981_s18, %s4558_s12  ;;  %p4565_p12 = scmp.lt.u32.totalorder %s4563_s26, %s4558_s12 }
  0x63   : > { %p4567_p0 = scmp.lt.u32.totalorder %s4558_s12, %s4981_s18 }
  0x64   : > { %p4561_p1 = pnand %p7072_p4, %p4559_p9  ;;  %p4566_p13 = por %p4565_p12, %p4564_p10 }
  0x66   : > { %p4562_p3 = pneg %p4561_p1  ;;  %p4568_p5 = por %p4567_p0, %p4566_p13 }
  0x68   : > { %p4569_p2 = pnand %p4568_p5, %p4562_p3 }
  0x6a   : > { %4572 = shalt.err (!%p4569_p2)
}
  0x6b   : > { %s4573_s3 = scalar_lea.vmem %s4990_s19, 2048  ;;  %s4790_s14 = smov [#allocation4]  }
  0x6c   : > { %p4574_p9 = scmp.ne.s32.totalorder %s4990_s19, %s4573_s3  ;;  %s4578_s21 = sshll.u32 %s4790_s14, 4  ;;  %s4579_s21 = int_to_ptr.vmem [resolvable:$false] %s4578_s21 }
  0x6d   : > { %s4580_s27 = scalar_lea.vmem %s4579_s21, 4096  ;;  %p4581_p6 = scmp.lt.s32.totalorder %s4990_s19, %s4579_s21 }
  0x6e   : > { %p4576_p1 = pnand %p4574_p9, %p7072_p4  ;;  %p4582_p10 = scmp.lt.s32.totalorder %s4580_s27, %s4573_s3 }
  0x70   : > { %p4577_p11 = pneg %p4576_p1  ;;  %p4583_p12 = por %p4582_p10, %p4581_p6 }
  0x72   : > { %p4584_p13 = pnand %p4583_p12, %p4577_p11 }
  0x74   : > { %4587 = shalt.err (!%p4584_p13)
}
  0x75   : > { %s7151_s26 = smov 4   ;;  %s7152_s23 = smov 64  }
  0x76   : > { %4422 = dma.hbm_to_vmem [thread:$0]  (!%p4986_p7), %s4981_s18, 2048, %s4990_s19, %s4997_s9, %s7152_s23, %s7152_s23, %s7151_s26  }
  0x77   : > { %s313_s12 = scalar_lea.vmem [#allocation15], %s4975_s20  ;;  %s4791_s13 = smov [#allocation9]  }
  0x78   : > { %s320_s29 = sshll.u32 %s313_s12, 4  ;;  %s238_s22 = sshll.u32 %s4791_s13, 4  ;;  %s5029_s29 = int_to_ptr.vmem [resolvable:$true] %s320_s29  ;;  %s239_s22 = int_to_ptr.vmem [resolvable:$true] %s238_s22 }
  0x79   : > { %s4588_s21 = scalar_lea.hbm %s7051_s2, 16 }
  0x7a   : > { %p4589_p6 = scmp.ne.s32.totalorder %s7051_s2, %s4588_s21  ;;  %p4595_p5 = scmp.lt.u32.totalorder %s4588_s21, %s7051_s2 }
  0x7c   : > { %p4591_p11 = pnand %p4589_p6, %p4896_p8 }
  0x7e   : > { %p4592_p2 = pneg %p4591_p11 }
  0x80   : > { %p4597_p3 = pnand %p4595_p5, %p4592_p2 }
  0x82   : > { %4600 = shalt.err (!%p4597_p3)
}
  0x83   : > { %s4601_s19 = scalar_lea.vmem %s239_s22, 16  ;;  %s4608_s20 = scalar_lea.vmem %s239_s22, 32 }
  0x84   : > { %p4602_p0 = scmp.ne.s32.totalorder %s239_s22, %s4601_s19  ;;  %p4609_p10 = scmp.lt.s32.totalorder %s239_s22, %s239_s22 }
  0x85   : > { %p4610_p12 = scmp.lt.s32.totalorder %s4608_s20, %s4601_s19 }
  0x86   : > { %p4604_p9 = pnand %p4602_p0, %p4896_p8 }
  0x87   : > { %p4611_p13 = por %p4610_p12, %p4609_p10 }
  0x88   : > { %p4605_p1 = pneg %p4604_p9 }
  0x8a   : > { %p4612_p4 = pnand %p4611_p13, %p4605_p1 }
  0x8c   : > { %4615 = shalt.err (!%p4612_p4)
}
  0x8d   : > { %p7153_p6 = scmp.ne.s32.totalorder %s7137_s11, 0  ;;  %s4792_s16 = smov [#allocation12]  }
  0x8e   : > { %s261_s13 = sshll.u32 %s4792_s16, 4  ;;  %s4793_s3 = smov [#allocation13]   ;;  %s262_s13 = int_to_ptr.vmem [resolvable:$true] %s261_s13 }
  0x8f   : > { %4409 = dma.hbm_to_vmem [thread:$0]  (!%p7153_p6), %s7051_s2, 16, %s239_s22, [#allocation8]  }
  0x90   : > { %s274_s14 = sshll.u32 %s4793_s3, 4  ;;  %s4616_s18 = scalar_lea.hbm %s7053_s4, 2048  ;;  %s275_s14 = int_to_ptr.vmem [resolvable:$true] %s274_s14 }
  0x91   : > { %p4617_p4 = scmp.ne.s32.totalorder %s7053_s4, %s4616_s18  ;;  %p4623_p5 = scmp.lt.u32.totalorder %s4616_s18, %s7053_s4 }
  0x93   : > { %p4619_p11 = pnand %p4617_p4, %p4896_p8 }
  0x95   : > { %p4620_p2 = pneg %p4619_p11 }
  0x97   : > { %p4625_p3 = pnand %p4623_p5, %p4620_p2 }
  0x99   : > { %4628 = shalt.err (!%p4625_p3)
}
  0x9a   : > { %s4629_s22 = scalar_lea.vmem %s262_s13, 2048  ;;  %p4637_p10 = scmp.lt.s32.totalorder %s262_s13, %s262_s13 }
  0x9b   : > { %p4630_p0 = scmp.ne.s32.totalorder %s262_s13, %s4629_s22  ;;  %p4638_p12 = scmp.lt.s32.totalorder %s4629_s22, %s4629_s22 }
  0x9d   : > { %p4632_p9 = pnand %p4630_p0, %p4896_p8  ;;  %p4639_p13 = por %p4638_p12, %p4637_p10 }
  0x9f   : > { %p4633_p1 = pneg %p4632_p9 }
  0xa1   : > { %p4640_p7 = pnand %p4639_p13, %p4633_p1 }
  0xa3   : > { %4643 = shalt.err (!%p4640_p7)
}
  0xa4   : > { %4415 = dma.hbm_to_vmem [thread:$0]  (!%p7153_p6), %s7053_s4, 2048, %s262_s13, [#allocation11], %s7152_s23, %s7152_s23, %s7151_s26  }
  0xa5   : > { %s4644_s21 = scalar_lea.hbm %s7054_s5, 576 }
  0xa6   : > { %p4645_p4 = scmp.ne.s32.totalorder %s7054_s5, %s4644_s21  ;;  %p4651_p2 = scmp.lt.u32.totalorder %s4644_s21, %s7054_s5 }
  0xa8   : > { %p4647_p7 = pnand %p4645_p4, %p4896_p8 }
  0xaa   : > { %p4648_p11 = pneg %p4647_p7 }
  0xac   : > { %p4653_p5 = pnand %p4651_p2, %p4648_p11 }
  0xae   : > { %4656 = shalt.err (!%p4653_p5)
}
  0xaf   : > { %s4657_s0 = scalar_lea.vmem %s275_s14, 576  ;;  %p4665_p1 = scmp.lt.s32.totalorder %s275_s14, %s275_s14 }
  0xb0   : > { %p4658_p3 = scmp.ne.s32.totalorder %s275_s14, %s4657_s0  ;;  %p4666_p10 = scmp.lt.s32.totalorder %s4657_s0, %s4657_s0 }
  0xb2   : > { %p4660_p0 = pnand %p4658_p3, %p4896_p8  ;;  %p4667_p12 = por %p4666_p10, %p4665_p1 }
  0xb4   : > { %p4661_p9 = pneg %p4660_p0 }
  0xb6   : > { %p4668_p13 = pnand %p4667_p12, %p4661_p9 }
  0xb8   : > { %4671 = shalt.err (!%p4668_p13)
}
  0xb9   : > { %4418 = dma.hbm_to_vmem [thread:$0]  (!%p7153_p6), %s7054_s5, 576, %s275_s14, [#allocation14], %s7152_s23, %s7152_s23, %s7151_s26  }
  0xba   : > { %s4672_s17 = scalar_lea.hbm %s4995_s28, 2048  ;;  %p7154_p4 = scmp.ne.s32.totalorder %s7150_s1, 0 }
  0xbb   : > { %p4673_p8 = scmp.ne.s32.totalorder %s4995_s28, %s4672_s17  ;;  %s4677_s12 = scalar_lea.hbm %s7055_s6, 4096 }
  0xbc   : > { %p7155_p7 = pneg %p7154_p4  ;;  %p4678_p5 = scmp.lt.u32.totalorder %s4995_s28, %s7055_s6 }
  0xbd   : > { %p4679_p3 = scmp.lt.u32.totalorder %s4677_s12, %s4672_s17  ;;  %p4681_p9 = scmp.lt.u32.totalorder %s4672_s17, %s4995_s28 }
  0xbe   : > { %p4675_p11 = pnand %p4673_p8, %p7155_p7 }
  0xbf   : > { %p4680_p0 = por %p4679_p3, %p4678_p5 }
  0xc0   : > { %p4676_p2 = pneg %p4675_p11 }
  0xc1   : > { %p4682_p1 = por %p4681_p9, %p4680_p0 }
  0xc3   : > { %p4683_p10 = pnand %p4682_p1, %p4676_p2 }
  0xc5   : > { %4686 = shalt.err (!%p4683_p10)
}
  0xc6   : > { %s4687_s14 = scalar_lea.vmem %s5029_s29, 2048  ;;  %p7156_p12 = pmov %p7155_p7 }
  0xc7   : > { %p4688_p6 = scmp.ne.s32.totalorder %s5029_s29, %s4687_s14  ;;  %s4794_s21 = smov [#allocation15]  }
  0xc8   : > { %s4692_s27 = sshll.u32 %s4794_s21, 4  ;;  %s4693_s27 = int_to_ptr.vmem [resolvable:$false] %s4692_s27 }
  0xc9   : > { %p4690_p13 = pnand %p4688_p6, %p7156_p12  ;;  %s4694_s18 = scalar_lea.vmem %s4693_s27, 4096 }
  0xca   : > { %p4695_p7 = scmp.lt.s32.totalorder %s5029_s29, %s4693_s27  ;;  %p4696_p11 = scmp.lt.s32.totalorder %s4694_s18, %s4687_s14 }
  0xcb   : > { %p4691_p8 = pneg %p4690_p13 }
  0xcc   : > { %p4697_p5 = por %p4696_p11, %p4695_p7 }
  0xce   : > { %p4698_p3 = pnand %p4697_p5, %p4691_p8 }
  0xd0   : > { %4701 = shalt.err (!%p4698_p3)
}
  0xd1   : > { %4425 = dma.hbm_to_vmem [thread:$0]  (!%p7154_p4), %s4995_s28, 2048, %s5029_s29, %s4997_s9, %s7152_s23, %s7152_s23, %s7151_s26  }
  0xd2   : > { %p7157_p2 = scmp.ne.s32.totalorder %s7136_s8, 0 }
  0xd4   : > { %332 = sbr.rel (%p7157_p2) target bundleno = 1051 (0x41b), region = 48 }
  0xdb   : > { %s334_s19 = sand.u32 1, %s4868_s30   ;;  %s5122_s20 = sand.u32 1, %s4776_s25  }
  0xdc   : > { %s4073_s0 = sshll.u32 %s5122_s20, 7  ;;  %s335_s13 = scalar_lea.sflag [#allocation5], %s334_s19 }
  0xdd   : > { %s5125_s1 = scalar_lea.vmem [#allocation4], %s4073_s0  ;;  %p7158_p0 = scmp.ne.s32.totalorder %s7145_s10, 0 }
  0xdf   : > { %4747 = dma.done.wait (%p7158_p0), %s335_s13, 2048  }
  0xe0   : > { %4749 = vsyncadd (%p7158_p0), %s335_s13, 4294965248  ;;  %p7159_p4 = scmp.eq.s32.totalorder %s4868_s30, 0 }
  0xe2   : > { %4751 = dma.done.wait (%p7159_p4), [#allocation8], 32   ;;  %p7160_p9 = pmov %p7159_p4 }
  0xe3   : > { %p7161_p1 = pmov %p7159_p4 }
  0xe4   : > { %4753 = vsyncadd (%p7160_p9), [#allocation8], 4294967264 }
  0xe5   : > { %4755 = dma.done.wait (%p7161_p1), [#allocation11], 4096   ;;  %p7162_p10 = pmov %p7161_p1 }
  0xe6   : > { %p7163_p6 = pmov %p7161_p1 }
  0xe7   : > { %4757 = vsyncadd (%p7162_p10), [#allocation11], 4294963200 }
  0xe8   : > { %4759 = dma.done.wait (%p7163_p6), [#allocation14], 576   ;;  %p7164_p12 = pmov %p7161_p1 }
  0xe9   : > { %s5143_s8 = scalar_lea.vmem [#allocation15], %s4073_s0 }
  0xea   : > { %4761 = vsyncadd (%p7164_p12), [#allocation14], 4294966720 }
  0xeb   : > { %4763 = dma.done.wait (%p7158_p0), %s335_s13, 2048  }
  0xec   : > { %4765 = vsyncadd (%p7158_p0), %s335_s13, 4294965248  ;;  %vm667_vm0 = vcmask 64512   ;;  %v4795_v0 = vmov 0   ;;  %v605_v1 = vld [vmem:[#allocation10 + $0x8] sm:$0xf]  ;;  %v4145_v15 = vld [vmem:[%s5125_s1] sm:$0xff]  }
  0xed   : > { %4493 = vset.pattern.permute.xlu1 %v4795_v0  ;;  %668 = vst.msk [vmem:[#allocation2] sm:$0xff] %vm667_vm0, %v4795_v0  ;;  %669 = vst.msk [vmem:[#allocation2 + $0x8] sm:$0xff] %vm667_vm0, %v4795_v0  ;;  %4492 = vset.pattern.permute.xlu0 %v4795_v0  ;;  %v603_v2 = vld [vmem:[#allocation10] sm:$0xf]  ;;  %v606_v3 = vld [vmem:[#allocation10 + $0xc] sm:$0xf]  ;;  %v4146_v18 = vunpack.c.l.bf16 %v4145_v15  ;;  %v4147_v19 = vunpack.c.h.bf16 %v4145_v15 }
  0xee   : > { %670 = vst.msk [vmem:[#allocation2 + $0x90] sm:$0xff] %vm667_vm0, %v4795_v0  ;;  %671 = vst.msk [vmem:[#allocation2 + $0x98] sm:$0xff] %vm667_vm0, %v4795_v0  ;;  %731 = vperm.xlu1 %4493, %v605_v1   ;;  %707 = vperm.xlu0 %4492, %v603_v2   ;;  %v604_v4 = vld [vmem:[#allocation10 + $0x4] sm:$0xf]  ;;  %v608_v5 = vld [vmem:[#allocation10 + $0x14] sm:$0xf] }
  0xef   : > { %v607_v6 = vld [vmem:[#allocation10 + $0x10] sm:$0xf]  ;;  %v610_v7 = vld [vmem:[#allocation10 + $0x1c] sm:$0xf]  ;;  %v609_v8 = vld [vmem:[#allocation10 + $0x18] sm:$0xf] }
  0xf0   : > { %v612_v9 = vld [vmem:[#allocation10 + $0x24] sm:$0xf]  ;;  %v611_v10 = vld [vmem:[#allocation10 + $0x20] sm:$0xf]  ;;  %v614_v11 = vld [vmem:[#allocation10 + $0x2c] sm:$0xf] }
  0xf1   : > { %v613_v12 = vld [vmem:[#allocation10 + $0x28] sm:$0xf]  ;;  %v616_v13 = vld [vmem:[#allocation10 + $0x34] sm:$0xf]  ;;  %v615_v14 = vld [vmem:[#allocation10 + $0x30] sm:$0xf] }
  0xf2   : > { %743 = vperm.xlu1 %4493, %v606_v3   ;;  %719 = vperm.xlu0 %4492, %v604_v4   ;;  %v5154_v16 = vld [vmem:[#allocation7] ss:$0 sm:$0xff]  ;;  %v4272_v17 = vld [vmem:[%s5125_s1 + $0x8] sm:$0xff]   ;;  %v4273_v22 = vld [vmem:[%s5125_s1 + $0x10] sm:$0xff]   ;;  %s4796_s10 = smov 8   ;;  %s4797_s28 = smov 32  }
  0xf3   : > { %v4150_v20 = vunpack.c.l.bf16 %v4272_v17  ;;  %v4151_v21 = vunpack.c.h.bf16 %v4272_v17  ;;  %v4274_v23 = vld [vmem:[%s5125_s1 + $0x18] sm:$0xff]   ;;  %v5159_v24 = vld [vmem:[#allocation9] ss:$0 sm:$0xff]  ;;  %v4154_v25 = vunpack.c.l.bf16 %v4273_v22  ;;  %v4155_v26 = vunpack.c.h.bf16 %v4273_v22  ;;  %v620_v44 = vld [vmem:[#allocation10 + $0x44] sm:$0xf]  ;;  %s4799_s9 = smov 16  }
  0xf4   : > { %v4158_v27 = vunpack.c.l.bf16 %v4274_v23  ;;  %v4159_v28 = vunpack.c.h.bf16 %v4274_v23  ;;  %v4275_v29 = vld [vmem:[%s5125_s1 + $0x20] sm:$0xff]   ;;  %v617_v31 = vld [vmem:[#allocation10 + $0x38] sm:$0xf]  ;;  %v475_v32 = vmul.f32 %v4146_v18, %v5154_v16  ;;  %v476_v33 = vmul.f32 %v4147_v19, %v5154_v16  ;;  %v4276_v54 = vld [vmem:[%s5125_s1 + $0x28] sm:$0xff]   ;;  %s4800_s26 = smov 24   ;;  %s4801_s23 = smov 40  }
  0xf5   : > { %v618_v30 = vld [vmem:[#allocation10 + $0x3c] sm:$0xf]  ;;  %v477_v34 = vmul.f32 %v4150_v20, %v5154_v16  ;;  %v4162_v35 = vunpack.c.l.bf16 %v4275_v29  ;;  %v478_v36 = vmul.f32 %v4151_v21, %v5154_v16  ;;  %v479_v37 = vmul.f32 %v4154_v25, %v5154_v16  ;;  %v619_v49 = vld [vmem:[#allocation10 + $0x40] sm:$0xf]  ;;  %v4277_v59 = vld [vmem:[%s5125_s1 + $0x30] sm:$0xff]   ;;  %s4802_s29 = smov 48  }
  0xf6   : > { %767 = vperm.xlu1 %4493, %v608_v5   ;;  %755 = vperm.xlu0 %4492, %v607_v6   ;;  %v480_v38 = vmul.f32 %v4155_v26, %v5154_v16  ;;  %v481_v39 = vmul.f32 %v4158_v27, %v5154_v16  ;;  %v514_v40 = vadd.f32 %v5159_v24, %v475_v32  ;;  %v4163_v62 = vunpack.c.h.bf16 %v4275_v29  ;;  %v4278_v0 = vld [vmem:[%s5125_s1 + $0x38] sm:$0xff]   ;;  %v4279_v15 = vld [vmem:[%s5125_s1 + $0x40] sm:$0xff]   ;;  %s4803_s22 = smov 56   ;;  %s4804_s17 = smov 64  }
  0xf7   : > { %v515_v41 = vadd.f32 %v5159_v24, %v476_v33  ;;  %v516_v42 = vadd.f32 %v5159_v24, %v477_v34  ;;  %v482_v43 = vmul.f32 %v4159_v28, %v5154_v16  ;;  %v517_v45 = vadd.f32 %v5159_v24, %v478_v36  ;;  %v624_v26 = vld [vmem:[#allocation10 + $0x54] sm:$0xf]  ;;  %v4280_v36 = vld [vmem:[%s5125_s1 + $0x48] sm:$0xff]   ;;  %s4080_s24 = sshll.u32 %s5122_s20, 8  ;;  %s4143_s12 = sshll.u32 %s4868_s30, 12 }
  0xf8   : > { %v518_v46 = vadd.f32 %v5159_v24, %v479_v37  ;;  %v519_v47 = vadd.f32 %v5159_v24, %v480_v38  ;;  %v520_v48 = vadd.f32 %v5159_v24, %v481_v39  ;;  %v546_v50 = vmax.f32 %v514_v40, 0.0  ;;  %s6919_s11 = scalar_lea.vmem [#allocation16], %s4080_s24  ;;  %s6994_s14 = scalar_lea.hbm %s7056_s7, %s4143_s12 }
  0xf9   : > { %v547_v51 = vmax.f32 %v515_v41, 0.0  ;;  %v548_v52 = vmax.f32 %v516_v42, 0.0  ;;  %v521_v53 = vadd.f32 %v5159_v24, %v482_v43  ;;  %v549_v55 = vmax.f32 %v517_v45, 0.0  ;;  %v4281_v41 = vld [vmem:[%s5125_s1 + $0x50] sm:$0xff]   ;;  %s3917_s16 = sshll.u32 %s6919_s11, 4  ;;  %s3904_s21 = scalar_lea.sflag [#allocation6], %s5122_s20  ;;  %s7000_s16 = int_to_ptr.vmem [resolvable:$true] %s3917_s16 }
  0xfa   : > { %791 = vperm.xlu1 %4493, %v610_v7   ;;  %779 = vperm.xlu0 %4492, %v609_v8   ;;  %v550_v56 = vmax.f32 %v518_v46, 0.0  ;;  %v551_v57 = vmax.f32 %v519_v47, 0.0  ;;  %v552_v58 = vmax.f32 %v520_v48, 0.0  ;;  %v483_v63 = vmul.f32 %v4162_v35, %v5154_v16  ;;  %s4702_s27 = scalar_lea.vmem %s7000_s16, 4096  ;;  %p7307_p8 = scmp.ne.s32.totalorder %s7146_s15, 0 }
  0xfb   : > { %v578_v60 = vpack.c.bf16 %v547_v51, %v546_v50  ;;  %v553_v61 = vmax.f32 %v521_v53, 0.0  ;;  %v579_v1 = vpack.c.bf16 %v549_v55, %v548_v52  ;;  %v4166_v3 = vunpack.c.l.bf16 %v4276_v54  ;;  %v4282_v50 = vld [vmem:[%s5125_s1 + $0x58] sm:$0xff]   ;;  %v626_v51 = vld [vmem:[#allocation10 + $0x5c] sm:$0xf]  ;;  %p4703_p13 = scmp.ne.s32.totalorder %s7000_s16, %s4702_s27  ;;  %s4805_s18 = smov [#allocation16]  }
  0xfc   : > { %v580_v2 = vpack.c.bf16 %v551_v57, %v550_v56  ;;  %v4167_v4 = vunpack.c.h.bf16 %v4276_v54  ;;  %v484_v6 = vmul.f32 %v4163_v62, %v5154_v16  ;;  %v522_v7 = vadd.f32 %v5159_v24, %v483_v63  ;;  %v625_v52 = vld [vmem:[#allocation10 + $0x58] sm:$0xf]  ;;  %s4706_s19 = sshll.u32 %s4805_s18, 4  ;;  %s4707_s19 = int_to_ptr.vmem [resolvable:$false] %s4706_s19 }
  0xfd   : > { %672 = vst.msk [vmem:[#allocation2 + $0x10] sm:$0xff] %vm667_vm0, %v578_v60  ;;  %v581_v5 = vpack.c.bf16 %v553_v61, %v552_v58  ;;  %v4170_v8 = vunpack.c.l.bf16 %v4277_v59  ;;  %673 = vst.msk [vmem:[#allocation2 + $0x18] sm:$0xff] %vm667_vm0, %v579_v1  ;;  %v4175_v20 = vunpack.c.h.bf16 %v4278_v0  ;;  %v4179_v40 = vunpack.c.h.bf16 %v4279_v15  ;;  %p4704_p7 = pnand %p4703_p13, %p7307_p8  ;;  %s4708_s0 = scalar_lea.vmem %s4707_s19, 8192 }
  0xfe   : > { %815 = vperm.xlu1 %4493, %v612_v9   ;;  %803 = vperm.xlu0 %4492, %v611_v10   ;;  %v622_v9 = vld [vmem:[#allocation10 + $0x4c] sm:$0xf]  ;;  %v621_v10 = vld [vmem:[#allocation10 + $0x48] sm:$0xf]  ;;  %674 = vst.msk [vmem:[#allocation2 + $0x20] sm:$0xff] %vm667_vm0, %v580_v2  ;;  %v523_v17 = vadd.f32 %v5159_v24, %v484_v6  ;;  %v554_v18 = vmax.f32 %v522_v7, 0.0  ;;  %v4182_v48 = vunpack.c.l.bf16 %v4280_v36  ;;  %v4186_v55 = vunpack.c.l.bf16 %v4281_v41  ;;  %p4709_p5 = scmp.lt.s32.totalorder %s7000_s16, %s4707_s19  ;;  %p4710_p3 = scmp.lt.s32.totalorder %s4708_s0, %s4702_s27 }
  0xff   : > { %675 = vst.msk [vmem:[#allocation2 + $0x28] sm:$0xff] %vm667_vm0, %v581_v5  ;;  %v487_v19 = vmul.f32 %v4170_v8, %v5154_v16  ;;  %v490_v29 = vmul.f32 %v4175_v20, %v5154_v16  ;;  %v492_v47 = vmul.f32 %v4179_v40, %v5154_v16  ;;  %v4187_v56 = vunpack.c.h.bf16 %v4281_v41  ;;  %v628_v5 = vld [vmem:[#allocation10 + $0x64] sm:$0xf]  ;;  %v627_v6 = vld [vmem:[#allocation10 + $0x60] sm:$0xf]  ;;  %p4705_p11 = pneg %p4704_p7 }
 0x100   : > { %v555_v27 = vmax.f32 %v523_v17, 0.0  ;;  %v495_v62 = vmul.f32 %v4186_v55, %v5154_v16  ;;  %v630_v20 = vld [vmem:[#allocation10 + $0x6c] sm:$0xf]  ;;  %v653_v41 = vld [vmem:[#allocation12 + $0x48] sm:$0xf]  ;;  %vm1576_vm3 = vcmask 130112   ;;  %p4711_p2 = por %p4710_p3, %p4709_p5 }
 0x101   : > { %v526_v28 = vadd.f32 %v5159_v24, %v487_v19  ;;  %v529_v39 = vadd.f32 %v5159_v24, %v490_v29  ;;  %v531_v58 = vadd.f32 %v5159_v24, %v492_v47  ;;  %v496_v63 = vmul.f32 %v4187_v56, %v5154_v16  ;;  %v636_v29 = vld [vmem:[#allocation12 + $0x4] sm:$0xf]  ;;  %v654_v40 = vld [vmem:[#allocation12 + $0x4c] sm:$0xf]  ;;  %v640_v47 = vld [vmem:[#allocation12 + $0x14] sm:$0xf] }
 0x102   : > { %839 = vperm.xlu1 %4493, %v614_v11   ;;  %827 = vperm.xlu0 %4492, %v613_v12   ;;  %v485_v11 = vmul.f32 %v4166_v3, %v5154_v16  ;;  %v486_v12 = vmul.f32 %v4167_v4, %v5154_v16  ;;  %v582_v37 = vpack.c.bf16 %v555_v27, %v554_v18  ;;  %v4191_v4 = vunpack.c.h.bf16 %v4282_v50  ;;  %v652_v27 = vld [vmem:[#allocation12 + $0x44] sm:$0xf]  ;;  %p4712_p0 = pnand %p4711_p2, %p4705_p11 }
 0x103   : > { %v558_v38 = vmax.f32 %v526_v28, 0.0  ;;  %v561_v46 = vmax.f32 %v529_v39, 0.0  ;;  %v563_v1 = vmax.f32 %v531_v58, 0.0  ;;  %v534_v7 = vadd.f32 %v5159_v24, %v495_v62  ;;  %v651_v28 = vld [vmem:[#allocation12 + $0x40] sm:$0xf] }
 0x104   : > { %v524_v21 = vadd.f32 %v5159_v24, %v485_v11  ;;  %v525_v22 = vadd.f32 %v5159_v24, %v486_v12  ;;  %676 = vst.msk [vmem:[#allocation2 + $0x30] sm:$0xff] %vm667_vm0, %v582_v37  ;;  %v535_v8 = vadd.f32 %v5159_v24, %v496_v63  ;;  %v658_v58 = vld [vmem:[#allocation12 + $0x5c] sm:$0xf]  ;;  %vm1169_vm1 = vsmask.f32 7424 }
 0x105   : > { %vm1331_vm2 = vsmask.f32 256  ;;  %vm3706_vm4 = vcmask 1043456   ;;  %vm2415_vm5 = vcmask 195712   ;;  %vm2646_vm6 = vcmask 261312  }
 0x106   : > { %863 = vperm.xlu1 %4493, %v616_v13   ;;  %851 = vperm.xlu0 %4492, %v615_v14   ;;  %v4171_v13 = vunpack.c.h.bf16 %v4277_v59  ;;  %v4174_v14 = vunpack.c.l.bf16 %v4278_v0  ;;  %v556_v32 = vmax.f32 %v524_v21, 0.0  ;;  %v557_v33 = vmax.f32 %v525_v22, 0.0  ;;  %v629_v21 = vld [vmem:[#allocation10 + $0x68] sm:$0xf] }
 0x107   : > { %v493_v59 = vmul.f32 %v4182_v48, %v5154_v16  ;;  %v4190_v0 = vunpack.c.l.bf16 %v4282_v50  ;;  %v639_v48 = vld [vmem:[#allocation12 + $0x10] sm:$0xf]  ;;  %vm2743_vm7 = vcmask 326912   ;;  %vm2974_vm8 = vcmask 392512  }
 0x108   : > { %v488_v23 = vmul.f32 %v4171_v13, %v5154_v16  ;;  %v489_v25 = vmul.f32 %v4174_v14, %v5154_v16  ;;  %v583_v42 = vpack.c.bf16 %v557_v33, %v556_v32  ;;  %v498_v13 = vmul.f32 %v4191_v4, %v5154_v16  ;;  %v655_v50 = vld [vmem:[#allocation12 + $0x50] sm:$0xf]  ;;  %v659_v4 = vld [vmem:[#allocation12 + $0x60] sm:$0xf] }
 0x109   : > { %v532_v2 = vadd.f32 %v5159_v24, %v493_v59  ;;  %v566_v14 = vmax.f32 %v534_v7, 0.0  ;;  %v657_v59 = vld [vmem:[#allocation12 + $0x58] sm:$0xf]  ;;  %v662_v7 = vld [vmem:[#allocation12 + $0x6c] sm:$0xf]  ;;  %vm3205_vm9 = vcmask 458112  }
 0x10a   : > { %887 = vperm.xlu1 %4493, %v618_v30   ;;  %875 = vperm.xlu0 %4492, %v617_v31   ;;  %v4178_v30 = vunpack.c.l.bf16 %v4279_v15  ;;  %v623_v31 = vld [vmem:[#allocation10 + $0x50] sm:$0xf]  ;;  %v527_v34 = vadd.f32 %v5159_v24, %v488_v23  ;;  %v528_v35 = vadd.f32 %v5159_v24, %v489_v25  ;;  %677 = vst.msk [vmem:[#allocation2 + $0x38] sm:$0xff] %vm667_vm0, %v583_v42  ;;  %v567_v15 = vmax.f32 %v535_v8, 0.0  ;;  %v661_v8 = vld [vmem:[#allocation12 + $0x68] sm:$0xf] }
 0x10b   : > { %v564_v11 = vmax.f32 %v532_v2, 0.0  ;;  %v537_v19 = vadd.f32 %v5159_v24, %v498_v13  ;;  %v632_v13 = vld [vmem:[#allocation10 + $0x74] sm:$0xf]  ;;  %vm3302_vm10 = vcmask 523712   ;;  %vm3533_vm11 = vcmask 589312  }
 0x10c   : > { %v559_v43 = vmax.f32 %v527_v34, 0.0  ;;  %v491_v45 = vmul.f32 %v4178_v30, %v5154_v16  ;;  %v588_v22 = vpack.c.bf16 %v567_v15, %v566_v14  ;;  %v635_v30 = vld [vmem:[#allocation12] sm:$0xf]  ;;  %v638_v34 = vld [vmem:[#allocation12 + $0xc] sm:$0xf]  ;;  %vm3657_vm12 = vcmask 588800  }
 0x10d   : > { %v569_v25 = vmax.f32 %v537_v19, 0.0  ;;  %v631_v14 = vld [vmem:[#allocation10 + $0x70] sm:$0xf]  ;;  %v666_v15 = vld [vmem:[#allocation12 + $0x7c] sm:$0xf] }
 0x10e   : > { %911 = vperm.xlu1 %4493, %v620_v44   ;;  %899 = vperm.xlu0 %4492, %v619_v49   ;;  %v560_v44 = vmax.f32 %v528_v35, 0.0  ;;  %v4183_v49 = vunpack.c.h.bf16 %v4280_v36  ;;  %v584_v53 = vpack.c.bf16 %v559_v43, %v558_v38  ;;  %v530_v54 = vadd.f32 %v5159_v24, %v491_v45  ;;  %682 = vst.msk [vmem:[#allocation2 + $0x60] sm:$0xff] %vm667_vm0, %v588_v22  ;;  %v637_v35 = vld [vmem:[#allocation12 + $0x8] sm:$0xf]  ;;  %v650_v45 = vld [vmem:[#allocation12 + $0x3c] sm:$0xf] }
 0x10f   : > { %v633_v19 = vld [vmem:[#allocation10 + $0x78] sm:$0xf]  ;;  %v5243_v22 = vld [vmem:[#allocation2 + $0x8] sm:$0xff] }
 0x110   : > { %v585_v57 = vpack.c.bf16 %v561_v46, %v560_v44  ;;  %v494_v60 = vmul.f32 %v4183_v49, %v5154_v16  ;;  %678 = vst.msk [vmem:[#allocation2 + $0x40] sm:$0xff] %vm667_vm0, %v584_v53  ;;  %v562_v61 = vmax.f32 %v530_v54, 0.0  ;;  %v649_v46 = vld [vmem:[#allocation12 + $0x38] sm:$0xf]  ;;  %v656_v49 = vld [vmem:[#allocation12 + $0x54] sm:$0xf] }
 0x111   : > { %v641_v53 = vld [vmem:[#allocation12 + $0x18] sm:$0xf] }
 0x112   : > { %935 = vperm.xlu1 %4493, %v622_v9   ;;  %923 = vperm.xlu0 %4492, %v621_v10   ;;  %679 = vst.msk [vmem:[#allocation2 + $0x48] sm:$0xff] %vm667_vm0, %v585_v57  ;;  %v533_v3 = vadd.f32 %v5159_v24, %v494_v60  ;;  %v497_v9 = vmul.f32 %v4190_v0, %v5154_v16  ;;  %v644_v0 = vld [vmem:[#allocation12 + $0x24] sm:$0xf] }
 0x113   : > { %v586_v10 = vpack.c.bf16 %v563_v1, %v562_v61  ;;  %v643_v1 = vld [vmem:[#allocation12 + $0x20] sm:$0xf] }
 0x114   : > { %v565_v12 = vmax.f32 %v533_v3, 0.0  ;;  %v536_v17 = vadd.f32 %v5159_v24, %v497_v9  ;;  %v660_v3 = vld [vmem:[#allocation12 + $0x64] sm:$0xf]  ;;  %v648_v9 = vld [vmem:[#allocation12 + $0x34] sm:$0xf] }
 0x115   : > { %680 = vst.msk [vmem:[#allocation2 + $0x50] sm:$0xff] %vm667_vm0, %v586_v10  ;;  %v647_v10 = vld [vmem:[#allocation12 + $0x30] sm:$0xf] }
 0x116   : > { %959 = vperm.xlu1 %4493, %v624_v26   ;;  %947 = vperm.xlu0 %4492, %v623_v31   ;;  %v587_v18 = vpack.c.bf16 %v565_v12, %v564_v11  ;;  %v568_v23 = vmax.f32 %v536_v17, 0.0  ;;  %v4283_v31 = vld [vmem:[%s5125_s1 + $0x60] sm:$0xff]   ;;  %v664_v11 = vld [vmem:[#allocation12 + $0x74] sm:$0xf]  ;;  %v663_v12 = vld [vmem:[#allocation12 + $0x70] sm:$0xf] }
 0x117   : > { %v4194_v32 = vunpack.c.l.bf16 %v4283_v31  ;;  %v4195_v33 = vunpack.c.h.bf16 %v4283_v31  ;;  %v665_v17 = vld [vmem:[#allocation12 + $0x78] sm:$0xf] }
 0x118   : > { %681 = vst.msk [vmem:[#allocation2 + $0x58] sm:$0xff] %vm667_vm0, %v587_v18  ;;  %v589_v26 = vpack.c.bf16 %v569_v25, %v568_v23  ;;  %v634_v18 = vld [vmem:[#allocation10 + $0x7c] sm:$0xf]  ;;  %v4285_v25 = vld [vmem:[%s5125_s1 + $0x70] sm:$0xff]  }
 0x119   : > { %v499_v36 = vmul.f32 %v4194_v32, %v5154_v16  ;;  %v500_v37 = vmul.f32 %v4195_v33, %v5154_v16  ;;  %v5245_v23 = vld [vmem:[#allocation2 + $0x48] sm:$0xff]  ;;  %v4203_v31 = vunpack.c.h.bf16 %v4285_v25 }
 0x11a   : > { %983 = vperm.xlu1 %4493, %v626_v51   ;;  %971 = vperm.xlu0 %4492, %v625_v52   ;;  %683 = vst.msk [vmem:[#allocation2 + $0x68] sm:$0xff] %vm667_vm0, %v589_v26  ;;  %v4284_v51 = vld [vmem:[%s5125_s1 + $0x68] sm:$0xff]   ;;  %v642_v52 = vld [vmem:[#allocation12 + $0x1c] sm:$0xf]  ;;  %7165 = vst [vmem:[#allocation29_spill] sm:$0xff] %v5245_v23 }
 0x11b   : > { %v538_v38 = vadd.f32 %v5159_v24, %v499_v36  ;;  %v539_v39 = vadd.f32 %v5159_v24, %v500_v37  ;;  %v4198_v54 = vunpack.c.l.bf16 %v4284_v51  ;;  %v4199_v55 = vunpack.c.h.bf16 %v4284_v51 }
 0x11c   : > { %v504_v33 = vmul.f32 %v4203_v31, %v5154_v16  ;;  %v713_v51 = vlaneseq  ;;  %v2432_v31 = vld [vmem:[#allocation2 + $0x8] sm:$0x80] }
 0x11d   : > { %v570_v42 = vmax.f32 %v538_v38, 0.0  ;;  %v571_v43 = vmax.f32 %v539_v39, 0.0  ;;  %v501_v56 = vmul.f32 %v4198_v54, %v5154_v16  ;;  %v502_v57 = vmul.f32 %v4199_v55, %v5154_v16 }
 0x11e   : > { %1007 = vperm.xlu1 %4493, %v628_v5   ;;  %995 = vperm.xlu0 %4492, %v627_v6   ;;  %v646_v5 = vld [vmem:[#allocation12 + $0x2c] sm:$0xf]  ;;  %v645_v6 = vld [vmem:[#allocation12 + $0x28] sm:$0xf]  ;;  %v543_v37 = vadd.f32 %v5159_v24, %v504_v33  ;;  %v714_v55 = vshrl.u32 %v713_v51, 7 }
 0x11f   : > { %v590_v44 = vpack.c.bf16 %v571_v43, %v570_v42  ;;  %v540_v60 = vadd.f32 %v5159_v24, %v501_v56  ;;  %v541_v61 = vadd.f32 %v5159_v24, %v502_v57  ;;  %v5274_v43 = vld [vmem:[#allocation2 + $0x58] sm:$0xff] }
 0x120   : > { %v575_v39 = vmax.f32 %v543_v37, 0.0 }
 0x121   : > { %684 = vst.msk [vmem:[#allocation2 + $0x70] sm:$0xff] %vm667_vm0, %v590_v44  ;;  %v572_v62 = vmax.f32 %v540_v60, 0.0  ;;  %v573_v63 = vmax.f32 %v541_v61, 0.0 }
 0x122   : > { %1031 = vperm.xlu1 %4493, %v630_v20   ;;  %1019 = vperm.xlu0 %4492, %v629_v21  }
 0x123   : > { %v591_v2 = vpack.c.bf16 %v573_v63, %v572_v62 }
 0x125   : > { %685 = vst.msk [vmem:[#allocation2 + $0x78] sm:$0xff] %vm667_vm0, %v591_v2 }
 0x126   : > { %1816 = vperm.xlu1 %4493, %v652_v27   ;;  %1804 = vperm.xlu0 %4492, %v651_v28   ;;  %v5252_v28 = vld [vmem:[#allocation2 + $0x10] sm:$0xff] }
 0x12a   : > { %1624 = vperm.xlu1 %4493, %v636_v29   ;;  %1612 = vperm.xlu0 %4492, %v635_v30   ;;  %v5254_v29 = vld [vmem:[#allocation2 + $0x50] sm:$0xff]  ;;  %v4202_v30 = vunpack.c.l.bf16 %v4285_v25 }
 0x12c   : > { %v503_v32 = vmul.f32 %v4202_v30, %v5154_v16  ;;  %v5272_v16 = vld [vmem:[#allocation2 + $0x18] sm:$0xff] }
 0x12e   : > { %1648 = vperm.xlu1 %4493, %v638_v34   ;;  %1636 = vperm.xlu0 %4492, %v637_v35   ;;  %v542_v36 = vadd.f32 %v5159_v24, %v503_v32  ;;  %v5330_v32 = vld [vmem:[#allocation2 + $0x10] sm:$0x80] }
 0x130   : > { %v574_v38 = vmax.f32 %v542_v36, 0.0 }
 0x132   : > { %1840 = vperm.xlu1 %4493, %v654_v40   ;;  %1828 = vperm.xlu0 %4492, %v653_v41   ;;  %v592_v42 = vpack.c.bf16 %v575_v39, %v574_v38 }
 0x134   : > { %686 = vst.msk [vmem:[#allocation2 + $0x80] sm:$0xff] %vm667_vm0, %v592_v42 }
 0x136   : > { %1792 = vperm.xlu1 %4493, %v650_v45   ;;  %1780 = vperm.xlu0 %4492, %v649_v46  }
 0x13a   : > { %1672 = vperm.xlu1 %4493, %v640_v47   ;;  %1660 = vperm.xlu0 %4492, %v639_v48  }
 0x13e   : > { %1864 = vperm.xlu1 %4493, %v656_v49   ;;  %1852 = vperm.xlu0 %4492, %v655_v50   ;;  %v4798_v49 = vmov 839922192  }
 0x13f   : > { %v711_v50 = vunpack.c.l.s4 %v4798_v49 }
 0x141   : > { %v712_v54 = vunpack.c.0.s8 %v711_v50 }
 0x142   : > { %1696 = vperm.xlu1 %4493, %v642_v52   ;;  %1684 = vperm.xlu0 %4492, %v641_v53  }
 0x146   : > { %1888 = vperm.xlu1 %4493, %v658_v58   ;;  %1876 = vperm.xlu0 %4492, %v657_v59   ;;  %v5297_v58 = vsub.s32 %v712_v54, %v714_v55 }
 0x14a   : > { %1720 = vperm.xlu1 %4493, %v644_v0   ;;  %1708 = vperm.xlu0 %4492, %v643_v1  }
 0x14e   : > { %1912 = vperm.xlu1 %4493, %v660_v3   ;;  %1900 = vperm.xlu0 %4492, %v659_v4  }
 0x152   : > { %1744 = vperm.xlu1 %4493, %v646_v5   ;;  %1732 = vperm.xlu0 %4492, %v645_v6  }
 0x156   : > { %1936 = vperm.xlu1 %4493, %v662_v7   ;;  %1924 = vperm.xlu0 %4492, %v661_v8  }
 0x15a   : > { %1768 = vperm.xlu1 %4493, %v648_v9   ;;  %1756 = vperm.xlu0 %4492, %v647_v10  }
 0x15e   : > { %1960 = vperm.xlu1 %4493, %v664_v11   ;;  %1948 = vperm.xlu0 %4492, %v663_v12  }
 0x162   : > { %1055 = vperm.xlu1 %4493, %v632_v13   ;;  %1043 = vperm.xlu0 %4492, %v631_v14  }
 0x166   : > { %1984 = vperm.xlu1 %4493, %v666_v15   ;;  %1972 = vperm.xlu0 %4492, %v665_v17  }
 0x16a   : > { %1079 = vperm.xlu1 %4493, %v634_v18   ;;  %1067 = vperm.xlu0 %4492, %v633_v19   ;;  %v688_v18 = vld [vmem:[#allocation2] sm:$0x80] }
 0x16d   : > { %v5241_v20 = vpop.permute.xlu1 %731  ;;  %v708_v21 = vpop.permute.xlu0 %707 }
 0x16e   : > { %1528 = vrot.lane.b32.xlu0 %v5243_v22, %s4796_s10  ;;  %1544 = vrot.lane.b32.xlu1 %v5245_v23, %s4796_s10  ;;  %v716_v62 = vrot.slane %v708_v21, %v5297_v58  ;;  %v740_v5 = vrot.slane %v5241_v20, %v5297_v58 }
 0x171   : > { %v744_v26 = vpop.permute.xlu1 %743  ;;  %v720_v27 = vpop.permute.xlu0 %719 }
 0x172   : > { %1530 = vrot.lane.b32.xlu0 %v5252_v28, %s4796_s10  ;;  %1546 = vrot.lane.b32.xlu1 %v5254_v29, %s4796_s10  ;;  %v728_v61 = vrot.slane %v720_v27, %v5297_v58  ;;  %v752_v2 = vrot.slane %v744_v26, %v5297_v58 }
 0x174   : > { %v4083_v1 = vcombine.low %v716_v62, %v728_v61  ;;  %v4084_v7 = vcombine.low %v740_v5, %v752_v2  ;;  %v5353_v2 = vld [vmem:[#allocation2 + $0x18] sm:$0xff] }
 0x175   : > { %v768_v34 = vpop.permute.xlu1 %767  ;;  %v756_v35 = vpop.permute.xlu0 %755 }
 0x176   : > { %2695 = vrot.lane.b32.xlu0 %v5252_v28, %s4797_s28  ;;  %2711 = vrot.lane.b32.xlu1 %v5254_v29, %s4797_s28  ;;  %v1171_v6 = vshll.u32 %v4083_v1, 16  ;;  %v776_v11 = vrot.slane %v768_v34, %v5297_v58  ;;  %v764_v12 = vrot.slane %v756_v35, %v5297_v58  ;;  %v1178_v13 = vshll.u32 %v4084_v7, 16 }
 0x177   : > { %v1174_v14 = vshrl.u32 %v4083_v1, 16  ;;  %v1182_v25 = vshrl.u32 %v4084_v7, 16 }
 0x178   : > { %v5320_v10 = vrot.slane %v1171_v6, 1  ;;  %v4085_v20 = vcombine.low %v764_v12, %v776_v11  ;;  %v1180_v21 = vrot.slane %v1178_v13, 1 }
 0x179   : > { %v5268_v40 = vpop.permute.xlu1 %791  ;;  %v5270_v41 = vpop.permute.xlu0 %779 }
 0x17a   : > { %2697 = vrot.lane.b32.xlu0 %v5272_v16, %s4797_s28  ;;  %2713 = vrot.lane.b32.xlu1 %v5274_v43, %s4797_s28  ;;  %v1176_v19 = vor.u32 %v1174_v14, %v5320_v10  ;;  %v1314_v26 = vmul.bf16 %v5320_v10, %v688_v18  ;;  %v1186_v34 = vshll.u32 %v4085_v20, 16  ;;  %v800_v37 = vrot.slane %v5268_v40, %v5297_v58 }
 0x17b   : > { %v788_v38 = vrot.slane %v5270_v41, %v5297_v58  ;;  %v1184_v39 = vor.u32 %v1182_v25, %v1180_v21  ;;  %v1190_v42 = vshrl.u32 %v4085_v20, 16  ;;  %v2449_v49 = vmul.bf16 %v2432_v31, %v5320_v10 }
 0x17c   : > { %v1181_v33 = vsel %vm1169_vm1, %v1176_v19, %v1180_v21  ;;  %v1188_v41 = vrot.slane %v1186_v34, 1 }
 0x17d   : > { %v5281_v24 = vpop.permute.xlu1 %815  ;;  %v5283_v44 = vpop.permute.xlu0 %803  ;;  %v5343_v51 = vmul.bf16 %v1181_v33, %v5243_v22  ;;  %v5355_v5 = vcombine.low %v788_v38, %v800_v37  ;;  %v5362_v6 = vmul.bf16 %v1181_v33, %v5252_v28  ;;  %v5372_v20 = vshrl.u32 %v2449_v49, 16 }
 0x17e   : > { %v812_v14 = vrot.slane %v5283_v44, %v5297_v58  ;;  %v5389_v37 = vor.u32 %v1190_v42, %v1188_v41 }
 0x17f   : > { %7168 = vst [vmem:[#allocation32_spill] sm:$0xff] %v5343_v51 }
 0x181   : > { %v5285_v45 = vpop.permute.xlu1 %839  ;;  %v5287_v46 = vpop.permute.xlu0 %827 }
 0x185   : > { %v5289_v47 = vpop.permute.xlu1 %863  ;;  %v5291_v48 = vpop.permute.xlu0 %851 }
 0x189   : > { %v5293_v52 = vpop.permute.xlu1 %887  ;;  %v5295_v53 = vpop.permute.xlu0 %875 }
 0x18a   : > { %v884_v7 = vrot.slane %v5295_v53, %v5297_v58  ;;  %v5379_v53 = vsel %vm1169_vm1, %v1184_v39, %v1188_v41 }
 0x18d   : > { %v912_v56 = vpop.permute.xlu1 %911  ;;  %v900_v57 = vpop.permute.xlu0 %899 }
 0x18e   : > { %v920_v35 = vrot.slane %v912_v56, %v5297_v58  ;;  %v908_v36 = vrot.slane %v900_v57, %v5297_v58  ;;  %v5349_v57 = vshrl.u32 %v1314_v26, 16 }
 0x190   : > { %7169 = vst [vmem:[#allocation33_spill] sm:$0xff] %v5349_v57  ;;  %v4091_v61 = vcombine.low %v908_v36, %v920_v35 }
 0x191   : > { %v5299_v59 = vpop.permute.xlu1 %935  ;;  %v5301_v60 = vpop.permute.xlu0 %923 }
 0x192   : > { %v944_v54 = vrot.slane %v5299_v59, %v5297_v58  ;;  %v932_v55 = vrot.slane %v5301_v60, %v5297_v58  ;;  %v824_v59 = vrot.slane %v5281_v24, %v5297_v58  ;;  %v896_v60 = vrot.slane %v5293_v52, %v5297_v58 }
 0x193   : > { %v5375_v52 = vmul.bf16 %v5353_v2, %v1181_v33  ;;  %v1234_v25 = vshll.u32 %v4091_v61, 16 }
 0x194   : > { %v5370_v18 = vcombine.low %v932_v55, %v944_v54  ;;  %v5387_v34 = vcombine.low %v884_v7, %v896_v60 }
 0x195   : > { %v5305_v63 = vpop.permute.xlu1 %959  ;;  %v5307_v0 = vpop.permute.xlu0 %947  ;;  %v5402_v41 = vrot.slane %v1234_v25, 1 }
 0x196   : > { %v956_v44 = vrot.slane %v5307_v0, %v5297_v58  ;;  %v1242_v39 = vshll.u32 %v5370_v18, 16  ;;  %v5395_v0 = vmul.bf16 %v5379_v53, %v5252_v28  ;;  %v1226_v60 = vshll.u32 %v5387_v34, 16 }
 0x199   : > { %v5310_v3 = vpop.permute.xlu1 %983  ;;  %v5312_v4 = vpop.permute.xlu0 %971 }
 0x19d   : > { %v5316_v8 = vpop.permute.xlu1 %1007  ;;  %v5318_v9 = vpop.permute.xlu0 %995 }
 0x1a1   : > { %v5324_v15 = vpop.permute.xlu1 %1031  ;;  %v5326_v17 = vpop.permute.xlu0 %1019 }
 0x1a2   : > { %7166 = vst [vmem:[#allocation30_spill] sm:$0xff] %v5324_v15  ;;  %7167 = vst [vmem:[#allocation31_spill] sm:$0xff] %v5326_v17 }
 0x1a5   : > { %v1817_v27 = vpop.permute.xlu1 %1816  ;;  %v1805_v30 = vpop.permute.xlu0 %1804 }
 0x1a6   : > { %v1825_v11 = vrot.slane %v1817_v27, %v5297_v58  ;;  %v1813_v12 = vrot.slane %v1805_v30, %v5297_v58  ;;  %v968_v27 = vrot.slane %v5305_v63, %v5297_v58 }
 0x1a8   : > { %v4107_v33 = vcombine.low %v1813_v12, %v1825_v11 }
 0x1a9   : > { %v1625_v40 = vpop.permute.xlu1 %1624  ;;  %v1613_v56 = vpop.permute.xlu0 %1612 }
 0x1aa   : > { %v1633_v62 = vrot.slane %v1625_v40, %v5297_v58  ;;  %v1621_v1 = vrot.slane %v1613_v56, %v5297_v58  ;;  %v2138_v7 = vshrl.u32 %v4107_v33, 16  ;;  %v2141_v21 = vshll.u32 %v4107_v33, 16 }
 0x1ac   : > { %v4099_v13 = vcombine.low %v1621_v1, %v1633_v62  ;;  %v5404_v62 = vcombine.low %v956_v44, %v968_v27 }
 0x1ad   : > { %v1649_v24 = vpop.permute.xlu1 %1648  ;;  %v1637_v19 = vpop.permute.xlu0 %1636 }
 0x1ae   : > { %v2075_v26 = vshrl.u32 %v4099_v13, 16  ;;  %v1657_v30 = vrot.slane %v1649_v24, %v5297_v58  ;;  %v1645_v31 = vrot.slane %v1637_v19, %v5297_v58  ;;  %v2078_v36 = vshll.u32 %v4099_v13, 16  ;;  %7170 = vst [vmem:[#allocation34_spill] sm:$0xff] %v5404_v62 }
 0x1af   : > { %v1238_v13 = vshrl.u32 %v4091_v61, 16  ;;  %v1244_v24 = vrot.slane %v1242_v39, 1  ;;  %v2140_v39 = vrot.slane %v2138_v7, 7 }
 0x1b0   : > { %v2077_v35 = vrot.slane %v2075_v26, 7  ;;  %v4100_v63 = vcombine.low %v1645_v31, %v1657_v30 }
 0x1b1   : > { %v1841_v49 = vpop.permute.xlu1 %1840  ;;  %v1829_v54 = vpop.permute.xlu0 %1828 }
 0x1b2   : > { %v5397_v55 = vor.u32 %v2078_v36, %v2077_v35  ;;  %v1849_v40 = vrot.slane %v1841_v49, %v5297_v58  ;;  %v1837_v56 = vrot.slane %v1829_v54, %v5297_v58  ;;  %v2082_v1 = vshrl.u32 %v4100_v63, 16 }
 0x1b3   : > { %v2085_v26 = vshll.u32 %v4100_v63, 16  ;;  %v5411_v36 = vcombine.low %v812_v14, %v824_v59  ;;  %v1240_v49 = vor.u32 %v1238_v13, %v5402_v41  ;;  %v1250_v54 = vshll.u32 %v5404_v62, 16 }
 0x1b4   : > { %v4108_v11 = vcombine.low %v1837_v56, %v1849_v40  ;;  %v2218_v12 = vmul.bf16 %v5397_v55, %v5243_v22  ;;  %v5409_v19 = vrot.slane %v2082_v1, 7  ;;  %v5420_v1 = vrot.slane %v1226_v60, 1 }
 0x1b5   : > { %v1793_v30 = vpop.permute.xlu1 %1792  ;;  %v1781_v31 = vpop.permute.xlu0 %1780  ;;  %v5423_v59 = vsel %vm1169_vm1, %v1240_v49, %v1244_v24  ;;  %v1246_v14 = vshrl.u32 %v5370_v18, 16 }
 0x1b6   : > { %v2146_v25 = vshrl.u32 %v4108_v11, 16  ;;  %v1801_v27 = vrot.slane %v1793_v30, %v5297_v58  ;;  %v1789_v44 = vrot.slane %v1781_v31, %v5297_v58  ;;  %v2087_v22 = vor.u32 %v2085_v26, %v5409_v19  ;;  %7171 = vst [vmem:[#allocation35_spill] sm:$0xff] %v5420_v1  ;;  %7172 = vst [vmem:[#allocation36_spill] sm:$0xff] %v5423_v59 }
 0x1b7   : > { %v2238_v61 = vshll.u32 %v2218_v12, 16  ;;  %v2149_v63 = vshll.u32 %v4108_v11, 16  ;;  %v5431_v11 = vrot.slane %v1250_v54, 1  ;;  %v2236_v50 = vshrl.u32 %v2218_v12, 16 }
 0x1b8   : > { %v5418_v40 = vrot.slane %v2146_v25, 7  ;;  %v4106_v56 = vcombine.low %v1789_v44, %v1801_v27  ;;  %v5427_v13 = vsel %vm1331_vm2, %v2077_v35, %v2087_v22  ;;  %v2143_v44 = vor.u32 %v2141_v21, %v2140_v39 }
 0x1b9   : > { %v1673_v30 = vpop.permute.xlu1 %1672  ;;  %v1661_v31 = vpop.permute.xlu0 %1660  ;;  %7173 = vst [vmem:[#allocation37_spill] sm:$0xff] %v5431_v11  ;;  %v5436_v27 = vmul.bf16 %v5427_v13, %v5252_v28  ;;  %v2240_v18 = vrot.slane %v2238_v61, 1 }
 0x1ba   : > { %v2151_v26 = vor.u32 %v2149_v63, %v5418_v40  ;;  %v2130_v7 = vshrl.u32 %v4106_v56, 16  ;;  %v1681_v25 = vrot.slane %v1673_v30, %v5297_v58  ;;  %v1669_v60 = vrot.slane %v1661_v31, %v5297_v58 }
 0x1bb   : > { %v2133_v42 = vshll.u32 %v4106_v56, 16  ;;  %v2243_v54 = vshll.u32 %v5436_v27, 16  ;;  %v2241_v56 = vor.u32 %v2240_v18, %v2236_v50  ;;  %v2247_v57 = vshrl.u32 %v5436_v27, 16 }
 0x1bc   : > { %v2132_v49 = vrot.slane %v2130_v7, 7  ;;  %v5439_v35 = vsel %vm1331_vm2, %v2140_v39, %v2151_v26  ;;  %v4101_v33 = vcombine.low %v1669_v60, %v1681_v25  ;;  %v1230_v7 = vshrl.u32 %v5387_v34, 16 }
 0x1bd   : > { %v1865_v22 = vpop.permute.xlu1 %1864  ;;  %v1853_v63 = vpop.permute.xlu0 %1852  ;;  %v5444_v30 = vmul.bf16 %v5439_v35, %v5254_v29  ;;  %v2245_v26 = vrot.slane %v2243_v54, 1  ;;  %v1248_v25 = vor.u32 %v1246_v14, %v1244_v24  ;;  %v2458_v24 = vmul.bf16 %v5423_v59, %v5254_v29 }
 0x1be   : > { %v5446_v31 = vor.u32 %v2133_v42, %v2132_v49  ;;  %v5449_v28 = vsel %vm1331_vm2, %v2132_v49, %v2143_v44  ;;  %v1873_v21 = vrot.slane %v1865_v22, %v5297_v58  ;;  %v1861_v61 = vrot.slane %v1853_v63, %v5297_v58 }
 0x1bf   : > { %v2090_v39 = vshrl.u32 %v4101_v33, 16  ;;  %v2226_v12 = vmul.bf16 %v5449_v28, %v5245_v23  ;;  %v2093_v60 = vshll.u32 %v4101_v33, 16  ;;  %v2246_v44 = vsel %vm1169_vm1, %v2241_v56, %v2245_v26 }
 0x1c0   : > { %7174 = vst [vmem:[#allocation38_spill] sm:$0xff] %v5446_v31  ;;  %v4109_v38 = vcombine.low %v1861_v61, %v1873_v21  ;;  %v2307_v50 = vshll.u32 %v5444_v30, 16  ;;  %v1232_v18 = vor.u32 %v1230_v7, %v5420_v1  ;;  %2367 = vrot.lane.b32.xlu0 %v2246_v44, %s4799_s9  ;;  %v5471_v14 = vsel %vm1169_vm1, %v1248_v25, %v5431_v11 }
 0x1c1   : > { %v5456_v42 = vrot.slane %v2090_v39, 7  ;;  %v5459_v49 = vpop.permute.xlu1 %1696  ;;  %v5461_v22 = vpop.permute.xlu0 %1684  ;;  %v2299_v63 = vshll.u32 %v2226_v12, 16  ;;  %v2303_v61 = vshrl.u32 %v2226_v12, 16  ;;  %v2471_v7 = vshrl.u32 %v5362_v6, 16 }
 0x1c2   : > { %v2154_v54 = vshrl.u32 %v4109_v38, 16  ;;  %v2157_v56 = vshll.u32 %v4109_v38, 16  ;;  %v2451_v44 = vmul.bf16 %v5379_v53, %v5272_v16  ;;  %v5483_v34 = vsel %vm1169_vm1, %v1232_v18, %v5402_v41 }
 0x1c3   : > { %7175 = vst [vmem:[#allocation39_spill] sm:$0xff] %v5456_v42  ;;  %v2095_v33 = vor.u32 %v2093_v60, %v5456_v42  ;;  %v5474_v21 = vrot.slane %v2299_v63, 1  ;;  %v2309_v60 = vrot.slane %v2307_v50, 1  ;;  %v7178_v38 = vshll.u32 %v5355_v5, 16 }
 0x1c4   : > { %v5476_v39 = vrot.slane %v2154_v54, 7  ;;  %v2535_v15 = vshrl.u32 %v2458_v24, 16  ;;  %v5501_v41 = vmul.bf16 %v5471_v14, %v5274_v43  ;;  %v2479_v18 = vshrl.u32 %v2451_v44, 16 }
 0x1c5   : > { %7176 = vst [vmem:[#allocation40_spill] sm:$0xff] %v5474_v21  ;;  %v5485_v31 = vpop.permute.xlu0 %1876  ;;  %v2305_v25 = vor.u32 %v2303_v61, %v5474_v21  ;;  %v5490_v12 = vsel %vm1331_vm2, %v5409_v19, %v2095_v33  ;;  %v5494_v63 = vrot.slane %v7178_v38, 1  ;;  %v5497_v17 = vpop.permute.xlu1 %1888  ;;  %v2474_v33 = vshll.u32 %v5362_v6, 16  ;;  %v2760_v61 = vld [vmem:[#allocation2 + $0x10] sm:$0xff] }
 0x1c6   : > { %7177 = vst [vmem:[#allocation41_spill] sm:$0xff] %v5476_v39  ;;  %v2159_v54 = vor.u32 %v2157_v56, %v5476_v39  ;;  %v5507_v19 = vmul.bf16 %v5490_v12, %v5272_v16  ;;  %v2473_v38 = vrot.slane %v2471_v7, 7  ;;  %v5517_v21 = vmul.bf16 %v5483_v34, %v5245_v23 }
 0x1c7   : > { %v2310_v50 = vsel %vm1169_vm1, %v2305_v25, %v2309_v60  ;;  %v5529_v7 = vrot.slane %v2535_v15, 7  ;;  %v5533_v51 = vmul.bf16 %v2760_v61, %v5397_v55  ;;  %v2249_v25 = vor.u32 %v2247_v57, %v2245_v26 }
 0x1c8   : > { %7179 = vst [vmem:[#allocation42_spill] sm:$0xff] %v5507_v19  ;;  %2383 = vrot.lane.b32.xlu1 %v2310_v50, %s4799_s9  ;;  %v5513_v56 = vsel %vm1331_vm2, %v5418_v40, %v2159_v54  ;;  %7181 = vst [vmem:[#allocation44_spill] sm:$0xff] %v5517_v21  ;;  %v2251_v6 = vshll.u32 %v5507_v19, 16  ;;  %v2311_v40 = vshrl.u32 %v5444_v30, 16  ;;  %v2543_v54 = vshrl.u32 %v5501_v41, 16 }
 0x1c9   : > { %7180 = vst [vmem:[#allocation43_spill] sm:$0xff] %v5513_v56  ;;  %v5520_v1 = vpop.permute.xlu0 %1708  ;;  %v5526_v50 = vmul.bf16 %v5513_v56, %v5274_v43  ;;  %v2785_v19 = vmul.bf16 %v5449_v28, %v5254_v29  ;;  %v5540_v39 = vpop.permute.xlu1 %1720  ;;  %v2476_v42 = vor.u32 %v2474_v33, %v2473_v38  ;;  %v2527_v30 = vshrl.u32 %v5517_v21, 16 }
 0x1ca   : > { %v5535_v11 = vrot.slane %v2251_v6, 1  ;;  %v2538_v15 = vshll.u32 %v2458_v24, 16  ;;  %v5543_v62 = vrot.slane %v2479_v18, 7  ;;  %v2313_v23 = vor.u32 %v2311_v40, %v2309_v60 }
 0x1cb   : > { %7182 = vst [vmem:[#allocation45_spill] sm:$0xff] %v5526_v50  ;;  %v2315_v27 = vshll.u32 %v5526_v50, 16  ;;  %v5551_v26 = vmul.bf16 %v5427_v13, %v5272_v16  ;;  %v2482_v18 = vshll.u32 %v2451_v44, 16  ;;  %v2797_v40 = vshll.u32 %v5533_v51, 16  ;;  %v5569_v50 = vld [vmem:[#allocation2 + $0x20] sm:$0xff] }
 0x1cc   : > { %7183 = vst [vmem:[#allocation46_spill] sm:$0xff] %v5535_v11  ;;  %7184 = vst [vmem:[#allocation47_spill] sm:$0xff] %v5543_v62  ;;  %v2254_v61 = vsel %vm1169_vm1, %v2249_v25, %v5535_v11  ;;  %v2540_v24 = vor.u32 %v2538_v15, %v5529_v7  ;;  %v5561_v25 = vrot.slane %v2543_v54, 7  ;;  %v5567_v6 = vsel %vm1169_vm1, %v5389_v37, %v5494_v63 }
 0x1cd   : > { %v5547_v57 = vrot.slane %v2315_v27, 1  ;;  %2369 = vrot.lane.b32.xlu0 %v2254_v61, %s4799_s9  ;;  %v5556_v33 = vpop.permute.xlu0 %1900  ;;  %v2858_v27 = vshll.u32 %v2785_v19, 16  ;;  %7187 = vst [vmem:[#allocation50_spill] sm:$0xff] %v5569_v50  ;;  %v7188_v15 = vrot.slane %v5372_v20, 7  ;;  %v5575_v61 = vrot.slane %v2527_v30, 7  ;;  %v5592_v30 = vld [vmem:[#allocation2 + $0x60] sm:$0xff] }
 0x1ce   : > { %7186 = vst [vmem:[#allocation49_spill] sm:$0xff] %v5561_v25  ;;  %v2546_v54 = vshll.u32 %v5501_v41, 16  ;;  %v2802_v21 = vshll.u32 %v5551_v26, 16  ;;  %v2786_v37 = vmul.bf16 %v5439_v35, %v5274_v43  ;;  %v848_v20 = vrot.slane %v5285_v45, %v5297_v58  ;;  %v5594_v41 = vpop.permute.xlu1 %1912 }
 0x1cf   : > { %7185 = vst [vmem:[#allocation48_spill] sm:$0xff] %v5547_v57  ;;  %v2318_v60 = vsel %vm1169_vm1, %v2313_v23, %v5547_v57  ;;  %v2477_v44 = vsel %vm1331_vm2, %v7188_v15, %v2476_v42  ;;  %7189 = vst [vmem:[#allocation51_spill] sm:$0xff] %v5575_v61  ;;  %v2484_v23 = vor.u32 %v2482_v18, %v5543_v62  ;;  %v5602_v45 = vrot.slane %v2858_v27, 1 }
 0x1d0   : > { %2385 = vrot.lane.b32.xlu1 %v2318_v60, %s4799_s9  ;;  %v5584_v57 = vmul.bf16 %v5490_v12, %v5569_v50  ;;  %v5586_v60 = vld [vmem:[#allocation2 + $0x20] sm:$0xff]  ;;  %v836_v42 = vrot.slane %v5287_v46, %v5297_v58  ;;  %v2541_v18 = vsel %vm1331_vm2, %v5575_v61, %v2540_v24  ;;  %v3017_v15 = vmul.bf16 %v5423_v59, %v5274_v43 }
 0x1d1   : > { %2598 = vrot.lane.b32.xlu0 %v2477_v44, %s4800_s26  ;;  %v2548_v62 = vor.u32 %v2546_v54, %v5561_v25  ;;  %v2799_v50 = vrot.slane %v2797_v40, 1  ;;  %7191 = vst [vmem:[#allocation53_spill] sm:$0xff] %v5602_v45  ;;  %v5606_v46 = vmul.bf16 %v5513_v56, %v5592_v30  ;;  %v5608_v11 = vpop.permute.xlu0 %1732  ;;  %v2485_v44 = vsel %vm1331_vm2, %v2473_v38, %v2484_v23 }
 0x1d2   : > { %7190 = vst [vmem:[#allocation52_spill] sm:$0xff] %v5584_v57  ;;  %7192 = vst [vmem:[#allocation54_spill] sm:$0xff] %v5608_v11  ;;  %v2795_v24 = vshrl.u32 %v5533_v51, 16  ;;  %v3030_v61 = vshrl.u32 %v5375_v52, 16  ;;  %v5616_v54 = vmul.bf16 %v5586_v60, %v5379_v53  ;;  %v2804_v40 = vrot.slane %v2802_v21, 1 }
 0x1d3   : > { %v2862_v27 = vshrl.u32 %v2785_v19, 16  ;;  %v2866_v25 = vshll.u32 %v2786_v37, 16  ;;  %v2810_v59 = vshll.u32 %v5584_v57, 16  ;;  %v5619_v56 = vcombine.low %v836_v42, %v848_v20  ;;  %v5634_v42 = vpop.permute.xlu1 %1744 }
 0x1d4   : > { %2614 = vrot.lane.b32.xlu1 %v2541_v18, %s4800_s26  ;;  %v5624_v38 = vmul.bf16 %v5483_v34, %v5254_v29  ;;  %v3094_v51 = vshrl.u32 %v3017_v15, 16  ;;  %v3018_v23 = vmul.bf16 %v5471_v14, %v5592_v30  ;;  %v2549_v53 = vsel %vm1331_vm2, %v5529_v7, %v2548_v62 }
 0x1d5   : > { %2600 = vrot.lane.b32.xlu0 %v2485_v44, %s4800_s26  ;;  %v2800_v21 = vor.u32 %v2799_v50, %v2795_v24  ;;  %v2864_v19 = vor.u32 %v2862_v27, %v5602_v45  ;;  %v2874_v18 = vshll.u32 %v5606_v46, 16  ;;  %v7194_v44 = vmul.bf16 %v5330_v32, %v5320_v10  ;;  %v5647_v20 = vpop.permute.xlu0 %1924 }
 0x1d6   : > { %7193 = vst [vmem:[#allocation55_spill] sm:$0xff] %v5624_v38  ;;  %v5640_v11 = vrot.slane %v3030_v61, 7  ;;  %v3038_v62 = vshrl.u32 %v5616_v54, 16  ;;  %v2868_v7 = vrot.slane %v2866_v25, 1  ;;  %v2806_v24 = vshrl.u32 %v5551_v26, 16 }
 0x1d7   : > { %v3026_v57 = vshrl.u32 %v7194_v44, 16  ;;  %v2805_v50 = vsel %vm1169_vm1, %v2800_v21, %v2804_v40  ;;  %v5645_v27 = vrot.slane %v2810_v59, 1  ;;  %v3086_v10 = vshrl.u32 %v5624_v38, 16 }
 0x1d8   : > { %2616 = vrot.lane.b32.xlu1 %v2549_v53, %s4800_s26  ;;  %v3033_v53 = vshll.u32 %v5375_v52, 16  ;;  %v5652_v32 = vrot.slane %v3094_v51, 7  ;;  %v3102_v61 = vshrl.u32 %v3018_v23, 16  ;;  %v2869_v44 = vsel %vm1169_vm1, %v2864_v19, %v2868_v7 }
 0x1d9   : > { %2926 = vrot.lane.b32.xlu0 %v2805_v50, %s4801_s23  ;;  %v2808_v21 = vor.u32 %v2806_v24, %v2804_v40  ;;  %v2870_v25 = vshrl.u32 %v2786_v37, 16  ;;  %v5655_v45 = vrot.slane %v2874_v18, 1  ;;  %v860_v59 = vrot.slane %v5291_v48, %v5297_v58  ;;  %v5673_v18 = vpop.permute.xlu1 %1936 }
 0x1da   : > { %v1705_v26 = vrot.slane %v5459_v49, %v5297_v58  ;;  %v1693_v52 = vrot.slane %v5461_v22, %v5297_v58  ;;  %v3097_v51 = vshll.u32 %v3017_v15, 16  ;;  %v3035_v37 = vor.u32 %v3033_v53, %v5640_v11 }
 0x1db   : > { %v2813_v50 = vsel %vm1169_vm1, %v2808_v21, %v5645_v27  ;;  %v2872_v19 = vor.u32 %v2870_v25, %v2868_v7  ;;  %v5667_v40 = vrot.slane %v3038_v62, 7  ;;  %v1897_v48 = vrot.slane %v5497_v17, %v5297_v58  ;;  %v5690_v21 = vpop.permute.xlu0 %1756 }
 0x1dc   : > { %2942 = vrot.lane.b32.xlu1 %v2869_v44, %s4801_s23  ;;  %v1885_v49 = vrot.slane %v5485_v31, %v5297_v58  ;;  %v3099_v22 = vor.u32 %v3097_v51, %v5652_v32  ;;  %v5677_v15 = vrot.slane %v3102_v61, 7  ;;  %v3028_v24 = vrot.slane %v3026_v57, 7 }
 0x1dd   : > { %7195 = vst [vmem:[#allocation56_spill] sm:$0xff] %v5667_v40  ;;  %2928 = vrot.lane.b32.xlu0 %v2813_v50, %s4801_s23  ;;  %v2877_v7 = vsel %vm1169_vm1, %v2872_v19, %v5655_v45  ;;  %v5681_v62 = vrot.slane %v3086_v10, 7  ;;  %v3041_v53 = vshll.u32 %v5616_v54, 16  ;;  %v5684_v17 = vcombine.low %v1693_v52, %v1705_v26 }
 0x1de   : > { %7196 = vst [vmem:[#allocation57_spill] sm:$0xff] %v5677_v15  ;;  %v1729_v31 = vrot.slane %v5540_v39, %v5297_v58  ;;  %v1717_v44 = vrot.slane %v5520_v1, %v5297_v58  ;;  %v3105_v61 = vshll.u32 %v3018_v23, 16  ;;  %v7198_v57 = vshrl.u32 %v5355_v5, 16  ;;  %v4494_v39 = vld [vmem:[#allocation13] sm:$0xff]  }
 0x1df   : > { %7197 = vst [vmem:[#allocation58_spill] sm:$0xff] %v5681_v62  ;;  %v7199_v25 = vshll.u32 %v5411_v36, 16  ;;  %v3036_v26 = vsel %vm1331_vm2, %v3028_v24, %v3035_v37  ;;  %v3043_v52 = vor.u32 %v3041_v53, %v5667_v40  ;;  %v5700_v51 = vcombine.low %v1885_v49, %v1897_v48  ;;  %4323 = vmatprep.subr.bf16.mxu0 %v4494_v39  ;;  %v4495_v53 = vld [vmem:[#allocation13 + $0x8] sm:$0xff]  }
 0x1e0   : > { %2944 = vrot.lane.b32.xlu1 %v2877_v7, %s4801_s23  ;;  %v1200_v10 = vor.u32 %v7198_v57, %v5494_v63  ;;  %v3100_v1 = vsel %vm1331_vm2, %v5681_v62, %v3099_v22  ;;  %v3107_v23 = vor.u32 %v3105_v61, %v5677_v15  ;;  %v5708_v5 = vmul.bf16 %v5353_v2, %v5397_v55 }
 0x1e1   : > { %v1204_v54 = vrot.slane %v7199_v25, 1  ;;  %3157 = vrot.lane.b32.xlu0 %v3036_v26, %s4802_s29  ;;  %v7200_v63 = vshrl.u32 %v5395_v0, 16  ;;  %v1921_v19 = vrot.slane %v5594_v41, %v5297_v58  ;;  %v1909_v37 = vrot.slane %v5556_v33, %v5297_v58  ;;  %4365 = vmatprep.subr.bf16.mxu1 %v4494_v39  ;;  %v5731_v41 = vpop.permute.xlu1 %1768 }
 0x1e2   : > { %v5720_v48 = vmul.bf16 %v5449_v28, %v5274_v43  ;;  %v1210_v49 = vshll.u32 %v5619_v56, 16  ;;  %v7202_v55 = vrot.slane %v5289_v47, %v5297_v58  ;;  %v2098_v7 = vshrl.u32 %v5684_v17, 16  ;;  %4324 = vmatpush3.bf16.msra.mxu0 %v4494_v39  ;;  %4370 = vmatpush3.bf16.msra.mxu1 %v4494_v39 }
 0x1e3   : > { %v5712_v50 = vrot.slane %v7200_v63, 7  ;;  %v5729_v24 = vcombine.low %v1717_v44, %v1729_v31  ;;  %v992_v28 = vrot.slane %v5310_v3, %v5297_v58  ;;  %v980_v33 = vrot.slane %v5312_v4, %v5297_v58  ;;  %4325 = vmatprep.subr.bf16.mxu0 %v4495_v53  ;;  %4366 = vmatprep.subr.bf16.mxu1 %v4495_v53  ;;  %v4496_v63 = vld [vmem:[#allocation13 + $0x10] sm:$0xff]  }
 0x1e4   : > { %v5726_v22 = vcombine.low %v860_v59, %v7202_v55  ;;  %3173 = vrot.lane.b32.xlu1 %v3100_v1, %s4802_s29  ;;  %v3044_v47 = vsel %vm1331_vm2, %v5640_v11, %v3043_v52  ;;  %v5742_v59 = vmul.bf16 %v5586_v60, %v5427_v13  ;;  %v5746_v31 = vmul.bf16 %v5567_v6, %v5272_v16  ;;  %v5756_v11 = vpop.permute.xlu0 %1948 }
 0x1e5   : > { %7201 = vst [vmem:[#allocation59_spill] sm:$0xff] %v5712_v50  ;;  %v5749_v44 = vsel %vm1169_vm1, %v1200_v10, %v1204_v54  ;;  %v7203_v3 = vshrl.u32 %v5411_v36, 16  ;;  %v2162_v4 = vshrl.u32 %v5700_v51, 16  ;;  %7204 = vst [vmem:[#allocation60_spill] sm:$0xff] %v5756_v11  ;;  %3159 = vrot.lane.b32.xlu0 %v3044_v47, %s4802_s29  ;;  %v5759_v13 = vcombine.low %v1909_v37, %v1921_v19 }
 0x1e6   : > { %v3108_v57 = vsel %vm1331_vm2, %v5652_v32, %v3107_v23  ;;  %v3356_v16 = vshll.u32 %v5708_v5, 16  ;;  %v3417_v10 = vshll.u32 %v5720_v48, 16  ;;  %v5765_v36 = vrot.slane %v1210_v49, 1  ;;  %4326 = vmatpush3.bf16.msra.mxu0 %v4495_v53  ;;  %4371 = vmatpush3.bf16.msra.mxu1 %v4495_v53  ;;  %v7211_v32 = vld [vmem:[#allocation43_spill] sm:$0xff] }
 0x1e7   : > { %v5753_v61 = vor.u32 %v7203_v3, %v1204_v54  ;;  %v696_v54 = vld [vmem:[#allocation2 + $0x40] sm:$0xff]  ;;  %v5768_v26 = vrot.slane %v2098_v7, 7  ;;  %v2106_v52 = vshrl.u32 %v5729_v24, 16  ;;  %v5773_v39 = vcombine.low %v980_v33, %v992_v28  ;;  %v5787_v7 = vpop.permute.xlu1 %1960  ;;  %4327 = vmatprep.subr.bf16.mxu0 %v4496_v63  ;;  %v5806_v3 = vld [vmem:[#allocation2 + $0x28] sm:$0xff]  ;;  %4367 = vmatprep.subr.bf16.mxu1 %v4496_v63 }
 0x1e8   : > { %3175 = vrot.lane.b32.xlu1 %v3108_v57, %s4802_s29  ;;  %v3361_v1 = vshll.u32 %v5742_v59, 16  ;;  %v5778_v23 = vmul.bf16 %v5439_v35, %v5592_v30  ;;  %v1016_v19 = vrot.slane %v5316_v8, %v5297_v58  ;;  %v1004_v37 = vrot.slane %v5318_v9, %v5297_v58  ;;  %v5801_v53 = vpop.permute.xlu0 %1043 }
 0x1e9   : > { %v2101_v49 = vshll.u32 %v5684_v17, 16  ;;  %v5785_v55 = vrot.slane %v2162_v4, 7  ;;  %3254 = vrot.lane.b32.xlu0 %v5353_v2, %s4803_s22  ;;  %v5792_v35 = vmul.bf16 %v5483_v34, %v696_v54  ;;  %v2170_v28 = vshrl.u32 %v5759_v13, 16  ;;  %7207 = vst [vmem:[#allocation63_spill] sm:$0xff] %v5801_v53  ;;  %v7216_v53 = vld [vmem:[#allocation39_spill] sm:$0xff] }
 0x1ea   : > { %v3358_v33 = vrot.slane %v3356_v16, 1  ;;  %v5795_v8 = vrot.slane %v3417_v10, 1  ;;  %v2165_v17 = vshll.u32 %v5700_v51, 16  ;;  %v5799_v47 = vrot.slane %v2106_v52, 7  ;;  %4328 = vmatpush3.bf16.msra.mxu0 %v4496_v63  ;;  %v4497_v10 = vld [vmem:[#allocation13 + $0x18] sm:$0xff]   ;;  %4372 = vmatpush3.bf16.msra.mxu1 %v4496_v63 }
 0x1eb   : > { %v2103_v9 = vor.u32 %v2101_v49, %v5768_v26  ;;  %v3354_v34 = vshrl.u32 %v5708_v5, 16  ;;  %v3363_v4 = vrot.slane %v3361_v1, 1  ;;  %v3421_v57 = vshrl.u32 %v5720_v48, 16  ;;  %v5817_v49 = vld [vmem:[#allocation2 + $0x68] sm:$0xff]  ;;  %4329 = vmatprep.subr.bf16.mxu0 %v4497_v10  ;;  %4368 = vmatprep.subr.bf16.mxu1 %v4497_v10 }
 0x1ec   : > { %7205 = vst [vmem:[#allocation61_spill] sm:$0xff] %v5795_v8  ;;  %7206 = vst [vmem:[#allocation62_spill] sm:$0xff] %v5799_v47  ;;  %3270 = vrot.lane.b32.xlu1 %v5274_v43, %s4803_s22  ;;  %v3425_v16 = vshll.u32 %v5778_v23, 16  ;;  %v5812_v51 = vmul.bf16 %v5806_v3, %v5490_v12  ;;  %v1258_v54 = vshll.u32 %v5773_v39, 16  ;;  %v5815_v52 = vcombine.low %v1004_v37, %v1016_v19  ;;  %v7213_v19 = vld [vmem:[#allocation29_spill] sm:$0xff]  ;;  %v7214_v37 = vld [vmem:[#allocation36_spill] sm:$0xff] }
 0x1ed   : > { %7209 = vst [vmem:[#allocation65_spill] sm:$0xff] %v5817_v49  ;;  %v2167_v5 = vor.u32 %v2165_v17, %v5785_v55  ;;  %v2109_v1 = vshll.u32 %v5729_v24, 16  ;;  %3256 = vrot.lane.b32.xlu0 %v5586_v60, %s4803_s22  ;;  %v5823_v48 = vrot.slane %v2170_v28, 7  ;;  %v3359_v25 = vor.u32 %v3358_v33, %v3354_v34  ;;  %v7215_v17 = vld [vmem:[#allocation34_spill] sm:$0xff]  ;;  %v5840_v33 = vpop.permute.xlu1 %1055 }
 0x1ee   : > { %7208 = vst [vmem:[#allocation64_spill] sm:$0xff] %v5812_v51  ;;  %v3423_v12 = vor.u32 %v3421_v57, %v5795_v8  ;;  %v5828_v62 = vmul.bf16 %v7211_v32, %v5817_v49  ;;  %v5832_v38 = vmul.bf16 %v7214_v37, %v7213_v19  ;;  %v1254_v24 = vshrl.u32 %v7215_v17, 16  ;;  %7217 = vst [vmem:[#allocation29_spill] sm:$0xff] %v5840_v33  ;;  %v7218_v19 = vld [vmem:[#allocation41_spill] sm:$0xff]  ;;  %v5856_v17 = vpop.permute.xlu0 %1972 }
 0x1ef   : > { %7210 = vst [vmem:[#allocation66_spill] sm:$0xff] %v5823_v48  ;;  %v5837_v15 = vsel %vm1331_vm2, %v7216_v53, %v2103_v9  ;;  %v2111_v28 = vor.u32 %v2109_v1, %v5799_v47  ;;  %4330 = vmatpush3.bf16.msra.mxu0 %v4497_v10  ;;  %v2173_v32 = vshll.u32 %v5759_v13, 16  ;;  %v3364_v63 = vsel %vm1169_vm1, %v3359_v25, %v3363_v4 }
 0x1f0   : > { %7212 = vst [vmem:[#allocation43_spill] sm:$0xff] %v5828_v62  ;;  %3272 = vrot.lane.b32.xlu1 %v5592_v30, %s4803_s22  ;;  %v3427_v34 = vrot.slane %v3425_v16, 1  ;;  %v3369_v57 = vshll.u32 %v5812_v51, 16  ;;  %v5849_v9 = vmul.bf16 %v5471_v14, %v5254_v29  ;;  %v1260_v53 = vrot.slane %v1258_v54, 1  ;;  %7219 = vst [vmem:[#allocation36_spill] sm:$0xff] %v5856_v17  ;;  %4373 = vmatpush3.bf16.msra.mxu1 %v4497_v10  ;;  %v7220_v54 = vld [vmem:[#allocation37_spill] sm:$0xff] }
 0x1f1   : > { %v1266_v1 = vshll.u32 %v5815_v52, 16  ;;  %v5854_v37 = vsel %vm1331_vm2, %v7218_v19, %v2167_v5  ;;  %3485 = vrot.lane.b32.xlu0 %v3364_v63, %s4804_s17  ;;  %v2175_v13 = vor.u32 %v2173_v32, %v5823_v48  ;;  %v3433_v16 = vshll.u32 %v5828_v62, 16  ;;  %v5873_v32 = vld [vmem:[#allocation2 + $0x60] sm:$0xff]  ;;  %v5897_v62 = vpop.permute.xlu1 %1984 }
 0x1f2   : > { %v3428_v25 = vsel %vm1169_vm1, %v3423_v12, %v3427_v34  ;;  %v5864_v29 = vmul.bf16 %v5586_v60, %v5567_v6  ;;  %v1401_v14 = vshrl.u32 %v5832_v38, 16  ;;  %v1256_v5 = vor.u32 %v1254_v24, %v7220_v54  ;;  %7222 = vst [vmem:[#allocation39_spill] sm:$0xff] %v5897_v62 }
 0x1f3   : > { %v5871_v63 = vmul.bf16 %v5586_v60, %v5837_v15  ;;  %v5877_v12 = vmul.bf16 %v5806_v3, %v5749_v44  ;;  %v5881_v19 = vsel %vm1331_vm2, %v5768_v26, %v2111_v28  ;;  %v3365_v10 = vshrl.u32 %v5742_v59, 16 }
 0x1f4   : > { %3501 = vrot.lane.b32.xlu1 %v3428_v25, %s4804_s17  ;;  %v5884_v8 = vrot.slane %v3369_v57, 1  ;;  %v5888_v24 = vmul.bf16 %v5854_v37, %v5873_v32  ;;  %v1409_v25 = vshrl.u32 %v5849_v9, 16  ;;  %v5892_v54 = vsel %vm1169_vm1, %v1256_v5, %v1260_v53 }
 0x1f5   : > { %v1262_v17 = vshrl.u32 %v5773_v39, 16  ;;  %v5895_v48 = vrot.slane %v1266_v1, 1  ;;  %1532 = vrot.lane.b32.xlu0 %v5353_v2, %s4796_s10  ;;  %v5903_v59 = vsel %vm1331_vm2, %v5785_v55, %v2175_v13  ;;  %v3367_v26 = vor.u32 %v3365_v10, %v3363_v4  ;;  %v5909_v39 = vpop.permute.xlu0 %1067 }
 0x1f6   : > { %7221 = vst [vmem:[#allocation34_spill] sm:$0xff] %v5884_v8  ;;  %v3429_v28 = vshrl.u32 %v5778_v23, 16  ;;  %v5906_v57 = vrot.slane %v3433_v16, 1  ;;  %v1404_v5 = vshll.u32 %v5832_v38, 16  ;;  %7224 = vst [vmem:[#allocation37_spill] sm:$0xff] %v5909_v39  ;;  %v2259_v1 = vshll.u32 %v5871_v63, 16 }
 0x1f7   : > { %v1264_v51 = vor.u32 %v1262_v17, %v1260_v53  ;;  %v5916_v2 = vmul.bf16 %v5806_v3, %v5881_v19  ;;  %v3372_v55 = vsel %vm1169_vm1, %v3367_v26, %v5884_v8  ;;  %v2323_v4 = vshll.u32 %v5888_v24, 16  ;;  %v7231_v8 = vld [vmem:[#allocation45_spill] sm:$0xff] }
 0x1f8   : > { %7223 = vst [vmem:[#allocation41_spill] sm:$0xff] %v5906_v57  ;;  %1548 = vrot.lane.b32.xlu1 %v5274_v43, %s4796_s10  ;;  %v3431_v23 = vor.u32 %v3429_v28, %v3427_v34  ;;  %v2487_v38 = vshrl.u32 %v5864_v29, 16  ;;  %v5922_v53 = vrot.slane %v1401_v14, 7  ;;  %v1412_v17 = vshll.u32 %v5849_v9, 16  ;;  %v7227_v9 = vld [vmem:[#allocation32_spill] sm:$0xff]  ;;  %v5944_v28 = vpop.permute.xlu1 %1079 }
 0x1f9   : > { %7225 = vst [vmem:[#allocation67_spill] sm:$0xff] %v5916_v2  ;;  %3487 = vrot.lane.b32.xlu0 %v3372_v55, %s4804_s17  ;;  %v5928_v43 = vmul.bf16 %v5903_v59, %v5817_v49  ;;  %v5932_v13 = vmul.bf16 %v5873_v32, %v5892_v54  ;;  %v5934_v16 = vrot.slane %v1409_v25, 7  ;;  %v5938_v34 = vsel %vm1169_vm1, %v1264_v51, %v5895_v48  ;;  %v7230_v55 = vld [vmem:[#allocation42_spill] sm:$0xff]  ;;  %v1529_v39 = vpop.permute.xlu0 %1528 }
 0x1fa   : > { %v3436_v14 = vsel %vm1169_vm1, %v3431_v23, %v5906_v57  ;;  %v7228_v10 = vshrl.u32 %v7227_v9, 16  ;;  %7229 = vst [vmem:[#allocation32_spill] sm:$0xff] %v5944_v28  ;;  %v2255_v62 = vshrl.u32 %v7230_v55, 16  ;;  %v2261_v49 = vrot.slane %v2259_v1, 1  ;;  %v7233_v28 = vld [vmem:[#allocation48_spill] sm:$0xff] }
 0x1fb   : > { %7226 = vst [vmem:[#allocation68_spill] sm:$0xff] %v5928_v43  ;;  %v2319_v25 = vshrl.u32 %v7231_v8, 16  ;;  %v2267_v47 = vshll.u32 %v5916_v2, 16  ;;  %v2325_v51 = vrot.slane %v2323_v4, 1  ;;  %v5950_v33 = vrot.slane %v2487_v38, 7  ;;  %v5960_v2 = vld [vmem:[#allocation2 + $0x68] sm:$0xff] }
 0x1fc   : > { %v1339_v26 = vrot.slane %v7228_v10, 7  ;;  %3503 = vrot.lane.b32.xlu1 %v3436_v14, %s4804_s17  ;;  %v2490_v23 = vshll.u32 %v5864_v29, 16  ;;  %v1340_v57 = vshll.u32 %v7227_v9, 16  ;;  %v7232_v10 = vld [vmem:[#allocation46_spill] sm:$0xff]  ;;  %v2331_v1 = vshll.u32 %v5928_v43, 16  ;;  %v7234_v29 = vld [vmem:[#allocation33_spill] sm:$0xff] }
 0x1fd   : > { %1534 = vrot.lane.b32.xlu0 %v5586_v60, %s4796_s10  ;;  %v2257_v14 = vor.u32 %v2255_v62, %v7232_v10  ;;  %v2321_v55 = vor.u32 %v2319_v25, %v7233_v28  ;;  %v2551_v8 = vshrl.u32 %v5932_v13, 16  ;;  %v5964_v4 = vmul.bf16 %v5960_v2, %v5938_v34  ;;  %v1545_v10 = vpop.permute.xlu1 %1544 }
 0x1fe   : > { %v1335_v38 = vrot.slane %v7234_v29, 7  ;;  %v1342_v9 = vor.u32 %v1340_v57, %v1339_v26  ;;  %v7235_v40 = vshll.u32 %v5395_v0, 16  ;;  %v2263_v28 = vshrl.u32 %v5871_v63, 16 }
 0x1ff   : > { %v2262_v62 = vsel %vm1169_vm1, %v2257_v14, %v2261_v49  ;;  %v5974_v25 = vrot.slane %v2267_v47, 1  ;;  %v2326_v43 = vsel %vm1169_vm1, %v2321_v55, %v2325_v51  ;;  %v2495_v29 = vshrl.u32 %v5877_v12, 16  ;;  %v1531_v47 = vpop.permute.xlu0 %1530 }
 0x200   : > { %v1350_v11 = vor.u32 %v7235_v40, %v5712_v50  ;;  %1550 = vrot.lane.b32.xlu1 %v5592_v30, %s4796_s10  ;;  %v1343_v57 = vsel %vm1331_vm2, %v1335_v38, %v1342_v9  ;;  %v2265_v40 = vor.u32 %v2263_v28, %v2261_v49  ;;  %v2327_v50 = vshrl.u32 %v5888_v24, 16 }
 0x201   : > { %2371 = vrot.lane.b32.xlu0 %v2262_v62, %s4799_s9  ;;  %v5982_v14 = vrot.slane %v2331_v1, 1  ;;  %v2553_v63 = vrot.slane %v2551_v8, 7  ;;  %1480 = vst.msk [vmem:[#allocation3] sm:$0xff] %vm667_vm0, %v1343_v57  ;;  %v2559_v55 = vshrl.u32 %v5964_v4, 16  ;;  %v1406_v49 = vor.u32 %v1404_v5, %v5922_v53 }
 0x202   : > { %v1351_v0 = vsel %vm1331_vm2, %v1339_v26, %v1350_v11  ;;  %1577 = vst.msk [vmem:[#allocation3] sm:$0xff] %vm1576_vm3, %v1529_v39  ;;  %v1393_v11 = vshrl.u32 %v5792_v35, 16  ;;  %v1414_v24 = vor.u32 %v1412_v17, %v5934_v16  ;;  %v7236_v26 = vshll.u32 %v5726_v22, 16  ;;  %v7238_v17 = vld [vmem:[#allocation50_spill] sm:$0xff] }
 0x203   : > { %1481 = vst.msk [vmem:[#allocation3 + $0x8] sm:$0xff] %vm667_vm0, %v1351_v0  ;;  %v2270_v8 = vsel %vm1169_vm1, %v2265_v40, %v5974_v25  ;;  %v2329_v38 = vor.u32 %v2327_v50, %v2325_v51  ;;  %v2492_v9 = vor.u32 %v2490_v23, %v5950_v33  ;;  %v2554_v39 = vshll.u32 %v5932_v13, 16 }
 0x204   : > { %1578 = vst.msk [vmem:[#allocation3 + $0x8] sm:$0xff] %vm1576_vm3, %v1531_v47  ;;  %v1220_v1 = vrot.slane %v7236_v26, 1  ;;  %2387 = vrot.lane.b32.xlu1 %v2326_v43, %s4799_s9  ;;  %v5999_v62 = vrot.slane %v2495_v29, 7  ;;  %v6001_v28 = vrot.slane %v1393_v11, 7  ;;  %v1415_v5 = vsel %vm1331_vm2, %v5922_v53, %v1414_v24  ;;  %v693_v43 = vld [vmem:[#allocation2 + $0x28] sm:$0xff]  ;;  %v1547_v53 = vpop.permute.xlu1 %1546  ;;  %v7240_v11 = vld [vmem:[#allocation47_spill] sm:$0xff] }
 0x205   : > { %v6007_v57 = vmul.bf16 %v5749_v44, %v7238_v17  ;;  %v6012_v50 = vsel %vm1169_vm1, %v5753_v61, %v5765_v36  ;;  %v7239_v13 = vshrl.u32 %v5619_v56, 16  ;;  %2373 = vrot.lane.b32.xlu0 %v2270_v8, %s4799_s9  ;;  %v2334_v23 = vsel %vm1169_vm1, %v2329_v38, %v5982_v14  ;;  %1489 = vst.msk [vmem:[#allocation3 + $0x48] sm:$0xff] %vm667_vm0, %v1415_v5  ;;  %v694_v56 = vld [vmem:[#allocation2 + $0x30] sm:$0xff]  ;;  %v7241_v38 = vld [vmem:[#allocation49_spill] sm:$0xff] }
 0x206   : > { %7237 = vst [vmem:[#allocation42_spill] sm:$0xff] %v6001_v28  ;;  %v2556_v29 = vor.u32 %v2554_v39, %v2553_v63  ;;  %v2498_v0 = vshll.u32 %v5877_v12, 16  ;;  %v6022_v40 = vrot.slane %v2559_v55, 7  ;;  %v1407_v61 = vsel %vm1331_vm2, %v6001_v28, %v1406_v49  ;;  %1586 = vst.msk [vmem:[#allocation3 + $0x48] sm:$0xff] %vm1576_vm3, %v1547_v53 }
 0x207   : > { %v1216_v51 = vor.u32 %v7239_v13, %v5765_v36  ;;  %1488 = vst.msk [vmem:[#allocation3 + $0x40] sm:$0xff] %vm667_vm0, %v1407_v61  ;;  %v6033_v47 = vmul.bf16 %v6012_v50, %v693_v43  ;;  %v2493_v12 = vsel %vm1331_vm2, %v7240_v11, %v2492_v9  ;;  %v2562_v49 = vshll.u32 %v5964_v4, 16  ;;  %v695_v61 = vld [vmem:[#allocation2 + $0x38] sm:$0xff] }
 0x208   : > { %2389 = vrot.lane.b32.xlu1 %v2334_v23, %s4799_s9  ;;  %v2500_v55 = vor.u32 %v2498_v0, %v5999_v62  ;;  %1585 = vst.msk [vmem:[#allocation3 + $0x40] sm:$0xff] %vm1576_vm3, %v1545_v10  ;;  %v1353_v24 = vshrl.u32 %v5746_v31, 16  ;;  %v1361_v26 = vshrl.u32 %v6007_v57, 16  ;;  %v2557_v39 = vsel %vm1331_vm2, %v7241_v38, %v2556_v29  ;;  %v6084_v38 = vld [vmem:[#allocation2 + $0x30] sm:$0xff] }
 0x209   : > { %v6028_v36 = vsel %vm1169_vm1, %v1216_v51, %v1220_v1  ;;  %2602 = vrot.lane.b32.xlu0 %v2493_v12, %s4800_s26  ;;  %v2564_v9 = vor.u32 %v2562_v49, %v6022_v40  ;;  %v1222_v5 = vshrl.u32 %v5726_v22, 16  ;;  %v1369_v10 = vshrl.u32 %v6033_v47, 16 }
 0x20a   : > { %v6044_v8 = vmul.bf16 %v6028_v36, %v694_v56  ;;  %v2501_v17 = vsel %vm1331_vm2, %v5950_v33, %v2500_v55  ;;  %v6057_v43 = vmul.bf16 %v5806_v3, %v5837_v15  ;;  %v6059_v13 = vrot.slane %v1353_v24, 7  ;;  %v7242_v56 = vld [vmem:[#allocation35_spill] sm:$0xff]  ;;  %v7244_v55 = vld [vmem:[#allocation30_spill] sm:$0xff] }
 0x20b   : > { %v1224_v23 = vor.u32 %v1222_v5, %v1220_v1  ;;  %v6065_v22 = vmul.bf16 %v5960_v2, %v5854_v37  ;;  %v6067_v53 = vrot.slane %v1361_v26, 7  ;;  %v2565_v0 = vsel %vm1331_vm2, %v2553_v63, %v2564_v9  ;;  %v4499_v1 = vld [vmem:[#allocation2 + $0x58] sm:$0xff] }
 0x20c   : > { %2618 = vrot.lane.b32.xlu1 %v2557_v39, %s4800_s26  ;;  %v1377_v33 = vshrl.u32 %v6044_v8, 16  ;;  %v6077_v12 = vmul.bf16 %v4499_v1, %v5892_v54  ;;  %v1040_v49 = vrot.slane %v7244_v55, %v5297_v58  ;;  %v7245_v24 = vld [vmem:[#allocation31_spill] sm:$0xff]  ;;  %v6086_v63 = vrot.slane %v1369_v10, 7  ;;  %v6100_v1 = vld [vmem:[#allocation2 + $0x70] sm:$0xff] }
 0x20d   : > { %2604 = vrot.lane.b32.xlu0 %v2501_v17, %s4800_s26  ;;  %v6074_v11 = vsel %vm1169_vm1, %v1224_v23, %v7242_v56  ;;  %v1028_v26 = vrot.slane %v7245_v24, %v5297_v58  ;;  %v2818_v39 = vshll.u32 %v6057_v43, 16  ;;  %v6091_v9 = vmul.bf16 %v6084_v38, %v5881_v19 }
 0x20e   : > { %7243 = vst [vmem:[#allocation45_spill] sm:$0xff] %v6074_v11  ;;  %v3011_v5 = vmul.bf16 %v5806_v3, %v5567_v6  ;;  %v1753_v23 = vrot.slane %v5634_v42, %v5297_v58  ;;  %v2882_v10 = vshll.u32 %v6065_v22, 16  ;;  %v6105_v55 = vrot.slane %v1377_v33, 7 }
 0x20f   : > { %7246 = vst [vmem:[#allocation46_spill] sm:$0xff] %v6091_v9  ;;  %v6108_v24 = vmul.bf16 %v6074_v11, %v695_v61  ;;  %v6112_v6 = vmul.bf16 %v5903_v59, %v6100_v1  ;;  %v3019_v42 = vmul.bf16 %v5960_v2, %v5892_v54  ;;  %v1270_v17 = vshrl.u32 %v5815_v52, 16 }
 0x210   : > { %2620 = vrot.lane.b32.xlu1 %v2565_v0, %s4800_s26  ;;  %v7247_v0 = vld [vmem:[#allocation54_spill] sm:$0xff]  ;;  %v6118_v29 = vcombine.low %v1028_v26, %v1040_v49  ;;  %v2820_v61 = vrot.slane %v2818_v39, 1  ;;  %v2826_v51 = vshll.u32 %v6091_v9, 16  ;;  %v3046_v4 = vshrl.u32 %v3011_v5, 16 }
 0x211   : > { %v1741_v56 = vrot.slane %v7247_v0, %v5297_v58  ;;  %2699 = vrot.lane.b32.xlu0 %v5586_v60, %s4797_s28  ;;  %7248 = vst [vmem:[#allocation48_spill] sm:$0xff] %v6112_v6  ;;  %v1417_v0 = vshrl.u32 %v6077_v12, 16  ;;  %v7249_v60 = vld [vmem:[#allocation52_spill] sm:$0xff]  ;;  %v3012_v11 = vmul.bf16 %v6084_v38, %v5749_v44  ;;  %v6128_v54 = vmul.bf16 %v5938_v34, %v5592_v30 }
 0x212   : > { %v2814_v33 = vshrl.u32 %v7249_v60, 16  ;;  %v2878_v52 = vshrl.u32 %v5606_v46, 16  ;;  %v2890_v26 = vshll.u32 %v6112_v6, 16  ;;  %v3110_v39 = vshrl.u32 %v3019_v42, 16 }
 0x213   : > { %v6130_v28 = vcombine.low %v1741_v56, %v1753_v23  ;;  %v3020_v44 = vmul.bf16 %v5938_v34, %v6100_v1  ;;  %v1945_v30 = vrot.slane %v5673_v18, %v5297_v58  ;;  %v1933_v23 = vrot.slane %v5647_v20, %v5297_v58 }
 0x214   : > { %2715 = vrot.lane.b32.xlu1 %v5873_v32, %s4797_s28  ;;  %v2884_v32 = vrot.slane %v2882_v10, 1  ;;  %v2816_v49 = vor.u32 %v2814_v33, %v5645_v27  ;;  %v2880_v46 = vor.u32 %v2878_v52, %v5655_v45  ;;  %v2822_v56 = vshrl.u32 %v6057_v43, 16 }
 0x215   : > { %2701 = vrot.lane.b32.xlu0 %v5806_v3, %s4797_s28  ;;  %v6148_v10 = vrot.slane %v2826_v51, 1  ;;  %v3048_v60 = vrot.slane %v3046_v4, 7  ;;  %v3054_v33 = vshrl.u32 %v3012_v11, 16  ;;  %v2114_v34 = vshrl.u32 %v6130_v28, 16 }
 0x216   : > { %v2821_v27 = vsel %vm1169_vm1, %v2816_v49, %v2820_v61  ;;  %v2885_v18 = vsel %vm1169_vm1, %v2880_v46, %v2884_v32  ;;  %v2824_v20 = vor.u32 %v2822_v56, %v2820_v61  ;;  %v2886_v6 = vshrl.u32 %v6065_v22, 16 }
 0x217   : > { %v6154_v9 = vrot.slane %v2890_v26, 1  ;;  %v3049_v45 = vshll.u32 %v3011_v5, 16  ;;  %v3112_v52 = vrot.slane %v3110_v39, 7  ;;  %v3118_v43 = vshrl.u32 %v3020_v44, 16 }
 0x218   : > { %2717 = vrot.lane.b32.xlu1 %v5960_v2, %s4797_s28  ;;  %v1420_v49 = vshll.u32 %v6077_v12, 16  ;;  %v6158_v51 = vor.u32 %v1270_v17, %v5895_v48  ;;  %v6160_v4 = vcombine.low %v1933_v23, %v1945_v30  ;;  %v2829_v61 = vsel %vm1169_vm1, %v2824_v20, %v6148_v10 }
 0x219   : > { %2930 = vrot.lane.b32.xlu0 %v2821_v27, %s4801_s23  ;;  %v2888_v27 = vor.u32 %v2886_v6, %v2884_v32  ;;  %v3051_v46 = vor.u32 %v3049_v45, %v3048_v60  ;;  %v3113_v22 = vshll.u32 %v3019_v42, 16  ;;  %v6165_v26 = vrot.slane %v3054_v33, 7  ;;  %v7251_v33 = vld [vmem:[#allocation60_spill] sm:$0xff] }
 0x21a   : > { %v6167_v5 = vrot.slane %v1417_v0, 7  ;;  %v1425_v39 = vshrl.u32 %v6128_v54, 16  ;;  %v1274_v12 = vshll.u32 %v6118_v29, 16  ;;  %v6171_v48 = vrot.slane %v2114_v34, 7 }
 0x21b   : > { %v2893_v17 = vsel %vm1169_vm1, %v2888_v27, %v6154_v9  ;;  %v3115_v6 = vor.u32 %v3113_v22, %v3112_v52  ;;  %v3057_v32 = vshll.u32 %v3012_v11, 16  ;;  %v6176_v30 = vrot.slane %v3118_v43, 7  ;;  %v7254_v22 = vld [vmem:[#allocation57_spill] sm:$0xff] }
 0x21c   : > { %2946 = vrot.lane.b32.xlu1 %v2885_v18, %s4801_s23  ;;  %v2178_v42 = vshrl.u32 %v6160_v4, 16  ;;  %v1777_v0 = vrot.slane %v5731_v41, %v5297_v58  ;;  %v1765_v23 = vrot.slane %v5690_v21, %v5297_v58  ;;  %v1969_v56 = vrot.slane %v5787_v7, %v5297_v58  ;;  %v7252_v18 = vld [vmem:[#allocation56_spill] sm:$0xff] }
 0x21d   : > { %2932 = vrot.lane.b32.xlu0 %v2829_v61, %s4801_s23  ;;  %7250 = vst [vmem:[#allocation33_spill] sm:$0xff] %v6176_v30  ;;  %v1957_v34 = vrot.slane %v7251_v33, %v5297_v58  ;;  %v3052_v11 = vsel %vm1331_vm2, %v7252_v18, %v3051_v46  ;;  %v3059_v20 = vor.u32 %v3057_v32, %v6165_v26  ;;  %v3121_v45 = vshll.u32 %v3020_v44, 16 }
 0x21e   : > { %v1428_v43 = vshll.u32 %v6128_v54, 16  ;;  %v6192_v41 = vrot.slane %v1274_v12, 1  ;;  %v2117_v21 = vshll.u32 %v6130_v28, 16  ;;  %v7253_v7 = vshll.u32 %v5746_v31, 16  ;;  %v4498_v54 = vld [vmem:[#allocation13 + $0x20] ss:$0 sps:$4 sm:$0xff]  }
 0x21f   : > { %v6199_v61 = vrot.slane %v1425_v39, 7  ;;  %v3116_v46 = vsel %vm1331_vm2, %v7254_v22, %v3115_v6  ;;  %v1422_v44 = vor.u32 %v1420_v49, %v6167_v5  ;;  %v6206_v32 = vrot.slane %v2178_v42, 7  ;;  %v7255_v31 = vld [vmem:[#allocation59_spill] sm:$0xff]  ;;  %v7256_v42 = vld [vmem:[#allocation29_spill] sm:$0xff]  ;;  %4375 = vmatprep.subr.msk.bf16.mxu0 %vm3706_vm4, %v4498_v54  ;;  %4376 = vmatprep.subr.msk.bf16.mxu1 %vm3706_vm4, %v4498_v54 }
 0x220   : > { %2948 = vrot.lane.b32.xlu1 %v2893_v17, %s4801_s23  ;;  %v1358_v27 = vor.u32 %v7253_v7, %v6059_v13  ;;  %v3123_v17 = vor.u32 %v3121_v45, %v6176_v30  ;;  %v2119_v12 = vor.u32 %v2117_v21, %v6171_v48  ;;  %v6208_v28 = vcombine.low %v1765_v23, %v1777_v0  ;;  %v7257_v23 = vld [vmem:[#allocation63_spill] sm:$0xff]  ;;  %v7260_v7 = vld [vmem:[#allocation37_spill] sm:$0xff] }
 0x221   : > { %3161 = vrot.lane.b32.xlu0 %v3052_v11, %s4802_s29  ;;  %v6213_v33 = vcombine.low %v1957_v34, %v1969_v56  ;;  %v3060_v6 = vsel %vm1331_vm2, %v3048_v60, %v3059_v20  ;;  %v6218_v18 = vmul.bf16 %v6084_v38, %v5837_v15  ;;  %v1423_v49 = vsel %vm1331_vm2, %v5934_v16, %v1422_v44  ;;  %v7259_v56 = vld [vmem:[#allocation32_spill] sm:$0xff]  ;;  %v7269_v30 = vld [vmem:[#allocation65_spill] sm:$0xff] }
 0x222   : > { %v1359_v39 = vsel %vm1331_vm2, %v7255_v31, %v1358_v27  ;;  %v1064_v0 = vrot.slane %v7256_v42, %v5297_v58  ;;  %v1052_v11 = vrot.slane %v7257_v23, %v5297_v58  ;;  %1490 = vst.msk [vmem:[#allocation3 + $0x50] sm:$0xff] %vm667_vm0, %v1423_v49  ;;  %v7258_v60 = vshll.u32 %v6007_v57, 16  ;;  %v6243_v27 = vpop.permute.xlu0 %2695 }
 0x223   : > { %1482 = vst.msk [vmem:[#allocation3 + $0x10] sm:$0xff] %vm667_vm0, %v1359_v39  ;;  %v1088_v34 = vrot.slane %v7259_v56, %v5297_v58  ;;  %v3124_v16 = vsel %vm1331_vm2, %v3112_v52, %v3123_v17  ;;  %v6237_v20 = vmul.bf16 %v5854_v37, %v6100_v1  ;;  %v3708_v45 = vsel %vm3706_vm4, %v4498_v54, 0  ;;  %v4286_v54 = vld [vmem:[%s5125_s1 + $0x78] sm:$0xff]   ;;  %v7261_v39 = vld [vmem:[#allocation62_spill] sm:$0xff] }
 0x224   : > { %3177 = vrot.lane.b32.xlu1 %v3116_v46, %s4802_s29  ;;  %v1366_v15 = vor.u32 %v7258_v60, %v6067_v53  ;;  %v2122_v21 = vshrl.u32 %v6208_v28, 16  ;;  %v1076_v57 = vrot.slane %v7260_v7, %v5297_v58  ;;  %4332 = vmatpush3.bf16.msra.mxu0 %v3708_v45  ;;  %v1430_v37 = vor.u32 %v1428_v43, %v6199_v61  ;;  %v7264_v60 = vld [vmem:[#allocation64_spill] sm:$0xff]  ;;  %v6297_v7 = vpop.permute.xlu1 %2711 }
 0x225   : > { %3163 = vrot.lane.b32.xlu0 %v3060_v6, %s4802_s29  ;;  %v2181_v46 = vshll.u32 %v6160_v4, 16  ;;  %v2186_v17 = vshrl.u32 %v6213_v33, 16  ;;  %v3377_v44 = vshll.u32 %v6218_v18, 16  ;;  %4374 = vmatpush3.bf16.msra.mxu1 %v3708_v45  ;;  %v6257_v31 = vsel %vm1169_vm1, %v6158_v51, %v6192_v41  ;;  %v6291_v45 = vld [vmem:[#allocation2 + $0x78] sm:$0xff] }
 0x226   : > { %v1367_v52 = vsel %vm1331_vm2, %v6059_v13, %v1366_v15  ;;  %v1278_v13 = vshrl.u32 %v6118_v29, 16  ;;  %v6260_v43 = vcombine.low %v1052_v11, %v1064_v0  ;;  %v1431_v4 = vsel %vm1331_vm2, %v6167_v5, %v1430_v37  ;;  %v6280_v5 = vld [vmem:[#allocation2 + $0x38] sm:$0xff] }
 0x227   : > { %1483 = vst.msk [vmem:[#allocation3 + $0x18] sm:$0xff] %vm667_vm0, %v1367_v52  ;;  %v6268_v6 = vsel %vm1331_vm2, %v7261_v39, %v2119_v12  ;;  %v2183_v49 = vor.u32 %v2181_v46, %v6206_v32  ;;  %v2125_v42 = vshll.u32 %v6208_v28, 16  ;;  %v3441_v51 = vshll.u32 %v6237_v20, 16  ;;  %1491 = vst.msk [vmem:[#allocation3 + $0x58] sm:$0xff] %vm667_vm0, %v1431_v4  ;;  %v7265_v46 = vld [vmem:[#allocation34_spill] sm:$0xff] }
 0x228   : > { %3179 = vrot.lane.b32.xlu1 %v3124_v16, %s4802_s29  ;;  %v6274_v29 = vrot.slane %v2122_v21, 7  ;;  %v6276_v0 = vcombine.low %v1076_v57, %v1088_v34  ;;  %v4206_v23 = vunpack.c.l.bf16 %v4286_v54  ;;  %v4207_v12 = vunpack.c.h.bf16 %v4286_v54  ;;  %v6295_v21 = vpop.permute.xlu0 %2697  ;;  %v4500_v57 = vld [vmem:[#allocation7] ss:$0 sm:$0xff] }
 0x229   : > { %3258 = vrot.lane.b32.xlu0 %v5806_v3, %s4803_s22  ;;  %v6282_v11 = vrot.slane %v2186_v17, 7  ;;  %v3373_v15 = vshrl.u32 %v7264_v60, 16  ;;  %v3379_v28 = vrot.slane %v3377_v44, 1  ;;  %v6287_v56 = vmul.bf16 %v6280_v5, %v5881_v19  ;;  %v7266_v19 = vld [vmem:[#allocation43_spill] sm:$0xff]  ;;  %v4501_v60 = vld [vmem:[#allocation9] ss:$0 sm:$0xff] }
 0x22a   : > { %7262 = vst [vmem:[#allocation50_spill] sm:$0xff] %v6274_v29  ;;  %v2189_v16 = vshll.u32 %v6213_v33, 16  ;;  %v1282_v34 = vshll.u32 %v6260_v43, 16  ;;  %v505_v52 = vmul.f32 %v4500_v57, %v4206_v23  ;;  %v506_v37 = vmul.f32 %v4500_v57, %v4207_v12  ;;  %v7268_v57 = vld [vmem:[#allocation41_spill] sm:$0xff] }
 0x22b   : > { %7263 = vst [vmem:[#allocation47_spill] sm:$0xff] %v6282_v11  ;;  %v3375_v17 = vor.u32 %v3373_v15, %v7265_v46  ;;  %v3437_v44 = vshrl.u32 %v7266_v19, 16  ;;  %v3443_v54 = vrot.slane %v3441_v51, 1  ;;  %v6303_v33 = vmul.bf16 %v5903_v59, %v6291_v45 }
 0x22c   : > { %3274 = vrot.lane.b32.xlu1 %v5960_v2, %s4803_s22  ;;  %v2127_v4 = vor.u32 %v2125_v42, %v6274_v29  ;;  %v1290_v39 = vshll.u32 %v6276_v0, 16  ;;  %v544_v22 = vadd.f32 %v4501_v60, %v505_v52  ;;  %v545_v23 = vadd.f32 %v4501_v60, %v506_v37 }
 0x22d   : > { %3260 = vrot.lane.b32.xlu0 %v6084_v38, %s4803_s22  ;;  %7267 = vst [vmem:[#allocation49_spill] sm:$0xff] %v6303_v33  ;;  %v2191_v12 = vor.u32 %v2189_v16, %v6282_v11  ;;  %v3380_v15 = vsel %vm1169_vm1, %v3375_v17, %v3379_v28  ;;  %v3439_v51 = vor.u32 %v3437_v44, %v7268_v57  ;;  %v3385_v46 = vshll.u32 %v6287_v56, 16  ;;  %v7270_v17 = vld [vmem:[#allocation66_spill] sm:$0xff] }
 0x22e   : > { %v1284_v59 = vrot.slane %v1282_v34, 1  ;;  %v576_v42 = vmax.f32 %v544_v22, 0.0  ;;  %v577_v19 = vmax.f32 %v545_v23, 0.0  ;;  %v1280_v29 = vor.u32 %v1278_v13, %v6192_v41  ;;  %v6327_v22 = vpop.permute.xlu1 %2713 }
 0x22f   : > { %v6317_v52 = vmul.bf16 %v6257_v31, %v7269_v30  ;;  %v3444_v16 = vsel %vm1169_vm1, %v3439_v51, %v3443_v54  ;;  %v3449_v37 = vshll.u32 %v6303_v33, 16  ;;  %v6323_v44 = vsel %vm1331_vm2, %v7270_v17, %v2183_v49 }
 0x230   : > { %3276 = vrot.lane.b32.xlu1 %v6100_v1, %s4803_s22  ;;  %v1286_v34 = vshrl.u32 %v6260_v43, 16  ;;  %v1292_v60 = vrot.slane %v1290_v39, 1  ;;  %v593_v41 = vpack.c.bf16 %v577_v19, %v576_v42  ;;  %v6331_v30 = vsel %vm1331_vm2, %v6171_v48, %v2127_v4 }
 0x231   : > { %3489 = vrot.lane.b32.xlu0 %v3380_v15, %s4804_s17  ;;  %v3381_v13 = vshrl.u32 %v6218_v18, 16  ;;  %v6335_v23 = vrot.slane %v3385_v46, 1  ;;  %v6339_v43 = vmul.bf16 %v6084_v38, %v6268_v6  ;;  %v7272_v49 = vshrl.u32 %v6108_v24, 16 }
 0x232   : > { %v2368_v15 = vpop.permute.xlu0 %2367  ;;  %v6347_v57 = vsel %vm1331_vm2, %v6206_v32, %v2191_v12  ;;  %v6350_v48 = vsel %vm1169_vm1, %v1280_v29, %v1284_v59  ;;  %v1288_v4 = vor.u32 %v1286_v34, %v1284_v59  ;;  %687 = vst.msk [vmem:[#allocation2 + $0x88] sm:$0xff] %vm667_vm0, %v593_v41  ;;  %v3445_v51 = vshrl.u32 %v6237_v20, 16 }
 0x233   : > { %2416 = vst.msk [vmem:[#allocation3] sm:$0xff] %vm2415_vm5, %v2368_v15  ;;  %7271 = vst [vmem:[#allocation35_spill] sm:$0xff] %v6335_v23  ;;  %v6343_v39 = vrot.slane %v7272_v49, 7  ;;  %v3383_v18 = vor.u32 %v3381_v13, %v3379_v28  ;;  %v6356_v46 = vrot.slane %v3449_v37, 1  ;;  %v6360_v42 = vmul.bf16 %v6323_v44, %v6100_v1 }
 0x234   : > { %3505 = vrot.lane.b32.xlu1 %v3444_v16, %s4804_s17  ;;  %v1433_v32 = vshrl.u32 %v6317_v52, 16  ;;  %v6364_v29 = vsel %vm1169_vm1, %v1288_v4, %v1292_v60  ;;  %v1294_v12 = vshrl.u32 %v6276_v0, 16  ;;  %v3447_v28 = vor.u32 %v3445_v51, %v3443_v54  ;;  %v7279_v4 = vld [vmem:[#allocation67_spill] sm:$0xff] }
 0x235   : > { %1536 = vrot.lane.b32.xlu0 %v5806_v3, %s4796_s10  ;;  %7273 = vst [vmem:[#allocation30_spill] sm:$0xff] %v6356_v46  ;;  %7274 = vst [vmem:[#allocation31_spill] sm:$0xff] %v6364_v29  ;;  %v6371_v3 = vmul.bf16 %v6280_v5, %v6331_v30  ;;  %v3388_v20 = vsel %vm1169_vm1, %v3383_v18, %v6335_v23  ;;  %v2275_v59 = vshll.u32 %v6339_v43, 16  ;;  %v2339_v34 = vshll.u32 %v6360_v42, 16 }
 0x236   : > { %v2454_v19 = vmul.bf16 %v6084_v38, %v6012_v50  ;;  %v6381_v0 = vmul.bf16 %v6350_v48, %v6100_v1  ;;  %v6388_v17 = vmul.bf16 %v6347_v57, %v6291_v45  ;;  %v3452_v54 = vsel %vm1169_vm1, %v3447_v28, %v6356_v46 }
 0x237   : > { %7275 = vst [vmem:[#allocation54_spill] sm:$0xff] %v6371_v3  ;;  %v6396_v15 = vmul.bf16 %v6257_v31, %v6100_v1  ;;  %v6401_v13 = vrot.slane %v1433_v32, 7  ;;  %v6405_v49 = vmul.bf16 %v6364_v29, %v6291_v45  ;;  %v2271_v18 = vshrl.u32 %v7279_v4, 16 }
 0x238   : > { %1552 = vrot.lane.b32.xlu1 %v5960_v2, %s4796_s10  ;;  %v6383_v2 = vor.u32 %v1294_v12, %v1292_v60  ;;  %7277 = vst [vmem:[#allocation60_spill] sm:$0xff] %v6388_v17  ;;  %v7278_v60 = vshll.u32 %v6033_v47, 16  ;;  %v2283_v51 = vshll.u32 %v6371_v3, 16  ;;  %v6410_v12 = vld [vmem:[#allocation2 + $0x80] sm:$0xff]  ;;  %v2503_v28 = vshrl.u32 %v2454_v19, 16 }
 0x239   : > { %3491 = vrot.lane.b32.xlu0 %v3388_v20, %s4804_s17  ;;  %v2277_v20 = vrot.slane %v2275_v59, 1  ;;  %v6414_v47 = vmul.bf16 %v6280_v5, %v6028_v36  ;;  %v2347_v59 = vshll.u32 %v6388_v17, 16  ;;  %v2273_v16 = vor.u32 %v2271_v18, %v5974_v25 }
 0x23a   : > { %7276 = vst [vmem:[#allocation52_spill] sm:$0xff] %v6383_v2  ;;  %v2384_v37 = vpop.permute.xlu1 %2383  ;;  %v1374_v41 = vor.u32 %v7278_v60, %v6086_v63  ;;  %v7280_v60 = vld [vmem:[#allocation68_spill] sm:$0xff]  ;;  %v2341_v29 = vrot.slane %v2339_v34, 1  ;;  %v6438_v17 = vrot.slane %v2283_v51, 1  ;;  %v6443_v18 = vrot.slane %v2503_v28, 7 }
 0x23b   : > { %2424 = vst.msk [vmem:[#allocation3 + $0x40] sm:$0xff] %vm2415_vm5, %v2384_v37  ;;  %v1441_v37 = vshrl.u32 %v6381_v0, 16  ;;  %v2335_v4 = vshrl.u32 %v7280_v60, 16  ;;  %v2279_v60 = vshrl.u32 %v6339_v43, 16  ;;  %v2278_v25 = vsel %vm1169_vm1, %v2273_v16, %v2277_v20 }
 0x23c   : > { %3507 = vrot.lane.b32.xlu1 %v3452_v54, %s4804_s17  ;;  %v1375_v32 = vsel %vm1331_vm2, %v6067_v53, %v1374_v41  ;;  %v6421_v54 = vmul.bf16 %v6383_v2, %v6410_v12  ;;  %v2567_v53 = vshrl.u32 %v6396_v15, 16  ;;  %v6432_v41 = vmul.bf16 %v6350_v48, %v6291_v45 }
 0x23d   : > { %1538 = vrot.lane.b32.xlu0 %v6084_v38, %s4796_s10  ;;  %1484 = vst.msk [vmem:[#allocation3 + $0x20] sm:$0xff] %vm667_vm0, %v1375_v32  ;;  %v1449_v2 = vshrl.u32 %v6405_v49, 16  ;;  %v2337_v34 = vor.u32 %v2335_v4, %v5982_v14  ;;  %v2511_v32 = vshrl.u32 %v6414_v47, 16  ;;  %v2281_v46 = vor.u32 %v2279_v60, %v2277_v20 }
 0x23e   : > { %v2343_v33 = vshrl.u32 %v6360_v42, 16  ;;  %v6448_v23 = vrot.slane %v2347_v59, 1  ;;  %v6452_v16 = vrot.slane %v2567_v53, 7  ;;  %v2575_v14 = vshrl.u32 %v6432_v41, 16 }
 0x23f   : > { %v2370_v3 = vpop.permute.xlu0 %2369  ;;  %v2342_v43 = vsel %vm1169_vm1, %v2337_v34, %v2341_v29  ;;  %v1443_v51 = vrot.slane %v1441_v37, 7  ;;  %v1457_v28 = vshrl.u32 %v6421_v54, 16  ;;  %v2286_v42 = vsel %vm1169_vm1, %v2281_v46, %v6438_v17 }
 0x240   : > { %1554 = vrot.lane.b32.xlu1 %v6100_v1, %s4796_s10  ;;  %2417 = vst.msk [vmem:[#allocation3 + $0x8] sm:$0xff] %vm2415_vm5, %v2370_v3  ;;  %v2506_v3 = vshll.u32 %v2454_v19, 16  ;;  %v2345_v20 = vor.u32 %v2343_v33, %v2341_v29  ;;  %v2570_v19 = vshll.u32 %v6396_v15, 16  ;;  %v6462_v59 = vrot.slane %v2511_v32, 7 }
 0x241   : > { %2375 = vrot.lane.b32.xlu0 %v2278_v25, %s4799_s9  ;;  %v7281_v37 = vshll.u32 %v6317_v52, 16  ;;  %v1444_v60 = vshll.u32 %v6381_v0, 16  ;;  %v1451_v25 = vrot.slane %v1449_v2, 7  ;;  %v7282_v46 = vshll.u32 %v6044_v8, 16 }
 0x242   : > { %v2386_v11 = vpop.permute.xlu1 %2385  ;;  %v2350_v33 = vsel %vm1169_vm1, %v2345_v20, %v6448_v23  ;;  %v2572_v52 = vor.u32 %v2570_v19, %v6452_v16  ;;  %v2514_v0 = vshll.u32 %v6414_v47, 16  ;;  %v6479_v2 = vrot.slane %v2575_v14, 7 }
 0x243   : > { %2425 = vst.msk [vmem:[#allocation3 + $0x48] sm:$0xff] %vm2415_vm5, %v2386_v11  ;;  %v2599_v4 = vpop.permute.xlu0 %2598  ;;  %v2508_v11 = vor.u32 %v2506_v3, %v6443_v18  ;;  %v1438_v53 = vor.u32 %v7281_v37, %v6401_v13  ;;  %v1382_v29 = vor.u32 %v7282_v46, %v6105_v55  ;;  %v1388_v32 = vshll.u32 %v6108_v24, 16 }
 0x244   : > { %2391 = vrot.lane.b32.xlu1 %v2342_v43, %s4799_s9  ;;  %2647 = vst.msk [vmem:[#allocation3] sm:$0xff] %vm2646_vm6, %v2599_v4  ;;  %v1452_v43 = vshll.u32 %v6405_v49, 16  ;;  %v1446_v47 = vor.u32 %v1444_v60, %v1443_v51  ;;  %v1459_v3 = vrot.slane %v1457_v28, 7  ;;  %v2578_v49 = vshll.u32 %v6432_v41, 16 }
 0x245   : > { %2377 = vrot.lane.b32.xlu0 %v2286_v42, %s4799_s9  ;;  %2744 = vst.msk [vmem:[#allocation3] sm:$0xff] %vm2743_vm7, %v6243_v27  ;;  %v1439_v15 = vsel %vm1331_vm2, %v6199_v61, %v1438_v53  ;;  %v1383_v8 = vsel %vm1331_vm2, %v6086_v63, %v1382_v29  ;;  %v2509_v24 = vsel %vm1331_vm2, %v5999_v62, %v2508_v11  ;;  %v1460_v14 = vshll.u32 %v6421_v54, 16 }
 0x246   : > { %v2615_v34 = vpop.permute.xlu1 %2614  ;;  %1492 = vst.msk [vmem:[#allocation3 + $0x60] sm:$0xff] %vm667_vm0, %v1439_v15  ;;  %v2516_v61 = vor.u32 %v2514_v0, %v6462_v59  ;;  %1485 = vst.msk [vmem:[#allocation3 + $0x28] sm:$0xff] %vm667_vm0, %v1383_v8  ;;  %v1447_v62 = vsel %vm1331_vm2, %v6401_v13, %v1446_v47  ;;  %v2573_v41 = vsel %vm1331_vm2, %v6022_v40, %v2572_v52  ;;  %v7283_v13 = vld [vmem:[#allocation42_spill] sm:$0xff] }
 0x247   : > { %2655 = vst.msk [vmem:[#allocation3 + $0x40] sm:$0xff] %vm2646_vm6, %v2615_v34  ;;  %v2601_v27 = vpop.permute.xlu0 %2600  ;;  %v2580_v28 = vor.u32 %v2578_v49, %v6479_v2  ;;  %v1454_v54 = vor.u32 %v1452_v43, %v1451_v25  ;;  %v1462_v19 = vor.u32 %v1460_v14, %v1459_v3  ;;  %v6527_v37 = vmul.bf16 %v6323_v44, %v6291_v45 }
 0x248   : > { %2393 = vrot.lane.b32.xlu1 %v2350_v33, %s4799_s9  ;;  %2752 = vst.msk [vmem:[#allocation3 + $0x40] sm:$0xff] %vm2743_vm7, %v6297_v7  ;;  %v1396_v7 = vshll.u32 %v5792_v35, 16  ;;  %v1390_v35 = vor.u32 %v1388_v32, %v6343_v39  ;;  %v2517_v40 = vsel %vm1331_vm2, %v6443_v18, %v2516_v61  ;;  %v6556_v46 = vmul.bf16 %v6347_v57, %v6410_v12 }
 0x249   : > { %2648 = vst.msk [vmem:[#allocation3 + $0x8] sm:$0xff] %vm2646_vm6, %v2601_v27  ;;  %2606 = vrot.lane.b32.xlu0 %v2509_v24, %s4800_s26  ;;  %v1455_v11 = vsel %vm1331_vm2, %v1443_v51, %v1454_v54  ;;  %v6536_v51 = vld [vmem:[#allocation2 + $0x40] sm:$0xff]  ;;  %v1463_v53 = vsel %vm1331_vm2, %v1451_v25, %v1462_v19  ;;  %v2898_v33 = vshll.u32 %v6527_v37, 16  ;;  %v3021_v29 = vmul.bf16 %v6257_v31, %v6291_v45 }
 0x24a   : > { %v2617_v63 = vpop.permute.xlu1 %2616  ;;  %2745 = vst.msk [vmem:[#allocation3 + $0x8] sm:$0xff] %vm2743_vm7, %v6295_v21  ;;  %v6515_v21 = vmul.bf16 %v6280_v5, %v6268_v6  ;;  %v1398_v42 = vor.u32 %v1396_v7, %v7283_v13  ;;  %v1391_v20 = vsel %vm1331_vm2, %v6105_v55, %v1390_v35  ;;  %v2581_v55 = vsel %vm1331_vm2, %v6452_v16, %v2580_v28  ;;  %v7285_v31 = vld [vmem:[#allocation48_spill] sm:$0xff] }
 0x24b   : > { %2656 = vst.msk [vmem:[#allocation3 + $0x48] sm:$0xff] %vm2646_vm6, %v2617_v63  ;;  %v2927_v4 = vpop.permute.xlu0 %2926  ;;  %v6543_v34 = vmul.bf16 %v6536_v51, %v6331_v30  ;;  %v3013_v16 = vmul.bf16 %v6280_v5, %v6012_v50  ;;  %v3014_v43 = vmul.bf16 %v6536_v51, %v6028_v36  ;;  %v2894_v8 = vshrl.u32 %v7285_v31, 16 }
 0x24c   : > { %1493 = vst.msk [vmem:[#allocation3 + $0x68] sm:$0xff] %vm667_vm0, %v1447_v62  ;;  %2622 = vrot.lane.b32.xlu1 %v2573_v41, %s4800_s26  ;;  %1486 = vst.msk [vmem:[#allocation3 + $0x30] sm:$0xff] %vm667_vm0, %v1391_v20  ;;  %v1399_v18 = vsel %vm1331_vm2, %v6343_v39, %v1398_v42  ;;  %v2834_v39 = vshll.u32 %v6515_v21, 16  ;;  %v2900_v47 = vrot.slane %v2898_v33, 1  ;;  %v2906_v3 = vshll.u32 %v6556_v46, 16 }
 0x24d   : > { %2753 = vst.msk [vmem:[#allocation3 + $0x48] sm:$0xff] %vm2743_vm7, %v6327_v22  ;;  %2608 = vrot.lane.b32.xlu0 %v2517_v40, %s4800_s26  ;;  %v2842_v50 = vshll.u32 %v6543_v34, 16  ;;  %v3062_v32 = vshrl.u32 %v3013_v16, 16  ;;  %v3126_v24 = vshrl.u32 %v3021_v29, 16  ;;  %v3022_v61 = vmul.bf16 %v6350_v48, %v6410_v12 }
 0x24e   : > { %2975 = vst.msk [vmem:[#allocation3] sm:$0xff] %vm2974_vm8, %v2927_v4  ;;  %v2943_v22 = vpop.permute.xlu1 %2942  ;;  %v2836_v15 = vrot.slane %v2834_v39, 1  ;;  %v2896_v36 = vor.u32 %v2894_v8, %v6154_v9  ;;  %v2838_v7 = vshrl.u32 %v6515_v21, 16  ;;  %v3070_v62 = vshrl.u32 %v3014_v43, 16 }
 0x24f   : > { %1494 = vst.msk [vmem:[#allocation3 + $0x70] sm:$0xff] %vm667_vm0, %v1455_v11  ;;  %1487 = vst.msk [vmem:[#allocation3 + $0x38] sm:$0xff] %vm667_vm0, %v1399_v18  ;;  %v2929_v60 = vpop.permute.xlu0 %2928  ;;  %v6579_v14 = vrot.slane %v2842_v50, 1  ;;  %v3064_v63 = vrot.slane %v3062_v32, 7  ;;  %v6587_v9 = vrot.slane %v2906_v3, 1  ;;  %v3065_v28 = vshll.u32 %v3013_v16, 16 }
 0x250   : > { %2983 = vst.msk [vmem:[#allocation3 + $0x40] sm:$0xff] %vm2974_vm8, %v2943_v22  ;;  %2624 = vrot.lane.b32.xlu1 %v2581_v55, %s4800_s26  ;;  %2976 = vst.msk [vmem:[#allocation3 + $0x8] sm:$0xff] %vm2974_vm8, %v2929_v60  ;;  %v2901_v48 = vsel %vm1169_vm1, %v2896_v36, %v2900_v47  ;;  %v2840_v12 = vor.u32 %v2838_v7, %v2836_v15  ;;  %v3128_v35 = vrot.slane %v3126_v24, 7  ;;  %v3134_v54 = vshrl.u32 %v3022_v61, 16  ;;  %v7286_v55 = vld [vmem:[#allocation39_spill] sm:$0xff]  ;;  %v7287_v60 = vld [vmem:[#allocation36_spill] sm:$0xff] }
 0x251   : > { %1495 = vst.msk [vmem:[#allocation3 + $0x78] sm:$0xff] %vm667_vm0, %v1463_v53  ;;  %2703 = vrot.lane.b32.xlu0 %v6084_v38, %s4797_s28  ;;  %v7284_v38 = vld [vmem:[#allocation46_spill] sm:$0xff]  ;;  %v3067_v42 = vor.u32 %v3065_v28, %v3064_v63  ;;  %v3129_v40 = vshll.u32 %v3021_v29, 16  ;;  %v6593_v20 = vrot.slane %v3070_v62, 7  ;;  %v1993_v53 = vrot.slane %v7286_v55, %v5297_v58  ;;  %v7288_v50 = vld [vmem:[#allocation33_spill] sm:$0xff]  ;;  %v6616_v32 = vld [vmem:[#allocation2 + $0x80] sm:$0xff] }
 0x252   : > { %v2945_v25 = vpop.permute.xlu1 %2944  ;;  %v2830_v0 = vshrl.u32 %v7284_v38, 16  ;;  %v2845_v21 = vsel %vm1169_vm1, %v2840_v12, %v6579_v14  ;;  %v6599_v18 = vrot.slane %v3134_v54, 7  ;;  %v1981_v39 = vrot.slane %v7287_v60, %v5297_v58  ;;  %v3234_v3 = vld [vmem:[#allocation2 + $0x78] sm:$0xff]  ;;  %v6641_v7 = vld [vmem:[#allocation2 + $0x48] sm:$0xff] }
 0x253   : > { %2984 = vst.msk [vmem:[#allocation3 + $0x48] sm:$0xff] %vm2974_vm8, %v2945_v25  ;;  %v3158_v52 = vpop.permute.xlu0 %3157  ;;  %v3131_v22 = vor.u32 %v3129_v40, %v3128_v35  ;;  %v3068_v25 = vsel %vm1331_vm2, %v6165_v26, %v3067_v42  ;;  %v3137_v29 = vshll.u32 %v3022_v61, 16  ;;  %v6629_v8 = vmul.bf16 %v6616_v32, %v6323_v44  ;;  %v7289_v28 = vld [vmem:[#allocation35_spill] sm:$0xff]  ;;  %v7290_v54 = vld [vmem:[#allocation49_spill] sm:$0xff]  ;;  %v7291_v40 = vld [vmem:[#allocation30_spill] sm:$0xff] }
 0x254   : > { %2719 = vrot.lane.b32.xlu1 %v6100_v1, %s4797_s28  ;;  %3206 = vst.msk [vmem:[#allocation3] sm:$0xff] %vm3205_vm9, %v3158_v52  ;;  %v2832_v1 = vor.u32 %v2830_v0, %v6148_v10  ;;  %v4114_v0 = vcombine.low %v1981_v39, %v1993_v53  ;;  %v7294_v39 = vld [vmem:[#allocation47_spill] sm:$0xff] }
 0x255   : > { %2705 = vrot.lane.b32.xlu0 %v6280_v5, %s4797_s28  ;;  %v3132_v58 = vsel %vm1331_vm2, %v7288_v50, %v3131_v22  ;;  %v3139_v38 = vor.u32 %v3137_v29, %v6599_v18  ;;  %v3457_v61 = vshll.u32 %v6629_v8, 16  ;;  %v7292_v22 = vld [vmem:[#allocation38_spill] sm:$0xff] }
 0x256   : > { %v3174_v27 = vpop.permute.xlu1 %3173  ;;  %v2837_v10 = vsel %vm1169_vm1, %v2832_v1, %v2836_v15 }
 0x257   : > { %3214 = vst.msk [vmem:[#allocation3 + $0x40] sm:$0xff] %vm3205_vm9, %v3174_v27  ;;  %v3160_v49 = vpop.permute.xlu0 %3159  ;;  %v3140_v31 = vsel %vm1331_vm2, %v3128_v35, %v3139_v38 }
 0x258   : > { %2721 = vrot.lane.b32.xlu1 %v6291_v45, %s4797_s28  ;;  %3207 = vst.msk [vmem:[#allocation3 + $0x8] sm:$0xff] %vm3205_vm9, %v3160_v49  ;;  %v2902_v45 = vshrl.u32 %v6527_v37, 16  ;;  %v3073_v37 = vshll.u32 %v3014_v43, 16  ;;  %v6622_v43 = vmul.bf16 %v6536_v51, %v6268_v6 }
 0x259   : > { %2934 = vrot.lane.b32.xlu0 %v2837_v10, %s4801_s23  ;;  %v6643_v10 = vld [vmem:[#allocation2 + $0x88] sm:$0xff] }
 0x25a   : > { %v3176_v41 = vpop.permute.xlu1 %3175  ;;  %v2904_v13 = vor.u32 %v2902_v45, %v2900_v47  ;;  %v3075_v33 = vor.u32 %v3073_v37, %v6593_v20  ;;  %v2194_v47 = vshrl.u32 %v4114_v0, 16  ;;  %v3393_v6 = vshll.u32 %v6622_v43, 16  ;;  %v7293_v37 = vld [vmem:[#allocation50_spill] sm:$0xff] }
 0x25b   : > { %3215 = vst.msk [vmem:[#allocation3 + $0x48] sm:$0xff] %vm3205_vm9, %v3176_v41  ;;  %v3255_v4 = vpop.permute.xlu0 %3254  ;;  %v6650_v41 = vmul.bf16 %v6641_v7, %v6331_v30  ;;  %v6672_v55 = vsel %vm1331_vm2, %v7293_v37, %v7292_v22  ;;  %v3397_v29 = vshrl.u32 %v6622_v43, 16 }
 0x25c   : > { %2950 = vrot.lane.b32.xlu1 %v2901_v48, %s4801_s23  ;;  %3303 = vst.msk [vmem:[#allocation3] sm:$0xff] %vm3302_vm10, %v3255_v4  ;;  %v2909_v19 = vsel %vm1169_vm1, %v2904_v13, %v6587_v9  ;;  %v3076_v26 = vsel %vm1331_vm2, %v3064_v63, %v3075_v33  ;;  %v6638_v44 = vrot.slane %v2194_v47, 7  ;;  %v3389_v63 = vshrl.u32 %v6287_v56, 16 }
 0x25d   : > { %2936 = vrot.lane.b32.xlu0 %v2845_v21, %s4801_s23  ;;  %v3395_v62 = vrot.slane %v3393_v6, 1  ;;  %v2197_v48 = vshll.u32 %v4114_v0, 16  ;;  %v3453_v4 = vshrl.u32 %v7290_v54, 16  ;;  %v3459_v56 = vrot.slane %v3457_v61, 1 }
 0x25e   : > { %v3271_v11 = vpop.permute.xlu1 %3270  ;;  %v3391_v35 = vor.u32 %v3389_v63, %v7289_v28  ;;  %v6660_v21 = vmul.bf16 %v6643_v10, %v6347_v57  ;;  %v2225_v50 = vmul.bf16 %v6536_v51, %v6672_v55  ;;  %v7297_v63 = vld [vmem:[#allocation31_spill] sm:$0xff] }
 0x25f   : > { %3311 = vst.msk [vmem:[#allocation3 + $0x40] sm:$0xff] %vm3302_vm10, %v3271_v11  ;;  %v3257_v16 = vpop.permute.xlu0 %3256  ;;  %v2199_v30 = vor.u32 %v2197_v48, %v6638_v44  ;;  %v3455_v11 = vor.u32 %v3453_v4, %v7291_v40  ;;  %v3399_v0 = vor.u32 %v3397_v29, %v3395_v62  ;;  %v7298_v4 = vld [vmem:[#allocation60_spill] sm:$0xff] }
 0x260   : > { %2952 = vrot.lane.b32.xlu1 %v2909_v19, %s4801_s23  ;;  %3304 = vst.msk [vmem:[#allocation3 + $0x8] sm:$0xff] %vm3302_vm10, %v3257_v16  ;;  %v3396_v42 = vsel %vm1169_vm1, %v3391_v35, %v3395_v62  ;;  %v3401_v19 = vshll.u32 %v6650_v41, 16  ;;  %v3465_v60 = vshll.u32 %v6660_v21, 16  ;;  %v2291_v47 = vshll.u32 %v2225_v50, 16  ;;  %v7299_v40 = vld [vmem:[#allocation52_spill] sm:$0xff] }
 0x261   : > { %3165 = vrot.lane.b32.xlu0 %v3068_v25, %s4802_s29  ;;  %v3460_v53 = vsel %vm1169_vm1, %v3455_v11, %v3459_v56  ;;  %v6680_v16 = vsel %vm1331_vm2, %v7294_v39, %v2199_v30  ;;  %v2464_v62 = vmul.bf16 %v6616_v32, %v7297_v63 }
 0x262   : > { %v3273_v52 = vpop.permute.xlu1 %3272  ;;  %v2233_v43 = vmul.bf16 %v6616_v32, %v6680_v16 }
 0x263   : > { %3312 = vst.msk [vmem:[#allocation3 + $0x48] sm:$0xff] %vm3302_vm10, %v3273_v52  ;;  %v3486_v15 = vpop.permute.xlu0 %3485  ;;  %v6686_v52 = vrot.slane %v3401_v19, 1 }
 0x264   : > { %3181 = vrot.lane.b32.xlu1 %v3132_v58, %s4802_s29  ;;  %3534 = vst.msk [vmem:[#allocation3] sm:$0xff] %vm3533_vm11, %v3486_v15  ;;  %v3461_v15 = vshrl.u32 %v6629_v8, 16  ;;  %v2359_v22 = vshrl.u32 %v2233_v43, 16 }
 0x265   : > { %3167 = vrot.lane.b32.xlu0 %v3076_v26, %s4802_s29  ;;  %v6695_v26 = vrot.slane %v3465_v60, 1 }
 0x266   : > { %v3502_v27 = vpop.permute.xlu1 %3501 }
 0x267   : > { %3542 = vst.msk [vmem:[#allocation3 + $0x40] sm:$0xff] %vm3533_vm11, %v3502_v27  ;;  %v1533_v1 = vpop.permute.xlu0 %1532 }
 0x268   : > { %3183 = vrot.lane.b32.xlu1 %v3140_v31, %s4802_s29  ;;  %1579 = vst.msk [vmem:[#allocation3 + $0x10] sm:$0xff] %vm1576_vm3, %v1533_v1  ;;  %v3463_v31 = vor.u32 %v3461_v15, %v3459_v56  ;;  %v7295_v1 = vld [vmem:[#allocation45_spill] sm:$0xff]  ;;  %v2351_v56 = vshrl.u32 %v7298_v4, 16 }
 0x269   : > { %3262 = vrot.lane.b32.xlu0 %v6280_v5, %s4803_s22  ;;  %v2456_v6 = vmul.bf16 %v6536_v51, %v7295_v1 }
 0x26a   : > { %v1549_v24 = vpop.permute.xlu1 %1548  ;;  %v2353_v37 = vor.u32 %v2351_v56, %v6448_v23  ;;  %v7300_v23 = vld [vmem:[#allocation40_spill] sm:$0xff] }
 0x26b   : > { %1587 = vst.msk [vmem:[#allocation3 + $0x50] sm:$0xff] %vm1576_vm3, %v1549_v24  ;;  %v3488_v49 = vpop.permute.xlu0 %3487  ;;  %v3550_v36 = vld [vmem:[#allocation3] sm:$0xff]  ;;  %v7296_v24 = vld [vmem:[#allocation54_spill] sm:$0xff]  ;;  %v2519_v35 = vshrl.u32 %v2456_v6, 16 }
 0x26c   : > { %3278 = vrot.lane.b32.xlu1 %v3234_v3, %s4803_s22  ;;  %3535 = vst.msk [vmem:[#allocation3 + $0x8] sm:$0xff] %vm3533_vm11, %v3488_v49  ;;  %4333 = vmatprep.mubr.msk.bf16.mxu0 %vm3657_vm12, %v3550_v36  ;;  %v2287_v61 = vshrl.u32 %v7296_v24, 16  ;;  %v1609_v49 = vld [vmem:[#allocation2 + $0x88] sm:$0x1]  ;;  %v2355_v36 = vshll.u32 %v2233_v43, 16 }
 0x26d   : > { %3264 = vrot.lane.b32.xlu0 %v6536_v51, %s4803_s22  ;;  %v2234_v28 = vmul.bf16 %v6638_v44, %v1609_v49  ;;  %v2521_v60 = vrot.slane %v2519_v35, 7 }
 0x26e   : > { %v3504_v12 = vpop.permute.xlu1 %3503  ;;  %v3558_v45 = vld [vmem:[#allocation3 + $0x40] sm:$0xff]  ;;  %v2357_v30 = vrot.slane %v2355_v36, 1 }
 0x26f   : > { %3543 = vst.msk [vmem:[#allocation3 + $0x48] sm:$0xff] %vm3533_vm11, %v3504_v12  ;;  %4349 = vmatprep.mubr.msk.bf16.mxu1 %vm3657_vm12, %v3558_v45  ;;  %v1535_v13 = vpop.permute.xlu0 %1534  ;;  %v2289_v12 = vor.u32 %v2287_v61, %v6438_v17  ;;  %v2293_v45 = vrot.slane %v2291_v47, 1  ;;  %v2465_v17 = vmul.bf16 %v6643_v10, %v7299_v40 }
 0x270   : > { %3280 = vrot.lane.b32.xlu1 %v6616_v32, %s4803_s22  ;;  %1580 = vst.msk [vmem:[#allocation3 + $0x18] sm:$0xff] %vm1576_vm3, %v1535_v13  ;;  %v2295_v13 = vshrl.u32 %v2225_v50, 16  ;;  %v2361_v29 = vor.u32 %v2359_v22, %v2357_v30  ;;  %v3023_v22 = vmul.bf16 %v6643_v10, %v7297_v63 }
 0x271   : > { %3493 = vrot.lane.b32.xlu0 %v3396_v42, %s4804_s17  ;;  %v2583_v42 = vshrl.u32 %v2464_v62, 16  ;;  %v2294_v19 = vsel %vm1169_vm1, %v2289_v12, %v2293_v45 }
 0x272   : > { %v1551_v57 = vpop.permute.xlu1 %1550 }
 0x273   : > { %1588 = vst.msk [vmem:[#allocation3 + $0x58] sm:$0xff] %vm1576_vm3, %v1551_v57  ;;  %v2372_v25 = vpop.permute.xlu0 %2371  ;;  %v3551_v33 = vld [vmem:[#allocation3 + $0x8] sm:$0xff]  ;;  %v2297_v57 = vor.u32 %v2295_v13, %v2293_v45  ;;  %v2585_v50 = vrot.slane %v2583_v42, 7  ;;  %v2776_v13 = vld [vmem:[#allocation2 + $0x90] sm:$0x1]  ;;  %v3015_v42 = vmul.bf16 %v6641_v7, %v7295_v1 }
 0x274   : > { %3509 = vrot.lane.b32.xlu1 %v3460_v53, %s4804_s17  ;;  %2418 = vst.msk [vmem:[#allocation3 + $0x10] sm:$0xff] %vm2415_vm5, %v2372_v25  ;;  %4334 = vmatmul.mubr.msk.bf16.vlgmr.msra.gmra.mrb[0].mxu0 %vm3657_vm12, %v3551_v33  ;;  %v2363_v53 = vshll.u32 %v2234_v28, 16  ;;  %v2522_v25 = vshll.u32 %v2456_v6, 16  ;;  %v2358_v33 = vsel %vm1169_vm1, %v2353_v37, %v2357_v30  ;;  %v7301_v6 = vld [vmem:[#allocation44_spill] sm:$0xff] }
 0x275   : > { %1540 = vrot.lane.b32.xlu0 %v6280_v5, %s4796_s10  ;;  %v3404_v5 = vsel %vm1169_vm1, %v3399_v0, %v6686_v52  ;;  %v2302_v0 = vsel %vm1169_vm1, %v2297_v57, %v7300_v23  ;;  %v2793_v57 = vmul.bf16 %v2776_v13, %v6638_v44 }
 0x276   : > { %v2388_v58 = vpop.permute.xlu1 %2387  ;;  %v3559_v38 = vld [vmem:[#allocation3 + $0x48] sm:$0xff]  ;;  %v2365_v15 = vrot.slane %v2363_v53, 1  ;;  %v2524_v43 = vor.u32 %v2522_v25, %v2521_v60  ;;  %v3078_v53 = vshrl.u32 %v3015_v42, 16  ;;  %v3142_v25 = vshrl.u32 %v3023_v22, 16 }
 0x277   : > { %2426 = vst.msk [vmem:[#allocation3 + $0x50] sm:$0xff] %vm2415_vm5, %v2388_v58  ;;  %4350 = vmatmul.mubr.msk.bf16.vlgmr.msra.gmra.mrb[0].mxu1 %vm3657_vm12, %v3559_v38  ;;  %v2374_v27 = vpop.permute.xlu0 %2373  ;;  %v2591_v58 = vshrl.u32 %v2465_v17, 16 }
 0x278   : > { %1556 = vrot.lane.b32.xlu1 %v3234_v3, %s4796_s10  ;;  %2419 = vst.msk [vmem:[#allocation3 + $0x18] sm:$0xff] %vm2415_vm5, %v2374_v27  ;;  %v3468_v3 = vsel %vm1169_vm1, %v3463_v31, %v6695_v26  ;;  %v2586_v27 = vshll.u32 %v2464_v62, 16  ;;  %v2366_v31 = vsel %vm1169_vm1, %v2361_v29, %v2365_v15  ;;  %v2525_v49 = vsel %vm1331_vm2, %v6462_v59, %v2524_v43 }
 0x279   : > { %3495 = vrot.lane.b32.xlu0 %v3404_v5, %s4804_s17  ;;  %v2593_v24 = vrot.slane %v2591_v58, 7  ;;  %v2594_v62 = vshll.u32 %v2465_v17, 16  ;;  %v2784_v59 = vmul.bf16 %v6641_v7, %v6672_v55  ;;  %v3080_v23 = vrot.slane %v3078_v53, 7 }
 0x27a   : > { %v2390_v8 = vpop.permute.xlu1 %2389  ;;  %v2588_v47 = vor.u32 %v2586_v27, %v2585_v50  ;;  %v3081_v15 = vshll.u32 %v3015_v42, 16  ;;  %v3144_v27 = vrot.slane %v3142_v25, 7 }
 0x27b   : > { %2427 = vst.msk [vmem:[#allocation3 + $0x58] sm:$0xff] %vm2415_vm5, %v2390_v8  ;;  %v2603_v48 = vpop.permute.xlu0 %2602  ;;  %v2530_v8 = vshll.u32 %v7301_v6, 16  ;;  %v2596_v45 = vor.u32 %v2594_v62, %v2593_v24  ;;  %v2850_v30 = vshll.u32 %v2784_v59, 16  ;;  %v3145_v24 = vshll.u32 %v3023_v22, 16  ;;  %v3335_v22 = vld [vmem:[#allocation2 + $0x98] sm:$0x1] }
 0x27c   : > { %3511 = vrot.lane.b32.xlu1 %v3468_v3, %s4804_s17  ;;  %2649 = vst.msk [vmem:[#allocation3 + $0x10] sm:$0xff] %vm2646_vm6, %v2603_v48  ;;  %v7302_v3 = vld [vmem:[#allocation51_spill] sm:$0xff]  ;;  %v2589_v12 = vsel %vm1331_vm2, %v6479_v2, %v2588_v47  ;;  %v2792_v2 = vmul.bf16 %v6643_v10, %v6680_v16 }
 0x27d   : > { %1542 = vrot.lane.b32.xlu0 %v6536_v51, %s4796_s10  ;;  %v2532_v36 = vor.u32 %v2530_v8, %v7302_v3  ;;  %v2597_v4 = vsel %vm1331_vm2, %v2585_v50, %v2596_v45  ;;  %v2922_v50 = vshll.u32 %v2793_v57, 16  ;;  %v3083_v8 = vor.u32 %v3081_v15, %v3080_v23 }
 0x27e   : > { %v2619_v54 = vpop.permute.xlu1 %2618  ;;  %v3147_v3 = vor.u32 %v3145_v24, %v3144_v27 }
 0x27f   : > { %2657 = vst.msk [vmem:[#allocation3 + $0x50] sm:$0xff] %vm2646_vm6, %v2619_v54  ;;  %v2605_v11 = vpop.permute.xlu0 %2604  ;;  %v2533_v35 = vsel %vm1331_vm2, %v2521_v60, %v2532_v36  ;;  %v2910_v60 = vshrl.u32 %v6556_v46, 16  ;;  %v2924_v6 = vrot.slane %v2922_v50, 1  ;;  %v7304_v36 = vld [vmem:[#allocation55_spill] sm:$0xff]  ;;  %v3084_v45 = vsel %vm1331_vm2, %v6593_v20, %v3083_v8 }
 0x280   : > { %1558 = vrot.lane.b32.xlu1 %v6616_v32, %s4796_s10  ;;  %2650 = vst.msk [vmem:[#allocation3 + $0x18] sm:$0xff] %vm2646_vm6, %v2605_v11  ;;  %v2846_v11 = vshrl.u32 %v6543_v34, 16  ;;  %v3089_v62 = vshll.u32 %v7304_v36, 16 }
 0x281   : > { %2379 = vrot.lane.b32.xlu0 %v2294_v19, %s4799_s9  ;;  %v2914_v19 = vshll.u32 %v2792_v2, 16 }
 0x282   : > { %v2621_v39 = vpop.permute.xlu1 %2620  ;;  %v2848_v1 = vor.u32 %v2846_v11, %v6579_v14  ;;  %v2912_v14 = vor.u32 %v2910_v60, %v6587_v9 }
 0x283   : > { %2658 = vst.msk [vmem:[#allocation3 + $0x58] sm:$0xff] %vm2646_vm6, %v2621_v39  ;;  %v2700_v38 = vpop.permute.xlu0 %2699  ;;  %v6775_v39 = vld [vmem:[#allocation2 + $0x90] sm:$0xff]  ;;  %v2916_v63 = vrot.slane %v2914_v19, 1 }
 0x284   : > { %2395 = vrot.lane.b32.xlu1 %v2358_v33, %s4799_s9  ;;  %2746 = vst.msk [vmem:[#allocation3 + $0x10] sm:$0xff] %vm2743_vm7, %v2700_v38  ;;  %v3024_v33 = vmul.bf16 %v6775_v39, %v7299_v40  ;;  %v2918_v38 = vshrl.u32 %v2792_v2, 16  ;;  %v3148_v2 = vsel %vm1331_vm2, %v6599_v18, %v3147_v3  ;;  %v3351_v18 = vmul.bf16 %v6775_v39, %v6680_v16 }
 0x285   : > { %2381 = vrot.lane.b32.xlu0 %v2302_v0, %s4799_s9  ;;  %v2917_v40 = vsel %vm1169_vm1, %v2912_v14, %v2916_v63 }
 0x286   : > { %v2716_v5 = vpop.permute.xlu1 %2715  ;;  %v2920_v43 = vor.u32 %v2918_v38, %v2916_v63  ;;  %v3473_v57 = vshll.u32 %v3351_v18, 16 }
 0x287   : > { %2754 = vst.msk [vmem:[#allocation3 + $0x50] sm:$0xff] %vm2743_vm7, %v2716_v5  ;;  %v2702_v61 = vpop.permute.xlu0 %2701  ;;  %v3150_v5 = vshrl.u32 %v3024_v33, 16 }
 0x288   : > { %2397 = vrot.lane.b32.xlu1 %v2366_v31, %s4799_s9  ;;  %2747 = vst.msk [vmem:[#allocation3 + $0x18] sm:$0xff] %vm2743_vm7, %v2702_v61  ;;  %v7303_v31 = vld [vmem:[#allocation53_spill] sm:$0xff] }
 0x289   : > { %2610 = vrot.lane.b32.xlu0 %v2525_v49, %s4800_s26  ;;  %v2925_v49 = vsel %vm1169_vm1, %v2920_v43, %v2924_v6 }
 0x28a   : > { %v2718_v48 = vpop.permute.xlu1 %2717 }
 0x28b   : > { %2755 = vst.msk [vmem:[#allocation3 + $0x58] sm:$0xff] %vm2743_vm7, %v2718_v48  ;;  %v2931_v28 = vpop.permute.xlu0 %2930  ;;  %v3152_v48 = vrot.slane %v3150_v5, 7 }
 0x28c   : > { %2626 = vrot.lane.b32.xlu1 %v2589_v12, %s4800_s26  ;;  %2977 = vst.msk [vmem:[#allocation3 + $0x10] sm:$0xff] %vm2974_vm8, %v2931_v28  ;;  %v7305_v28 = vld [vmem:[#allocation58_spill] sm:$0xff] }
 0x28d   : > { %2612 = vrot.lane.b32.xlu0 %v2533_v35, %s4800_s26  ;;  %v3091_v35 = vor.u32 %v3089_v62, %v7305_v28 }
 0x28e   : > { %v2947_v54 = vpop.permute.xlu1 %2946 }
 0x28f   : > { %2985 = vst.msk [vmem:[#allocation3 + $0x50] sm:$0xff] %vm2974_vm8, %v2947_v54  ;;  %v2933_v56 = vpop.permute.xlu0 %2932  ;;  %v3092_v20 = vsel %vm1331_vm2, %v3080_v23, %v3091_v35 }
 0x290   : > { %2628 = vrot.lane.b32.xlu1 %v2597_v4, %s4800_s26  ;;  %2978 = vst.msk [vmem:[#allocation3 + $0x18] sm:$0xff] %vm2974_vm8, %v2933_v56  ;;  %v3229_v4 = vld [vmem:[#allocation2 + $0x50] sm:$0xff] }
 0x291   : > { %2707 = vrot.lane.b32.xlu0 %v6536_v51, %s4797_s28  ;;  %v2852_v51 = vrot.slane %v2850_v30, 1  ;;  %v3343_v13 = vmul.bf16 %v3229_v4, %v6672_v55 }
 0x292   : > { %v2949_v17 = vpop.permute.xlu1 %2948 }
 0x293   : > { %2986 = vst.msk [vmem:[#allocation3 + $0x58] sm:$0xff] %vm2974_vm8, %v2949_v17  ;;  %v3162_v37 = vpop.permute.xlu0 %3161  ;;  %v2853_v46 = vsel %vm1169_vm1, %v2848_v1, %v2852_v51  ;;  %v3409_v19 = vshll.u32 %v3343_v13, 16  ;;  %v3413_v63 = vshrl.u32 %v3343_v13, 16 }
 0x294   : > { %2723 = vrot.lane.b32.xlu1 %v6616_v32, %s4797_s28  ;;  %3208 = vst.msk [vmem:[#allocation3 + $0x10] sm:$0xff] %vm3205_vm9, %v3162_v37  ;;  %v2854_v32 = vshrl.u32 %v2784_v59, 16  ;;  %v3153_v59 = vshll.u32 %v3024_v33, 16  ;;  %v3405_v37 = vshrl.u32 %v6650_v41, 16  ;;  %v3469_v41 = vshrl.u32 %v6660_v21, 16 }
 0x295   : > { %2709 = vrot.lane.b32.xlu0 %v6641_v7, %s4797_s28  ;;  %v3411_v53 = vrot.slane %v3409_v19, 1 }
 0x296   : > { %v3178_v34 = vpop.permute.xlu1 %3177  ;;  %v2856_v58 = vor.u32 %v2854_v32, %v2852_v51  ;;  %v3155_v56 = vor.u32 %v3153_v59, %v3152_v48  ;;  %v3407_v16 = vor.u32 %v3405_v37, %v6686_v52  ;;  %v3477_v52 = vshrl.u32 %v3351_v18, 16 }
 0x297   : > { %3216 = vst.msk [vmem:[#allocation3 + $0x50] sm:$0xff] %vm3205_vm9, %v3178_v34  ;;  %v3164_v29 = vpop.permute.xlu0 %3163  ;;  %v3471_v25 = vor.u32 %v3469_v41, %v6695_v26  ;;  %v3415_v33 = vor.u32 %v3413_v63, %v3411_v53 }
 0x298   : > { %2725 = vrot.lane.b32.xlu1 %v6643_v10, %s4797_s28  ;;  %3209 = vst.msk [vmem:[#allocation3 + $0x18] sm:$0xff] %vm3205_vm9, %v3164_v29  ;;  %v2861_v47 = vsel %vm1169_vm1, %v2856_v58, %v7303_v31  ;;  %v3156_v17 = vsel %vm1331_vm2, %v3144_v27, %v3155_v56 }
 0x299   : > { %2938 = vrot.lane.b32.xlu0 %v2853_v46, %s4801_s23 }
 0x29a   : > { %v3180_v0 = vpop.permute.xlu1 %3179 }
 0x29b   : > { %3217 = vst.msk [vmem:[#allocation3 + $0x58] sm:$0xff] %vm3205_vm9, %v3180_v0  ;;  %v3259_v9 = vpop.permute.xlu0 %3258 }
 0x29c   : > { %2954 = vrot.lane.b32.xlu1 %v2917_v40, %s4801_s23  ;;  %3305 = vst.msk [vmem:[#allocation3 + $0x10] sm:$0xff] %vm3302_vm10, %v3259_v9 }
 0x29d   : > { %2940 = vrot.lane.b32.xlu0 %v2861_v47, %s4801_s23 }
 0x29e   : > { %v3275_v61 = vpop.permute.xlu1 %3274 }
 0x29f   : > { %3313 = vst.msk [vmem:[#allocation3 + $0x50] sm:$0xff] %vm3302_vm10, %v3275_v61  ;;  %v3261_v12 = vpop.permute.xlu0 %3260 }
 0x2a0   : > { %2956 = vrot.lane.b32.xlu1 %v2925_v49, %s4801_s23  ;;  %3306 = vst.msk [vmem:[#allocation3 + $0x18] sm:$0xff] %vm3302_vm10, %v3261_v12 }
 0x2a1   : > { %3169 = vrot.lane.b32.xlu0 %v3084_v45, %s4802_s29 }
 0x2a2   : > { %v3277_v54 = vpop.permute.xlu1 %3276 }
 0x2a3   : > { %3314 = vst.msk [vmem:[#allocation3 + $0x58] sm:$0xff] %vm3302_vm10, %v3277_v54  ;;  %v3490_v30 = vpop.permute.xlu0 %3489 }
 0x2a4   : > { %3185 = vrot.lane.b32.xlu1 %v3148_v2, %s4802_s29  ;;  %3536 = vst.msk [vmem:[#allocation3 + $0x10] sm:$0xff] %vm3533_vm11, %v3490_v30 }
 0x2a5   : > { %3171 = vrot.lane.b32.xlu0 %v3092_v20, %s4802_s29 }
 0x2a6   : > { %v3506_v42 = vpop.permute.xlu1 %3505 }
 0x2a7   : > { %3544 = vst.msk [vmem:[#allocation3 + $0x50] sm:$0xff] %vm3533_vm11, %v3506_v42  ;;  %v1537_v11 = vpop.permute.xlu0 %1536 }
 0x2a8   : > { %3187 = vrot.lane.b32.xlu1 %v3156_v17, %s4802_s29  ;;  %1581 = vst.msk [vmem:[#allocation3 + $0x20] sm:$0xff] %vm1576_vm3, %v1537_v11 }
 0x2a9   : > { %3266 = vrot.lane.b32.xlu0 %v6641_v7, %s4803_s22  ;;  %v3352_v7 = vmul.bf16 %v3335_v22, %v6638_v44  ;;  %v3412_v44 = vsel %vm1169_vm1, %v3407_v16, %v3411_v53 }
 0x2aa   : > { %v1553_v55 = vpop.permute.xlu1 %1552 }
 0x2ab   : > { %1589 = vst.msk [vmem:[#allocation3 + $0x60] sm:$0xff] %vm1576_vm3, %v1553_v55  ;;  %v3492_v1 = vpop.permute.xlu0 %3491  ;;  %v3552_v51 = vld [vmem:[#allocation3 + $0x10] sm:$0xff]  ;;  %v3481_v29 = vshll.u32 %v3352_v7, 16 }
 0x2ac   : > { %3282 = vrot.lane.b32.xlu1 %v6643_v10, %s4803_s22  ;;  %3537 = vst.msk [vmem:[#allocation3 + $0x18] sm:$0xff] %vm3533_vm11, %v3492_v1  ;;  %4337 = vmatprep.mubr.msk.bf16.mxu0 %vm3657_vm12, %v3552_v51  ;;  %v3475_v10 = vrot.slane %v3473_v57, 1 }
 0x2ad   : > { %3268 = vrot.lane.b32.xlu0 %v3229_v4, %s4803_s22  ;;  %v3483_v38 = vrot.slane %v3481_v29, 1 }
 0x2ae   : > { %v3508_v34 = vpop.permute.xlu1 %3507  ;;  %v3560_v60 = vld [vmem:[#allocation3 + $0x50] sm:$0xff]  ;;  %v3476_v21 = vsel %vm1169_vm1, %v3471_v25, %v3475_v10  ;;  %v3479_v50 = vor.u32 %v3477_v52, %v3475_v10 }
 0x2af   : > { %3545 = vst.msk [vmem:[#allocation3 + $0x58] sm:$0xff] %vm3533_vm11, %v3508_v34  ;;  %4353 = vmatprep.mubr.msk.bf16.mxu1 %vm3657_vm12, %v3560_v60  ;;  %v1539_v32 = vpop.permute.xlu0 %1538 }
 0x2b0   : > { %3284 = vrot.lane.b32.xlu1 %v6775_v39, %s4803_s22  ;;  %1582 = vst.msk [vmem:[#allocation3 + $0x28] sm:$0xff] %vm1576_vm3, %v1539_v32  ;;  %v7306_v39 = vld [vmem:[#allocation61_spill] sm:$0xff]  ;;  %v3484_v15 = vsel %vm1169_vm1, %v3479_v50, %v3483_v38 }
 0x2b1   : > { %3497 = vrot.lane.b32.xlu0 %v3412_v44, %s4804_s17  ;;  %v3420_v26 = vsel %vm1169_vm1, %v3415_v33, %v7306_v39 }
 0x2b2   : > { %v1555_v14 = vpop.permute.xlu1 %1554 }
 0x2b3   : > { %1590 = vst.msk [vmem:[#allocation3 + $0x68] sm:$0xff] %vm1576_vm3, %v1555_v14  ;;  %v2376_v46 = vpop.permute.xlu0 %2375  ;;  %v3553_v58 = vld [vmem:[#allocation3 + $0x18] sm:$0xff] }
 0x2b4   : > { %3513 = vrot.lane.b32.xlu1 %v3476_v21, %s4804_s17  ;;  %2420 = vst.msk [vmem:[#allocation3 + $0x20] sm:$0xff] %vm2415_vm5, %v2376_v46  ;;  %4338 = vmatmul.mubr.msk.bf16.gmra.mrb[4].mxu0 %vm3657_vm12, %v3553_v58 }
 0x2b5   : > { %3499 = vrot.lane.b32.xlu0 %v3420_v26, %s4804_s17 }
 0x2b6   : > { %v2392_v23 = vpop.permute.xlu1 %2391  ;;  %v3561_v0 = vld [vmem:[#allocation3 + $0x58] sm:$0xff] }
 0x2b7   : > { %2428 = vst.msk [vmem:[#allocation3 + $0x60] sm:$0xff] %vm2415_vm5, %v2392_v23  ;;  %4354 = vmatmul.mubr.msk.bf16.gmra.mrb[4].mxu1 %vm3657_vm12, %v3561_v0  ;;  %v2378_v40 = vpop.permute.xlu0 %2377 }
 0x2b8   : > { %3515 = vrot.lane.b32.xlu1 %v3484_v15, %s4804_s17  ;;  %2421 = vst.msk [vmem:[#allocation3 + $0x28] sm:$0xff] %vm2415_vm5, %v2378_v40 }
 0x2ba   : > { %v2394_v43 = vpop.permute.xlu1 %2393 }
 0x2bb   : > { %2429 = vst.msk [vmem:[#allocation3 + $0x68] sm:$0xff] %vm2415_vm5, %v2394_v43  ;;  %v2607_v27 = vpop.permute.xlu0 %2606 }
 0x2bc   : > { %2651 = vst.msk [vmem:[#allocation3 + $0x20] sm:$0xff] %vm2646_vm6, %v2607_v27  ;;  %v4287_v27 = vld [vmem:[%s5143_s8 + $0x8] sm:$0xff]  }
 0x2be   : > { %v2623_v5 = vpop.permute.xlu1 %2622 }
 0x2bf   : > { %2659 = vst.msk [vmem:[#allocation3 + $0x60] sm:$0xff] %vm2646_vm6, %v2623_v5  ;;  %v2609_v9 = vpop.permute.xlu0 %2608  ;;  %v4209_v5 = vld [vmem:[%s5143_s8] sm:$0xff]  }
 0x2c0   : > { %2652 = vst.msk [vmem:[#allocation3 + $0x28] sm:$0xff] %vm2646_vm6, %v2609_v9  ;;  %v4295_v9 = vld [vmem:[%s5143_s8 + $0x48] sm:$0xff]  }
 0x2c2   : > { %v2625_v31 = vpop.permute.xlu1 %2624 }
 0x2c3   : > { %2660 = vst.msk [vmem:[#allocation3 + $0x68] sm:$0xff] %vm2646_vm6, %v2625_v31  ;;  %v2704_v47 = vpop.permute.xlu0 %2703  ;;  %v4214_v31 = vunpack.c.l.bf16 %v4287_v27 }
 0x2c4   : > { %2748 = vst.msk [vmem:[#allocation3 + $0x20] sm:$0xff] %vm2743_vm7, %v2704_v47  ;;  %v4294_v47 = vld [vmem:[%s5143_s8 + $0x40] sm:$0xff]  }
 0x2c6   : > { %v2720_v6 = vpop.permute.xlu1 %2719 }
 0x2c7   : > { %2756 = vst.msk [vmem:[#allocation3 + $0x60] sm:$0xff] %vm2743_vm7, %v2720_v6  ;;  %v2706_v8 = vpop.permute.xlu0 %2705  ;;  %v4210_v6 = vunpack.c.l.bf16 %v4209_v5 }
 0x2c8   : > { %2749 = vst.msk [vmem:[#allocation3 + $0x28] sm:$0xff] %vm2743_vm7, %v2706_v8  ;;  %v4215_v8 = vunpack.c.h.bf16 %v4287_v27 }
 0x2ca   : > { %v2722_v24 = vpop.permute.xlu1 %2721 }
 0x2cb   : > { %2757 = vst.msk [vmem:[#allocation3 + $0x68] sm:$0xff] %vm2743_vm7, %v2722_v24  ;;  %v2935_v61 = vpop.permute.xlu0 %2934  ;;  %v4246_v24 = vunpack.c.l.bf16 %v4295_v9 }
 0x2cc   : > { %2979 = vst.msk [vmem:[#allocation3 + $0x20] sm:$0xff] %vm2974_vm8, %v2935_v61 }
 0x2ce   : > { %v2951_v49 = vpop.permute.xlu1 %2950 }
 0x2cf   : > { %2987 = vst.msk [vmem:[#allocation3 + $0x60] sm:$0xff] %vm2974_vm8, %v2951_v49  ;;  %v2937_v3 = vpop.permute.xlu0 %2936  ;;  %v4211_v49 = vunpack.c.h.bf16 %v4209_v5 }
 0x2d0   : > { %2980 = vst.msk [vmem:[#allocation3 + $0x28] sm:$0xff] %vm2974_vm8, %v2937_v3  ;;  %v4242_v3 = vunpack.c.l.bf16 %v4294_v47 }
 0x2d2   : > { %v2953_v36 = vpop.permute.xlu1 %2952 }
 0x2d3   : > { %2988 = vst.msk [vmem:[#allocation3 + $0x68] sm:$0xff] %vm2974_vm8, %v2953_v36  ;;  %v3166_v62 = vpop.permute.xlu0 %3165 }
 0x2d4   : > { %3210 = vst.msk [vmem:[#allocation3 + $0x20] sm:$0xff] %vm3205_vm9, %v3166_v62 }
 0x2d6   : > { %v3182_v48 = vpop.permute.xlu1 %3181 }
 0x2d7   : > { %3218 = vst.msk [vmem:[#allocation3 + $0x60] sm:$0xff] %vm3205_vm9, %v3182_v48  ;;  %v3168_v12 = vpop.permute.xlu0 %3167  ;;  %v4247_v48 = vunpack.c.h.bf16 %v4295_v9 }
 0x2d8   : > { %3211 = vst.msk [vmem:[#allocation3 + $0x28] sm:$0xff] %vm3205_vm9, %v3168_v12 }
 0x2da   : > { %v3184_v45 = vpop.permute.xlu1 %3183 }
 0x2db   : > { %3219 = vst.msk [vmem:[#allocation3 + $0x68] sm:$0xff] %vm3205_vm9, %v3184_v45  ;;  %v3263_v28 = vpop.permute.xlu0 %3262 }
 0x2dc   : > { %3307 = vst.msk [vmem:[#allocation3 + $0x20] sm:$0xff] %vm3302_vm10, %v3263_v28 }
 0x2de   : > { %v3279_v35 = vpop.permute.xlu1 %3278 }
 0x2df   : > { %3315 = vst.msk [vmem:[#allocation3 + $0x60] sm:$0xff] %vm3302_vm10, %v3279_v35  ;;  %v3265_v59 = vpop.permute.xlu0 %3264  ;;  %v4243_v35 = vunpack.c.h.bf16 %v4294_v47 }
 0x2e0   : > { %3308 = vst.msk [vmem:[#allocation3 + $0x28] sm:$0xff] %vm3302_vm10, %v3265_v59 }
 0x2e2   : > { %v3281_v54 = vpop.permute.xlu1 %3280 }
 0x2e3   : > { %3316 = vst.msk [vmem:[#allocation3 + $0x68] sm:$0xff] %vm3302_vm10, %v3281_v54  ;;  %v3494_v4 = vpop.permute.xlu0 %3493 }
 0x2e4   : > { %3538 = vst.msk [vmem:[#allocation3 + $0x20] sm:$0xff] %vm3533_vm11, %v3494_v4 }
 0x2e6   : > { %v3510_v2 = vpop.permute.xlu1 %3509 }
 0x2e7   : > { %3546 = vst.msk [vmem:[#allocation3 + $0x60] sm:$0xff] %vm3533_vm11, %v3510_v2  ;;  %v1541_v56 = vpop.permute.xlu0 %1540 }
 0x2e8   : > { %1583 = vst.msk [vmem:[#allocation3 + $0x30] sm:$0xff] %vm1576_vm3, %v1541_v56 }
 0x2ea   : > { %v1557_v30 = vpop.permute.xlu1 %1556 }
 0x2eb   : > { %1591 = vst.msk [vmem:[#allocation3 + $0x70] sm:$0xff] %vm1576_vm3, %v1557_v30  ;;  %v3496_v20 = vpop.permute.xlu0 %3495  ;;  %v3554_v13 = vld [vmem:[#allocation3 + $0x20] sm:$0xff] }
 0x2ec   : > { %3539 = vst.msk [vmem:[#allocation3 + $0x28] sm:$0xff] %vm3533_vm11, %v3496_v20  ;;  %4341 = vmatprep.mubr.msk.bf16.mxu0 %vm3657_vm12, %v3554_v13 }
 0x2ee   : > { %v3512_v42 = vpop.permute.xlu1 %3511  ;;  %v3562_v17 = vld [vmem:[#allocation3 + $0x60] sm:$0xff] }
 0x2ef   : > { %3547 = vst.msk [vmem:[#allocation3 + $0x68] sm:$0xff] %vm3533_vm11, %v3512_v42  ;;  %4357 = vmatprep.mubr.msk.bf16.mxu1 %vm3657_vm12, %v3562_v17  ;;  %v1543_v18 = vpop.permute.xlu0 %1542 }
 0x2f0   : > { %1584 = vst.msk [vmem:[#allocation3 + $0x38] sm:$0xff] %vm1576_vm3, %v1543_v18  ;;  %v4289_v18 = vld [vmem:[%s5143_s8 + $0x18] sm:$0xff]  }
 0x2f2   : > { %v1559_v11 = vpop.permute.xlu1 %1558 }
 0x2f3   : > { %1592 = vst.msk [vmem:[#allocation3 + $0x78] sm:$0xff] %vm1576_vm3, %v1559_v11  ;;  %v2380_v19 = vpop.permute.xlu0 %2379  ;;  %v3555_v55 = vld [vmem:[#allocation3 + $0x28] sm:$0xff]  ;;  %v4288_v11 = vld [vmem:[%s5143_s8 + $0x10] sm:$0xff]  }
 0x2f4   : > { %2422 = vst.msk [vmem:[#allocation3 + $0x30] sm:$0xff] %vm2415_vm5, %v2380_v19  ;;  %4342 = vmatmul.mubr.msk.bf16.gmra.mrb[8].mxu0 %vm3657_vm12, %v3555_v55  ;;  %v4297_v19 = vld [vmem:[%s5143_s8 + $0x58] sm:$0xff]   ;;  %v4222_v55 = vunpack.c.l.bf16 %v4289_v18 }
 0x2f6   : > { %v2396_v22 = vpop.permute.xlu1 %2395  ;;  %v3563_v37 = vld [vmem:[#allocation3 + $0x68] sm:$0xff] }
 0x2f7   : > { %2430 = vst.msk [vmem:[#allocation3 + $0x70] sm:$0xff] %vm2415_vm5, %v2396_v22  ;;  %4358 = vmatmul.mubr.msk.bf16.gmra.mrb[8].mxu1 %vm3657_vm12, %v3563_v37  ;;  %v2382_v57 = vpop.permute.xlu0 %2381  ;;  %v4296_v22 = vld [vmem:[%s5143_s8 + $0x50] sm:$0xff]   ;;  %v4218_v37 = vunpack.c.l.bf16 %v4288_v11 }
 0x2f8   : > { %2423 = vst.msk [vmem:[#allocation3 + $0x38] sm:$0xff] %vm2415_vm5, %v2382_v57  ;;  %v4223_v57 = vunpack.c.h.bf16 %v4289_v18 }
 0x2fa   : > { %v2398_v1 = vpop.permute.xlu1 %2397 }
 0x2fb   : > { %2431 = vst.msk [vmem:[#allocation3 + $0x78] sm:$0xff] %vm2415_vm5, %v2398_v1  ;;  %v2611_v51 = vpop.permute.xlu0 %2610  ;;  %v4254_v1 = vunpack.c.l.bf16 %v4297_v19 }
 0x2fc   : > { %2653 = vst.msk [vmem:[#allocation3 + $0x30] sm:$0xff] %vm2646_vm6, %v2611_v51 }
 0x2fe   : > { %v2627_v16 = vpop.permute.xlu1 %2626 }
 0x2ff   : > { %2661 = vst.msk [vmem:[#allocation3 + $0x70] sm:$0xff] %vm2646_vm6, %v2627_v16  ;;  %v2613_v53 = vpop.permute.xlu0 %2612  ;;  %v4219_v16 = vunpack.c.h.bf16 %v4288_v11 }
 0x300   : > { %2654 = vst.msk [vmem:[#allocation3 + $0x38] sm:$0xff] %vm2646_vm6, %v2613_v53  ;;  %v4250_v53 = vunpack.c.l.bf16 %v4296_v22 }
 0x302   : > { %v2629_v7 = vpop.permute.xlu1 %2628 }
 0x303   : > { %2662 = vst.msk [vmem:[#allocation3 + $0x78] sm:$0xff] %vm2646_vm6, %v2629_v7  ;;  %v2708_v34 = vpop.permute.xlu0 %2707 }
 0x304   : > { %2750 = vst.msk [vmem:[#allocation3 + $0x30] sm:$0xff] %vm2743_vm7, %v2708_v34 }
 0x306   : > { %v2724_v60 = vpop.permute.xlu1 %2723 }
 0x307   : > { %2758 = vst.msk [vmem:[#allocation3 + $0x70] sm:$0xff] %vm2743_vm7, %v2724_v60  ;;  %v2710_v41 = vpop.permute.xlu0 %2709  ;;  %v4255_v60 = vunpack.c.h.bf16 %v4297_v19 }
 0x308   : > { %2751 = vst.msk [vmem:[#allocation3 + $0x38] sm:$0xff] %vm2743_vm7, %v2710_v41 }
 0x30a   : > { %v2726_v10 = vpop.permute.xlu1 %2725 }
 0x30b   : > { %2759 = vst.msk [vmem:[#allocation3 + $0x78] sm:$0xff] %vm2743_vm7, %v2726_v10  ;;  %v2939_v63 = vpop.permute.xlu0 %2938 }
 0x30c   : > { %2981 = vst.msk [vmem:[#allocation3 + $0x30] sm:$0xff] %vm2974_vm8, %v2939_v63 }
 0x30e   : > { %v2955_v32 = vpop.permute.xlu1 %2954 }
 0x30f   : > { %2989 = vst.msk [vmem:[#allocation3 + $0x70] sm:$0xff] %vm2974_vm8, %v2955_v32  ;;  %v2941_v52 = vpop.permute.xlu0 %2940  ;;  %v4251_v32 = vunpack.c.h.bf16 %v4296_v22 }
 0x310   : > { %2982 = vst.msk [vmem:[#allocation3 + $0x38] sm:$0xff] %vm2974_vm8, %v2941_v52 }
 0x312   : > { %v2957_v44 = vpop.permute.xlu1 %2956 }
 0x313   : > { %2990 = vst.msk [vmem:[#allocation3 + $0x78] sm:$0xff] %vm2974_vm8, %v2957_v44  ;;  %v3170_v25 = vpop.permute.xlu0 %3169 }
 0x314   : > { %3212 = vst.msk [vmem:[#allocation3 + $0x30] sm:$0xff] %vm3205_vm9, %v3170_v25 }
 0x316   : > { %v3186_v33 = vpop.permute.xlu1 %3185 }
 0x317   : > { %3220 = vst.msk [vmem:[#allocation3 + $0x70] sm:$0xff] %vm3205_vm9, %v3186_v33  ;;  %v3172_v29 = vpop.permute.xlu0 %3171 }
 0x318   : > { %3213 = vst.msk [vmem:[#allocation3 + $0x38] sm:$0xff] %vm3205_vm9, %v3172_v29 }
 0x31a   : > { %v3188_v14 = vpop.permute.xlu1 %3187 }
 0x31b   : > { %3221 = vst.msk [vmem:[#allocation3 + $0x78] sm:$0xff] %vm3205_vm9, %v3188_v14  ;;  %v3267_v21 = vpop.permute.xlu0 %3266 }
 0x31c   : > { %3309 = vst.msk [vmem:[#allocation3 + $0x30] sm:$0xff] %vm3302_vm10, %v3267_v21 }
 0x31e   : > { %v3283_v50 = vpop.permute.xlu1 %3282 }
 0x31f   : > { %3317 = vst.msk [vmem:[#allocation3 + $0x70] sm:$0xff] %vm3302_vm10, %v3283_v50  ;;  %v3269_v46 = vpop.permute.xlu0 %3268 }
 0x320   : > { %3310 = vst.msk [vmem:[#allocation3 + $0x38] sm:$0xff] %vm3302_vm10, %v3269_v46 }
 0x322   : > { %v3285_v58 = vpop.permute.xlu1 %3284 }
 0x323   : > { %3318 = vst.msk [vmem:[#allocation3 + $0x78] sm:$0xff] %vm3302_vm10, %v3285_v58  ;;  %v3498_v39 = vpop.permute.xlu0 %3497 }
 0x324   : > { %3540 = vst.msk [vmem:[#allocation3 + $0x30] sm:$0xff] %vm3533_vm11, %v3498_v39  ;;  %v4291_v39 = vld [vmem:[%s5143_s8 + $0x28] sm:$0xff]  }
 0x326   : > { %v3514_v26 = vpop.permute.xlu1 %3513 }
 0x327   : > { %3548 = vst.msk [vmem:[#allocation3 + $0x70] sm:$0xff] %vm3533_vm11, %v3514_v26  ;;  %v3500_v38 = vpop.permute.xlu0 %3499  ;;  %v4290_v26 = vld [vmem:[%s5143_s8 + $0x20] sm:$0xff]  }
 0x328   : > { %3541 = vst.msk [vmem:[#allocation3 + $0x38] sm:$0xff] %vm3533_vm11, %v3500_v38  ;;  %v4299_v38 = vld [vmem:[%s5143_s8 + $0x68] sm:$0xff]   ;;  %v4227_v5 = vunpack.c.h.bf16 %v4290_v26 }
 0x32a   : > { %v3516_v23 = vpop.permute.xlu1 %3515 }
 0x32b   : > { %3549 = vst.msk [vmem:[#allocation3 + $0x78] sm:$0xff] %vm3533_vm11, %v3516_v23  ;;  %v3556_v0 = vld [vmem:[#allocation3 + $0x30] sm:$0xff]  ;;  %v4230_v23 = vunpack.c.l.bf16 %v4291_v39 }
 0x32c   : > { %4345 = vmatprep.mubr.msk.bf16.mxu0 %vm3657_vm12, %v3556_v0  ;;  %v4298_v0 = vld [vmem:[%s5143_s8 + $0x60] sm:$0xff]  }
 0x32d   : > { %v4258_v9 = vunpack.c.l.bf16 %v4298_v0 }
 0x32e   : > { %v3564_v15 = vld [vmem:[#allocation3 + $0x70] sm:$0xff] }
 0x32f   : > { %4361 = vmatprep.mubr.msk.bf16.mxu1 %vm3657_vm12, %v3564_v15  ;;  %v3557_v40 = vld [vmem:[#allocation3 + $0x38] sm:$0xff]  ;;  %v4226_v15 = vunpack.c.l.bf16 %v4290_v26 }
 0x330   : > { %4346 = vmatmul.mubr.msk.bf16.gmra.mrb[12].mxu0 %vm3657_vm12, %v3557_v40  ;;  %v4231_v40 = vunpack.c.h.bf16 %v4291_v39 }
 0x332   : > { %v3565_v43 = vld [vmem:[#allocation3 + $0x78] sm:$0xff] }
 0x333   : > { %4362 = vmatmul.mubr.msk.bf16.gmra.mrb[12].mxu1 %vm3657_vm12, %v3565_v43  ;;  %v4262_v43 = vunpack.c.l.bf16 %v4299_v38 }
 0x347   : > { %v4335_v61 = vpop.f32.mrb[0].mxu0 }
 0x348   : > { %v3753_v36 = vadd.f32 %v4335_v61, %v4214_v31  ;;  %v3744_v62 = vpop.f32.mrb[1].mxu0 }
 0x349   : > { %v3745_v12 = vadd.f32 %v4210_v6, %v3744_v62  ;;  %v4336_v45 = vpop.f32.mrb[2].mxu0  ;;  %v4263_v6 = vunpack.c.h.bf16 %v4299_v38 }
 0x34a   : > { %v4351_v28 = vpop.f32.mrb[0].mxu1  ;;  %3873 = vst.msk [vmem:[%s6919_s11 + $0x10] sm:$0xff] %vm667_vm0, %v3753_v36  ;;  %v3756_v59 = vadd.f32 %v4336_v45, %v4215_v8  ;;  %v3747_v54 = vpop.f32.mrb[3].mxu0 }
 0x34b   : > { %v3817_v4 = vadd.f32 %v4351_v28, %v4246_v24  ;;  %v3808_v2 = vpop.f32.mrb[1].mxu1  ;;  %3871 = vst.msk [vmem:[%s6919_s11] sm:$0xff] %vm667_vm0, %v3745_v12  ;;  %v3748_v56 = vadd.f32 %v4211_v49, %v3747_v54  ;;  %v4259_v49 = vunpack.c.h.bf16 %v4298_v0 }
 0x34c   : > { %v3809_v30 = vadd.f32 %v4242_v3, %v3808_v2  ;;  %v4352_v20 = vpop.f32.mrb[2].mxu1  ;;  %3874 = vst.msk [vmem:[%s6919_s11 + $0x18] sm:$0xff] %vm667_vm0, %v3756_v59  ;;  %v4292_v2 = vld [vmem:[%s5143_s8 + $0x30] sm:$0xff]  }
 0x34d   : > { %3889 = vst.msk [vmem:[%s6919_s11 + $0x90] sm:$0xff] %vm667_vm0, %v3817_v4  ;;  %v3820_v13 = vadd.f32 %v4352_v20, %v4247_v48  ;;  %v3811_v42 = vpop.f32.mrb[3].mxu1  ;;  %3872 = vst.msk [vmem:[%s6919_s11 + $0x8] sm:$0xff] %vm667_vm0, %v3748_v56  ;;  %v4293_v4 = vld [vmem:[%s5143_s8 + $0x38] sm:$0xff]   ;;  %v4300_v20 = vld [vmem:[%s5143_s8 + $0x70] sm:$0xff]   ;;  %v4235_v11 = vunpack.c.h.bf16 %v4292_v2 }
 0x34e   : > { %3887 = vst.msk [vmem:[%s6919_s11 + $0x80] sm:$0xff] %vm667_vm0, %v3809_v30  ;;  %v3812_v17 = vadd.f32 %v4243_v35, %v3811_v42  ;;  %v4301_v56 = vld [vmem:[%s5143_s8 + $0x78] sm:$0xff]   ;;  %v4238_v30 = vunpack.c.l.bf16 %v4293_v4  ;;  %v4239_v42 = vunpack.c.h.bf16 %v4293_v4  ;;  %v4266_v19 = vunpack.c.l.bf16 %v4300_v20 }
 0x34f   : > { %3890 = vst.msk [vmem:[%s6919_s11 + $0x98] sm:$0xff] %vm667_vm0, %v3820_v13  ;;  %v4234_v13 = vunpack.c.l.bf16 %v4292_v2 }
 0x350   : > { %3888 = vst.msk [vmem:[%s6919_s11 + $0x88] sm:$0xff] %vm667_vm0, %v3812_v17  ;;  %v4270_v17 = vunpack.c.l.bf16 %v4301_v56 }
 0x387   : > { %v4339_v51 = vpop.f32.mrb[4].mxu0 }
 0x388   : > { %v3769_v7 = vadd.f32 %v4339_v51, %v4222_v55  ;;  %v3760_v34 = vpop.f32.mrb[5].mxu0 }
 0x389   : > { %v3761_v41 = vadd.f32 %v4218_v37, %v3760_v34  ;;  %v4340_v10 = vpop.f32.mrb[6].mxu0  ;;  %v4271_v37 = vunpack.c.h.bf16 %v4301_v56 }
 0x38a   : > { %v4355_v63 = vpop.f32.mrb[4].mxu1  ;;  %3877 = vst.msk [vmem:[%s6919_s11 + $0x30] sm:$0xff] %vm667_vm0, %v3769_v7  ;;  %v3772_v52 = vadd.f32 %v4340_v10, %v4223_v57  ;;  %v3763_v44 = vpop.f32.mrb[7].mxu0 }
 0x38b   : > { %v3833_v25 = vadd.f32 %v4355_v63, %v4254_v1  ;;  %v3824_v33 = vpop.f32.mrb[5].mxu1  ;;  %3875 = vst.msk [vmem:[%s6919_s11 + $0x20] sm:$0xff] %vm667_vm0, %v3761_v41  ;;  %v3764_v29 = vadd.f32 %v4219_v16, %v3763_v44  ;;  %v4267_v16 = vunpack.c.h.bf16 %v4300_v20 }
 0x38c   : > { %v3825_v14 = vadd.f32 %v4250_v53, %v3824_v33  ;;  %v4356_v21 = vpop.f32.mrb[6].mxu1  ;;  %3878 = vst.msk [vmem:[%s6919_s11 + $0x38] sm:$0xff] %vm667_vm0, %v3772_v52 }
 0x38d   : > { %3893 = vst.msk [vmem:[%s6919_s11 + $0xb0] sm:$0xff] %vm667_vm0, %v3833_v25  ;;  %v3836_v50 = vadd.f32 %v4356_v21, %v4255_v60  ;;  %v3827_v46 = vpop.f32.mrb[7].mxu1  ;;  %3876 = vst.msk [vmem:[%s6919_s11 + $0x28] sm:$0xff] %vm667_vm0, %v3764_v29 }
 0x38e   : > { %3891 = vst.msk [vmem:[%s6919_s11 + $0xa0] sm:$0xff] %vm667_vm0, %v3825_v14  ;;  %v3828_v58 = vadd.f32 %v4251_v32, %v3827_v46 }
 0x38f   : > { %3894 = vst.msk [vmem:[%s6919_s11 + $0xb8] sm:$0xff] %vm667_vm0, %v3836_v50 }
 0x390   : > { %3892 = vst.msk [vmem:[%s6919_s11 + $0xa8] sm:$0xff] %vm667_vm0, %v3828_v58 }
 0x3c7   : > { %v4343_v27 = vpop.f32.mrb[8].mxu0 }
 0x3c8   : > { %v3785_v31 = vadd.f32 %v4343_v27, %v4230_v23  ;;  %v3776_v47 = vpop.f32.mrb[9].mxu0 }
 0x3c9   : > { %v3777_v8 = vadd.f32 %v4226_v15, %v3776_v47  ;;  %v4344_v24 = vpop.f32.mrb[10].mxu0 }
 0x3ca   : > { %v4359_v61 = vpop.f32.mrb[8].mxu1  ;;  %3881 = vst.msk [vmem:[%s6919_s11 + $0x50] sm:$0xff] %vm667_vm0, %v3785_v31  ;;  %v3788_v3 = vadd.f32 %v4344_v24, %v4231_v40  ;;  %v3779_v36 = vpop.f32.mrb[11].mxu0 }
 0x3cb   : > { %v3849_v62 = vadd.f32 %v4359_v61, %v4262_v43  ;;  %v3840_v48 = vpop.f32.mrb[9].mxu1  ;;  %3879 = vst.msk [vmem:[%s6919_s11 + $0x40] sm:$0xff] %vm667_vm0, %v3777_v8  ;;  %v3780_v12 = vadd.f32 %v4227_v5, %v3779_v36 }
 0x3cc   : > { %v3841_v45 = vadd.f32 %v4258_v9, %v3840_v48  ;;  %v4360_v28 = vpop.f32.mrb[10].mxu1  ;;  %3882 = vst.msk [vmem:[%s6919_s11 + $0x58] sm:$0xff] %vm667_vm0, %v3788_v3 }
 0x3cd   : > { %3897 = vst.msk [vmem:[%s6919_s11 + $0xd0] sm:$0xff] %vm667_vm0, %v3849_v62  ;;  %v3852_v35 = vadd.f32 %v4360_v28, %v4263_v6  ;;  %v3843_v59 = vpop.f32.mrb[11].mxu1  ;;  %3880 = vst.msk [vmem:[%s6919_s11 + $0x48] sm:$0xff] %vm667_vm0, %v3780_v12 }
 0x3ce   : > { %3895 = vst.msk [vmem:[%s6919_s11 + $0xc0] sm:$0xff] %vm667_vm0, %v3841_v45  ;;  %v3844_v54 = vadd.f32 %v4259_v49, %v3843_v59 }
 0x3cf   : > { %3898 = vst.msk [vmem:[%s6919_s11 + $0xd8] sm:$0xff] %vm667_vm0, %v3852_v35 }
 0x3d0   : > { %3896 = vst.msk [vmem:[%s6919_s11 + $0xc8] sm:$0xff] %vm667_vm0, %v3844_v54 }
 0x403   : > { %v4347_v18 = vpop.f32.mrb[12].mxu0 }
 0x404   : > { %v3801_v55 = vadd.f32 %v4347_v18, %v4238_v30  ;;  %v3792_v22 = vpop.f32.mrb[13].mxu0 }
 0x405   : > { %v3793_v57 = vadd.f32 %v4234_v13, %v3792_v22  ;;  %v4348_v1 = vpop.f32.mrb[14].mxu0 }
 0x406   : > { %v4363_v51 = vpop.f32.mrb[12].mxu1  ;;  %3885 = vst.msk [vmem:[%s6919_s11 + $0x70] sm:$0xff] %vm667_vm0, %v3801_v55  ;;  %v3804_v53 = vadd.f32 %v4348_v1, %v4239_v42  ;;  %v3795_v7 = vpop.f32.mrb[15].mxu0 }
 0x407   : > { %v3865_v34 = vadd.f32 %v4363_v51, %v4270_v17  ;;  %v3856_v60 = vpop.f32.mrb[13].mxu1  ;;  %3883 = vst.msk [vmem:[%s6919_s11 + $0x60] sm:$0xff] %vm667_vm0, %v3793_v57  ;;  %v3796_v41 = vadd.f32 %v4235_v11, %v3795_v7 }
 0x408   : > { %v3857_v10 = vadd.f32 %v4266_v19, %v3856_v60  ;;  %v4364_v63 = vpop.f32.mrb[14].mxu1  ;;  %3886 = vst.msk [vmem:[%s6919_s11 + $0x78] sm:$0xff] %vm667_vm0, %v3804_v53 }
 0x409   : > { %3901 = vst.msk [vmem:[%s6919_s11 + $0xf0] sm:$0xff] %vm667_vm0, %v3865_v34  ;;  %v3868_v32 = vadd.f32 %v4364_v63, %v4271_v37  ;;  %v3859_v52 = vpop.f32.mrb[15].mxu1  ;;  %3884 = vst.msk [vmem:[%s6919_s11 + $0x68] sm:$0xff] %vm667_vm0, %v3796_v41 }
 0x40a   : > { %3899 = vst.msk [vmem:[%s6919_s11 + $0xe0] sm:$0xff] %vm667_vm0, %v3857_v10  ;;  %v3860_v44 = vadd.f32 %v4267_v16, %v3859_v52 }
 0x40b   : > { %3902 = vst.msk [vmem:[%s6919_s11 + $0xf8] sm:$0xff] %vm667_vm0, %v3868_v32 }
 0x40c   : > { %3900 = vst.msk [vmem:[%s6919_s11 + $0xe8] sm:$0xff] %vm667_vm0, %v3860_v44 }
 0x40d   : > { %4715 = shalt.err (!%p4712_p0)
}
 0x40e   : > { %s4716_s13 = scalar_lea.hbm %s6994_s14, 4096  ;;  %s4720_s28 = scalar_lea.hbm %s7056_s7, 8192 }
 0x40f   : > { %p4717_p4 = scmp.ne.s32.totalorder %s6994_s14, %s4716_s13  ;;  %p4721_p10 = scmp.lt.u32.totalorder %s6994_s14, %s7056_s7 }
 0x410   : > { %p4722_p6 = scmp.lt.u32.totalorder %s4720_s28, %s4716_s13  ;;  %p4724_p13 = scmp.lt.u32.totalorder %s4716_s13, %s6994_s14 }
 0x411   : > { %p4718_p9 = pnand %p4717_p4, %p7307_p8 }
 0x412   : > { %p4723_p12 = por %p4722_p6, %p4721_p10 }
 0x413   : > { %p4719_p1 = pneg %p4718_p9 }
 0x414   : > { %p4725_p7 = por %p4724_p13, %p4723_p12 }
 0x416   : > { %p4726_p11 = pnand %p4725_p7, %p4719_p1 }
 0x418   : > { %4729 = shalt.err (!%p4726_p11)
}
 0x419   : > { %s4806_s23 = smov 128  }
 0x41a   : > { %4401 = dma.vmem_to_hbm [thread:$0]  (%p7307_p8), %s7000_s16, 4096, %s6994_s14, %s3904_s21, %s4806_s23, %s4806_s23, %s4796_s10  }
 0x41b PF: > { %s7308_s29 = sld [smem:[#allocation23_spill]]  ;;  %s7309_s22 = sld [smem:[#allocation28_spill]] }
 0x41c   : > { %s7310_s17 = sld [smem:[#allocation25_spill]] }
 0x421   : > { %s3932_s24 = sand.u32 1, %s7308_s29   ;;  %p7311_p5 = scmp.ne.s32.totalorder %s7309_s22, 0 }
 0x422   : > { %p7312_p3 = scmp.ge.s32.totalorder %s7310_s17, 2  ;;  %s3933_s11 = scalar_lea.sflag [#allocation6], %s3932_s24 }
 0x424   : > { %p4427_p2 = pnand %p7312_p3, %p7311_p5 }
 0x426   : > { %4767 = dma.done.wait (!%p4427_p2), %s3933_s11, 4096  }
 0x427   : > { %4769 = vsyncadd (!%p4427_p2), %s3933_s11, 4294963200  ;;  %s7313_s27 = sld [smem:[#allocation26_spill]]  ;;  %s7314_s15 = sld [smem:[#allocation24_spill]] }
 0x428   : > { %s7315_s26 = sld [smem:[#allocation27_spill]]  ;;  %s7316_s24 = smov %s4776_s25 }
 0x42d   : > { %p23_p0 = scmp.ge.s32.totalorder %s7313_s27, 4   ;;  %s7317_s25 = smov %s7314_s15 }
 0x42f   :  { %25 = sbr.rel (!%p23_p0) target bundleno = 12 (0xc), region = 124 }
 0x436   :  { %3938 = vsyncpa [#allocation5], 1 }
 0x437   :  { %3940 = vsyncpa [#allocation5 + $0x1], 1 }
 0x438   :  { %3941 = vsyncpa [#allocation8], 1 }
 0x439   :  { %3942 = vsyncpa [#allocation11], 1 }
 0x43a   :  { %3943 = vsyncpa [#allocation14], 1 }
 0x43b   :  { %3944 = vsyncpa [#allocation6], 1 }
 0x43c   :  { %3946 = vsyncpa [#allocation6 + $0x1], 1 }

// kernel: preact_block_forward.2
= control target key start
LH: loop header
LB: loop body
LE: loop exit
PB: predicated region body
PF: predicated region fallthrough
CT: control target
= control target key end

     0   :  { %s8223_s0 = inlined_call_operand.hbm [shape: f32[2,256,4], index: 0, kind: input, shape index: {}]   ;;  %s8224_s1 = inlined_call_operand.hbm [shape: f32[1,4], index: 1, kind: input, shape index: {}]   ;;  %s8225_s2 = inlined_call_operand.hbm [shape: f32[1,4], index: 2, kind: input, shape index: {}]   ;;  %s8226_s3 = inlined_call_operand.hbm [shape: bf16[256,1], index: 3, kind: input, shape index: {}]   ;;  %s8227_s4 = inlined_call_operand.hbm [shape: bf16[256,1], index: 4, kind: input, shape index: {}]   ;;  %s8228_s5 = inlined_call_operand.hbm [shape: bf16[36,8], index: 5, kind: input, shape index: {}]   ;;  %s8229_s6 = inlined_call_operand.hbm [shape: bf16[4,8], index: 6, kind: input, shape index: {}]   ;;  %s8230_s7 = inlined_call_operand.hbm [shape: bf16[2,256,8], index: 7, kind: output, shape index: {0}]   ;;  %s8231_s8 = inlined_call_operand.hbm [shape: bf16[2,256,8], index: 8, kind: output, shape index: {1}]   ;;  %s8232_s9 = inlined_call_operand.hbm [shape: f32[2,1,8], index: 9, kind: output, shape index: {2}]   ;;  %s8233_s10 = inlined_call_operand.hbm [shape: f32[2,1,8], index: 10, kind: output, shape index: {3}]  }
   0x1   :  { %8260 = sst [smem:[#allocation63_spill]] %s8224_s1 }
   0x2   :  { %8261 = sst [smem:[#allocation64_spill]] %s8226_s3 }
   0x3   :  { %8262 = sst [smem:[#allocation65_spill]] %s8233_s10 }
   0x4   :  { %16 = vsyncpa [#allocation5], 0 }
   0x5   :  { %18 = vsyncpa [#allocation5 + $0x1], 0 }
   0x6   :  { %19 = vsyncpa [#allocation8], 0 }
   0x7   :  { %20 = vsyncpa [#allocation11], 0 }
   0x8   :  { %21 = vsyncpa [#allocation14], 0 }
   0x9   :  { %22 = vsyncpa [#allocation6], 0 }
   0xa   :  { %24 = vsyncpa [#allocation6 + $0x1], 0 }
   0xb   :  { %25 = vsyncpa [#allocation18], 0 }
   0xc   :  { %27 = vsyncpa [#allocation18 + $0x1], 0 }
   0xd   :  { %28 = vsyncpa [#allocation21], 0 }
   0xe   :  { %30 = vsyncpa [#allocation21 + $0x1], 0  ;;  %s5770_s13 = smov 0   ;;  %s5772_s14 = smov 0  }
   0xf   :  { %s5774_s15 = smov 0   ;;  %s5776_s16 = smov 0  }
  0x10 LB: > { %s5689_s17 = smov [#allocation7]   ;;  %s5791_s19 = sadd.s32 4294967295, %s5687_s16   ;;  %s5687_s16 = sphi %s5776_s16, %s8370_s16   ;;  %s5683_s15 = sphi %s5774_s15, %s8369_s15   ;;  %s5679_s14 = sphi %s5772_s14, %s8368_s14   ;;  %s5675_s13 = sphi %s5770_s13, %s8367_s13  }
  0x11   : > { %s310_s18 = sshll.u32 %s5689_s17, 4  ;;  %p4834_p0 = scmp.ge.s32.totalorder %s5687_s16, 1  ;;  %s5796_s18 = int_to_ptr.vmem [resolvable:$true] %s310_s18 }
  0x12   : > { %p8235_p1 = scmp.eq.s32.totalorder %s5791_s19, 0  ;;  %p297_p2 = scmp.lt.s32.totalorder %s5687_s16, 3 }
  0x13   : > { %s5690_s21 = smov [#allocation10]   ;;  %s5691_s24 = smov [#allocation13]  }
  0x14   : > { %p5798_p3 = pnand %p4834_p0, %p297_p2  ;;  %s331_s22 = sshll.u32 %s5690_s21, 4  ;;  %s5805_s22 = int_to_ptr.vmem [resolvable:$true] %s331_s22 }
  0x15   : > { %s357_s25 = sshll.u32 %s5691_s24, 4  ;;  %s8265_s1 = sld [smem:[#allocation63_spill]]  ;;  %s5813_s25 = int_to_ptr.vmem [resolvable:$true] %s357_s25 }
  0x16   : > { %s8263_s20 = scalar_select %p5798_p3, 1, 0 }
  0x17   : > { %p5209_p5 = pneg %p5798_p3 }
  0x19   : > { %p5809_p6 = pnand %p5209_p5, %p8235_p1 }
  0x1b   : > { %s5319_s28 = scalar_lea.hbm %s8265_s1, 16  ;;  %p5823_p8 = pneg %p5809_p6 }
  0x1c   : > { %p5320_p7 = scmp.ne.s32.totalorder %s8265_s1, %s5319_s28  ;;  %p5326_p11 = scmp.lt.u32.totalorder %s5319_s28, %s8265_s1 }
  0x1e   : > { %p5322_p9 = pnand %p5823_p8, %p5320_p7 }
  0x20   : > { %p5323_p10 = pneg %p5322_p9 }
  0x22   : > { %p5328_p12 = pnand %p5326_p11, %p5323_p10 }
  0x24   : > { %5331 = shalt.err (!%p5328_p12)
}
  0x25   : > { %s5332_s21 = scalar_lea.vmem %s5796_s18, 16  ;;  %s5339_s24 = scalar_lea.vmem %s5796_s18, 32 }
  0x26   : > { %p5333_p13 = scmp.ne.s32.totalorder %s5796_s18, %s5332_s21  ;;  %p5340_p5 = scmp.lt.s32.totalorder %s5796_s18, %s5796_s18 }
  0x27   : > { %p5341_p7 = scmp.lt.s32.totalorder %s5339_s24, %s5332_s21 }
  0x28   : > { %p5335_p0 = pnand %p5333_p13, %p5823_p8 }
  0x29   : > { %p5342_p9 = por %p5341_p7, %p5340_p5 }
  0x2a   : > { %p5336_p2 = pneg %p5335_p0 }
  0x2c   : > { %p5343_p4 = pnand %p5342_p9, %p5336_p2 }
  0x2e   : > { %5346 = shalt.err (!%p5343_p4)
}
  0x2f   : > { %5212 = dma.hbm_to_vmem [thread:$0]  (!%p5809_p6), %s8265_s1, 16, %s5796_s18, [#allocation8]  }
  0x30   : > { %s8267_s3 = sld [smem:[#allocation64_spill]] }
  0x36   : > { %s5347_s30 = scalar_lea.hbm %s8267_s3, 2048 }
  0x37   : > { %p5348_p10 = scmp.ne.s32.totalorder %s8267_s3, %s5347_s30  ;;  %p5354_p4 = scmp.lt.u32.totalorder %s5347_s30, %s8267_s3 }
  0x39   : > { %p5350_p11 = pnand %p5348_p10, %p5823_p8 }
  0x3b   : > { %p5351_p12 = pneg %p5350_p11 }
  0x3d   : > { %p5356_p13 = pnand %p5354_p4, %p5351_p12 }
  0x3f   : > { %5359 = shalt.err (!%p5356_p13)
}
  0x40   : > { %s5360_s18 = scalar_lea.vmem %s5805_s22, 2048  ;;  %p5368_p7 = scmp.lt.s32.totalorder %s5805_s22, %s5805_s22 }
  0x41   : > { %p5361_p0 = scmp.ne.s32.totalorder %s5805_s22, %s5360_s18  ;;  %p5369_p9 = scmp.lt.s32.totalorder %s5360_s18, %s5360_s18 }
  0x43   : > { %p5363_p2 = pnand %p5361_p0, %p5823_p8  ;;  %p5370_p10 = por %p5369_p9, %p5368_p7 }
  0x45   : > { %p5364_p5 = pneg %p5363_p2 }
  0x47   : > { %p5371_p11 = pnand %p5370_p10, %p5364_p5 }
  0x49   : > { %5374 = shalt.err (!%p5371_p11)
}
  0x4a   : > { %s5692_s26 = smov 64   ;;  %s5693_s27 = smov 4  }
  0x4b   : > { %5218 = dma.hbm_to_vmem [thread:$0]  (!%p5809_p6), %s8267_s3, 2048, %s5805_s22, [#allocation11], %s5692_s26, %s5692_s26, %s5693_s27  }
  0x4c   : > { %s5375_s17 = scalar_lea.hbm %s8228_s5, 320 }
  0x4d   : > { %p5376_p12 = scmp.ne.s32.totalorder %s8228_s5, %s5375_s17  ;;  %p5382_p0 = scmp.lt.u32.totalorder %s5375_s17, %s8228_s5 }
  0x4f   : > { %p5378_p4 = pnand %p5376_p12, %p5823_p8 }
  0x51   : > { %p5379_p13 = pneg %p5378_p4 }
  0x53   : > { %p5384_p2 = pnand %p5382_p0, %p5379_p13 }
  0x55   : > { %5387 = shalt.err (!%p5384_p2)
}
  0x56   : > { %s5388_s22 = scalar_lea.vmem %s5813_s25, 320  ;;  %p5396_p10 = scmp.lt.s32.totalorder %s5813_s25, %s5813_s25 }
  0x57   : > { %p5389_p5 = scmp.ne.s32.totalorder %s5813_s25, %s5388_s22  ;;  %p5397_p11 = scmp.lt.s32.totalorder %s5388_s22, %s5388_s22 }
  0x59   : > { %p5391_p7 = pnand %p5389_p5, %p5823_p8  ;;  %p5398_p12 = por %p5397_p11, %p5396_p10 }
  0x5b   : > { %p5392_p9 = pneg %p5391_p7 }
  0x5d   : > { %p5399_p4 = pnand %p5398_p12, %p5392_p9 }
  0x5f   : > { %5402 = shalt.err (!%p5399_p4)
}
  0x60   : > { %5224 = dma.hbm_to_vmem [thread:$0]  (!%p5809_p6), %s8228_s5, 320, %s5813_s25, [#allocation14], %s5692_s26, %s5692_s26, %s5693_s27  }
  0x61   : > { %s5694_s29 = smov [#allocation9]   ;;  %s5695_s12 = smov [#allocation12]  }
  0x62   : > { %s321_s30 = sshll.u32 %s5694_s29, 4  ;;  %s344_s17 = sshll.u32 %s5695_s12, 4  ;;  %s322_s30 = int_to_ptr.vmem [resolvable:$true] %s321_s30  ;;  %s345_s17 = int_to_ptr.vmem [resolvable:$true] %s344_s17 }
  0x63   : > { %s5403_s18 = scalar_lea.hbm %s8225_s2, 16 }
  0x64   : > { %p5404_p13 = scmp.ne.s32.totalorder %s8225_s2, %s5403_s18  ;;  %p5410_p5 = scmp.lt.u32.totalorder %s5403_s18, %s8225_s2 }
  0x66   : > { %p5406_p0 = pnand %p5404_p13, %p5823_p8 }
  0x68   : > { %p5407_p2 = pneg %p5406_p0 }
  0x6a   : > { %p5412_p7 = pnand %p5410_p5, %p5407_p2 }
  0x6c   : > { %5415 = shalt.err (!%p5412_p7)
}
  0x6d   : > { %s5416_s25 = scalar_lea.vmem %s322_s30, 16  ;;  %s5423_s28 = scalar_lea.vmem %s322_s30, 32 }
  0x6e   : > { %p5417_p9 = scmp.ne.s32.totalorder %s322_s30, %s5416_s25  ;;  %p5424_p12 = scmp.lt.s32.totalorder %s322_s30, %s322_s30 }
  0x6f   : > { %p5425_p4 = scmp.lt.s32.totalorder %s5423_s28, %s5416_s25 }
  0x70   : > { %p5419_p10 = pnand %p5417_p9, %p5823_p8 }
  0x71   : > { %p5426_p1 = por %p5425_p4, %p5424_p12 }
  0x72   : > { %p5420_p11 = pneg %p5419_p10 }
  0x74   : > { %p5427_p3 = pnand %p5426_p1, %p5420_p11 }
  0x76   : > { %5430 = shalt.err (!%p5427_p3)
}
  0x77   : > { %5215 = dma.hbm_to_vmem [thread:$0]  (!%p5809_p6), %s8225_s2, 16, %s322_s30, [#allocation8]  }
  0x78   : > { %s5431_s21 = scalar_lea.hbm %s8227_s4, 2048 }
  0x79   : > { %p5432_p13 = scmp.ne.s32.totalorder %s8227_s4, %s5431_s21  ;;  %p5438_p3 = scmp.lt.u32.totalorder %s5431_s21, %s8227_s4 }
  0x7b   : > { %p5434_p0 = pnand %p5432_p13, %p5823_p8 }
  0x7d   : > { %p5435_p1 = pneg %p5434_p0 }
  0x7f   : > { %p5440_p2 = pnand %p5438_p3, %p5435_p1 }
  0x81   : > { %5443 = shalt.err (!%p5440_p2)
}
  0x82   : > { %s5444_s25 = scalar_lea.vmem %s345_s17, 2048  ;;  %p5452_p10 = scmp.lt.s32.totalorder %s345_s17, %s345_s17 }
  0x83   : > { %p5445_p5 = scmp.ne.s32.totalorder %s345_s17, %s5444_s25  ;;  %p5453_p11 = scmp.lt.s32.totalorder %s5444_s25, %s5444_s25 }
  0x85   : > { %p5447_p7 = pnand %p5445_p5, %p5823_p8  ;;  %p5454_p12 = por %p5453_p11, %p5452_p10 }
  0x87   : > { %p5448_p9 = pneg %p5447_p7 }
  0x89   : > { %p5455_p4 = pnand %p5454_p12, %p5448_p9 }
  0x8b   : > { %5458 = shalt.err (!%p5455_p4)
}
  0x8c   : > { %5221 = dma.hbm_to_vmem [thread:$0]  (!%p5809_p6), %s8227_s4, 2048, %s345_s17, [#allocation11], %s5692_s26, %s5692_s26, %s5693_s27  }
  0x8d   : > { %s5696_s3 = smov [#allocation15]   ;;  %s5459_s21 = scalar_lea.hbm %s8229_s6, 32 }
  0x8e   : > { %s371_s29 = sshll.u32 %s5696_s3, 4  ;;  %p5460_p13 = scmp.ne.s32.totalorder %s8229_s6, %s5459_s21  ;;  %s372_s29 = int_to_ptr.vmem [resolvable:$true] %s371_s29 }
  0x8f   : > { %p5466_p3 = scmp.lt.u32.totalorder %s5459_s21, %s8229_s6 }
  0x90   : > { %p5462_p0 = pnand %p5460_p13, %p5823_p8 }
  0x92   : > { %p5463_p1 = pneg %p5462_p0 }
  0x94   : > { %p5468_p2 = pnand %p5466_p3, %p5463_p1 }
  0x96   : > { %5471 = shalt.err (!%p5468_p2)
}
  0x97   : > { %s5472_s26 = scalar_lea.vmem %s372_s29, 32  ;;  %p5480_p10 = scmp.lt.s32.totalorder %s372_s29, %s372_s29 }
  0x98   : > { %p5473_p5 = scmp.ne.s32.totalorder %s372_s29, %s5472_s26  ;;  %p5481_p11 = scmp.lt.s32.totalorder %s5472_s26, %s5472_s26 }
  0x9a   : > { %p5475_p7 = pnand %p5473_p5, %p5823_p8  ;;  %p5482_p12 = por %p5481_p11, %p5480_p10 }
  0x9c   : > { %p5476_p9 = pneg %p5475_p7 }
  0x9e   : > { %p5483_p4 = pnand %p5482_p12, %p5476_p9 }
  0xa0   : > { %5486 = shalt.err (!%p5483_p4)
}
  0xa1   : > { %5227 = dma.hbm_to_vmem [thread:$0]  (!%p5809_p6), %s8229_s6, 32, %s372_s29, [#allocation14]  }
  0xa2   : > { %s8257_s23 = sadd.s32 4294967294, %s5687_s16   ;;  %s5956_s11 = sadd.s32 1, %s5687_s16  }
  0xa3   : > { %s40_s25 = ssub.s32 %s5687_s16, %s5956_s11  ;;  %s43_s30 = sadd.s32 1, %s5683_s15 }
  0xa4   : > { %p41_p8 = scmp.eq.s32.totalorder %s40_s25, 0  ;;  %p50_p13 = scmp.ne.s32.totalorder %s5683_s15, %s5679_s14 }
  0xa5   : > { %p51_p0 = scmp.eq.s32.totalorder %s5687_s16, 0  ;;  %p56_p1 = scmp.ne.s32.totalorder %s5679_s14, %s5675_s13 }
  0xa6   : > { %s5967_s28 = scalar_select %p41_p8, %s5683_s15, %s43_s30  }
  0xa7   : > { %p5969_p3 = por %p51_p0, %p50_p13  ;;  %p8269_p2 = scmp.eq.s32.totalorder %s5791_s19, 0 }
  0xa8   : > { %p206_p5 = scmp.eq.s32.totalorder %s5791_s19, 1  ;;  %p212_p7 = scmp.eq.s32.totalorder %s8257_s23, 1 }
  0xa9   : > { %p5975_p6 = por %p8269_p2, %p56_p1  ;;  %p5251_p9 = scmp.lt.s32.totalorder %s5687_s16, 2 }
  0xaa   : > { %s382_s10 = sand.u32 1, %s5683_s15   ;;  %p5984_p10 = por %p206_p5, %p50_p13 }
  0xab   : > { %p5988_p11 = por %p212_p7, %p56_p1  ;;  %s4842_s24 = sshll.u32 %s382_s10, 8 }
  0xac   : > { %s8271_s12 = scalar_select %p5984_p10, 1, 0 }
  0xad   : > { %s8272_s21 = scalar_select %p5988_p11, 1, 0 }
  0xae   : > { %s4998_s18 = sshll.u32 %s5687_s16, 12  ;;  %s386_s27 = scalar_lea.vmem [#allocation4], %s4842_s24 }
  0xaf   : > { %s5996_s26 = scalar_lea.hbm %s8223_s0, %s4998_s18  ;;  %s393_s17 = sshll.u32 %s386_s27, 4  ;;  %s5998_s17 = int_to_ptr.vmem [resolvable:$true] %s393_s17 }
  0xb0   : > { %p6002_p12 = pnand %p5251_p9, %p5969_p3  ;;  %s6006_s30 = scalar_lea.sflag [#allocation5], %s382_s10 }
  0xb1   : > { %s5487_s22 = scalar_lea.hbm %s5996_s26, 4096  ;;  %s5492_s3 = scalar_lea.hbm %s8223_s0, 8192 }
  0xb2   : > { %p5488_p4 = scmp.ne.s32.totalorder %s5996_s26, %s5487_s22  ;;  %p5489_p8 = pneg %p6002_p12 }
  0xb3   : > { %p5493_p1 = scmp.lt.u32.totalorder %s5996_s26, %s8223_s0  ;;  %p5494_p3 = scmp.lt.u32.totalorder %s5492_s3, %s5487_s22 }
  0xb4   : > { %p5490_p13 = pnand %p5489_p8, %p5488_p4  ;;  %p5496_p5 = scmp.lt.u32.totalorder %s5487_s22, %s5996_s26 }
  0xb5   : > { %p5495_p2 = por %p5494_p3, %p5493_p1 }
  0xb6   : > { %p5491_p0 = pneg %p5490_p13 }
  0xb7   : > { %p5497_p7 = por %p5496_p5, %p5495_p2 }
  0xb9   : > { %p5498_p9 = pnand %p5497_p7, %p5491_p0 }
  0xbb   : > { %5501 = shalt.err (!%p5498_p9)
}
  0xbc   : > { %s5502_s10 = scalar_lea.vmem %s5998_s17, 4096  ;;  %s5697_s24 = smov [#allocation4]  }
  0xbd   : > { %p5503_p4 = scmp.ne.s32.totalorder %s5998_s17, %s5502_s10  ;;  %s5507_s18 = sshll.u32 %s5697_s24, 4  ;;  %s5508_s18 = int_to_ptr.vmem [resolvable:$false] %s5507_s18 }
  0xbe   : > { %s5509_s1 = scalar_lea.vmem %s5508_s18, 8192  ;;  %p5510_p10 = scmp.lt.s32.totalorder %s5998_s17, %s5508_s18 }
  0xbf   : > { %p5505_p13 = pnand %p5503_p4, %p5489_p8  ;;  %p5511_p1 = scmp.lt.s32.totalorder %s5509_s1, %s5502_s10 }
  0xc1   : > { %p5506_p11 = pneg %p5505_p13  ;;  %p5512_p3 = por %p5511_p1, %p5510_p10 }
  0xc3   : > { %p5513_p2 = pnand %p5512_p3, %p5506_p11 }
  0xc5   : > { %5516 = shalt.err (!%p5513_p2)
}
  0xc6   : > { %s5698_s22 = smov 128   ;;  %s5699_s3 = smov 8  }
  0xc7   : > { %5231 = dma.hbm_to_vmem [thread:$0]  (!%p6002_p12), %s5996_s26, 4096, %s5998_s17, %s6006_s30, %s5698_s22, %s5698_s22, %s5699_s3  }
  0xc8   : > { %p8274_p8 = scmp.ne.s32.totalorder %s8263_s20, 0 }
  0xca   : > { %405 = sbr.rel (%p8274_p8) target bundleno = 1061 (0x425), region = 48 }
  0xd1   : > { %s6037_s27 = sand.u32 1, %s5679_s14  }
  0xd2   : > { %s4846_s10 = sshll.u32 %s6037_s27, 8  ;;  %s408_s24 = scalar_lea.sflag [#allocation5], %s6037_s27 }
  0xd3   : > { %s6041_s18 = scalar_lea.vmem [#allocation4], %s4846_s10 }
  0xd4   : > { %5646 = dma.done.wait (%p5975_p6), %s408_s24, 4096  }
  0xd5   : > { %5648 = vsyncadd (%p5975_p6), %s408_s24, 4294963200  ;;  %p8275_p10 = scmp.eq.s32.totalorder %s5791_s19, 0 }
  0xd7   : > { %5650 = dma.done.wait (%p8275_p10), [#allocation8], 32   ;;  %p8276_p11 = pmov %p8275_p10 }
  0xd8   : > { %p8277_p12 = pmov %p8275_p10 }
  0xd9   : > { %5652 = vsyncadd (%p8276_p11), [#allocation8], 4294967264 }
  0xda   : > { %5654 = dma.done.wait (%p8277_p12), [#allocation11], 4096   ;;  %p8278_p0 = pmov %p8275_p10 }
  0xdc   : > { %5656 = vsyncadd (%p8278_p0), [#allocation11], 4294963200  ;;  %p8279_p5 = pmov %p8278_p0 }
  0xdd   : > { %p8280_p7 = pmov %p8278_p0 }
  0xde   : > { %5658 = dma.done.wait (%p8279_p5), [#allocation14], 352  }
  0xdf   : > { %5660 = vsyncadd (%p8280_p7), [#allocation14], 4294966944  ;;  %vm713_vm0 = vcmask 31744   ;;  %v5700_v0 = vmov 0   ;;  %v651_v1 = vld [vmem:[#allocation10 + $0x8] sm:$0xf] }
  0xe0   : > { %5313 = vset.pattern.permute.xlu1 %v5700_v0  ;;  %714 = vst.msk [vmem:[#allocation2] sm:$0xff] %vm713_vm0, %v5700_v0  ;;  %715 = vst.msk [vmem:[#allocation2 + $0x8] sm:$0xff] %vm713_vm0, %v5700_v0  ;;  %5312 = vset.pattern.permute.xlu0 %v5700_v0  ;;  %v649_v2 = vld [vmem:[#allocation10] sm:$0xf]  ;;  %v652_v3 = vld [vmem:[#allocation10 + $0xc] sm:$0xf] }
  0xe1   : > { %716 = vst.msk [vmem:[#allocation2 + $0x90] sm:$0xff] %vm713_vm0, %v5700_v0  ;;  %717 = vst.msk [vmem:[#allocation2 + $0x98] sm:$0xff] %vm713_vm0, %v5700_v0  ;;  %777 = vperm.xlu1 %5313, %v651_v1   ;;  %753 = vperm.xlu0 %5312, %v649_v2   ;;  %v650_v4 = vld [vmem:[#allocation10 + $0x4] sm:$0xf]  ;;  %v654_v5 = vld [vmem:[#allocation10 + $0x14] sm:$0xf] }
  0xe2   : > { %v653_v6 = vld [vmem:[#allocation10 + $0x10] sm:$0xf]  ;;  %v656_v7 = vld [vmem:[#allocation10 + $0x1c] sm:$0xf]  ;;  %v655_v8 = vld [vmem:[#allocation10 + $0x18] sm:$0xf] }
  0xe3   : > { %v658_v9 = vld [vmem:[#allocation10 + $0x24] sm:$0xf]  ;;  %v657_v10 = vld [vmem:[#allocation10 + $0x20] sm:$0xf]  ;;  %v660_v11 = vld [vmem:[#allocation10 + $0x2c] sm:$0xf] }
  0xe4   : > { %v659_v12 = vld [vmem:[#allocation10 + $0x28] sm:$0xf]  ;;  %v662_v13 = vld [vmem:[#allocation10 + $0x34] sm:$0xf]  ;;  %v661_v14 = vld [vmem:[#allocation10 + $0x30] sm:$0xf] }
  0xe5   : > { %789 = vperm.xlu1 %5313, %v652_v3   ;;  %765 = vperm.xlu0 %5312, %v650_v4   ;;  %v486_v15 = vld [vmem:[%s6041_s18] sm:$0xff]  ;;  %v487_v16 = vld [vmem:[%s6041_s18 + $0x8] sm:$0xff]  ;;  %v488_v21 = vld [vmem:[%s6041_s18 + $0x10] sm:$0xff]  ;;  %s5702_s20 = smov 4   ;;  %s5703_s29 = smov 16   ;;  %vm1622_vm3 = vcmask 64544  }
  0xe6   : > { %v6065_v17 = vld [vmem:[#allocation7] ss:$0 sm:$0xff]  ;;  %v6069_v20 = vld [vmem:[#allocation9] ss:$0 sm:$0xff]  ;;  %v489_v22 = vld [vmem:[%s6041_s18 + $0x18] sm:$0xff]  ;;  %s5704_s26 = smov 28  }
  0xe7   : > { %v525_v18 = vmul.f32 %v6065_v17, %v486_v15  ;;  %v526_v19 = vmul.f32 %v6065_v17, %v487_v16  ;;  %v527_v23 = vmul.f32 %v6065_v17, %v488_v21  ;;  %v528_v24 = vmul.f32 %v6065_v17, %v489_v22  ;;  %v490_v25 = vld [vmem:[%s6041_s18 + $0x20] sm:$0xff]  ;;  %v491_v26 = vld [vmem:[%s6041_s18 + $0x28] sm:$0xff]  ;;  %v492_v27 = vld [vmem:[%s6041_s18 + $0x30] sm:$0xff]  ;;  %s5705_s17 = smov 8   ;;  %s5706_s25 = smov 20  }
  0xe8   : > { %v529_v30 = vmul.f32 %v6065_v17, %v490_v25  ;;  %v493_v31 = vld [vmem:[%s6041_s18 + $0x38] sm:$0xff]  ;;  %v664_v32 = vld [vmem:[#allocation10 + $0x3c] sm:$0xf]  ;;  %v530_v36 = vmul.f32 %v6065_v17, %v491_v26  ;;  %v531_v37 = vmul.f32 %v6065_v17, %v492_v27  ;;  %v495_v43 = vld [vmem:[%s6041_s18 + $0x48] sm:$0xff]  ;;  %vm1215_vm1 = vsmask.f32 7424 }
  0xe9   : > { %813 = vperm.xlu1 %5313, %v654_v5   ;;  %801 = vperm.xlu0 %5312, %v653_v6   ;;  %v564_v28 = vadd.f32 %v6069_v20, %v525_v18  ;;  %v565_v29 = vadd.f32 %v6069_v20, %v526_v19  ;;  %v663_v33 = vld [vmem:[#allocation10 + $0x38] sm:$0xf]  ;;  %v566_v34 = vadd.f32 %v6069_v20, %v527_v23  ;;  %v494_v38 = vld [vmem:[%s6041_s18 + $0x40] sm:$0xff]  ;;  %v496_v44 = vld [vmem:[%s6041_s18 + $0x50] sm:$0xff]  ;;  %vm1377_vm2 = vsmask.f32 256 }
  0xea   : > { %v567_v35 = vadd.f32 %v6069_v20, %v528_v24  ;;  %v568_v41 = vadd.f32 %v6069_v20, %v529_v30  ;;  %v532_v42 = vmul.f32 %v6065_v17, %v493_v31  ;;  %v682_v45 = vld [vmem:[#allocation12 + $0x4] sm:$0xf]  ;;  %v569_v48 = vadd.f32 %v6069_v20, %v530_v36  ;;  %v497_v50 = vld [vmem:[%s6041_s18 + $0x58] sm:$0xff]  ;;  %v498_v51 = vld [vmem:[%s6041_s18 + $0x60] sm:$0xff]  ;;  %s5707_s30 = smov 32   ;;  %s5708_s1 = smov 12  }
  0xeb   : > { %v596_v39 = vmax.f32 %v564_v28, 0.0  ;;  %v597_v40 = vmax.f32 %v565_v29, 0.0  ;;  %v598_v46 = vmax.f32 %v566_v34, 0.0  ;;  %v570_v49 = vadd.f32 %v6069_v20, %v531_v37  ;;  %v499_v56 = vld [vmem:[%s6041_s18 + $0x68] sm:$0xff]  ;;  %v681_v57 = vld [vmem:[#allocation12] sm:$0xf] }
  0xec   : > { %v599_v47 = vmax.f32 %v567_v35, 0.0  ;;  %v600_v53 = vmax.f32 %v568_v41, 0.0  ;;  %v571_v54 = vadd.f32 %v6069_v20, %v532_v42  ;;  %v533_v55 = vmul.f32 %v6065_v17, %v494_v38  ;;  %v686_v23 = vld [vmem:[#allocation12 + $0x14] sm:$0xf]  ;;  %v685_v24 = vld [vmem:[#allocation12 + $0x10] sm:$0xf] }
  0xed   : > { %837 = vperm.xlu1 %5313, %v656_v7   ;;  %825 = vperm.xlu0 %5312, %v655_v8   ;;  %v628_v52 = vpack.c.bf16 %v597_v40, %v596_v39  ;;  %v601_v59 = vmax.f32 %v569_v48, 0.0  ;;  %v602_v60 = vmax.f32 %v570_v49, 0.0  ;;  %v534_v61 = vmul.f32 %v6065_v17, %v495_v43  ;;  %v688_v26 = vld [vmem:[#allocation12 + $0x1c] sm:$0xf]  ;;  %v687_v27 = vld [vmem:[#allocation12 + $0x18] sm:$0xf] }
  0xee   : > { %v6098_v58 = vpack.c.bf16 %v599_v47, %v598_v46  ;;  %v603_v62 = vmax.f32 %v571_v54, 0.0  ;;  %v572_v63 = vadd.f32 %v6069_v20, %v533_v55  ;;  %v535_v0 = vmul.f32 %v6065_v17, %v496_v44  ;;  %v690_v28 = vld [vmem:[#allocation12 + $0x24] sm:$0xf]  ;;  %v689_v29 = vld [vmem:[#allocation12 + $0x20] sm:$0xf]  ;;  %v500_v34 = vld [vmem:[%s6041_s18 + $0x70] sm:$0xff] }
  0xef   : > { %718 = vst.msk [vmem:[#allocation2 + $0x10] sm:$0xff] %vm713_vm0, %v628_v52  ;;  %v536_v1 = vmul.f32 %v6065_v17, %v497_v50  ;;  %5141 = vmatprep.mubr.msk.bf16.mxu1 %vm713_vm0, %v628_v52  ;;  %v6108_v2 = vpack.c.bf16 %v601_v59, %v600_v53  ;;  %v573_v3 = vadd.f32 %v6069_v20, %v534_v61  ;;  %v692_v30 = vld [vmem:[#allocation12 + $0x2c] sm:$0xf]  ;;  %v691_v31 = vld [vmem:[#allocation12 + $0x28] sm:$0xf]  ;;  %v501_v35 = vld [vmem:[%s6041_s18 + $0x78] sm:$0xff] }
  0xf0   : > { %8281 = vst [vmem:[#allocation29_spill] sm:$0xff] %v6098_v58  ;;  %719 = vst.msk [vmem:[#allocation2 + $0x18] sm:$0xff] %vm713_vm0, %v6098_v58  ;;  %v537_v4 = vmul.f32 %v6065_v17, %v498_v51  ;;  %v538_v5 = vmul.f32 %v6065_v17, %v499_v56  ;;  %v6113_v6 = vpack.c.bf16 %v603_v62, %v602_v60  ;;  %v604_v7 = vmax.f32 %v572_v63, 0.0  ;;  %v696_v36 = vld [vmem:[#allocation12 + $0x3c] sm:$0xf]  ;;  %v503_v63 = vld [vmem:[%s6041_s18 + $0x88] sm:$0xff] }
  0xf1   : > { %861 = vperm.xlu1 %5313, %v658_v9   ;;  %849 = vperm.xlu0 %5312, %v657_v10   ;;  %8282 = vst [vmem:[#allocation30_spill] sm:$0xff] %v6108_v2  ;;  %v574_v8 = vadd.f32 %v6069_v20, %v535_v0  ;;  %v575_v9 = vadd.f32 %v6069_v20, %v536_v1  ;;  %v684_v10 = vld [vmem:[#allocation12 + $0xc] sm:$0xf]  ;;  %720 = vst.msk [vmem:[#allocation2 + $0x20] sm:$0xff] %vm713_vm0, %v6108_v2  ;;  %v695_v37 = vld [vmem:[#allocation12 + $0x38] sm:$0xf] }
  0xf2   : > { %8283 = vst [vmem:[#allocation31_spill] sm:$0xff] %v6113_v6  ;;  %721 = vst.msk [vmem:[#allocation2 + $0x28] sm:$0xff] %vm713_vm0, %v6113_v6  ;;  %v539_v38 = vmul.f32 %v6065_v17, %v500_v34  ;;  %v540_v39 = vmul.f32 %v6065_v17, %v501_v35  ;;  %v698_v42 = vld [vmem:[#allocation12 + $0x44] sm:$0xf]  ;;  %v697_v43 = vld [vmem:[#allocation12 + $0x40] sm:$0xf]  ;;  %v542_v1 = vmul.f32 %v6065_v17, %v503_v63 }
  0xf3   : > { %v606_v15 = vmax.f32 %v574_v8, 0.0  ;;  %v607_v16 = vmax.f32 %v575_v9, 0.0  ;;  %v666_v47 = vld [vmem:[#allocation10 + $0x44] sm:$0xf]  ;;  %v665_v48 = vld [vmem:[#allocation10 + $0x40] sm:$0xf] }
  0xf4   : > { %v578_v40 = vadd.f32 %v6069_v20, %v539_v38  ;;  %v579_v41 = vadd.f32 %v6069_v20, %v540_v39  ;;  %v700_v49 = vld [vmem:[#allocation12 + $0x4c] sm:$0xf]  ;;  %v699_v50 = vld [vmem:[#allocation12 + $0x48] sm:$0xf]  ;;  %v702_v53 = vld [vmem:[#allocation12 + $0x54] sm:$0xf] }
  0xf5   : > { %885 = vperm.xlu1 %5313, %v660_v11   ;;  %873 = vperm.xlu0 %5312, %v659_v12   ;;  %v683_v11 = vld [vmem:[#allocation12 + $0x8] sm:$0xf]  ;;  %v605_v12 = vmax.f32 %v573_v3, 0.0  ;;  %v6125_v22 = vpack.c.bf16 %v607_v16, %v606_v15  ;;  %v668_v51 = vld [vmem:[#allocation10 + $0x4c] sm:$0xf]  ;;  %v502_v62 = vld [vmem:[%s6041_s18 + $0x80] sm:$0xff] }
  0xf6   : > { %v610_v44 = vmax.f32 %v578_v40, 0.0  ;;  %v667_v52 = vld [vmem:[#allocation10 + $0x48] sm:$0xf]  ;;  %v701_v54 = vld [vmem:[#allocation12 + $0x50] sm:$0xf]  ;;  %v541_v0 = vmul.f32 %v6065_v17, %v502_v62  ;;  %s5709_s22 = smov 24  }
  0xf7   : > { %v6123_v18 = vpack.c.bf16 %v605_v12, %v604_v7  ;;  %8285 = vst [vmem:[#allocation33_spill] sm:$0xff] %v6125_v22  ;;  %723 = vst.msk [vmem:[#allocation2 + $0x38] sm:$0xff] %vm713_vm0, %v6125_v22  ;;  %v670_v55 = vld [vmem:[#allocation10 + $0x54] sm:$0xf]  ;;  %v669_v56 = vld [vmem:[#allocation10 + $0x50] sm:$0xf]  ;;  %v581_v7 = vadd.f32 %v6069_v20, %v542_v1 }
  0xf8   : > { %v703_v59 = vld [vmem:[#allocation12 + $0x58] sm:$0xf]  ;;  %v672_v60 = vld [vmem:[#allocation10 + $0x5c] sm:$0xf]  ;;  %v706_v3 = vld [vmem:[#allocation12 + $0x64] sm:$0xf] }
  0xf9   : > { %909 = vperm.xlu1 %5313, %v662_v13   ;;  %897 = vperm.xlu0 %5312, %v661_v14   ;;  %v576_v13 = vadd.f32 %v6069_v20, %v537_v4  ;;  %v577_v14 = vadd.f32 %v6069_v20, %v538_v5  ;;  %8284 = vst [vmem:[#allocation32_spill] sm:$0xff] %v6123_v18  ;;  %722 = vst.msk [vmem:[#allocation2 + $0x30] sm:$0xff] %vm713_vm0, %v6123_v18  ;;  %v671_v61 = vld [vmem:[#allocation10 + $0x58] sm:$0xf]  ;;  %v705_v4 = vld [vmem:[#allocation12 + $0x60] sm:$0xf] }
  0xfa   : > { %v580_v5 = vadd.f32 %v6069_v20, %v541_v0  ;;  %v613_v9 = vmax.f32 %v581_v7, 0.0  ;;  %v710_v35 = vld [vmem:[#allocation12 + $0x74] sm:$0xf]  ;;  %v510_v0 = vld [vmem:[%s6041_s18 + $0xc0] sm:$0xff]  ;;  %v511_v1 = vld [vmem:[%s6041_s18 + $0xc8] sm:$0xff]  ;;  %vm3676_vm4 = vcmask 1041408  }
  0xfb   : > { %v608_v19 = vmax.f32 %v576_v13, 0.0  ;;  %v609_v21 = vmax.f32 %v577_v14, 0.0  ;;  %v504_v13 = vld [vmem:[%s6041_s18 + $0x90] sm:$0xff]  ;;  %v505_v14 = vld [vmem:[%s6041_s18 + $0x98] sm:$0xff]  ;;  %vm2461_vm5 = vcmask 97344   ;;  %vm2692_vm6 = vcmask 130144  }
  0xfc   : > { %v612_v8 = vmax.f32 %v580_v5, 0.0  ;;  %v543_v15 = vmul.f32 %v6065_v17, %v504_v13  ;;  %v544_v16 = vmul.f32 %v6065_v17, %v505_v14  ;;  %v6195_v13 = vld [vmem:[#allocation2 + $0x8] sm:$0xff]  ;;  %vm2789_vm7 = vcmask 162944   ;;  %s4853_s3 = sshll.u32 %s6037_s27, 7  ;;  %p8359_p9 = scmp.ne.s32.totalorder %s8271_s12, 0 }
  0xfd   : > { %933 = vperm.xlu1 %5313, %v664_v32   ;;  %921 = vperm.xlu0 %5312, %v663_v33   ;;  %v6129_v25 = vpack.c.bf16 %v609_v21, %v608_v19  ;;  %v694_v32 = vld [vmem:[#allocation12 + $0x34] sm:$0xf]  ;;  %v693_v33 = vld [vmem:[#allocation12 + $0x30] sm:$0xf]  ;;  %v708_v19 = vld [vmem:[#allocation12 + $0x6c] sm:$0xf] }
  0xfe   : > { %v6151_v12 = vpack.c.bf16 %v613_v9, %v612_v8  ;;  %v707_v21 = vld [vmem:[#allocation12 + $0x68] sm:$0xf]  ;;  %vm3020_vm8 = vcmask 195744   ;;  %vm3251_vm9 = vcmask 228544   ;;  %vm3348_vm10 = vcmask 261344   ;;  %s7851_s10 = scalar_lea.vmem [#allocation16], %s4853_s3 }
  0xff   : > { %8286 = vst [vmem:[#allocation34_spill] sm:$0xff] %v6129_v25  ;;  %724 = vst.msk [vmem:[#allocation2 + $0x40] sm:$0xff] %vm713_vm0, %v6129_v25  ;;  %v6389_v25 = vld [vmem:[#allocation2 + $0x28] sm:$0xff]  ;;  %vm3579_vm11 = vcmask 294144   ;;  %vm3627_vm12 = vcmask 293888   ;;  %vm3969_vm13 = vcmask 60416  }
 0x100   : > { %8288 = vst [vmem:[#allocation36_spill] sm:$0xff] %v6151_v12  ;;  %726 = vst.msk [vmem:[#allocation2 + $0x50] sm:$0xff] %vm713_vm0, %v6151_v12  ;;  %vm4002_vm14 = vcmask 64512   ;;  %s7892_s24 = scalar_lea.vmem [#allocation17], %s4853_s3  ;;  %s5710_s3 = smov [#allocation17]  }
 0x101   : > { %1670 = vperm.xlu1 %5313, %v682_v45   ;;  %1658 = vperm.xlu0 %5312, %v681_v57   ;;  %v611_v45 = vmax.f32 %v579_v41, 0.0  ;;  %v704_v57 = vld [vmem:[#allocation12 + $0x5c] sm:$0xf]  ;;  %v678_v41 = vld [vmem:[#allocation10 + $0x74] sm:$0xf] }
 0x103   : > { %v6141_v46 = vpack.c.bf16 %v611_v45, %v610_v44  ;;  %v508_v44 = vld [vmem:[%s6041_s18 + $0xb0] sm:$0xff]  ;;  %v509_v45 = vld [vmem:[%s6041_s18 + $0xb8] sm:$0xff] }
 0x105   : > { %1694 = vperm.xlu1 %5313, %v684_v10   ;;  %1682 = vperm.xlu0 %5312, %v683_v11   ;;  %8287 = vst [vmem:[#allocation35_spill] sm:$0xff] %v6141_v46  ;;  %725 = vst.msk [vmem:[#allocation2 + $0x48] sm:$0xff] %vm713_vm0, %v6141_v46  ;;  %v674_v10 = vld [vmem:[#allocation10 + $0x64] sm:$0xf]  ;;  %v673_v11 = vld [vmem:[#allocation10 + $0x60] sm:$0xf] }
 0x109   : > { %1718 = vperm.xlu1 %5313, %v686_v23   ;;  %1706 = vperm.xlu0 %5312, %v685_v24   ;;  %v582_v23 = vadd.f32 %v6069_v20, %v543_v15  ;;  %v583_v24 = vadd.f32 %v6069_v20, %v544_v16 }
 0x10d   : > { %1742 = vperm.xlu1 %5313, %v688_v26   ;;  %1730 = vperm.xlu0 %5312, %v687_v27   ;;  %v614_v26 = vmax.f32 %v582_v23, 0.0  ;;  %v615_v27 = vmax.f32 %v583_v24, 0.0 }
 0x111   : > { %1766 = vperm.xlu1 %5313, %v690_v28   ;;  %1754 = vperm.xlu0 %5312, %v689_v29   ;;  %v676_v28 = vld [vmem:[#allocation10 + $0x6c] sm:$0xf]  ;;  %v675_v29 = vld [vmem:[#allocation10 + $0x68] sm:$0xf] }
 0x115   : > { %1790 = vperm.xlu1 %5313, %v692_v30   ;;  %1778 = vperm.xlu0 %5312, %v691_v31   ;;  %v6161_v30 = vpack.c.bf16 %v615_v27, %v614_v26  ;;  %v506_v31 = vld [vmem:[%s6041_s18 + $0xa0] sm:$0xff]  ;;  %v6205_v26 = vld [vmem:[#allocation2 + $0x18] sm:$0xff]  ;;  %v512_v27 = vld [vmem:[%s6041_s18 + $0xd0] sm:$0xff] }
 0x117   : > { %8289 = vst [vmem:[#allocation37_spill] sm:$0xff] %v6161_v30  ;;  %727 = vst.msk [vmem:[#allocation2 + $0x58] sm:$0xff] %vm713_vm0, %v6161_v30 }
 0x119   : > { %1814 = vperm.xlu1 %5313, %v694_v32   ;;  %1802 = vperm.xlu0 %5312, %v693_v33   ;;  %v507_v32 = vld [vmem:[%s6041_s18 + $0xa8] sm:$0xff]  ;;  %v545_v33 = vmul.f32 %v6065_v17, %v506_v31 }
 0x11a   : > { %v546_v34 = vmul.f32 %v6065_v17, %v507_v32  ;;  %v514_v32 = vld [vmem:[%s6041_s18 + $0xe0] sm:$0xff] }
 0x11c   : > { %v585_v38 = vadd.f32 %v6069_v20, %v546_v34  ;;  %v551_v34 = vmul.f32 %v6065_v17, %v512_v27 }
 0x11d   : > { %1838 = vperm.xlu1 %5313, %v696_v36   ;;  %1826 = vperm.xlu0 %5312, %v695_v37   ;;  %v709_v36 = vld [vmem:[#allocation12 + $0x70] sm:$0xf]  ;;  %v584_v37 = vadd.f32 %v6069_v20, %v545_v33  ;;  %v515_v33 = vld [vmem:[%s6041_s18 + $0xe8] sm:$0xff] }
 0x11e   : > { %v617_v40 = vmax.f32 %v585_v38, 0.0 }
 0x11f   : > { %v616_v39 = vmax.f32 %v584_v37, 0.0  ;;  %v554_v37 = vmul.f32 %v6065_v17, %v515_v33 }
 0x121   : > { %1862 = vperm.xlu1 %5313, %v698_v42   ;;  %1850 = vperm.xlu0 %5312, %v697_v43   ;;  %v677_v42 = vld [vmem:[#allocation10 + $0x70] sm:$0xf]  ;;  %v6171_v43 = vpack.c.bf16 %v617_v40, %v616_v39  ;;  %v590_v40 = vadd.f32 %v6069_v20, %v551_v34 }
 0x123   : > { %8290 = vst [vmem:[#allocation38_spill] sm:$0xff] %v6171_v43  ;;  %728 = vst.msk [vmem:[#allocation2 + $0x60] sm:$0xff] %vm713_vm0, %v6171_v43 }
 0x125   : > { %957 = vperm.xlu1 %5313, %v666_v47   ;;  %945 = vperm.xlu0 %5312, %v665_v48   ;;  %v547_v47 = vmul.f32 %v6065_v17, %v508_v44  ;;  %v548_v48 = vmul.f32 %v6065_v17, %v509_v45  ;;  %v6224_v44 = vld [vmem:[#allocation2 + $0x20] sm:$0xff] }
 0x129   : > { %1886 = vperm.xlu1 %5313, %v700_v49   ;;  %1874 = vperm.xlu0 %5312, %v699_v50   ;;  %v712_v49 = vld [vmem:[#allocation12 + $0x7c] sm:$0xf]  ;;  %v711_v50 = vld [vmem:[#allocation12 + $0x78] sm:$0xf] }
 0x12d   : > { %981 = vperm.xlu1 %5313, %v668_v51   ;;  %969 = vperm.xlu0 %5312, %v667_v52   ;;  %v586_v51 = vadd.f32 %v6069_v20, %v547_v47  ;;  %v587_v52 = vadd.f32 %v6069_v20, %v548_v48  ;;  %v593_v48 = vadd.f32 %v6069_v20, %v554_v37 }
 0x131   : > { %1910 = vperm.xlu1 %5313, %v702_v53   ;;  %1898 = vperm.xlu0 %5312, %v701_v54   ;;  %v5701_v53 = vmov 839922192  }
 0x132   : > { %v757_v54 = vunpack.c.l.s4 %v5701_v53 }
 0x134   : > { %v758_v62 = vunpack.c.0.s8 %v757_v54 }
 0x135   : > { %1005 = vperm.xlu1 %5313, %v670_v55   ;;  %993 = vperm.xlu0 %5312, %v669_v56   ;;  %v759_v55 = vlaneseq  ;;  %v618_v56 = vmax.f32 %v586_v51, 0.0 }
 0x137   : > { %v760_v63 = vshrl.u32 %v759_v55, 7 }
 0x139   : > { %1934 = vperm.xlu1 %5313, %v704_v57   ;;  %1922 = vperm.xlu0 %5312, %v703_v59   ;;  %v619_v57 = vmax.f32 %v587_v52, 0.0  ;;  %v680_v59 = vld [vmem:[#allocation10 + $0x7c] sm:$0xf]  ;;  %v6191_v8 = vsub.s32 %v758_v62, %v760_v63  ;;  %v622_v52 = vmax.f32 %v590_v40, 0.0 }
 0x13d   : > { %1029 = vperm.xlu1 %5313, %v672_v60   ;;  %1017 = vperm.xlu0 %5312, %v671_v61   ;;  %v679_v60 = vld [vmem:[#allocation10 + $0x78] sm:$0xf]  ;;  %v6181_v61 = vpack.c.bf16 %v619_v57, %v618_v56 }
 0x13f   : > { %8291 = vst [vmem:[#allocation39_spill] sm:$0xff] %v6181_v61  ;;  %729 = vst.msk [vmem:[#allocation2 + $0x68] sm:$0xff] %vm713_vm0, %v6181_v61 }
 0x141   : > { %1958 = vperm.xlu1 %5313, %v706_v3   ;;  %1946 = vperm.xlu0 %5312, %v705_v4   ;;  %v549_v3 = vmul.f32 %v6065_v17, %v510_v0  ;;  %v550_v4 = vmul.f32 %v6065_v17, %v511_v1 }
 0x143   : > { %v588_v5 = vadd.f32 %v6069_v20, %v549_v3  ;;  %v589_v7 = vadd.f32 %v6069_v20, %v550_v4 }
 0x145   : > { %1053 = vperm.xlu1 %5313, %v674_v10   ;;  %1041 = vperm.xlu0 %5312, %v673_v11   ;;  %v6193_v11 = vld [vmem:[#allocation2 + $0x10] sm:$0xff]  ;;  %v620_v14 = vmax.f32 %v588_v5, 0.0  ;;  %v621_v15 = vmax.f32 %v589_v7, 0.0 }
 0x147   : > { %v6201_v16 = vpack.c.bf16 %v621_v15, %v620_v14 }
 0x149   : > { %1982 = vperm.xlu1 %5313, %v708_v19   ;;  %1970 = vperm.xlu0 %5312, %v707_v21   ;;  %8292 = vst [vmem:[#allocation40_spill] sm:$0xff] %v6201_v16  ;;  %730 = vst.msk [vmem:[#allocation2 + $0x70] sm:$0xff] %vm713_vm0, %v6201_v16 }
 0x14d   : > { %1077 = vperm.xlu1 %5313, %v676_v28   ;;  %1065 = vperm.xlu0 %5312, %v675_v29   ;;  %v513_v28 = vld [vmem:[%s6041_s18 + $0xd8] sm:$0xff] }
 0x151   : > { %2006 = vperm.xlu1 %5313, %v710_v35   ;;  %1994 = vperm.xlu0 %5312, %v709_v36   ;;  %v552_v35 = vmul.f32 %v6065_v17, %v513_v28  ;;  %v553_v36 = vmul.f32 %v6065_v17, %v514_v32 }
 0x153   : > { %v591_v45 = vadd.f32 %v6069_v20, %v552_v35  ;;  %v592_v47 = vadd.f32 %v6069_v20, %v553_v36  ;;  %v625_v20 = vmax.f32 %v593_v48, 0.0 }
 0x155   : > { %1101 = vperm.xlu1 %5313, %v678_v41   ;;  %1089 = vperm.xlu0 %5312, %v677_v42   ;;  %v623_v53 = vmax.f32 %v591_v45, 0.0  ;;  %v624_v56 = vmax.f32 %v592_v47, 0.0 }
 0x157   : > { %v6237_v63 = vpack.c.bf16 %v623_v53, %v622_v52  ;;  %v2478_v52 = vld [vmem:[#allocation2 + $0x8] sm:$0x80] }
 0x159   : > { %2030 = vperm.xlu1 %5313, %v712_v49   ;;  %2018 = vperm.xlu0 %5312, %v711_v50   ;;  %8293 = vst [vmem:[#allocation41_spill] sm:$0xff] %v6237_v63  ;;  %731 = vst.msk [vmem:[#allocation2 + $0x78] sm:$0xff] %vm713_vm0, %v6237_v63 }
 0x15d   : > { %1125 = vperm.xlu1 %5313, %v680_v59   ;;  %1113 = vperm.xlu0 %5312, %v679_v60  }
 0x160   : > { %v778_v9 = vpop.permute.xlu1 %777  ;;  %v754_v10 = vpop.permute.xlu0 %753 }
 0x161   : > { %1574 = vrot.lane.b32.xlu0 %v6195_v13, %s5702_s20  ;;  %1576 = vrot.lane.b32.xlu1 %v6193_v11, %s5702_s20  ;;  %v786_v19 = vrot.slane %v778_v9, %v6191_v8  ;;  %v762_v21 = vrot.slane %v754_v10, %v6191_v8  ;;  %v6247_v9 = vpack.c.bf16 %v625_v20, %v624_v56 }
 0x163   : > { %8294 = vst [vmem:[#allocation42_spill] sm:$0xff] %v6247_v9  ;;  %732 = vst.msk [vmem:[#allocation2 + $0x80] sm:$0xff] %vm713_vm0, %v6247_v9 }
 0x164   : > { %v790_v23 = vpop.permute.xlu1 %789  ;;  %v766_v24 = vpop.permute.xlu0 %765 }
 0x165   : > { %v798_v29 = vrot.slane %v790_v23, %v6191_v8  ;;  %v774_v31 = vrot.slane %v766_v24, %v6191_v8  ;;  %2741 = vrot.lane.b32.xlu0 %v6193_v11, %s5703_s29  ;;  %2743 = vrot.lane.b32.xlu1 %v6205_v26, %s5703_s29 }
 0x167   : > { %v4858_v38 = vcombine.low %v786_v19, %v798_v29  ;;  %v4857_v39 = vcombine.low %v762_v21, %v774_v31 }
 0x168   : > { %v814_v41 = vpop.permute.xlu1 %813  ;;  %v802_v42 = vpop.permute.xlu0 %801 }
 0x169   : > { %v1224_v49 = vshll.u32 %v4858_v38, 16  ;;  %v1217_v50 = vshll.u32 %v4857_v39, 16  ;;  %3300 = vrot.lane.b32.xlu0 %v6205_v26, %s5704_s26  ;;  %3302 = vrot.lane.b32.xlu1 %v6224_v44, %s5704_s26  ;;  %v822_v17 = vrot.slane %v814_v41, %v6191_v8  ;;  %v810_v51 = vrot.slane %v802_v42, %v6191_v8 }
 0x16a   : > { %v1220_v55 = vshrl.u32 %v4857_v39, 16  ;;  %v1228_v3 = vshrl.u32 %v4858_v38, 16 }
 0x16b   : > { %v6235_v54 = vrot.slane %v1217_v50, 1  ;;  %v1226_v57 = vrot.slane %v1224_v49, 1  ;;  %v4859_v59 = vcombine.low %v810_v51, %v822_v17 }
 0x16c   : > { %v838_v60 = vpop.permute.xlu1 %837  ;;  %v826_v62 = vpop.permute.xlu0 %825 }
 0x16d   : > { %v1222_v0 = vor.u32 %v1220_v55, %v6235_v54  ;;  %v846_v1 = vrot.slane %v838_v60, %v6191_v8  ;;  %1578 = vrot.lane.b32.xlu1 %v6205_v26, %s5702_s20  ;;  %v1232_v4 = vshll.u32 %v4859_v59, 16  ;;  %v834_v5 = vrot.slane %v826_v62, %v6191_v8  ;;  %v6291_v62 = vld [vmem:[#allocation2 + $0x10] sm:$0x80] }
 0x16e   : > { %v1230_v10 = vor.u32 %v1228_v3, %v1226_v57  ;;  %v1236_v27 = vshrl.u32 %v4859_v59, 16  ;;  %v2495_v60 = vmul.bf16 %v2478_v52, %v6235_v54 }
 0x16f   : > { %v1227_v7 = vsel %vm1215_vm1, %v1222_v0, %v1226_v57  ;;  %v1234_v14 = vrot.slane %v1232_v4, 1  ;;  %v6249_v15 = vcombine.low %v834_v5, %v846_v1 }
 0x170   : > { %v862_v19 = vpop.permute.xlu1 %861  ;;  %v850_v21 = vpop.permute.xlu0 %849  ;;  %v6252_v23 = vmul.bf16 %v6195_v13, %v1227_v7 }
 0x171   : > { %v6257_v24 = vsel %vm1215_vm1, %v1230_v10, %v1234_v14  ;;  %v1240_v28 = vshll.u32 %v6249_v15, 16  ;;  %v1238_v31 = vor.u32 %v1236_v27, %v1234_v14  ;;  %v870_v4 = vrot.slane %v862_v19, %v6191_v8 }
 0x172   : > { %v6262_v29 = vmul.bf16 %v6257_v24, %v6193_v11  ;;  %v858_v5 = vrot.slane %v850_v21, %v6191_v8  ;;  %v6298_v14 = vmul.bf16 %v1227_v7, %v6193_v11  ;;  %v6307_v19 = vmul.bf16 %v1227_v7, %v6205_v26 }
 0x173   : > { %v6264_v32 = vrot.slane %v1240_v28, 1 }
 0x174   : > { %v6266_v33 = vpop.permute.xlu1 %885  ;;  %v6268_v34 = vpop.permute.xlu0 %873  ;;  %v6314_v52 = vcombine.low %v858_v5, %v870_v4  ;;  %v3076_v61 = vshrl.u32 %v6307_v19, 16 }
 0x175   : > { %v6272_v35 = vsel %vm1215_vm1, %v1238_v31, %v6264_v32 }
 0x176   : > { %v6276_v36 = vmul.bf16 %v6272_v35, %v6205_v26 }
 0x178   : > { %8295 = vst [vmem:[#allocation43_spill] sm:$0xff] %v6276_v36  ;;  %v6278_v37 = vpop.permute.xlu1 %909  ;;  %v6280_v38 = vpop.permute.xlu0 %897 }
 0x17c   : > { %v6282_v39 = vpop.permute.xlu1 %933  ;;  %v6284_v40 = vpop.permute.xlu0 %921 }
 0x180   : > { %v1671_v41 = vpop.permute.xlu1 %1670  ;;  %v1659_v42 = vpop.permute.xlu0 %1658 }
 0x181   : > { %v1679_v45 = vrot.slane %v1671_v41, %v6191_v8  ;;  %v1667_v47 = vrot.slane %v1659_v42, %v6191_v8 }
 0x183   : > { %v4873_v48 = vcombine.low %v1667_v47, %v1679_v45 }
 0x184   : > { %v1695_v49 = vpop.permute.xlu1 %1694  ;;  %v1683_v50 = vpop.permute.xlu0 %1682 }
 0x185   : > { %v1703_v17 = vrot.slane %v1695_v49, %v6191_v8  ;;  %v1691_v51 = vrot.slane %v1683_v50, %v6191_v8  ;;  %v2121_v53 = vshrl.u32 %v4873_v48, 16  ;;  %v2124_v20 = vshll.u32 %v4873_v48, 16 }
 0x186   : > { %v6304_v49 = vshrl.u32 %v2495_v60, 16 }
 0x187   : > { %v4874_v55 = vcombine.low %v1691_v51, %v1703_v17  ;;  %v2123_v56 = vrot.slane %v2121_v53, 7  ;;  %v6312_v51 = vmul.bf16 %v6257_v24, %v6205_v26 }
 0x188   : > { %v1719_v57 = vpop.permute.xlu1 %1718  ;;  %v1707_v59 = vpop.permute.xlu0 %1706  ;;  %v2515_v22 = vrot.slane %v6304_v49, 7 }
 0x189   : > { %v2128_v0 = vshrl.u32 %v4874_v55, 16  ;;  %v1727_v1 = vrot.slane %v1719_v57, %v6191_v8  ;;  %v1715_v3 = vrot.slane %v1707_v59, %v6191_v8  ;;  %v2126_v10 = vor.u32 %v2124_v20, %v2123_v56 }
 0x18a   : > { %v2131_v28 = vshll.u32 %v4874_v55, 16  ;;  %v2517_v55 = vshrl.u32 %v6298_v14, 16 }
 0x18b   : > { %v2130_v27 = vrot.slane %v2128_v0, 7  ;;  %v4875_v31 = vcombine.low %v1715_v3, %v1727_v1  ;;  %v2264_v47 = vmul.bf16 %v2126_v10, %v6195_v13  ;;  %v2823_v48 = vmul.bf16 %v2126_v10, %v6193_v11 }
 0x18c   : > { %v1743_v42 = vpop.permute.xlu1 %1742  ;;  %v1731_v45 = vpop.permute.xlu0 %1730  ;;  %v3382_v41 = vmul.bf16 %v2126_v10, %v6205_v26 }
 0x18d   : > { %v2133_v21 = vor.u32 %v2131_v28, %v2130_v27  ;;  %v2136_v50 = vshrl.u32 %v4875_v31, 16  ;;  %v1751_v17 = vrot.slane %v1743_v42, %v6191_v8  ;;  %v1739_v53 = vrot.slane %v1731_v45, %v6191_v8 }
 0x18e   : > { %v2284_v13 = vshll.u32 %v2264_v47, 16  ;;  %v2139_v57 = vshll.u32 %v4875_v31, 16  ;;  %v2843_v59 = vshll.u32 %v2823_v48, 16  ;;  %v2525_v31 = vshrl.u32 %v6312_v51, 16 }
 0x18f   : > { %v6318_v20 = vrot.slane %v2136_v50, 7  ;;  %v2134_v7 = vsel %vm1377_vm2, %v2123_v56, %v2133_v21  ;;  %v4876_v60 = vcombine.low %v1739_v53, %v1751_v17  ;;  %v1248_v56 = vshll.u32 %v6314_v52, 16 }
 0x190   : > { %v1767_v0 = vpop.permute.xlu1 %1766  ;;  %v1755_v1 = vpop.permute.xlu0 %1754  ;;  %v2265_v3 = vmul.bf16 %v2134_v7, %v6193_v11  ;;  %v2286_v28 = vrot.slane %v2284_v13, 1  ;;  %v6323_v4 = vmul.bf16 %v2134_v7, %v6205_v26  ;;  %v2282_v50 = vshrl.u32 %v2264_v47, 16 }
 0x191   : > { %v2141_v5 = vor.u32 %v2139_v57, %v6318_v20  ;;  %v1775_v42 = vrot.slane %v1767_v0, %v6191_v8  ;;  %v1763_v45 = vrot.slane %v1755_v1, %v6191_v8  ;;  %v2144_v21 = vshrl.u32 %v4876_v60, 16 }
 0x192   : > { %v2289_v17 = vshll.u32 %v2265_v3, 16  ;;  %v2848_v11 = vshll.u32 %v6323_v4, 16  ;;  %v2287_v1 = vor.u32 %v2286_v28, %v2282_v50  ;;  %v2845_v63 = vrot.slane %v2843_v59, 1 }
 0x193   : > { %v4877_v53 = vcombine.low %v1763_v45, %v1775_v42  ;;  %v6332_v13 = vsel %vm1377_vm2, %v2130_v27, %v2141_v5  ;;  %v2519_v47 = vrot.slane %v2517_v55, 7  ;;  %v6343_v42 = vrot.slane %v2525_v31, 7 }
 0x194   : > { %v6335_v57 = vpop.permute.xlu1 %1790  ;;  %v6337_v0 = vpop.permute.xlu0 %1778  ;;  %v2291_v9 = vrot.slane %v2289_v17, 1  ;;  %v6341_v16 = vmul.bf16 %v6332_v13, %v6205_v26  ;;  %v2528_v45 = vshll.u32 %v6312_v51, 16  ;;  %v6348_v27 = vmul.bf16 %v6257_v24, %v6224_v44 }
 0x195   : > { %v6350_v10 = vrot.slane %v2144_v21, 7  ;;  %v2841_v28 = vshrl.u32 %v2823_v48, 16  ;;  %v2850_v50 = vrot.slane %v2848_v11, 1  ;;  %v2152_v59 = vshrl.u32 %v4877_v53, 16 }
 0x196   : > { %v2292_v5 = vsel %vm1215_vm1, %v2287_v1, %v2291_v9  ;;  %v2293_v26 = vshrl.u32 %v2265_v3, 16  ;;  %v2297_v55 = vshll.u32 %v6341_v16, 16  ;;  %v6356_v31 = vmul.bf16 %v2134_v7, %v6224_v44 }
 0x197   : > { %2413 = vrot.lane.b32.xlu0 %v2292_v5, %s5705_s17  ;;  %v2846_v21 = vor.u32 %v2845_v63, %v2841_v28  ;;  %v3402_v17 = vshll.u32 %v3382_v41, 16  ;;  %v2520_v1 = vshll.u32 %v6298_v14, 16  ;;  %v6365_v48 = vmul.bf16 %v6332_v13, %v6224_v44 }
 0x198   : > { %v6358_v51 = vpop.permute.xlu1 %1814  ;;  %v6360_v24 = vpop.permute.xlu0 %1802  ;;  %v2147_v11 = vshll.u32 %v4876_v60, 16  ;;  %v2295_v5 = vor.u32 %v2293_v26, %v2291_v9  ;;  %v3400_v3 = vshrl.u32 %v3382_v41, 16  ;;  %v6369_v43 = vrot.slane %v2297_v55, 1 }
 0x199   : > { %v2851_v7 = vsel %vm1215_vm1, %v2846_v21, %v2850_v50  ;;  %v3404_v30 = vrot.slane %v3402_v17, 1  ;;  %v3407_v12 = vshll.u32 %v6356_v31, 16  ;;  %v6373_v28 = vrot.slane %v2152_v59, 7 }
 0x19a   : > { %v2149_v63 = vor.u32 %v2147_v11, %v6350_v10  ;;  %v2530_v14 = vor.u32 %v2528_v45, %v6343_v42  ;;  %v3084_v9 = vshrl.u32 %v6348_v27, 16  ;;  %v2300_v41 = vsel %vm1215_vm1, %v2295_v5, %v6369_v43 }
 0x19b   : > { %2972 = vrot.lane.b32.xlu0 %v2851_v7, %s5706_s25  ;;  %v3405_v55 = vor.u32 %v3404_v30, %v3400_v3  ;;  %v3409_v21 = vrot.slane %v3407_v12, 1  ;;  %v2856_v17 = vshll.u32 %v6365_v48, 16  ;;  %v1244_v59 = vshrl.u32 %v6249_v15, 16  ;;  %2415 = vrot.lane.b32.xlu1 %v2300_v41, %s5705_s17 }
 0x19c   : > { %v6380_v60 = vpop.permute.xlu1 %1838  ;;  %v6382_v26 = vpop.permute.xlu0 %1826  ;;  %v2155_v11 = vshll.u32 %v4877_v53, 16  ;;  %v2522_v7 = vor.u32 %v2520_v1, %v2519_v47  ;;  %v3078_v45 = vrot.slane %v3076_v61, 7  ;;  %v6387_v46 = vrot.slane %v1248_v56, 1 }
 0x19d   : > { %v3410_v5 = vsel %vm1215_vm1, %v3405_v55, %v3409_v21  ;;  %v8296_v12 = vmul.bf16 %v6291_v62, %v6235_v54  ;;  %v2531_v15 = vsel %vm1377_vm2, %v2519_v47, %v2530_v14  ;;  %v3079_v61 = vshll.u32 %v6307_v19, 16 }
 0x19e   : > { %v2157_v3 = vor.u32 %v2155_v11, %v6373_v28  ;;  %v6402_v56 = vmul.bf16 %v6332_v13, %v6389_v25  ;;  %v2852_v62 = vshrl.u32 %v6323_v4, 16  ;;  %v6409_v1 = vrot.slane %v2856_v17, 1  ;;  %v5314_v17 = vld [vmem:[#allocation13] sm:$0xff]  }
 0x19f   : > { %v3072_v30 = vshrl.u32 %v8296_v12, 16  ;;  %3531 = vrot.lane.b32.xlu0 %v3410_v5, %s5707_s30  ;;  %v6411_v41 = vrot.slane %v3084_v9, 7  ;;  %v6415_v55 = vsel %vm1377_vm2, %v6318_v20, %v2149_v63  ;;  %v1246_v19 = vor.u32 %v1244_v59, %v6264_v32  ;;  %2646 = vrot.lane.b32.xlu1 %v2531_v15, %s5708_s1 }
 0x1a0   : > { %v6404_v53 = vpop.permute.xlu1 %1862  ;;  %v6406_v49 = vpop.permute.xlu0 %1850  ;;  %v2523_v13 = vsel %vm1377_vm2, %v2515_v22, %v2522_v7  ;;  %v3081_v47 = vor.u32 %v3079_v61, %v3078_v45  ;;  %v2854_v14 = vor.u32 %v2852_v62, %v2850_v50  ;;  %v3087_v11 = vshll.u32 %v6348_v27, 16  ;;  %5101 = vmatprep.subr.bf16.mxu0 %v5314_v17  ;;  %v5315_v61 = vld [vmem:[#allocation13 + $0x8] sm:$0xff]  }
 0x1a1   : > { %v3415_v4 = vshll.u32 %v6402_v56, 16  ;;  %v2267_v9 = vmul.bf16 %v6415_v55, %v6224_v44  ;;  %v6426_v20 = vsel %vm1215_vm1, %v1246_v19, %v6387_v46  ;;  %v6431_v32 = vsel %vm1377_vm2, %v6350_v10, %v2157_v3  ;;  %5102 = vmatpush3.bf16.msra.mxu0 %v5314_v17 }
 0x1a2   : > { %v2498_v22 = vmul.bf16 %v6272_v35, %v6224_v44  ;;  %v2859_v27 = vsel %vm1215_vm1, %v2854_v14, %v6409_v1  ;;  %v3074_v59 = vrot.slane %v3072_v30, 7  ;;  %v3089_v7 = vor.u32 %v3087_v11, %v6411_v41  ;;  %5103 = vmatprep.subr.bf16.mxu0 %v5315_v61 }
 0x1a3   : > { %2644 = vrot.lane.b32.xlu0 %v2523_v13, %s5708_s1  ;;  %v6444_v5 = vmul.bf16 %v6431_v32, %v6389_v25  ;;  %2974 = vrot.lane.b32.xlu1 %v2859_v27, %s5706_s25  ;;  %v2305_v10 = vshll.u32 %v2267_v9, 16  ;;  %v3411_v3 = vshrl.u32 %v6356_v31, 16  ;;  %v6449_v15 = vrot.slane %v3415_v4, 1 }
 0x1a4   : > { %v6437_v50 = vpop.permute.xlu1 %957  ;;  %v6439_v63 = vpop.permute.xlu0 %945  ;;  %v3082_v12 = vsel %vm1377_vm2, %v3074_v59, %v3081_v47  ;;  %v2499_v30 = vmul.bf16 %v6426_v20, %v6389_v25  ;;  %v2533_v62 = vshrl.u32 %v2498_v22, 16  ;;  %v3090_v19 = vsel %vm1377_vm2, %v3078_v45, %v3089_v7 }
 0x1a5   : > { %v3413_v11 = vor.u32 %v3411_v3, %v3409_v21  ;;  %v2313_v47 = vshll.u32 %v6444_v5, 16  ;;  %v2301_v31 = vshrl.u32 %v6341_v16, 16  ;;  %v2307_v4 = vrot.slane %v2305_v10, 1  ;;  %5104 = vmatpush3.bf16.msra.mxu0 %v5315_v61 }
 0x1a6   : > { %v2535_v27 = vrot.slane %v2533_v62, 7  ;;  %v2541_v59 = vshrl.u32 %v2499_v30, 16  ;;  %v1799_v10 = vrot.slane %v6335_v57, %v6191_v8  ;;  %v1787_v61 = vrot.slane %v6337_v0, %v6191_v8 }
 0x1a7   : > { %3203 = vrot.lane.b32.xlu0 %v3082_v12, %s5709_s22  ;;  %3205 = vrot.lane.b32.xlu1 %v3090_v19, %s5709_s22  ;;  %v3418_v17 = vsel %vm1215_vm1, %v3413_v11, %v6449_v15  ;;  %v2303_v45 = vor.u32 %v2301_v31, %v6369_v43  ;;  %v2309_v12 = vshrl.u32 %v2267_v9, 16  ;;  %v6470_v3 = vrot.slane %v2313_v47, 1 }
 0x1a8   : > { %v6455_v13 = vpop.permute.xlu1 %1886  ;;  %v6457_v14 = vpop.permute.xlu0 %1874  ;;  %v2536_v19 = vshll.u32 %v2498_v22, 16  ;;  %v6472_v16 = vrot.slane %v2541_v59, 7  ;;  %v2544_v31 = vshll.u32 %v2499_v30, 16  ;;  %v2826_v9 = vmul.bf16 %v6415_v55, %v6389_v25  ;;  %v6483_v22 = vld [vmem:[#allocation2 + $0x30] sm:$0xff] }
 0x1a9   : > { %v2308_v43 = vsel %vm1215_vm1, %v2303_v45, %v2307_v4  ;;  %v2311_v62 = vor.u32 %v2309_v12, %v2307_v4  ;;  %v6495_v4 = vmul.bf16 %v6431_v32, %v6483_v22  ;;  %v4878_v30 = vcombine.low %v1787_v61, %v1799_v10 }
 0x1aa   : > { %v2538_v11 = vor.u32 %v2536_v19, %v2535_v27  ;;  %v1823_v59 = vrot.slane %v6358_v51, %v6191_v8  ;;  %v1811_v45 = vrot.slane %v6360_v24, %v6191_v8  ;;  %v2864_v19 = vshll.u32 %v2826_v9, 16 }
 0x1ab   : > { %3533 = vrot.lane.b32.xlu0 %v3418_v17, %s5707_s30  ;;  %1580 = vrot.lane.b32.xlu1 %v6224_v44, %s5702_s20  ;;  %v2316_v57 = vsel %vm1215_vm1, %v2311_v62, %v6470_v3  ;;  %v2546_v17 = vor.u32 %v2544_v31, %v6472_v16  ;;  %v2872_v10 = vshll.u32 %v6495_v4, 16  ;;  %v3057_v51 = vmul.bf16 %v6272_v35, %v6389_v25 }
 0x1ac   : > { %v6466_v7 = vpop.permute.xlu1 %981  ;;  %v6468_v21 = vpop.permute.xlu0 %969  ;;  %v2539_v12 = vsel %vm1377_vm2, %v6343_v42, %v2538_v11  ;;  %v2160_v24 = vshrl.u32 %v4878_v30, 16  ;;  %v4879_v61 = vcombine.low %v1811_v45, %v1823_v59  ;;  %v2860_v42 = vshrl.u32 %v6365_v48, 16 }
 0x1ad   : > { %v2866_v11 = vrot.slane %v2864_v19, 1  ;;  %v2868_v18 = vshrl.u32 %v2826_v9, 16  ;;  %v6524_v59 = vrot.slane %v2872_v10, 1  ;;  %v894_v48 = vrot.slane %v6266_v33, %v6191_v8 }
 0x1ae   : > { %v2862_v35 = vor.u32 %v2860_v42, %v6409_v1  ;;  %v882_v45 = vrot.slane %v6268_v34, %v6191_v8  ;;  %v2162_v19 = vrot.slane %v2160_v24, 7  ;;  %v918_v1 = vrot.slane %v6278_v37, %v6191_v8 }
 0x1af   : > { %2417 = vrot.lane.b32.xlu0 %v2308_v43, %s5705_s17  ;;  %2419 = vrot.lane.b32.xlu1 %v2316_v57, %s5705_s17  ;;  %v2547_v43 = vsel %vm1377_vm2, %v2535_v27, %v2546_v17  ;;  %v3092_v27 = vshrl.u32 %v3057_v51, 16  ;;  %v3058_v57 = vmul.bf16 %v6426_v20, %v6483_v22  ;;  %v2870_v2 = vor.u32 %v2868_v18, %v2866_v11 }
 0x1b0   : > { %v6488_v47 = vpop.permute.xlu1 %1910  ;;  %v6490_v0 = vpop.permute.xlu0 %1898  ;;  %v2867_v6 = vsel %vm1215_vm1, %v2862_v35, %v2866_v11  ;;  %v2163_v9 = vshll.u32 %v4878_v30, 16  ;;  %v906_v34 = vrot.slane %v6280_v38, %v6191_v8  ;;  %v3385_v18 = vmul.bf16 %v6415_v55, %v6483_v22  ;;  %v6551_v38 = vld [vmem:[#allocation2 + $0x38] sm:$0xff] }
 0x1b1   : > { %v3094_v58 = vrot.slane %v3092_v27, 7  ;;  %v3100_v33 = vshrl.u32 %v3058_v57, 16  ;;  %v2875_v10 = vsel %vm1215_vm1, %v2870_v2, %v6524_v59  ;;  %v2171_v2 = vshll.u32 %v4879_v61, 16 }
 0x1b2   : > { %v2165_v11 = vor.u32 %v2163_v9, %v2162_v19  ;;  %v3423_v55 = vshll.u32 %v3385_v18, 16  ;;  %v6556_v35 = vcombine.low %v906_v34, %v918_v1  ;;  %v6574_v34 = vld [vmem:[#allocation2 + $0x30] sm:$0xff] }
 0x1b3   : > { %2648 = vrot.lane.b32.xlu0 %v2539_v12, %s5708_s1  ;;  %2650 = vrot.lane.b32.xlu1 %v2547_v43, %s5708_s1  ;;  %v2168_v43 = vshrl.u32 %v4879_v61, 16  ;;  %v6554_v30 = vrot.slane %v3100_v33, 7 }
 0x1b4   : > { %v6506_v62 = vpop.permute.xlu1 %1005  ;;  %v6508_v31 = vpop.permute.xlu0 %993  ;;  %v3425_v33 = vrot.slane %v3423_v55, 1 }
 0x1b5   : > { %v6544_v27 = vrot.slane %v2168_v43, 7 }
 0x1b7   : > { %2745 = vrot.lane.b32.xlu0 %v6224_v44, %s5703_s29  ;;  %2747 = vrot.lane.b32.xlu1 %v6389_v25, %s5703_s29  ;;  %v2173_v61 = vor.u32 %v2171_v2, %v6544_v27 }
 0x1b8   : > { %v6519_v17 = vpop.permute.xlu1 %1934  ;;  %v6521_v12 = vpop.permute.xlu0 %1922 }
 0x1b9   : > { %8297 = vst [vmem:[#allocation44_spill] sm:$0xff] %v6521_v12  ;;  %v3095_v12 = vshll.u32 %v3057_v51, 16  ;;  %v4862_v51 = vcombine.low %v882_v45, %v894_v48  ;;  %v6562_v45 = vmul.bf16 %v6431_v32, %v6551_v38  ;;  %v1264_v32 = vshll.u32 %v6556_v35, 16 }
 0x1ba   : > { %v6588_v2 = vsel %vm1377_vm2, %v2162_v19, %v2173_v61  ;;  %v942_v61 = vrot.slane %v6282_v39, %v6191_v8 }
 0x1bb   : > { %2976 = vrot.lane.b32.xlu0 %v2867_v6, %s5706_s25  ;;  %v3097_v42 = vor.u32 %v3095_v12, %v3094_v58  ;;  %2978 = vrot.lane.b32.xlu1 %v2875_v10, %s5706_s25  ;;  %v3103_v12 = vshll.u32 %v3058_v57, 16  ;;  %v1256_v43 = vshll.u32 %v4862_v51, 16  ;;  %v3419_v57 = vshrl.u32 %v6402_v56, 16 }
 0x1bc   : > { %v6540_v24 = vpop.permute.xlu1 %1029  ;;  %v6547_v6 = vpop.permute.xlu0 %1017  ;;  %v3431_v56 = vshll.u32 %v6562_v45, 16 }
 0x1bd   : > { %v3098_v37 = vsel %vm1377_vm2, %v6411_v41, %v3097_v42  ;;  %v6566_v41 = vsel %vm1377_vm2, %v6373_v28, %v2165_v11  ;;  %v3105_v9 = vor.u32 %v3103_v12, %v6554_v30  ;;  %v3421_v42 = vor.u32 %v3419_v57, %v6449_v15  ;;  %v734_v12 = vld [vmem:[#allocation2] sm:$0x80]  ;;  %v6595_v57 = vld [vmem:[#allocation2 + $0x38] sm:$0xff] }
 0x1be   : > { %v1252_v11 = vshrl.u32 %v6314_v52, 16  ;;  %v1260_v15 = vshrl.u32 %v4862_v51, 16 }
 0x1bf   : > { %3207 = vrot.lane.b32.xlu0 %v3098_v37, %s5709_s22  ;;  %v3106_v1 = vsel %vm1377_vm2, %v3094_v58, %v3105_v9  ;;  %v2269_v58 = vmul.bf16 %v6566_v41, %v6574_v34  ;;  %v1258_v37 = vrot.slane %v1256_v43, 1  ;;  %v3426_v55 = vsel %vm1215_vm1, %v3421_v42, %v3425_v33 }
 0x1c0   : > { %v6558_v48 = vpop.permute.xlu1 %1958  ;;  %3209 = vrot.lane.b32.xlu1 %v3106_v1, %s5709_s22  ;;  %v6578_v28 = vpop.permute.xlu0 %1946  ;;  %v3427_v9 = vshrl.u32 %v3385_v18, 16  ;;  %v6591_v1 = vrot.slane %v3431_v56, 1  ;;  %v6605_v18 = vmul.bf16 %v6588_v2, %v6595_v57  ;;  %v930_v56 = vrot.slane %v6284_v40, %v6191_v8 }
 0x1c1   : > { %8298 = vst [vmem:[#allocation45_spill] sm:$0xff] %v6558_v48  ;;  %8299 = vst [vmem:[#allocation46_spill] sm:$0xff] %v6578_v28  ;;  %v6597_v28 = vrot.slane %v1264_v32, 1  ;;  %v2321_v43 = vshll.u32 %v2269_v58, 16  ;;  %v1546_v32 = vld [vmem:[#allocation2 + $0x28] sm:$0xff]  ;;  %v1262_v42 = vor.u32 %v1260_v15, %v1258_v37 }
 0x1c2   : > { %v3429_v19 = vor.u32 %v3427_v9, %v3425_v33  ;;  %v2329_v9 = vshll.u32 %v6605_v18, 16 }
 0x1c3   : > { %3304 = vrot.lane.b32.xlu0 %v6389_v25, %s5704_s26  ;;  %v6625_v39 = vsel %vm1215_vm1, %v1262_v42, %v6597_v28 }
 0x1c4   : > { %v6580_v10 = vpop.permute.xlu1 %1053  ;;  %3306 = vrot.lane.b32.xlu1 %v6483_v22, %s5704_s26  ;;  %v3434_v33 = vsel %vm1215_vm1, %v3429_v19, %v6591_v1 }
 0x1c5   : > { %8300 = vst [vmem:[#allocation47_spill] sm:$0xff] %v6580_v10  ;;  %v1254_v10 = vor.u32 %v1252_v11, %v6387_v46  ;;  %v1360_v46 = vmul.bf16 %v6235_v54, %v734_v12  ;;  %v6615_v11 = vpop.permute.xlu0 %1041  ;;  %v1391_v54 = vshrl.u32 %v6262_v29, 16  ;;  %v2323_v12 = vrot.slane %v2321_v43, 1 }
 0x1c6   : > { %8302 = vst [vmem:[#allocation49_spill] sm:$0xff] %v6615_v11  ;;  %v6637_v43 = vcombine.low %v930_v56, %v942_v61 }
 0x1c7   : > { %3535 = vrot.lane.b32.xlu0 %v3426_v55, %s5707_s30  ;;  %v6609_v51 = vsel %vm1215_vm1, %v1254_v10, %v1258_v37  ;;  %v2317_v55 = vshrl.u32 %v6444_v5, 16  ;;  %v1383_v10 = vshrl.u32 %v6252_v23, 16  ;;  %v6634_v15 = vshrl.u32 %v1360_v46, 16 }
 0x1c8   : > { %v6601_v52 = vpop.permute.xlu1 %1982  ;;  %1582 = vrot.lane.b32.xlu1 %v1546_v32, %s5702_s20  ;;  %v2500_v5 = vmul.bf16 %v6574_v34, %v6609_v51  ;;  %v2325_v32 = vshrl.u32 %v2269_v58, 16  ;;  %v1399_v46 = vshrl.u32 %v6276_v36, 16  ;;  %v1272_v61 = vshll.u32 %v6637_v43, 16 }
 0x1c9   : > { %8301 = vst [vmem:[#allocation48_spill] sm:$0xff] %v6601_v52  ;;  %v2319_v37 = vor.u32 %v2317_v55, %v6470_v3  ;;  %v6642_v52 = vrot.slane %v2329_v9, 1  ;;  %v2501_v55 = vmul.bf16 %v6595_v57, %v6625_v39  ;;  %v6650_v56 = vrot.slane %v1383_v10, 7  ;;  %v6652_v19 = vpop.permute.xlu0 %1970 }
 0x1ca   : > { %v2549_v3 = vshrl.u32 %v2500_v5, 16  ;;  %8304 = vst [vmem:[#allocation51_spill] sm:$0xff] %v6652_v19  ;;  %v1835_v9 = vrot.slane %v6382_v26, %v6191_v8  ;;  %v6668_v10 = vmul.bf16 %v6609_v51, %v6389_v25  ;;  %v2552_v19 = vshll.u32 %v2500_v5, 16 }
 0x1cb   : > { %3537 = vrot.lane.b32.xlu0 %v3434_v33, %s5707_s30  ;;  %v2324_v33 = vsel %vm1215_vm1, %v2319_v37, %v2323_v12  ;;  %v6660_v37 = vmul.bf16 %v6426_v20, %v6224_v44  ;;  %v2557_v20 = vshrl.u32 %v2501_v55, 16  ;;  %v1859_v26 = vrot.slane %v6406_v49, %v6191_v8 }
 0x1cc   : > { %v6628_v40 = vpop.permute.xlu1 %1077  ;;  %1584 = vrot.lane.b32.xlu1 %v6574_v34, %s5702_s20  ;;  %v2551_v42 = vrot.slane %v2549_v3, 7  ;;  %v966_v25 = vrot.slane %v6437_v50, %v6191_v8  ;;  %v6689_v11 = vrot.slane %v1399_v46, 7  ;;  %v1268_v49 = vshrl.u32 %v6556_v35, 16 }
 0x1cd   : > { %8303 = vst [vmem:[#allocation50_spill] sm:$0xff] %v6628_v40  ;;  %v6646_v40 = vrot.slane %v1391_v54, 7  ;;  %v1847_v54 = vrot.slane %v6380_v60, %v6191_v8  ;;  %v2828_v60 = vmul.bf16 %v6566_v41, %v6595_v57  ;;  %v6687_v3 = vrot.slane %v2557_v20, 7  ;;  %v6692_v36 = vpop.permute.xlu0 %1065 }
 0x1ce   : > { %v2554_v5 = vor.u32 %v2552_v19, %v2551_v42  ;;  %v1274_v48 = vrot.slane %v1272_v61, 1  ;;  %v1415_v19 = vshrl.u32 %v6668_v10, 16  ;;  %v1270_v46 = vor.u32 %v1268_v49, %v6597_v28 }
 0x1cf   : > { %2421 = vrot.lane.b32.xlu0 %v2324_v33, %s5705_s17  ;;  %v2327_v33 = vor.u32 %v2325_v32, %v2323_v12  ;;  %v954_v12 = vrot.slane %v6439_v63, %v6191_v8  ;;  %v6685_v32 = vcombine.low %v1835_v9, %v1847_v54  ;;  %v6701_v54 = vmul.bf16 %v6625_v39, %v6483_v22  ;;  %v6703_v9 = vld [vmem:[#allocation2 + $0x40] sm:$0xff] }
 0x1d0   : > { %v6656_v58 = vpop.permute.xlu1 %2006  ;;  %v2555_v50 = vsel %vm1377_vm2, %v6472_v16, %v2554_v5  ;;  %v6712_v16 = vmul.bf16 %v6588_v2, %v6703_v9  ;;  %v2876_v28 = vshrl.u32 %v6495_v4, 16  ;;  %v1883_v22 = vrot.slane %v6457_v14, %v6191_v8 }
 0x1d1   : > { %8305 = vst [vmem:[#allocation52_spill] sm:$0xff] %v6656_v58  ;;  %v1871_v58 = vrot.slane %v6404_v53, %v6191_v8  ;;  %v2332_v44 = vsel %vm1215_vm1, %v2327_v33, %v6642_v52  ;;  %v1407_v53 = vshrl.u32 %v6660_v37, 16  ;;  %v2560_v33 = vshll.u32 %v2501_v55, 16 }
 0x1d2   : > { %2423 = vrot.lane.b32.xlu1 %v2332_v44, %s5705_s17  ;;  %v2880_v55 = vshll.u32 %v2828_v60, 16  ;;  %v6708_v44 = vcombine.low %v954_v12, %v966_v25  ;;  %v2176_v5 = vshrl.u32 %v6685_v32, 16  ;;  %v1423_v25 = vshrl.u32 %v6701_v54, 16 }
 0x1d3   : > { %2652 = vrot.lane.b32.xlu0 %v2555_v50, %s5708_s1  ;;  %v2562_v35 = vor.u32 %v2560_v33, %v6687_v3  ;;  %v4881_v61 = vcombine.low %v1859_v26, %v1871_v58  ;;  %v6714_v20 = vrot.slane %v1407_v53, 7  ;;  %v6725_v26 = vrot.slane %v1415_v19, 7 }
 0x1d4   : > { %v6696_v63 = vpop.permute.xlu1 %1101  ;;  %v2882_v58 = vrot.slane %v2880_v55, 1  ;;  %v1276_v12 = vshrl.u32 %v6637_v43, 16  ;;  %v1280_v49 = vshll.u32 %v6708_v44, 16  ;;  %v2878_v4 = vor.u32 %v2876_v28, %v6524_v59 }
 0x1d5   : > { %8306 = vst [vmem:[#allocation53_spill] sm:$0xff] %v6696_v63  ;;  %v2563_v50 = vsel %vm1377_vm2, %v2551_v42, %v2562_v35  ;;  %v6721_v63 = vsel %vm1215_vm1, %v1270_v46, %v1274_v48  ;;  %v2888_v42 = vshll.u32 %v6712_v16, 16  ;;  %v2184_v53 = vshrl.u32 %v4881_v61, 16  ;;  %v6733_v35 = vpop.permute.xlu0 %1994 }
 0x1d6   : > { %2654 = vrot.lane.b32.xlu1 %v2563_v50, %s5708_s1  ;;  %8307 = vst [vmem:[#allocation54_spill] sm:$0xff] %v6733_v35  ;;  %v3059_v19 = vmul.bf16 %v6595_v57, %v6609_v51  ;;  %v6742_v43 = vmul.bf16 %v6721_v63, %v6551_v38  ;;  %v2178_v55 = vrot.slane %v2176_v5, 7  ;;  %v1895_v33 = vrot.slane %v6455_v13, %v6191_v8 }
 0x1d7   : > { %2749 = vrot.lane.b32.xlu0 %v6574_v34, %s5703_s29  ;;  %v2884_v34 = vshrl.u32 %v2828_v60, 16  ;;  %v6744_v50 = vrot.slane %v2888_v42, 1  ;;  %v2883_v59 = vsel %vm1215_vm1, %v2878_v4, %v2882_v58  ;;  %v2179_v28 = vshll.u32 %v6685_v32, 16 }
 0x1d8   : > { %v6735_v46 = vpop.permute.xlu1 %2030  ;;  %8309 = vst [vmem:[#allocation56_spill] sm:$0xff] %v6742_v43  ;;  %v3108_v51 = vshrl.u32 %v3059_v19, 16  ;;  %v990_v38 = vrot.slane %v6466_v7, %v6191_v8  ;;  %v978_v60 = vrot.slane %v6468_v21, %v6191_v8  ;;  %v6759_v5 = vrot.slane %v2184_v53, 7 }
 0x1d9   : > { %8308 = vst [vmem:[#allocation55_spill] sm:$0xff] %v6735_v46  ;;  %v2886_v13 = vor.u32 %v2884_v34, %v2882_v58  ;;  %v1282_v14 = vrot.slane %v1280_v49, 1  ;;  %v3060_v46 = vmul.bf16 %v6625_v39, %v6703_v9  ;;  %v1278_v4 = vor.u32 %v1276_v12, %v1274_v48  ;;  %v6772_v49 = vpop.permute.xlu0 %1089  ;;  %v6778_v12 = vld [vmem:[#allocation2 + $0x48] sm:$0xff] }
 0x1da   : > { %2751 = vrot.lane.b32.xlu1 %v6595_v57, %s5703_s29  ;;  %v3110_v42 = vrot.slane %v3108_v51, 7  ;;  %v3111_v35 = vshll.u32 %v3059_v19, 16  ;;  %v6767_v7 = vmul.bf16 %v6566_v41, %v6703_v9  ;;  %v1431_v21 = vshrl.u32 %v6742_v43, 16 }
 0x1db   : > { %2980 = vrot.lane.b32.xlu0 %v2883_v59, %s5706_s25  ;;  %v2891_v32 = vsel %vm1215_vm1, %v2886_v13, %v6744_v50  ;;  %v2181_v59 = vor.u32 %v2179_v28, %v2178_v55  ;;  %v2187_v58 = vshll.u32 %v4881_v61, 16  ;;  %v6770_v53 = vcombine.low %v1883_v22, %v1895_v33 }
 0x1dc   : > { %v6775_v39 = vpop.permute.xlu1 %1125  ;;  %v6780_v19 = vcombine.low %v978_v60, %v990_v38  ;;  %v3113_v41 = vor.u32 %v3111_v35, %v3110_v42  ;;  %v3116_v34 = vshrl.u32 %v3060_v46, 16  ;;  %v6782_v51 = vrot.slane %v1423_v25, 7 }
 0x1dd   : > { %8310 = vst [vmem:[#allocation57_spill] sm:$0xff] %v6775_v39  ;;  %v2189_v61 = vor.u32 %v2187_v58, %v6759_v5  ;;  %v6786_v22 = vsel %vm1215_vm1, %v1278_v4, %v1282_v14  ;;  %v6790_v33 = vmul.bf16 %v6588_v2, %v6778_v12  ;;  %v3119_v38 = vshll.u32 %v3060_v46, 16 }
 0x1de   : > { %2982 = vrot.lane.b32.xlu1 %v2891_v32, %s5706_s25  ;;  %v3114_v28 = vsel %vm1377_vm2, %v6554_v30, %v3113_v41  ;;  %v6794_v13 = vrot.slane %v3116_v34, 7  ;;  %v3439_v35 = vshll.u32 %v6767_v7, 16  ;;  %v6797_v60 = vrot.slane %v1431_v21, 7  ;;  %v6821_v34 = vpop.permute.xlu0 %2018 }
 0x1df   : > { %v6802_v4 = vsel %vm1377_vm2, %v6544_v27, %v2181_v59  ;;  %v2192_v32 = vshrl.u32 %v6770_v53, 16  ;;  %3211 = vrot.lane.b32.xlu0 %v3114_v28, %s5709_s22  ;;  %v1284_v30 = vshrl.u32 %v6708_v44, 16  ;;  %v6811_v46 = vmul.bf16 %v6786_v22, %v6703_v9  ;;  %8313 = vst [vmem:[#allocation60_spill] sm:$0xff] %v6821_v34 }
 0x1e0   : > { %8311 = vst [vmem:[#allocation58_spill] sm:$0xff] %v6797_v60  ;;  %v6806_v2 = vpop.permute.xlu1 %1576  ;;  %v1288_v21 = vshll.u32 %v6780_v19, 16  ;;  %v3121_v58 = vor.u32 %v3119_v38, %v6794_v13  ;;  %v6816_v41 = vsel %vm1377_vm2, %v2178_v55, %v2189_v61  ;;  %v2195_v27 = vshll.u32 %v6770_v53, 16 }
 0x1e1   : > { %8312 = vst [vmem:[#allocation59_spill] sm:$0xff] %v6811_v46  ;;  %v1919_v59 = vrot.slane %v6488_v47, %v6191_v8  ;;  %v3447_v44 = vshll.u32 %v6790_v33, 16  ;;  %v3435_v25 = vshrl.u32 %v6562_v45, 16  ;;  %v3441_v48 = vrot.slane %v3439_v35, 1 }
 0x1e2   : > { %v3122_v28 = vsel %vm1377_vm2, %v3110_v42, %v3121_v58  ;;  %v6828_v38 = vmul.bf16 %v6802_v4, %v6703_v9  ;;  %v6830_v55 = vrot.slane %v2192_v32, 7  ;;  %v1907_v53 = vrot.slane %v6490_v0, %v6191_v8  ;;  %v6865_v60 = vpop.permute.xlu0 %1113 }
 0x1e3   : > { %v1014_v47 = vrot.slane %v6506_v62, %v6191_v8  ;;  %v1002_v61 = vrot.slane %v6508_v31, %v6191_v8  ;;  %3213 = vrot.lane.b32.xlu1 %v3122_v28, %s5709_s22  ;;  %3308 = vrot.lane.b32.xlu0 %v6595_v57, %s5704_s26  ;;  %v1439_v45 = vshrl.u32 %v6811_v46, 16  ;;  %v6842_v42 = vrot.slane %v1288_v21, 1  ;;  %8314 = vst [vmem:[#allocation61_spill] sm:$0xff] %v6865_v60 }
 0x1e4   : > { %v3437_v35 = vor.u32 %v3435_v25, %v6591_v1  ;;  %v2502_v0 = vmul.bf16 %v6721_v63, %v6703_v9  ;;  %v3443_v32 = vshrl.u32 %v6767_v7, 16  ;;  %v6848_v62 = vrot.slane %v3447_v44, 1  ;;  %v6856_v28 = vpop.permute.xlu1 %2743 }
 0x1e5   : > { %v6852_v31 = vmul.bf16 %v6816_v41, %v6778_v12  ;;  %v2503_v58 = vmul.bf16 %v6786_v22, %v6778_v12  ;;  %v1286_v21 = vor.u32 %v1284_v30, %v1282_v14  ;;  %v2337_v1 = vshll.u32 %v6828_v38, 16 }
 0x1e6   : > { %v3442_v34 = vsel %vm1215_vm1, %v3437_v35, %v3441_v48  ;;  %v2565_v25 = vshrl.u32 %v2502_v0, 16  ;;  %v6861_v7 = vcombine.low %v1907_v53, %v1919_v59  ;;  %v6863_v44 = vcombine.low %v1002_v61, %v1014_v47 }
 0x1e7   : > { %3310 = vrot.lane.b32.xlu1 %v6703_v9, %s5704_s26  ;;  %3539 = vrot.lane.b32.xlu0 %v3442_v34, %s5707_s30  ;;  %v3445_v39 = vor.u32 %v3443_v32, %v3441_v48  ;;  %v6870_v14 = vrot.slane %v1439_v45, 7  ;;  %v2197_v30 = vor.u32 %v2195_v27, %v6830_v55  ;;  %v6875_v35 = vsel %vm1215_vm1, %v1286_v21, %v6842_v42  ;;  %v1575_v21 = vpop.permute.xlu0 %1574 }
 0x1e8   : > { %v1292_v59 = vshrl.u32 %v6780_v19, 16  ;;  %v2333_v47 = vshrl.u32 %v6605_v18, 16  ;;  %v2345_v61 = vshll.u32 %v6852_v31, 16  ;;  %v2573_v43 = vshrl.u32 %v2503_v58, 16 }
 0x1e9   : > { %8315 = vst [vmem:[#allocation62_spill] sm:$0xff] %v6870_v14  ;;  %v3450_v53 = vsel %vm1215_vm1, %v3445_v39, %v6848_v62  ;;  %v2339_v34 = vrot.slane %v2337_v1, 1  ;;  %v6882_v48 = vrot.slane %v2565_v25, 7  ;;  %v1381_v45 = vrot.slane %v6634_v15, 7  ;;  %v6897_v15 = vpop.permute.xlu1 %3302 }
 0x1ea   : > { %v8316_v27 = vshll.u32 %v6252_v23, 16  ;;  %v6890_v19 = vmul.bf16 %v6875_v35, %v6778_v12  ;;  %v2200_v39 = vshrl.u32 %v6861_v7, 16  ;;  %v1296_v18 = vshll.u32 %v6863_v44, 16 }
 0x1eb   : > { %1586 = vrot.lane.b32.xlu1 %v6595_v57, %s5702_s20  ;;  %3541 = vrot.lane.b32.xlu0 %v3450_v53, %s5707_s30  ;;  %v2335_v23 = vor.u32 %v2333_v47, %v6642_v52  ;;  %v2568_v1 = vshll.u32 %v2502_v0, 16  ;;  %v2341_v14 = vshrl.u32 %v6828_v38, 16  ;;  %v6905_v60 = vrot.slane %v2345_v61, 1  ;;  %v8318_v47 = vld [vmem:[#allocation44_spill] sm:$0xff] }
 0x1ec   : > { %v1388_v32 = vor.u32 %v8316_v27, %v6650_v56  ;;  %v8317_v27 = vshll.u32 %v6262_v29, 16  ;;  %v6907_v57 = vrot.slane %v2573_v43, 7  ;;  %v6911_v53 = vmul.bf16 %v6802_v4, %v6778_v12 }
 0x1ed   : > { %v2340_v52 = vsel %vm1215_vm1, %v2335_v23, %v2339_v34  ;;  %v2570_v0 = vor.u32 %v2568_v1, %v6882_v48  ;;  %v3061_v38 = vmul.bf16 %v6721_v63, %v6778_v12  ;;  %v1943_v43 = vrot.slane %v6519_v17, %v6191_v8 }
 0x1ee   : > { %v1389_v25 = vsel %vm1377_vm2, %v1381_v45, %v1388_v32  ;;  %v1396_v46 = vor.u32 %v8317_v27, %v6646_v40  ;;  %v1931_v61 = vrot.slane %v8318_v47, %v6191_v8  ;;  %v2343_v45 = vor.u32 %v2341_v14, %v2339_v34 }
 0x1ef   : > { %1526 = vst.msk [vmem:[#allocation3] sm:$0xff] %vm713_vm0, %v1389_v25  ;;  %1588 = vrot.lane.b32.xlu1 %v6703_v9, %s5702_s20  ;;  %2425 = vrot.lane.b32.xlu0 %v2340_v52, %s5705_s17  ;;  %v2576_v32 = vshll.u32 %v2503_v58, 16  ;;  %v1038_v63 = vrot.slane %v6540_v24, %v6191_v8  ;;  %v1026_v17 = vrot.slane %v6547_v6, %v6191_v8  ;;  %v8319_v9 = vld [vmem:[#allocation43_spill] sm:$0xff]  ;;  %v2896_v34 = vshll.u32 %v6911_v53, 16 }
 0x1f0   : > { %1623 = vst.msk [vmem:[#allocation3] sm:$0xff] %vm1622_vm3, %v1575_v21  ;;  %v1397_v29 = vsel %vm1377_vm2, %v6650_v56, %v1396_v46  ;;  %v6929_v21 = vld [vmem:[#allocation2 + $0x50] sm:$0xff]  ;;  %v1298_v56 = vrot.slane %v1296_v18, 1  ;;  %v8320_v46 = vshll.u32 %v8319_v9, 16  ;;  %v2348_v58 = vsel %vm1215_vm1, %v2343_v45, %v6905_v60  ;;  %v1579_v18 = vpop.permute.xlu1 %1578  ;;  %v8321_v9 = vld [vmem:[#allocation45_spill] sm:$0xff] }
 0x1f1   : > { %1527 = vst.msk [vmem:[#allocation3 + $0x8] sm:$0xff] %vm713_vm0, %v1397_v29  ;;  %v2578_v14 = vor.u32 %v2576_v32, %v6907_v57  ;;  %v6946_v24 = vmul.bf16 %v6816_v41, %v6929_v21  ;;  %v2571_v6 = vsel %vm1377_vm2, %v6687_v3, %v2570_v0  ;;  %v3062_v1 = vmul.bf16 %v6786_v22, %v6929_v21  ;;  %v6978_v32 = vpop.permute.xlu0 %2741 }
 0x1f2   : > { %1624 = vst.msk [vmem:[#allocation3 + $0x8] sm:$0xff] %vm1622_vm3, %v6806_v2  ;;  %v1404_v23 = vor.u32 %v8320_v46, %v6689_v11  ;;  %v3124_v2 = vshrl.u32 %v3061_v38, 16  ;;  %v6956_v27 = vsel %vm1377_vm2, %v6759_v5, %v2197_v30  ;;  %v1294_v52 = vor.u32 %v1292_v59, %v6842_v42  ;;  %v2715_v5 = vld [vmem:[#allocation2 + $0x40] sm:$0xff] }
 0x1f3   : > { %v1447_v29 = vshrl.u32 %v6890_v19, 16  ;;  %v4884_v47 = vcombine.low %v1931_v61, %v1943_v43  ;;  %2427 = vrot.lane.b32.xlu1 %v2348_v58, %s5705_s17  ;;  %2656 = vrot.lane.b32.xlu0 %v2571_v6, %s5708_s1  ;;  %v1450_v3 = vshll.u32 %v6890_v19, 16  ;;  %v6964_v22 = vrot.slane %v2200_v39, 7 }
 0x1f4   : > { %v1405_v25 = vsel %vm1377_vm2, %v6646_v40, %v1404_v23  ;;  %v2203_v40 = vshll.u32 %v6861_v7, 16  ;;  %v6967_v0 = vcombine.low %v1026_v17, %v1038_v63  ;;  %v6971_v42 = vsel %vm1215_vm1, %v1294_v52, %v1298_v56 }
 0x1f5   : > { %1528 = vst.msk [vmem:[#allocation3 + $0x10] sm:$0xff] %vm713_vm0, %v1405_v25  ;;  %v1300_v30 = vshrl.u32 %v6863_v44, 16  ;;  %v2892_v59 = vshrl.u32 %v6712_v16, 16  ;;  %v2904_v43 = vshll.u32 %v6946_v24, 16  ;;  %v2579_v39 = vsel %vm1377_vm2, %v6882_v48, %v2578_v14  ;;  %v8322_v44 = vld [vmem:[#allocation46_spill] sm:$0xff] }
 0x1f6   : > { %1625 = vst.msk [vmem:[#allocation3 + $0x10] sm:$0xff] %vm1622_vm3, %v1579_v18  ;;  %v2898_v61 = vrot.slane %v2896_v34, 1  ;;  %v3126_v45 = vrot.slane %v3124_v2, 7  ;;  %v3132_v7 = vshrl.u32 %v3062_v1, 16  ;;  %v6980_v63 = vrot.slane %v1447_v29, 7 }
 0x1f7   : > { %v2208_v17 = vshrl.u32 %v4884_v47, 16  ;;  %v1967_v46 = vrot.slane %v8321_v9, %v6191_v8  ;;  %v1955_v23 = vrot.slane %v8322_v44, %v6191_v8  ;;  %2658 = vrot.lane.b32.xlu1 %v2579_v39, %s5708_s1  ;;  %2753 = vrot.lane.b32.xlu0 %v2715_v5, %s5703_s29  ;;  %v2205_v16 = vor.u32 %v2203_v40, %v6964_v22  ;;  %v8325_v39 = vld [vmem:[#allocation49_spill] sm:$0xff]  ;;  %v7021_v9 = vpop.permute.xlu0 %3300 }
 0x1f8   : > { %v1304_v48 = vshll.u32 %v6967_v0, 16  ;;  %v2894_v58 = vor.u32 %v2892_v59, %v6744_v50  ;;  %v3127_v14 = vshll.u32 %v3061_v38, 16  ;;  %v1302_v34 = vor.u32 %v1300_v30, %v1298_v56  ;;  %v7007_v38 = vld [vmem:[#allocation2 + $0x58] sm:$0xff] }
 0x1f9   : > { %v6993_v18 = vmul.bf16 %v6971_v42, %v6929_v21  ;;  %v2900_v6 = vshrl.u32 %v6911_v53, 16  ;;  %v6996_v2 = vrot.slane %v2904_v43, 1  ;;  %v6999_v29 = vrot.slane %v3132_v7, 7 }
 0x1fa   : > { %v2899_v25 = vsel %vm1215_vm1, %v2894_v58, %v2898_v61  ;;  %v3129_v52 = vor.u32 %v3127_v14, %v3126_v45  ;;  %v7003_v40 = vmul.bf16 %v6802_v4, %v6929_v21  ;;  %v7005_v50 = vrot.slane %v2208_v17, 7  ;;  %v8324_v4 = vld [vmem:[#allocation47_spill] sm:$0xff] }
 0x1fb   : > { %v7009_v56 = vcombine.low %v1955_v23, %v1967_v46  ;;  %2755 = vrot.lane.b32.xlu1 %v6778_v12, %s5703_s29  ;;  %2984 = vrot.lane.b32.xlu0 %v2899_v25, %s5706_s25  ;;  %v2902_v53 = vor.u32 %v2900_v6, %v2898_v61  ;;  %v8323_v5 = vshll.u32 %v6660_v37, 16  ;;  %v1306_v59 = vrot.slane %v1304_v48, 1  ;;  %v5316_v46 = vld [vmem:[#allocation13 + $0x10] ss:$0 sps:$4 sm:$0x33]  }
 0x1fc   : > { %v1062_v43 = vrot.slane %v8324_v4, %v6191_v8  ;;  %v1050_v7 = vrot.slane %v8325_v39, %v6191_v8  ;;  %v3135_v17 = vshll.u32 %v3062_v1, 16  ;;  %v1455_v44 = vshrl.u32 %v6993_v18, 16  ;;  %5173 = vmatprep.subr.msk.bf16.mxu0 %vm3676_vm4, %v5316_v46 }
 0x1fd   : > { %v1412_v30 = vor.u32 %v8323_v5, %v6714_v20  ;;  %v2211_v23 = vshll.u32 %v4884_v47, 16  ;;  %v2907_v61 = vsel %vm1215_vm1, %v2902_v53, %v6996_v2  ;;  %v3130_v48 = vsel %vm1377_vm2, %v6794_v13, %v3129_v52 }
 0x1fe   : > { %v3137_v58 = vor.u32 %v3135_v17, %v6999_v29  ;;  %v3455_v14 = vshll.u32 %v7003_v40, 16  ;;  %v7034_v1 = vmul.bf16 %v6816_v41, %v7007_v38  ;;  %v7039_v47 = vsel %vm1377_vm2, %v6830_v55, %v2205_v16 }
 0x1ff   : > { %v1413_v37 = vsel %vm1377_vm2, %v6689_v11, %v1412_v30  ;;  %v2213_v6 = vor.u32 %v2211_v23, %v7005_v50  ;;  %v2216_v11 = vshrl.u32 %v7009_v56, 16  ;;  %2986 = vrot.lane.b32.xlu1 %v2907_v61, %s5706_s25  ;;  %3215 = vrot.lane.b32.xlu0 %v3130_v48, %s5709_s22  ;;  %v7046_v13 = vsel %vm1215_vm1, %v1302_v34, %v1306_v59 }
 0x200   : > { %1529 = vst.msk [vmem:[#allocation3 + $0x18] sm:$0xff] %vm713_vm0, %v1413_v37  ;;  %v7048_v41 = vcombine.low %v1050_v7, %v1062_v43  ;;  %v3678_v55 = vsel %vm3676_vm4, %v5316_v46, 0  ;;  %v7052_v16 = vrot.slane %v1455_v44, 7  ;;  %v3451_v52 = vshrl.u32 %v6790_v33, 16 }
 0x201   : > { %v7058_v53 = vmul.bf16 %v6956_v27, %v6929_v21  ;;  %5106 = vmatpush3.bf16.msra.mxu0 %v3678_v55  ;;  %v3138_v34 = vsel %vm1377_vm2, %v3126_v45, %v3137_v58  ;;  %v3457_v5 = vrot.slane %v3455_v14, 1  ;;  %v3463_v4 = vshll.u32 %v7034_v1, 16 }
 0x202   : > { %v2504_v43 = vmul.bf16 %v6875_v35, %v6929_v21  ;;  %v7066_v39 = vsel %vm1377_vm2, %v6964_v22, %v2213_v6  ;;  %v1308_v33 = vshrl.u32 %v6967_v0, 16  ;;  %v7071_v7 = vmul.bf16 %v7046_v13, %v7007_v38  ;;  %v8326_v22 = vld [vmem:[#allocation50_spill] sm:$0xff] }
 0x203   : > { %v7073_v17 = vrot.slane %v2216_v11, 7  ;;  %3217 = vrot.lane.b32.xlu1 %v3138_v34, %s5709_s22  ;;  %3312 = vrot.lane.b32.xlu0 %v6778_v12, %s5704_s26  ;;  %v1312_v45 = vshll.u32 %v7048_v41, 16  ;;  %v1086_v46 = vrot.slane %v8326_v22, %v6191_v8  ;;  %v1074_v0 = vrot.slane %v6692_v36, %v6191_v8  ;;  %v8327_v11 = vld [vmem:[#allocation48_spill] sm:$0xff]  ;;  %v8328_v34 = vld [vmem:[#allocation51_spill] sm:$0xff] }
 0x204   : > { %v3453_v44 = vor.u32 %v3451_v52, %v6848_v62  ;;  %v2219_v23 = vshll.u32 %v7009_v56, 16  ;;  %v3459_v61 = vshrl.u32 %v7003_v40, 16  ;;  %v2353_v37 = vshll.u32 %v7058_v53, 16 }
 0x205   : > { %v7090_v12 = vmul.bf16 %v7039_v47, %v7007_v38  ;;  %v7093_v58 = vrot.slane %v3463_v4, 1  ;;  %v2581_v6 = vshrl.u32 %v2504_v43, 16  ;;  %v7099_v36 = vmul.bf16 %v6971_v42, %v7007_v38 }
 0x206   : > { %v3458_v48 = vsel %vm1215_vm1, %v3453_v44, %v3457_v5  ;;  %v1310_v62 = vor.u32 %v1308_v33, %v1306_v59  ;;  %v1463_v40 = vshrl.u32 %v7071_v7, 16  ;;  %v7103_v56 = vor.u32 %v2219_v23, %v7073_v17  ;;  %v1550_v59 = vld [vmem:[#allocation2 + $0x48] sm:$0xff] }
 0x207   : > { %v1991_v55 = vrot.slane %v8327_v11, %v6191_v8  ;;  %3314 = vrot.lane.b32.xlu1 %v6929_v21, %s5704_s26  ;;  %3543 = vrot.lane.b32.xlu0 %v3458_v48, %s5707_s30  ;;  %v7110_v52 = vrot.slane %v1312_v45, 1  ;;  %v7114_v4 = vcombine.low %v1074_v0, %v1086_v46  ;;  %v3461_v33 = vor.u32 %v3459_v61, %v3457_v5  ;;  %v8330_v0 = vld [vmem:[#allocation53_spill] sm:$0xff] }
 0x208   : > { %v2349_v44 = vshrl.u32 %v6852_v31, 16  ;;  %v2355_v23 = vrot.slane %v2353_v37, 1  ;;  %v2361_v11 = vshll.u32 %v7090_v12, 16  ;;  %v8329_v48 = vshll.u32 %v6668_v10, 16 }
 0x209   : > { %v2414_v30 = vpop.permute.xlu0 %2413  ;;  %v3466_v25 = vsel %vm1215_vm1, %v3461_v33, %v7093_v58  ;;  %v7126_v46 = vrot.slane %v2581_v6, 7  ;;  %v2589_v5 = vshrl.u32 %v7099_v36, 16  ;;  %v1110_v31 = vrot.slane %v8330_v0, %v6191_v8 }
 0x20a   : > { %2462 = vst.msk [vmem:[#allocation3] sm:$0xff] %vm2461_vm5, %v2414_v30  ;;  %v1979_v30 = vrot.slane %v8328_v34, %v6191_v8  ;;  %v1420_v45 = vor.u32 %v8329_v48, %v6725_v26  ;;  %v2351_v10 = vor.u32 %v2349_v44, %v6905_v60  ;;  %v1098_v37 = vrot.slane %v6772_v49, %v6191_v8 }
 0x20b   : > { %1590 = vrot.lane.b32.xlu1 %v1550_v59, %s5702_s20  ;;  %3545 = vrot.lane.b32.xlu0 %v3466_v25, %s5707_s30  ;;  %v2357_v6 = vshrl.u32 %v7058_v53, 16  ;;  %v8331_v59 = vshll.u32 %v6701_v54, 16  ;;  %v7144_v60 = vrot.slane %v2361_v11, 1  ;;  %v7152_v53 = vrot.slane %v2589_v5, 7 }
 0x20c   : > { %v1421_v61 = vsel %vm1377_vm2, %v6714_v20, %v1420_v45  ;;  %v2356_v25 = vsel %vm1215_vm1, %v2351_v10, %v2355_v23  ;;  %v7149_v20 = vmul.bf16 %v6956_v27, %v7007_v38  ;;  %v7158_v54 = vmul.bf16 %v6875_v35, %v7007_v38  ;;  %v7174_v35 = vld [vmem:[#allocation2 + $0x60] sm:$0xff] }
 0x20d   : > { %v7095_v14 = vpop.permute.xlu0 %2972  ;;  %v2416_v22 = vpop.permute.xlu1 %2415  ;;  %1530 = vst.msk [vmem:[#allocation3 + $0x20] sm:$0xff] %vm713_vm0, %v1421_v61  ;;  %v1428_v48 = vor.u32 %v8331_v59, %v6782_v51  ;;  %v7164_v11 = vsel %vm1215_vm1, %v1310_v62, %v7110_v52  ;;  %v7166_v45 = vcombine.low %v1979_v30, %v1991_v55  ;;  %v1320_v5 = vshll.u32 %v7114_v4, 16 }
 0x20e   : > { %2463 = vst.msk [vmem:[#allocation3 + $0x8] sm:$0xff] %vm2461_vm5, %v2416_v22  ;;  %v2584_v22 = vshll.u32 %v2504_v43, 16  ;;  %v2592_v62 = vshll.u32 %v7099_v36, 16  ;;  %v2912_v30 = vshll.u32 %v7149_v20, 16  ;;  %v7189_v36 = vmul.bf16 %v7039_v47, %v7174_v35 }
 0x20f   : > { %v1429_v44 = vsel %vm1377_vm2, %v6725_v26, %v1428_v48  ;;  %1592 = vrot.lane.b32.xlu1 %v6929_v21, %s5702_s20  ;;  %2429 = vrot.lane.b32.xlu0 %v2356_v25, %s5705_s17  ;;  %v7176_v26 = vcombine.low %v1098_v37, %v1110_v31  ;;  %v3140_v31 = vshrl.u32 %v7158_v54, 16  ;;  %v7197_v10 = vmul.bf16 %v6971_v42, %v7174_v35  ;;  %v8332_v37 = vld [vmem:[#allocation57_spill] sm:$0xff]  ;;  %v2717_v48 = vld [vmem:[#allocation2 + $0x50] sm:$0xff] }
 0x210   : > { %v2586_v49 = vor.u32 %v2584_v22, %v7126_v46  ;;  %1531 = vst.msk [vmem:[#allocation3 + $0x28] sm:$0xff] %vm713_vm0, %v1429_v44  ;;  %v7202_v61 = vmul.bf16 %v7164_v11, %v7174_v35  ;;  %v7213_v42 = vrot.slane %v1463_v40, 7  ;;  %v7219_v22 = vsel %vm1377_vm2, %v7005_v50, %v7103_v56 }
 0x211   : > { %v7124_v34 = vpop.permute.xlu0 %3531  ;;  %v2647_v33 = vpop.permute.xlu1 %2646  ;;  %v1328_v59 = vshll.u32 %v7176_v26, 16  ;;  %v2908_v40 = vshrl.u32 %v6946_v24, 16  ;;  %v2920_v50 = vshll.u32 %v7189_v36, 16  ;;  %v1324_v24 = vshrl.u32 %v7114_v4, 16 }
 0x212   : > { %2694 = vst.msk [vmem:[#allocation3 + $0x8] sm:$0xff] %vm2692_vm6, %v2647_v33  ;;  %v2916_v4 = vshrl.u32 %v7149_v20, 16  ;;  %v8337_v20 = vld [vmem:[#allocation52_spill] sm:$0xff] }
 0x213   : > { %2791 = vst.msk [vmem:[#allocation3 + $0x8] sm:$0xff] %vm2789_vm7, %v6856_v28  ;;  %v2359_v28 = vor.u32 %v2357_v6, %v2355_v23  ;;  %v2594_v23 = vor.u32 %v2592_v62, %v7152_v53  ;;  %v1134_v6 = vrot.slane %v8332_v37, %v6191_v8  ;;  %v7256_v37 = vmul.bf16 %v6956_v27, %v7174_v35 }
 0x215   : > { %v2645_v43 = vpop.permute.xlu0 %2644  ;;  %v2975_v55 = vpop.permute.xlu1 %2974  ;;  %v2364_v21 = vsel %vm1215_vm1, %v2359_v28, %v7144_v60  ;;  %v2595_v56 = vsel %vm1377_vm2, %v7126_v46, %v2594_v23  ;;  %v7234_v28 = vrot.slane %v3140_v31, 7  ;;  %v2910_v46 = vor.u32 %v2908_v40, %v6996_v2 }
 0x216   : > { %2693 = vst.msk [vmem:[#allocation3] sm:$0xff] %vm2692_vm6, %v2645_v43  ;;  %2431 = vrot.lane.b32.xlu1 %v2364_v21, %s5705_s17  ;;  %v1322_v43 = vrot.slane %v1320_v5, 1  ;;  %v2224_v5 = vshrl.u32 %v7166_v45, 16  ;;  %v3143_v21 = vshll.u32 %v7158_v54, 16 }
 0x217   : > { %2790 = vst.msk [vmem:[#allocation3] sm:$0xff] %vm2789_vm7, %v6978_v32  ;;  %v2587_v32 = vsel %vm1377_vm2, %v6907_v57, %v2586_v49  ;;  %v8333_v57 = vld [vmem:[#allocation61_spill] sm:$0xff] }
 0x218   : > { %3022 = vst.msk [vmem:[#allocation3 + $0x8] sm:$0xff] %vm3020_vm8, %v2975_v55  ;;  %3021 = vst.msk [vmem:[#allocation3] sm:$0xff] %vm3020_vm8, %v7095_v14  ;;  %v1316_v14 = vshrl.u32 %v7048_v41, 16  ;;  %v1122_v33 = vrot.slane %v8333_v57, %v6191_v8  ;;  %2660 = vrot.lane.b32.xlu0 %v2587_v32, %s5708_s1  ;;  %v1466_v41 = vshll.u32 %v7071_v7, 16  ;;  %v8335_v32 = vld [vmem:[#allocation56_spill] sm:$0xff]  ;;  %v1326_v31 = vor.u32 %v1324_v24, %v1322_v43 }
 0x219   : > { %v3204_v0 = vpop.permute.xlu0 %3203  ;;  %v3206_v25 = vpop.permute.xlu1 %3205  ;;  %v8336_v23 = vshll.u32 %v8335_v32, 16  ;;  %v3145_v54 = vor.u32 %v3143_v21, %v7234_v28  ;;  %v7294_v21 = vld [vmem:[#allocation2 + $0x70] sm:$0xff]  ;;  %v1332_v32 = vshrl.u32 %v7176_v26, 16 }
 0x21a   : > { %3252 = vst.msk [vmem:[#allocation3] sm:$0xff] %vm3251_vm9, %v3204_v0  ;;  %v1318_v49 = vor.u32 %v1316_v14, %v7110_v52  ;;  %3253 = vst.msk [vmem:[#allocation3 + $0x8] sm:$0xff] %vm3251_vm9, %v3206_v25  ;;  %v3148_v52 = vshrl.u32 %v7197_v10, 16  ;;  %v7240_v62 = vcombine.low %v1122_v33, %v1134_v6  ;;  %2662 = vrot.lane.b32.xlu1 %v2595_v56, %s5708_s1  ;;  %v7251_v14 = vrot.slane %v2920_v50, 1  ;;  %v7258_v6 = vld [vmem:[#allocation2 + $0x68] sm:$0xff] }
 0x21b   : > { %3349 = vst.msk [vmem:[#allocation3] sm:$0xff] %vm3348_vm10, %v7021_v9  ;;  %3350 = vst.msk [vmem:[#allocation3 + $0x8] sm:$0xff] %vm3348_vm10, %v6897_v15  ;;  %v2914_v9 = vrot.slane %v2912_v30, 1  ;;  %v1330_v15 = vrot.slane %v1328_v59, 1  ;;  %v8334_v30 = vld [vmem:[#allocation58_spill] sm:$0xff]  ;;  %v2015_v59 = vrot.slane %v8337_v20, %v6191_v8 }
 0x21c   : > { %3580 = vst.msk [vmem:[#allocation3] sm:$0xff] %vm3579_vm11, %v7124_v34  ;;  %v1471_v34 = vshrl.u32 %v7202_v61, 16  ;;  %2757 = vrot.lane.b32.xlu0 %v2717_v48, %s5703_s29  ;;  %v1436_v0 = vor.u32 %v8336_v23, %v8334_v30  ;;  %v7262_v57 = vrot.slane %v3148_v52, 7  ;;  %v8338_v48 = vld [vmem:[#allocation54_spill] sm:$0xff]  ;;  %v1336_v40 = vshll.u32 %v7240_v62, 16 }
 0x21d   : > { %v3534_v44 = vpop.permute.xlu0 %3533  ;;  %v1581_v55 = vpop.permute.xlu1 %1580  ;;  %v2915_v2 = vsel %vm1215_vm1, %v2910_v46, %v2914_v9  ;;  %v2003_v25 = vrot.slane %v8338_v48, %v6191_v8  ;;  %v7276_v50 = vsel %vm1215_vm1, %v1318_v49, %v1322_v43  ;;  %v7279_v56 = vsel %vm1215_vm1, %v1326_v31, %v1330_v15  ;;  %v8339_v43 = vld [vmem:[#allocation62_spill] sm:$0xff]  ;;  %v517_v48 = vld [vmem:[%s6041_s18 + $0xf8] sm:$0xff] }
 0x21e   : > { %3581 = vst.msk [vmem:[#allocation3 + $0x8] sm:$0xff] %vm3579_vm11, %v3534_v44  ;;  %2759 = vrot.lane.b32.xlu1 %v7007_v38, %s5703_s29  ;;  %v1437_v27 = vsel %vm1377_vm2, %v6782_v51, %v1436_v0  ;;  %v2918_v44 = vor.u32 %v2916_v4, %v2914_v9  ;;  %v3151_v52 = vshll.u32 %v7197_v10, 16  ;;  %v1474_v38 = vshll.u32 %v7202_v61, 16  ;;  %v8340_v9 = vld [vmem:[#allocation59_spill] sm:$0xff] }
 0x21f   : > { %1626 = vst.msk [vmem:[#allocation3 + $0x18] sm:$0xff] %vm1622_vm3, %v1581_v55  ;;  %v3471_v51 = vshll.u32 %v7256_v37, 16  ;;  %v7289_v49 = vmul.bf16 %v7039_v47, %v7258_v6  ;;  %v8341_v55 = vshll.u32 %v8340_v9, 16  ;;  %v3146_v0 = vsel %vm1377_vm2, %v6999_v29, %v3145_v54  ;;  %v516_v54 = vld [vmem:[%s6041_s18 + $0xf0] sm:$0xff]  ;;  %s4554_s18 = sand.u32 1, %s5791_s19  }
 0x220   : > { %2988 = vrot.lane.b32.xlu0 %v2915_v2, %s5706_s25  ;;  %1532 = vst.msk [vmem:[#allocation3 + $0x30] sm:$0xff] %vm713_vm0, %v1437_v27  ;;  %v2923_v23 = vsel %vm1215_vm1, %v2918_v44, %v7251_v14  ;;  %v3153_v31 = vor.u32 %v3151_v52, %v7262_v57  ;;  %v7302_v2 = vld [vmem:[#allocation2 + $0x60] sm:$0xff]  ;;  %v7310_v20 = vmul.bf16 %v7279_v56, %v7294_v21  ;;  %v1338_v26 = vrot.slane %v1336_v40, 1 }
 0x221   : > { %v2418_v33 = vpop.permute.xlu0 %2417  ;;  %v2420_v24 = vpop.permute.xlu1 %2419  ;;  %v1444_v10 = vor.u32 %v8341_v55, %v8339_v43  ;;  %v7319_v27 = vrot.slane %v1471_v34, 7  ;;  %v7321_v44 = vcombine.low %v2003_v25, %v2015_v59  ;;  %v1334_v52 = vor.u32 %v1332_v32, %v1330_v15  ;;  %v5317_v55 = vld [vmem:[#allocation7] ss:$0 sm:$0xff] }
 0x222   : > { %2464 = vst.msk [vmem:[#allocation3 + $0x10] sm:$0xff] %vm2461_vm5, %v2418_v33  ;;  %2465 = vst.msk [vmem:[#allocation3 + $0x18] sm:$0xff] %vm2461_vm5, %v2420_v24  ;;  %v7306_v33 = vmul.bf16 %v7276_v50, %v7258_v6  ;;  %2990 = vrot.lane.b32.xlu1 %v2923_v23, %s5706_s25  ;;  %v1340_v24 = vshrl.u32 %v7240_v62, 16  ;;  %v3473_v9 = vrot.slane %v3471_v51, 1  ;;  %v3479_v34 = vshll.u32 %v7289_v49, 16 }
 0x223   : > { %v3596_v46 = vld [vmem:[#allocation3] sm:$0xff]  ;;  %v1445_v29 = vsel %vm1377_vm2, %v8334_v30, %v1444_v10  ;;  %v3467_v30 = vshrl.u32 %v7034_v1, 16  ;;  %v7333_v59 = vmul.bf16 %v7066_v39, %v7302_v2  ;;  %v3154_v62 = vsel %vm1377_vm2, %v7234_v28, %v3153_v31 }
 0x224   : > { %5107 = vmatprep.mubr.msk.bf16.mxu0 %vm3627_vm12, %v3596_v46  ;;  %3219 = vrot.lane.b32.xlu0 %v3146_v0, %s5709_s22  ;;  %v7324_v46 = vld [vmem:[#allocation2 + $0x58] sm:$0xff]  ;;  %1533 = vst.msk [vmem:[#allocation3 + $0x38] sm:$0xff] %vm713_vm0, %v1445_v29  ;;  %v7339_v25 = vmul.bf16 %v7302_v2, %v7046_v13  ;;  %v555_v10 = vmul.f32 %v5317_v55, %v516_v54  ;;  %v1479_v1 = vshrl.u32 %v7306_v33, 16  ;;  %v1487_v51 = vshrl.u32 %v7310_v20, 16 }
 0x225   : > { %v2649_v47 = vpop.permute.xlu0 %2648  ;;  %v3597_v4 = vld [vmem:[#allocation3 + $0x8] sm:$0xff]  ;;  %v2651_v40 = vpop.permute.xlu1 %2650  ;;  %v556_v32 = vmul.f32 %v5317_v55, %v517_v48  ;;  %v7344_v23 = vsel %vm1215_vm1, %v1334_v52, %v1338_v26  ;;  %v3469_v28 = vor.u32 %v3467_v30, %v7093_v58  ;;  %v7351_v0 = vor.u32 %v1340_v24, %v1338_v26  ;;  %v750_v48 = vld [vmem:[#allocation2 + $0x80] sm:$0xff]  ;;  %v7363_v26 = vld [vmem:[#allocation2 + $0x78] sm:$0xff] }
 0x226   : > { %2695 = vst.msk [vmem:[#allocation3 + $0x10] sm:$0xff] %vm2692_vm6, %v2649_v47  ;;  %5108 = vmatmul.mubr.msk.bf16.vlgmr.msra.gmra.mrb[0].mxu0 %vm3627_vm12, %v3597_v4  ;;  %2696 = vst.msk [vmem:[#allocation3 + $0x18] sm:$0xff] %vm2692_vm6, %v2651_v40  ;;  %3221 = vrot.lane.b32.xlu1 %v3154_v62, %s5709_s22  ;;  %v3475_v47 = vshrl.u32 %v7256_v37, 16  ;;  %v5318_v4 = vld [vmem:[#allocation9] ss:$0 sm:$0xff]  ;;  %v7356_v40 = vrot.slane %v3479_v34, 1  ;;  %v7361_v58 = vmul.bf16 %v7219_v22, %v7258_v6 }
 0x227   : > { %v594_v29 = vadd.f32 %v5318_v4, %v555_v10  ;;  %v595_v54 = vadd.f32 %v5318_v4, %v556_v32  ;;  %v3474_v52 = vsel %vm1215_vm1, %v3469_v28, %v3473_v9  ;;  %v2369_v62 = vshll.u32 %v7333_v59, 16 }
 0x228   : > { %3316 = vrot.lane.b32.xlu0 %v7324_v46, %s5704_s26  ;;  %v2597_v37 = vshrl.u32 %v7339_v25, 16  ;;  %v7368_v30 = vmul.bf16 %v7164_v11, %v7258_v6  ;;  %v7370_v10 = vrot.slane %v1479_v1, 7  ;;  %v1482_v34 = vshll.u32 %v7306_v33, 16 }
 0x229   : > { %v2746_v15 = vpop.permute.xlu0 %2745  ;;  %v2748_v31 = vpop.permute.xlu1 %2747  ;;  %v627_v55 = vmax.f32 %v595_v54, 0.0  ;;  %v1490_v32 = vshll.u32 %v7310_v20, 16  ;;  %v7376_v28 = vmul.bf16 %v7344_v23, %v7363_v26  ;;  %v3477_v1 = vor.u32 %v3475_v47, %v3473_v9 }
 0x22a   : > { %2792 = vst.msk [vmem:[#allocation3 + $0x10] sm:$0xff] %vm2789_vm7, %v2746_v15  ;;  %2793 = vst.msk [vmem:[#allocation3 + $0x18] sm:$0xff] %vm2789_vm7, %v2748_v31  ;;  %v626_v15 = vmax.f32 %v594_v29, 0.0  ;;  %3318 = vrot.lane.b32.xlu1 %v7174_v35, %s5704_s26  ;;  %v7383_v31 = vmul.bf16 %v7351_v0, %v750_v48  ;;  %v2365_v33 = vshrl.u32 %v7090_v12, 16  ;;  %v2371_v20 = vrot.slane %v2369_v62, 1 }
 0x22b   : > { %v2377_v54 = vshll.u32 %v7361_v58, 16  ;;  %v1452_v35 = vor.u32 %v1450_v3, %v6980_v63  ;;  %v3482_v12 = vsel %vm1215_vm1, %v3477_v1, %v7356_v40  ;;  %v7400_v47 = vrot.slane %v2597_v37, 7 }
 0x22c   : > { %3547 = vrot.lane.b32.xlu0 %v3474_v52, %s5707_s30  ;;  %v7386_v29 = vpack.c.bf16 %v627_v55, %v626_v15  ;;  %v8342_v52 = vshll.u32 %v6993_v18, 16  ;;  %v2605_v62 = vshrl.u32 %v7368_v30, 16  ;;  %v7403_v15 = vld [vmem:[#allocation2 + $0x68] sm:$0xff]  ;;  %v1495_v19 = vshrl.u32 %v7376_v28, 16 }
 0x22d   : > { %v2977_v24 = vpop.permute.xlu0 %2976  ;;  %v2979_v4 = vpop.permute.xlu1 %2978  ;;  %v2367_v3 = vor.u32 %v2365_v33, %v7144_v60  ;;  %v1453_v18 = vsel %vm1377_vm2, %v8339_v43, %v1452_v35  ;;  %v1503_v37 = vshrl.u32 %v7383_v31, 16  ;;  %v2373_v55 = vshrl.u32 %v7333_v59, 16 }
 0x22e   : > { %3023 = vst.msk [vmem:[#allocation3 + $0x10] sm:$0xff] %vm3020_vm8, %v2977_v24  ;;  %3024 = vst.msk [vmem:[#allocation3 + $0x18] sm:$0xff] %vm3020_vm8, %v2979_v4  ;;  %v1460_v48 = vor.u32 %v8342_v52, %v7052_v16  ;;  %v7396_v24 = vrot.slane %v1487_v51, 7  ;;  %1594 = vrot.lane.b32.xlu1 %v7324_v46, %s5702_s20  ;;  %v2600_v1 = vshll.u32 %v7339_v25, 16  ;;  %v1468_v60 = vor.u32 %v1466_v41, %v7213_v42 }
 0x22f   : > { %733 = vst.msk [vmem:[#allocation2 + $0x88] sm:$0xff] %vm713_vm0, %v7386_v29  ;;  %1534 = vst.msk [vmem:[#allocation3 + $0x40] sm:$0xff] %vm713_vm0, %v1453_v18  ;;  %v2372_v46 = vsel %vm1215_vm1, %v2367_v3, %v2371_v20  ;;  %v7426_v43 = vrot.slane %v2377_v54, 1  ;;  %v1476_v59 = vor.u32 %v1474_v38, %v7319_v27  ;;  %v2375_v25 = vor.u32 %v2373_v55, %v2371_v20 }
 0x230   : > { %3549 = vrot.lane.b32.xlu0 %v3482_v12, %s5707_s30  ;;  %v1461_v51 = vsel %vm1377_vm2, %v6980_v63, %v1460_v48  ;;  %v7430_v63 = vmul.bf16 %v7403_v15, %v7066_v39  ;;  %v2602_v4 = vor.u32 %v2600_v1, %v7400_v47  ;;  %v7436_v33 = vrot.slane %v2605_v62, 7 }
 0x231   : > { %v3208_v9 = vpop.permute.xlu0 %3207  ;;  %1535 = vst.msk [vmem:[#allocation3 + $0x48] sm:$0xff] %vm713_vm0, %v1461_v51  ;;  %v3065_v7 = vmul.bf16 %v7403_v15, %v7046_v13  ;;  %v7440_v41 = vrot.slane %v1495_v19, 7  ;;  %v1469_v61 = vsel %vm1377_vm2, %v7052_v16, %v1468_v60  ;;  %v1477_v38 = vsel %vm1377_vm2, %v7213_v42, %v1476_v59 }
 0x232   : > { %3254 = vst.msk [vmem:[#allocation3 + $0x10] sm:$0xff] %vm3251_vm9, %v3208_v9  ;;  %1596 = vrot.lane.b32.xlu1 %v7302_v2, %s5702_s20  ;;  %v3210_v54 = vpop.permute.xlu1 %3209  ;;  %v1484_v20 = vor.u32 %v1482_v34, %v7370_v10  ;;  %v1498_v13 = vshll.u32 %v7376_v28, 16  ;;  %v1505_v52 = vrot.slane %v1503_v37, 7  ;;  %v2608_v48 = vshll.u32 %v7368_v30, 16 }
 0x233   : > { %3255 = vst.msk [vmem:[#allocation3 + $0x18] sm:$0xff] %vm3251_vm9, %v3210_v54  ;;  %v1492_v12 = vor.u32 %v1490_v32, %v7396_v24  ;;  %v2380_v16 = vsel %vm1215_vm1, %v2375_v25, %v7426_v43  ;;  %v2928_v42 = vshll.u32 %v7430_v63, 16  ;;  %v7462_v34 = vmul.bf16 %v7219_v22, %v7294_v21 }
 0x234   : > { %2433 = vrot.lane.b32.xlu0 %v2372_v46, %s5705_s17  ;;  %1536 = vst.msk [vmem:[#allocation3 + $0x50] sm:$0xff] %vm713_vm0, %v1469_v61  ;;  %1537 = vst.msk [vmem:[#allocation3 + $0x58] sm:$0xff] %vm713_vm0, %v1477_v38  ;;  %v1485_v28 = vsel %vm1377_vm2, %v7319_v27, %v1484_v20  ;;  %v2603_v30 = vsel %vm1377_vm2, %v7152_v53, %v2602_v4  ;;  %v2610_v9 = vor.u32 %v2608_v48, %v7436_v33 }
 0x235   : > { %v3305_v35 = vpop.permute.xlu0 %3304  ;;  %v3156_v19 = vshrl.u32 %v3065_v7, 16  ;;  %v3066_v32 = vmul.bf16 %v7164_v11, %v7294_v21  ;;  %1538 = vst.msk [vmem:[#allocation3 + $0x60] sm:$0xff] %vm713_vm0, %v1485_v28  ;;  %v1493_v27 = vsel %vm1377_vm2, %v7370_v10, %v1492_v12  ;;  %v1500_v53 = vor.u32 %v1498_v13, %v7440_v41 }
 0x236   : > { %3351 = vst.msk [vmem:[#allocation3 + $0x10] sm:$0xff] %vm3348_vm10, %v3305_v35  ;;  %2435 = vrot.lane.b32.xlu1 %v2380_v16, %s5705_s17  ;;  %v3307_v3 = vpop.permute.xlu1 %3306  ;;  %v2226_v18 = vrot.slane %v2224_v5, 7  ;;  %v2227_v51 = vshll.u32 %v7166_v45, 16  ;;  %v1506_v11 = vshll.u32 %v7383_v31, 16  ;;  %v2232_v37 = vshrl.u32 %v7321_v44, 16 }
 0x237   : > { %3352 = vst.msk [vmem:[#allocation3 + $0x18] sm:$0xff] %vm3348_vm10, %v3307_v3  ;;  %v2924_v55 = vshrl.u32 %v7189_v36, 16  ;;  %v2930_v1 = vrot.slane %v2928_v42, 1  ;;  %v2936_v10 = vshll.u32 %v7462_v34, 16  ;;  %v2611_v60 = vsel %vm1377_vm2, %v7400_v47, %v2610_v9  ;;  %v7532_v9 = vld [vmem:[#allocation2 + $0x70] sm:$0xff] }
 0x238   : > { %2664 = vrot.lane.b32.xlu0 %v2603_v30, %s5708_s1  ;;  %1539 = vst.msk [vmem:[#allocation3 + $0x68] sm:$0xff] %vm713_vm0, %v1493_v27  ;;  %v3158_v5 = vrot.slane %v3156_v19, 7  ;;  %v3164_v59 = vshrl.u32 %v3066_v32, 16  ;;  %v1508_v45 = vor.u32 %v1506_v11, %v1505_v52  ;;  %v1501_v36 = vsel %vm1377_vm2, %v7396_v24, %v1500_v53 }
 0x239   : > { %v3536_v62 = vpop.permute.xlu0 %3535  ;;  %v2229_v25 = vor.u32 %v2227_v51, %v2226_v18  ;;  %v2926_v47 = vor.u32 %v2924_v55, %v7251_v14  ;;  %v3159_v4 = vshll.u32 %v3065_v7, 16  ;;  %1540 = vst.msk [vmem:[#allocation3 + $0x70] sm:$0xff] %vm713_vm0, %v1501_v36  ;;  %v7498_v35 = vrot.slane %v2232_v37, 7 }
 0x23a   : > { %3582 = vst.msk [vmem:[#allocation3 + $0x10] sm:$0xff] %vm3579_vm11, %v3536_v62  ;;  %2666 = vrot.lane.b32.xlu1 %v2611_v60, %s5708_s1  ;;  %v1583_v31 = vpop.permute.xlu1 %1582  ;;  %v2932_v54 = vshrl.u32 %v7430_v63, 16  ;;  %v7501_v61 = vrot.slane %v2936_v10, 1  ;;  %v7506_v20 = vrot.slane %v3164_v59, 7  ;;  %v1509_v14 = vsel %vm1377_vm2, %v7440_v41, %v1508_v45  ;;  %v8344_v45 = vld [vmem:[#allocation60_spill] sm:$0xff] }
 0x23b   : > { %1627 = vst.msk [vmem:[#allocation3 + $0x20] sm:$0xff] %vm1622_vm3, %v1583_v31  ;;  %v2931_v38 = vsel %vm1215_vm1, %v2926_v47, %v2930_v1  ;;  %v3161_v24 = vor.u32 %v3159_v4, %v3158_v5  ;;  %v2235_v7 = vshll.u32 %v7321_v44, 16  ;;  %v3167_v48 = vshll.u32 %v3066_v32, 16 }
 0x23c   : > { %2761 = vrot.lane.b32.xlu0 %v7302_v2, %s5703_s29  ;;  %v3393_v2 = vmul.bf16 %v7066_v39, %v7294_v21  ;;  %1541 = vst.msk [vmem:[#allocation3 + $0x78] sm:$0xff] %vm713_vm0, %v1509_v14  ;;  %v2934_v39 = vor.u32 %v2932_v54, %v2930_v1  ;;  %v7520_v41 = vsel %vm1377_vm2, %v7073_v17, %v2229_v25  ;;  %v3483_v62 = vshrl.u32 %v7289_v49, 16 }
 0x23d   : > { %v3538_v46 = vpop.permute.xlu0 %3537  ;;  %v2237_v44 = vor.u32 %v2235_v7, %v7498_v35  ;;  %v3162_v16 = vsel %vm1377_vm2, %v7262_v57, %v3161_v24  ;;  %v3169_v42 = vor.u32 %v3167_v48, %v7506_v20  ;;  %v7530_v30 = vmul.bf16 %v7219_v22, %v7363_v26  ;;  %v7576_v24 = vld [vmem:[#allocation2 + $0x78] sm:$0xff] }
 0x23e   : > { %3583 = vst.msk [vmem:[#allocation3 + $0x18] sm:$0xff] %vm3579_vm11, %v3538_v46  ;;  %2763 = vrot.lane.b32.xlu1 %v7258_v6, %s5703_s29  ;;  %v1585_v63 = vpop.permute.xlu1 %1584  ;;  %v3487_v6 = vshll.u32 %v3393_v2, 16  ;;  %v2939_v12 = vsel %vm1215_vm1, %v2934_v39, %v7501_v61  ;;  %v2277_v22 = vmul.bf16 %v7520_v41, %v7532_v9  ;;  %v2508_v53 = vmul.bf16 %v7532_v9, %v7276_v50 }
 0x23f   : > { %1628 = vst.msk [vmem:[#allocation3 + $0x28] sm:$0xff] %vm1622_vm3, %v1585_v63  ;;  %v7539_v57 = vsel %vm1377_vm2, %v2226_v18, %v2237_v44  ;;  %v3170_v19 = vsel %vm1377_vm2, %v3158_v5, %v3169_v42  ;;  %v3495_v27 = vshll.u32 %v7530_v30, 16  ;;  %v3485_v49 = vor.u32 %v3483_v62, %v7356_v40  ;;  %v8343_v5 = vld [vmem:[#allocation55_spill] sm:$0xff] }
 0x240   : > { %2992 = vrot.lane.b32.xlu0 %v2931_v38, %s5706_s25  ;;  %v3489_v3 = vrot.slane %v3487_v6, 1  ;;  %v3491_v51 = vshrl.u32 %v3393_v2, 16  ;;  %v2385_v11 = vshll.u32 %v2277_v22, 16  ;;  %v7555_v37 = vmul.bf16 %v7539_v57, %v7363_v26 }
 0x241   : > { %v2422_v13 = vpop.permute.xlu0 %2421  ;;  %v3598_v52 = vld [vmem:[#allocation3 + $0x10] sm:$0xff]  ;;  %v7559_v10 = vrot.slane %v3495_v27, 1  ;;  %v2613_v60 = vshrl.u32 %v2508_v53, 16  ;;  %v2509_v46 = vmul.bf16 %v7279_v56, %v7363_v26  ;;  %v2039_v59 = vrot.slane %v8343_v5, %v6191_v8 }
 0x242   : > { %2466 = vst.msk [vmem:[#allocation3 + $0x20] sm:$0xff] %vm2461_vm5, %v2422_v13  ;;  %5111 = vmatprep.mubr.msk.bf16.mxu0 %vm3627_vm12, %v3598_v52  ;;  %2994 = vrot.lane.b32.xlu1 %v2939_v12, %s5706_s25  ;;  %v3490_v55 = vsel %vm1215_vm1, %v3485_v49, %v3489_v3  ;;  %v3493_v40 = vor.u32 %v3491_v51, %v3489_v3  ;;  %v2381_v25 = vshrl.u32 %v7361_v58, 16  ;;  %v2393_v47 = vshll.u32 %v7555_v37, 16  ;;  %v7596_v12 = vld [vmem:[#allocation2 + $0x80] sm:$0xff] }
 0x243   : > { %v2027_v31 = vrot.slane %v8344_v45, %v6191_v8  ;;  %v2387_v54 = vrot.slane %v2385_v11, 1  ;;  %v2615_v2 = vrot.slane %v2613_v60, 7  ;;  %v2621_v38 = vshrl.u32 %v2509_v46, 16 }
 0x244   : > { %3223 = vrot.lane.b32.xlu0 %v3162_v16, %s5709_s22  ;;  %v2424_v17 = vpop.permute.xlu1 %2423  ;;  %v2383_v8 = vor.u32 %v2381_v25, %v7426_v43  ;;  %v2616_v58 = vshll.u32 %v2508_v53, 16  ;;  %v2389_v14 = vshrl.u32 %v2277_v22, 16  ;;  %v7583_v7 = vrot.slane %v2393_v47, 1  ;;  %v7636_v47 = vld [vmem:[#allocation2 + $0x88] sm:$0xff] }
 0x245   : > { %v3599_v28 = vld [vmem:[#allocation3 + $0x18] sm:$0xff]  ;;  %2467 = vst.msk [vmem:[#allocation3 + $0x28] sm:$0xff] %vm2461_vm5, %v2424_v17  ;;  %v2653_v32 = vpop.permute.xlu0 %2652  ;;  %v4888_v13 = vcombine.low %v2027_v31, %v2039_v59  ;;  %v2836_v63 = vmul.bf16 %v7576_v24, %v7520_v41  ;;  %v7589_v48 = vrot.slane %v2621_v38, 7  ;;  %v3067_v44 = vmul.bf16 %v7576_v24, %v7276_v50 }
 0x246   : > { %5112 = vmatmul.mubr.msk.bf16.gmra.mrb[4].mxu0 %vm3627_vm12, %v3599_v28  ;;  %3225 = vrot.lane.b32.xlu1 %v3170_v19, %s5709_s22  ;;  %2697 = vst.msk [vmem:[#allocation3 + $0x20] sm:$0xff] %vm2692_vm6, %v2653_v32  ;;  %v2388_v39 = vsel %vm1215_vm1, %v2383_v8, %v2387_v54  ;;  %v2391_v43 = vor.u32 %v2389_v14, %v2387_v54  ;;  %v2624_v6 = vshll.u32 %v2509_v46, 16  ;;  %v2940_v49 = vshrl.u32 %v7462_v34, 16 }
 0x247   : > { %v2240_v16 = vshrl.u32 %v4888_v13, 16  ;;  %v2944_v17 = vshll.u32 %v2836_v63, 16  ;;  %v7602_v62 = vmul.bf16 %v7596_v12, %v7539_v57  ;;  %v3172_v19 = vshrl.u32 %v3067_v44, 16 }
 0x248   : > { %3320 = vrot.lane.b32.xlu0 %v7403_v15, %s5704_s26  ;;  %v2655_v18 = vpop.permute.xlu1 %2654  ;;  %v2396_v42 = vsel %vm1215_vm1, %v2391_v43, %v7583_v7  ;;  %v2626_v22 = vor.u32 %v2624_v6, %v7589_v48  ;;  %v3068_v32 = vmul.bf16 %v7596_v12, %v7279_v56  ;;  %v3175_v34 = vshll.u32 %v3067_v44, 16 }
 0x249   : > { %2698 = vst.msk [vmem:[#allocation3 + $0x28] sm:$0xff] %vm2692_vm6, %v2655_v18  ;;  %v2750_v1 = vpop.permute.xlu0 %2749  ;;  %v7612_v3 = vrot.slane %v2240_v16, 7  ;;  %v2952_v18 = vshll.u32 %v7602_v62, 16  ;;  %v2946_v51 = vrot.slane %v2944_v17, 1  ;;  %v3174_v56 = vrot.slane %v3172_v19, 7 }
 0x24a   : > { %3322 = vrot.lane.b32.xlu1 %v7294_v21, %s5704_s26  ;;  %2794 = vst.msk [vmem:[#allocation3 + $0x20] sm:$0xff] %vm2789_vm7, %v2750_v1  ;;  %v3498_v21 = vsel %vm1215_vm1, %v3493_v40, %v7559_v10  ;;  %v3180_v11 = vshrl.u32 %v3068_v32, 16  ;;  %v2942_v1 = vor.u32 %v2940_v49, %v7501_v61  ;;  %v2948_v5 = vshrl.u32 %v2836_v63, 16 }
 0x24b   : > { %v7624_v59 = vrot.slane %v2952_v18, 1  ;;  %v3177_v31 = vor.u32 %v3175_v34, %v3174_v56  ;;  %v3395_v61 = vmul.bf16 %v7596_v12, %v7520_v41  ;;  %v3499_v44 = vshrl.u32 %v7530_v30, 16  ;;  %v8347_v18 = vld [vmem:[#allocation31_spill] sm:$0xff] }
 0x24c   : > { %3551 = vrot.lane.b32.xlu0 %v3490_v55, %s5707_s30  ;;  %v2752_v36 = vpop.permute.xlu1 %2751  ;;  %v2243_v55 = vshll.u32 %v4888_v13, 16  ;;  %v2947_v45 = vsel %vm1215_vm1, %v2942_v1, %v2946_v51  ;;  %v2950_v25 = vor.u32 %v2948_v5, %v2946_v51  ;;  %v8345_v13 = vld [vmem:[#allocation29_spill] sm:$0xff]  ;;  %v8348_v1 = vld [vmem:[#allocation32_spill] sm:$0xff] }
 0x24d   : > { %2795 = vst.msk [vmem:[#allocation3 + $0x28] sm:$0xff] %vm2789_vm7, %v2752_v36  ;;  %v2981_v4 = vpop.permute.xlu0 %2980  ;;  %v7629_v36 = vrot.slane %v3180_v11, 7  ;;  %v3501_v16 = vor.u32 %v3499_v44, %v7559_v10  ;;  %v2511_v10 = vmul.bf16 %v7636_v47, %v7351_v0 }
 0x24e   : > { %1598 = vrot.lane.b32.xlu1 %v7403_v15, %s5702_s20  ;;  %3025 = vst.msk [vmem:[#allocation3 + $0x20] sm:$0xff] %vm3020_vm8, %v2981_v4  ;;  %v2618_v15 = vor.u32 %v2616_v58, %v2615_v2  ;;  %v2245_v60 = vor.u32 %v2243_v55, %v7612_v3  ;;  %v3183_v4 = vshll.u32 %v3068_v32, 16  ;;  %v2955_v41 = vsel %vm1215_vm1, %v2950_v25, %v7624_v59 }
 0x24f   : > { %v3503_v58 = vshll.u32 %v3395_v61, 16  ;;  %v3507_v32 = vshrl.u32 %v3395_v61, 16 }
 0x250   : > { %3553 = vrot.lane.b32.xlu0 %v3498_v21, %s5707_s30  ;;  %v2983_v52 = vpop.permute.xlu1 %2982  ;;  %v2619_v50 = vsel %vm1377_vm2, %v7436_v33, %v2618_v15  ;;  %v2627_v33 = vsel %vm1377_vm2, %v2615_v2, %v2626_v22  ;;  %v7642_v54 = vsel %vm1377_vm2, %v7498_v35, %v2245_v60  ;;  %v3185_v8 = vor.u32 %v3183_v4, %v7629_v36  ;;  %v8346_v15 = vld [vmem:[#allocation30_spill] sm:$0xff] }
 0x251   : > { %3026 = vst.msk [vmem:[#allocation3 + $0x28] sm:$0xff] %vm3020_vm8, %v2983_v52  ;;  %v3212_v28 = vpop.permute.xlu0 %3211  ;;  %v7653_v35 = vmul.bf16 %v7636_v47, %v7539_v57  ;;  %v3505_v43 = vrot.slane %v3503_v58, 1  ;;  %v1655_v22 = vld [vmem:[#allocation2 + $0x88] sm:$0x1]  ;;  %v2637_v60 = vshrl.u32 %v2511_v10, 16 }
 0x252   : > { %1600 = vrot.lane.b32.xlu1 %v7532_v9, %s5702_s20  ;;  %3256 = vst.msk [vmem:[#allocation3 + $0x20] sm:$0xff] %vm3251_vm9, %v3212_v28  ;;  %v3186_v57 = vsel %vm1377_vm2, %v3174_v56, %v3185_v8  ;;  %v2280_v49 = vmul.bf16 %v7612_v3, %v1655_v22  ;;  %v2397_v56 = vshrl.u32 %v7555_v37, 16 }
 0x253   : > { %v3511_v6 = vshll.u32 %v7653_v35, 16  ;;  %v3506_v30 = vsel %vm1215_vm1, %v3501_v16, %v3505_v43 }
 0x254   : > { %2437 = vrot.lane.b32.xlu0 %v2388_v39, %s5705_s17  ;;  %v2510_v39 = vmul.bf16 %v7596_v12, %v7344_v23  ;;  %v2399_v37 = vor.u32 %v2397_v56, %v7583_v7  ;;  %v2409_v5 = vshll.u32 %v2280_v49, 16  ;;  %v3069_v7 = vmul.bf16 %v7636_v47, %v7344_v23 }
 0x255   : > { %v3214_v27 = vpop.permute.xlu1 %3213  ;;  %v3309_v53 = vpop.permute.xlu0 %3308 }
 0x256   : > { %2439 = vrot.lane.b32.xlu1 %v2396_v42, %s5705_s17  ;;  %3257 = vst.msk [vmem:[#allocation3 + $0x28] sm:$0xff] %vm3251_vm9, %v3214_v27  ;;  %v2629_v19 = vshrl.u32 %v2510_v39, 16  ;;  %v7679_v27 = vrot.slane %v3511_v6, 1  ;;  %v2411_v4 = vrot.slane %v2409_v5, 1  ;;  %v8354_v5 = vld [vmem:[#allocation38_spill] sm:$0xff] }
 0x257   : > { %3353 = vst.msk [vmem:[#allocation3 + $0x20] sm:$0xff] %vm3348_vm10, %v3309_v53  ;;  %v3509_v53 = vor.u32 %v3507_v32, %v3505_v43  ;;  %v8352_v32 = vld [vmem:[#allocation36_spill] sm:$0xff] }
 0x258   : > { %2668 = vrot.lane.b32.xlu0 %v2619_v50, %s5708_s1  ;;  %v2631_v55 = vrot.slane %v2629_v19, 7 }
 0x259   : > { %v3311_v46 = vpop.permute.xlu1 %3310  ;;  %v3540_v40 = vpop.permute.xlu0 %3539  ;;  %v3514_v34 = vsel %vm1215_vm1, %v3509_v53, %v7679_v27 }
 0x25a   : > { %2670 = vrot.lane.b32.xlu1 %v2627_v33, %s5708_s1  ;;  %3354 = vst.msk [vmem:[#allocation3 + $0x28] sm:$0xff] %vm3348_vm10, %v3311_v46  ;;  %v2632_v46 = vshll.u32 %v2510_v39, 16  ;;  %v3188_v39 = vshrl.u32 %v3069_v7, 16 }
 0x25b   : > { %3584 = vst.msk [vmem:[#allocation3 + $0x20] sm:$0xff] %vm3579_vm11, %v3540_v40 }
 0x25c   : > { %2765 = vrot.lane.b32.xlu0 %v7532_v9, %s5703_s29  ;;  %v4176_v9 = vld [vmem:[#allocation15] sm:$0x3]  ;;  %v3190_v6 = vrot.slane %v3188_v39, 7 }
 0x25d   : > { %v4226_v21 = vsel %vm3676_vm4, %v4176_v9, 0  ;;  %5174 = vmatprep.subr.msk.bf16.mxu1 %vm3676_vm4, %v4176_v9  ;;  %v1587_v2 = vpop.permute.xlu1 %1586  ;;  %v3542_v38 = vpop.permute.xlu0 %3541  ;;  %v2634_v9 = vor.u32 %v2632_v46, %v2631_v55 }
 0x25e   : > { %2767 = vrot.lane.b32.xlu1 %v7363_v26, %s5703_s29  ;;  %5140 = vmatpush3.bf16.msra.mxu1 %v4226_v21  ;;  %1629 = vst.msk [vmem:[#allocation3 + $0x30] sm:$0xff] %vm1622_vm3, %v1587_v2  ;;  %v3178_v26 = vsel %vm1377_vm2, %v7506_v20, %v3177_v31  ;;  %v2279_v20 = vmul.bf16 %v7596_v12, %v7642_v54  ;;  %v2639_v21 = vrot.slane %v2637_v60, 7  ;;  %v2640_v2 = vshll.u32 %v2511_v10, 16  ;;  %v8353_v60 = vld [vmem:[#allocation37_spill] sm:$0xff] }
 0x25f   : > { %3585 = vst.msk [vmem:[#allocation3 + $0x28] sm:$0xff] %vm3579_vm11, %v3542_v38  ;;  %v8349_v38 = vld [vmem:[#allocation33_spill] sm:$0xff]  ;;  %v2635_v58 = vsel %vm1377_vm2, %v7589_v48, %v2634_v9 }
 0x260   : > { %2996 = vrot.lane.b32.xlu0 %v2947_v45, %s5706_s25  ;;  %v2401_v50 = vshll.u32 %v2279_v20, 16  ;;  %v2405_v40 = vshrl.u32 %v2279_v20, 16 }
 0x261   : > { %5142 = vmatmul.mubr.msk.bf16.vlgmr.msra.gmra.mrb[0].mxu1 %vm713_vm0, %v8345_v13  ;;  %v1589_v52 = vpop.permute.xlu1 %1588  ;;  %v2426_v14 = vpop.permute.xlu0 %2425  ;;  %v2822_v13 = vld [vmem:[#allocation2 + $0x90] sm:$0x1] }
 0x262   : > { %2998 = vrot.lane.b32.xlu1 %v2955_v41, %s5706_s25  ;;  %v3600_v63 = vld [vmem:[#allocation3 + $0x20] sm:$0xff]  ;;  %5145 = vmatprep.mubr.msk.bf16.mxu1 %vm713_vm0, %v8346_v15  ;;  %1630 = vst.msk [vmem:[#allocation3 + $0x38] sm:$0xff] %vm1622_vm3, %v1589_v52  ;;  %v2403_v11 = vrot.slane %v2401_v50, 1  ;;  %v7710_v41 = vld [vmem:[#allocation2 + $0x90] sm:$0xff]  ;;  %v2839_v48 = vmul.bf16 %v2822_v13, %v7612_v3  ;;  %v3191_v50 = vshll.u32 %v3069_v7, 16 }
 0x263   : > { %2468 = vst.msk [vmem:[#allocation3 + $0x30] sm:$0xff] %vm2461_vm5, %v2426_v14  ;;  %5115 = vmatprep.mubr.msk.bf16.mxu0 %vm3627_vm12, %v3600_v63  ;;  %v3070_v23 = vmul.bf16 %v7710_v41, %v7351_v0  ;;  %v8350_v52 = vld [vmem:[#allocation34_spill] sm:$0xff]  ;;  %v2642_v63 = vor.u32 %v2640_v2, %v2639_v21 }
 0x264   : > { %3227 = vrot.lane.b32.xlu0 %v3178_v26, %s5709_s22  ;;  %v2404_v61 = vsel %vm1215_vm1, %v2399_v37, %v2403_v11  ;;  %v2407_v25 = vor.u32 %v2405_v40, %v2403_v11  ;;  %v3193_v10 = vor.u32 %v3191_v50, %v3190_v6 }
 0x265   : > { %v2428_v42 = vpop.permute.xlu1 %2427  ;;  %v2657_v28 = vpop.permute.xlu0 %2656  ;;  %v2643_v44 = vsel %vm1377_vm2, %v2631_v55, %v2642_v63  ;;  %v3196_v16 = vshrl.u32 %v3070_v23, 16 }
 0x266   : > { %3229 = vrot.lane.b32.xlu1 %v3186_v57, %s5709_s22  ;;  %v3601_v17 = vld [vmem:[#allocation3 + $0x28] sm:$0xff]  ;;  %2469 = vst.msk [vmem:[#allocation3 + $0x38] sm:$0xff] %vm2461_vm5, %v2428_v42  ;;  %v2412_v14 = vsel %vm1215_vm1, %v2407_v25, %v2411_v4  ;;  %v2956_v57 = vshrl.u32 %v7602_v62, 16  ;;  %v3194_v11 = vsel %vm1377_vm2, %v7629_v36, %v3193_v10 }
 0x267   : > { %2699 = vst.msk [vmem:[#allocation3 + $0x30] sm:$0xff] %vm2692_vm6, %v2657_v28  ;;  %5116 = vmatmul.mubr.msk.bf16.gmra.mrb[8].mxu0 %vm3627_vm12, %v3601_v17  ;;  %v2968_v17 = vshll.u32 %v2839_v48, 16  ;;  %v8351_v62 = vld [vmem:[#allocation35_spill] sm:$0xff]  ;;  %v3198_v53 = vrot.slane %v3196_v16, 7 }
 0x268   : > { %3324 = vrot.lane.b32.xlu0 %v7576_v24, %s5704_s26  ;;  %v2958_v42 = vor.u32 %v2956_v57, %v7624_v59 }
 0x269   : > { %5146 = vmatmul.mubr.msk.bf16.gmra.mrb[4].mxu1 %vm713_vm0, %v8347_v18  ;;  %v2659_v33 = vpop.permute.xlu1 %2658  ;;  %v2754_v51 = vpop.permute.xlu0 %2753  ;;  %v2970_v49 = vrot.slane %v2968_v17, 1  ;;  %v3199_v18 = vshll.u32 %v3070_v23, 16 }
 0x26a   : > { %3326 = vrot.lane.b32.xlu1 %v7596_v12, %s5704_s26  ;;  %5149 = vmatprep.mubr.msk.bf16.mxu1 %vm713_vm0, %v8348_v1  ;;  %2700 = vst.msk [vmem:[#allocation3 + $0x38] sm:$0xff] %vm2692_vm6, %v2659_v33 }
 0x26b   : > { %2796 = vst.msk [vmem:[#allocation3 + $0x30] sm:$0xff] %vm2789_vm7, %v2754_v51  ;;  %v3381_v51 = vld [vmem:[#allocation2 + $0x98] sm:$0x1]  ;;  %v3201_v55 = vor.u32 %v3199_v18, %v3198_v53 }
 0x26c   : > { %3555 = vrot.lane.b32.xlu0 %v3506_v30, %s5707_s30  ;;  %v3397_v30 = vmul.bf16 %v7710_v41, %v7642_v54 }
 0x26d   : > { %v2756_v45 = vpop.permute.xlu1 %2755  ;;  %v2985_v31 = vpop.permute.xlu0 %2984  ;;  %v3202_v36 = vsel %vm1377_vm2, %v3190_v6, %v3201_v55 }
 0x26e   : > { %1602 = vrot.lane.b32.xlu1 %v7576_v24, %s5702_s20  ;;  %2797 = vst.msk [vmem:[#allocation3 + $0x38] sm:$0xff] %vm2789_vm7, %v2756_v45  ;;  %v2838_v24 = vmul.bf16 %v7636_v47, %v7642_v54  ;;  %v3519_v1 = vshll.u32 %v3397_v30, 16  ;;  %v3515_v45 = vshrl.u32 %v7653_v35, 16 }
 0x26f   : > { %3027 = vst.msk [vmem:[#allocation3 + $0x30] sm:$0xff] %vm3020_vm8, %v2985_v31 }
 0x270   : > { %3557 = vrot.lane.b32.xlu0 %v3514_v34, %s5707_s30  ;;  %v2960_v20 = vshll.u32 %v2838_v24, 16  ;;  %v2964_v28 = vshrl.u32 %v2838_v24, 16  ;;  %v3398_v34 = vmul.bf16 %v3381_v51, %v7612_v3  ;;  %v3521_v3 = vrot.slane %v3519_v1, 1 }
 0x271   : > { %5150 = vmatmul.mubr.msk.bf16.gmra.mrb[8].mxu1 %vm713_vm0, %v8349_v38  ;;  %v2987_v26 = vpop.permute.xlu1 %2986  ;;  %v3216_v8 = vpop.permute.xlu0 %3215  ;;  %v3517_v31 = vor.u32 %v3515_v45, %v7679_v27  ;;  %v8355_v27 = vld [vmem:[#allocation39_spill] sm:$0xff]  ;;  %v8356_v38 = vld [vmem:[#allocation40_spill] sm:$0xff] }
 0x272   : > { %1604 = vrot.lane.b32.xlu1 %v7596_v12, %s5702_s20  ;;  %5153 = vmatprep.mubr.msk.bf16.mxu1 %vm713_vm0, %v8350_v52  ;;  %3028 = vst.msk [vmem:[#allocation3 + $0x38] sm:$0xff] %vm3020_vm8, %v2987_v26  ;;  %v2962_v43 = vrot.slane %v2960_v20, 1  ;;  %v3527_v9 = vshll.u32 %v3398_v34, 16  ;;  %v8358_v52 = vld [vmem:[#allocation42_spill] sm:$0xff] }
 0x273   : > { %3258 = vst.msk [vmem:[#allocation3 + $0x30] sm:$0xff] %vm3251_vm9, %v3216_v8  ;;  %v3522_v35 = vsel %vm1215_vm1, %v3517_v31, %v3521_v3 }
 0x274   : > { %2441 = vrot.lane.b32.xlu0 %v2404_v61, %s5705_s17  ;;  %v2966_v59 = vor.u32 %v2964_v28, %v2962_v43  ;;  %v3523_v61 = vshrl.u32 %v3397_v30, 16 }
 0x275   : > { %v3218_v15 = vpop.permute.xlu1 %3217  ;;  %v3313_v0 = vpop.permute.xlu0 %3312 }
 0x276   : > { %2443 = vrot.lane.b32.xlu1 %v2412_v14, %s5705_s17  ;;  %3259 = vst.msk [vmem:[#allocation3 + $0x38] sm:$0xff] %vm3251_vm9, %v3218_v15  ;;  %v2971_v56 = vsel %vm1215_vm1, %v2966_v59, %v2970_v49  ;;  %v3525_v7 = vor.u32 %v3523_v61, %v3521_v3  ;;  %s5521_s17 = sshll.u32 %s5710_s3, 4  ;;  %s5522_s17 = int_to_ptr.vmem [resolvable:$false] %s5521_s17 }
 0x277   : > { %3355 = vst.msk [vmem:[#allocation3 + $0x30] sm:$0xff] %vm3348_vm10, %v3313_v0 }
 0x278   : > { %2672 = vrot.lane.b32.xlu0 %v2635_v58, %s5708_s1  ;;  %v8357_v58 = vld [vmem:[#allocation41_spill] sm:$0xff] }
 0x279   : > { %5154 = vmatmul.mubr.msk.bf16.gmra.mrb[12].mxu1 %vm713_vm0, %v8351_v62  ;;  %v3315_v22 = vpop.permute.xlu1 %3314  ;;  %v3544_v19 = vpop.permute.xlu0 %3543 }
 0x27a   : > { %2674 = vrot.lane.b32.xlu1 %v2643_v44, %s5708_s1  ;;  %5157 = vmatprep.mubr.msk.bf16.mxu1 %vm713_vm0, %v8352_v32  ;;  %3356 = vst.msk [vmem:[#allocation3 + $0x38] sm:$0xff] %vm3348_vm10, %v3315_v22  ;;  %s8006_s1 = scalar_lea.sflag [#allocation18], %s4554_s18 }
 0x27b   : > { %3586 = vst.msk [vmem:[#allocation3 + $0x30] sm:$0xff] %vm3579_vm11, %v3544_v19 }
 0x27c   : > { %2769 = vrot.lane.b32.xlu0 %v7596_v12, %s5703_s29  ;;  %v2963_v12 = vsel %vm1215_vm1, %v2958_v42, %v2962_v43 }
 0x27d   : > { %v1591_v54 = vpop.permute.xlu1 %1590  ;;  %v3546_v33 = vpop.permute.xlu0 %3545 }
 0x27e   : > { %2771 = vrot.lane.b32.xlu1 %v7636_v47, %s5703_s29  ;;  %1631 = vst.msk [vmem:[#allocation3 + $0x40] sm:$0xff] %vm1622_vm3, %v1591_v54  ;;  %s8258_s29 = sshll.u32 %s5791_s19, 11 }
 0x27f   : > { %3587 = vst.msk [vmem:[#allocation3 + $0x38] sm:$0xff] %vm3579_vm11, %v3546_v33 }
 0x280   : > { %3000 = vrot.lane.b32.xlu0 %v2963_v12, %s5706_s25 }
 0x281   : > { %5158 = vmatmul.mubr.msk.bf16.gmra.mrb[16].mxu1 %vm713_vm0, %v8353_v60  ;;  %v1593_v37 = vpop.permute.xlu1 %1592  ;;  %v2430_v46 = vpop.permute.xlu0 %2429 }
 0x282   : > { %3002 = vrot.lane.b32.xlu1 %v2971_v56, %s5706_s25  ;;  %v3602_v40 = vld [vmem:[#allocation3 + $0x30] sm:$0xff]  ;;  %5161 = vmatprep.mubr.msk.bf16.mxu1 %vm713_vm0, %v8354_v5  ;;  %1632 = vst.msk [vmem:[#allocation3 + $0x48] sm:$0xff] %vm1622_vm3, %v1593_v37  ;;  %s5523_s25 = scalar_lea.vmem %s5522_s17, 4096 }
 0x283   : > { %2470 = vst.msk [vmem:[#allocation3 + $0x40] sm:$0xff] %vm2461_vm5, %v2430_v46  ;;  %5119 = vmatprep.mubr.msk.bf16.mxu0 %vm3627_vm12, %v3602_v40 }
 0x284   : > { %3231 = vrot.lane.b32.xlu0 %v3194_v11, %s5709_s22 }
 0x286   : > { %3233 = vrot.lane.b32.xlu1 %v3202_v36, %s5709_s22  ;;  %v3603_v24 = vld [vmem:[#allocation3 + $0x38] sm:$0xff] }
 0x287   : > { %5120 = vmatmul.mubr.msk.bf16.gmra.mrb[12].mxu0 %vm3627_vm12, %v3603_v24 }
 0x288   : > { %3328 = vrot.lane.b32.xlu0 %v7636_v47, %s5704_s26  ;;  %v2432_v25 = vpop.permute.xlu1 %2431  ;;  %v3529_v47 = vrot.slane %v3527_v9, 1 }
 0x289   : > { %2471 = vst.msk [vmem:[#allocation3 + $0x48] sm:$0xff] %vm2461_vm5, %v2432_v25  ;;  %5162 = vmatmul.mubr.msk.bf16.gmra.mrb[20].mxu1 %vm713_vm0, %v8355_v27 }
 0x28a   : > { %v2661_v21 = vpop.permute.xlu0 %2660  ;;  %3330 = vrot.lane.b32.xlu1 %v7710_v41, %s5704_s26  ;;  %5165 = vmatprep.mubr.msk.bf16.mxu1 %vm713_vm0, %v8356_v38  ;;  %v3530_v26 = vsel %vm1215_vm1, %v3525_v7, %v3529_v47  ;;  %s4592_s26 = sshll.u32 %s7892_s24, 4  ;;  %s8000_s26 = int_to_ptr.vmem [resolvable:$true] %s4592_s26 }
 0x28b   : > { %2701 = vst.msk [vmem:[#allocation3 + $0x40] sm:$0xff] %vm2692_vm6, %v2661_v21  ;;  %s5517_s22 = scalar_lea.vmem %s8000_s26, 2048  ;;  %p5524_p1 = scmp.lt.s32.totalorder %s8000_s26, %s5522_s17 }
 0x28c   : > { %3559 = vrot.lane.b32.xlu0 %v3522_v35, %s5707_s30  ;;  %v2663_v4 = vpop.permute.xlu1 %2662  ;;  %p5518_p6 = scmp.ne.s32.totalorder %s8000_s26, %s5517_s22  ;;  %p5525_p3 = scmp.lt.s32.totalorder %s5523_s25, %s5517_s22 }
 0x28d   : > { %2702 = vst.msk [vmem:[#allocation3 + $0x48] sm:$0xff] %vm2692_vm6, %v2663_v4 }
 0x28e   : > { %v2758_v2 = vpop.permute.xlu0 %2757  ;;  %3561 = vrot.lane.b32.xlu1 %v3530_v26, %s5707_s30  ;;  %s7998_s30 = scalar_lea.hbm %s8231_s8, %s8258_s29  ;;  %p5519_p4 = pnand %p5518_p6, %p8359_p9 }
 0x28f   : > { %2798 = vst.msk [vmem:[#allocation3 + $0x40] sm:$0xff] %vm2789_vm7, %v2758_v2  ;;  %p5526_p2 = por %p5525_p3, %p5524_p1 }
 0x290   : > { %v2760_v41 = vpop.permute.xlu1 %2759  ;;  %p5520_p13 = pneg %p5519_p4 }
 0x291   : > { %2799 = vst.msk [vmem:[#allocation3 + $0x48] sm:$0xff] %vm2789_vm7, %v2760_v41  ;;  %5166 = vmatmul.mubr.msk.bf16.gmra.mrb[24].mxu1 %vm713_vm0, %v8357_v58 }
 0x292   : > { %v2989_v8 = vpop.permute.xlu0 %2988  ;;  %5169 = vmatprep.mubr.msk.bf16.mxu1 %vm713_vm0, %v8358_v52  ;;  %p5527_p8 = pnand %p5526_p2, %p5520_p13 }
 0x293   : > { %3029 = vst.msk [vmem:[#allocation3 + $0x40] sm:$0xff] %vm3020_vm8, %v2989_v8 }
 0x294   : > { %v2991_v13 = vpop.permute.xlu1 %2990 }
 0x295   : > { %3030 = vst.msk [vmem:[#allocation3 + $0x48] sm:$0xff] %vm3020_vm8, %v2991_v13 }
 0x296   : > { %v3220_v23 = vpop.permute.xlu0 %3219 }
 0x297   : > { %3260 = vst.msk [vmem:[#allocation3 + $0x40] sm:$0xff] %vm3251_vm9, %v3220_v23 }
 0x298   : > { %v3222_v14 = vpop.permute.xlu1 %3221 }
 0x299   : > { %3261 = vst.msk [vmem:[#allocation3 + $0x48] sm:$0xff] %vm3251_vm9, %v3222_v14  ;;  %5170 = vmatmul.mubr.msk.bf16.gmra.mrb[28].mxu1 %vm713_vm0, %v7386_v29 }
 0x29a   : > { %v3317_v63 = vpop.permute.xlu0 %3316 }
 0x29b   : > { %3357 = vst.msk [vmem:[#allocation3 + $0x40] sm:$0xff] %vm3348_vm10, %v3317_v63 }
 0x29c   : > { %v3319_v20 = vpop.permute.xlu1 %3318 }
 0x29d   : > { %3358 = vst.msk [vmem:[#allocation3 + $0x48] sm:$0xff] %vm3348_vm10, %v3319_v20 }
 0x29e   : > { %v3548_v39 = vpop.permute.xlu0 %3547 }
 0x29f   : > { %3588 = vst.msk [vmem:[#allocation3 + $0x40] sm:$0xff] %vm3579_vm11, %v3548_v39 }
 0x2a0   : > { %v1595_v48 = vpop.permute.xlu1 %1594 }
 0x2a1   : > { %1633 = vst.msk [vmem:[#allocation3 + $0x50] sm:$0xff] %vm1622_vm3, %v1595_v48 }
 0x2a2   : > { %v3550_v15 = vpop.permute.xlu0 %3549 }
 0x2a3   : > { %3589 = vst.msk [vmem:[#allocation3 + $0x48] sm:$0xff] %vm3579_vm11, %v3550_v15 }
 0x2a4   : > { %v1597_v0 = vpop.permute.xlu1 %1596 }
 0x2a5   : > { %1634 = vst.msk [vmem:[#allocation3 + $0x58] sm:$0xff] %vm1622_vm3, %v1597_v0 }
 0x2a6   : > { %v2434_v57 = vpop.permute.xlu0 %2433  ;;  %v3604_v44 = vld [vmem:[#allocation3 + $0x40] sm:$0xff] }
 0x2a7   : > { %2472 = vst.msk [vmem:[#allocation3 + $0x50] sm:$0xff] %vm2461_vm5, %v2434_v57  ;;  %5123 = vmatprep.mubr.msk.bf16.mxu0 %vm3627_vm12, %v3604_v44 }
 0x2a8   : > { %v2436_v29 = vpop.permute.xlu1 %2435 }
 0x2a9   : > { %2473 = vst.msk [vmem:[#allocation3 + $0x58] sm:$0xff] %vm2461_vm5, %v2436_v29 }
 0x2aa   : > { %v2665_v43 = vpop.permute.xlu0 %2664  ;;  %v3605_v6 = vld [vmem:[#allocation3 + $0x48] sm:$0xff] }
 0x2ab   : > { %2703 = vst.msk [vmem:[#allocation3 + $0x50] sm:$0xff] %vm2692_vm6, %v2665_v43  ;;  %5124 = vmatmul.mubr.msk.bf16.gmra.mrb[16].mxu0 %vm3627_vm12, %v3605_v6 }
 0x2ac   : > { %v2667_v16 = vpop.permute.xlu1 %2666 }
 0x2ad   : > { %2704 = vst.msk [vmem:[#allocation3 + $0x58] sm:$0xff] %vm2692_vm6, %v2667_v16 }
 0x2ae   : > { %v2762_v42 = vpop.permute.xlu0 %2761 }
 0x2af   : > { %2800 = vst.msk [vmem:[#allocation3 + $0x50] sm:$0xff] %vm2789_vm7, %v2762_v42 }
 0x2b0   : > { %v2764_v28 = vpop.permute.xlu1 %2763 }
 0x2b1   : > { %2801 = vst.msk [vmem:[#allocation3 + $0x58] sm:$0xff] %vm2789_vm7, %v2764_v28 }
 0x2b2   : > { %v2993_v17 = vpop.permute.xlu0 %2992 }
 0x2b3   : > { %3031 = vst.msk [vmem:[#allocation3 + $0x50] sm:$0xff] %vm3020_vm8, %v2993_v17 }
 0x2b4   : > { %v2995_v50 = vpop.permute.xlu1 %2994 }
 0x2b5   : > { %3032 = vst.msk [vmem:[#allocation3 + $0x58] sm:$0xff] %vm3020_vm8, %v2995_v50 }
 0x2b6   : > { %v3224_v62 = vpop.permute.xlu0 %3223 }
 0x2b7   : > { %3262 = vst.msk [vmem:[#allocation3 + $0x50] sm:$0xff] %vm3251_vm9, %v3224_v62 }
 0x2b8   : > { %v3226_v22 = vpop.permute.xlu1 %3225 }
 0x2b9   : > { %3263 = vst.msk [vmem:[#allocation3 + $0x58] sm:$0xff] %vm3251_vm9, %v3226_v22 }
 0x2ba   : > { %v3321_v19 = vpop.permute.xlu0 %3320 }
 0x2bb   : > { %3359 = vst.msk [vmem:[#allocation3 + $0x50] sm:$0xff] %vm3348_vm10, %v3321_v19 }
 0x2bc   : > { %v3323_v30 = vpop.permute.xlu1 %3322 }
 0x2bd   : > { %3360 = vst.msk [vmem:[#allocation3 + $0x58] sm:$0xff] %vm3348_vm10, %v3323_v30 }
 0x2be   : > { %v3552_v32 = vpop.permute.xlu0 %3551 }
 0x2bf   : > { %3590 = vst.msk [vmem:[#allocation3 + $0x50] sm:$0xff] %vm3579_vm11, %v3552_v32 }
 0x2c0   : > { %v1599_v12 = vpop.permute.xlu1 %1598 }
 0x2c1   : > { %1635 = vst.msk [vmem:[#allocation3 + $0x60] sm:$0xff] %vm1622_vm3, %v1599_v12 }
 0x2c2   : > { %v3554_v59 = vpop.permute.xlu0 %3553 }
 0x2c3   : > { %3591 = vst.msk [vmem:[#allocation3 + $0x58] sm:$0xff] %vm3579_vm11, %v3554_v59 }
 0x2c4   : > { %v1601_v10 = vpop.permute.xlu1 %1600 }
 0x2c5   : > { %1636 = vst.msk [vmem:[#allocation3 + $0x68] sm:$0xff] %vm1622_vm3, %v1601_v10 }
 0x2c6   : > { %v2438_v53 = vpop.permute.xlu0 %2437  ;;  %v3606_v49 = vld [vmem:[#allocation3 + $0x50] sm:$0xff] }
 0x2c7   : > { %2474 = vst.msk [vmem:[#allocation3 + $0x60] sm:$0xff] %vm2461_vm5, %v2438_v53  ;;  %5127 = vmatprep.mubr.msk.bf16.mxu0 %vm3627_vm12, %v3606_v49 }
 0x2c8   : > { %v2440_v18 = vpop.permute.xlu1 %2439 }
 0x2c9   : > { %2475 = vst.msk [vmem:[#allocation3 + $0x68] sm:$0xff] %vm2461_vm5, %v2440_v18 }
 0x2ca   : > { %v2669_v54 = vpop.permute.xlu0 %2668  ;;  %v3607_v33 = vld [vmem:[#allocation3 + $0x58] sm:$0xff] }
 0x2cb   : > { %2705 = vst.msk [vmem:[#allocation3 + $0x60] sm:$0xff] %vm2692_vm6, %v2669_v54  ;;  %5128 = vmatmul.mubr.msk.bf16.gmra.mrb[20].mxu0 %vm3627_vm12, %v3607_v33 }
 0x2cc   : > { %v2671_v51 = vpop.permute.xlu1 %2670 }
 0x2cd   : > { %2706 = vst.msk [vmem:[#allocation3 + $0x68] sm:$0xff] %vm2692_vm6, %v2671_v51 }
 0x2ce   : > { %v2766_v56 = vpop.permute.xlu0 %2765 }
 0x2cf   : > { %2802 = vst.msk [vmem:[#allocation3 + $0x60] sm:$0xff] %vm2789_vm7, %v2766_v56 }
 0x2d0   : > { %v2768_v11 = vpop.permute.xlu1 %2767 }
 0x2d1   : > { %2803 = vst.msk [vmem:[#allocation3 + $0x68] sm:$0xff] %vm2789_vm7, %v2768_v11 }
 0x2d2   : > { %v2997_v55 = vpop.permute.xlu0 %2996 }
 0x2d3   : > { %3033 = vst.msk [vmem:[#allocation3 + $0x60] sm:$0xff] %vm3020_vm8, %v2997_v55 }
 0x2d4   : > { %v2999_v1 = vpop.permute.xlu1 %2998 }
 0x2d5   : > { %3034 = vst.msk [vmem:[#allocation3 + $0x68] sm:$0xff] %vm3020_vm8, %v2999_v1 }
 0x2d6   : > { %v3228_v34 = vpop.permute.xlu0 %3227 }
 0x2d7   : > { %3264 = vst.msk [vmem:[#allocation3 + $0x60] sm:$0xff] %vm3251_vm9, %v3228_v34 }
 0x2d8   : > { %v3230_v60 = vpop.permute.xlu1 %3229 }
 0x2d9   : > { %3265 = vst.msk [vmem:[#allocation3 + $0x68] sm:$0xff] %vm3251_vm9, %v3230_v60 }
 0x2da   : > { %v3325_v37 = vpop.permute.xlu0 %3324 }
 0x2db   : > { %3361 = vst.msk [vmem:[#allocation3 + $0x60] sm:$0xff] %vm3348_vm10, %v3325_v37 }
 0x2dc   : > { %v3327_v46 = vpop.permute.xlu1 %3326 }
 0x2dd   : > { %3362 = vst.msk [vmem:[#allocation3 + $0x68] sm:$0xff] %vm3348_vm10, %v3327_v46 }
 0x2de   : > { %v3556_v40 = vpop.permute.xlu0 %3555 }
 0x2df   : > { %3592 = vst.msk [vmem:[#allocation3 + $0x60] sm:$0xff] %vm3579_vm11, %v3556_v40 }
 0x2e0   : > { %v1603_v5 = vpop.permute.xlu1 %1602 }
 0x2e1   : > { %1637 = vst.msk [vmem:[#allocation3 + $0x70] sm:$0xff] %vm1622_vm3, %v1603_v5 }
 0x2e2   : > { %v3558_v36 = vpop.permute.xlu0 %3557 }
 0x2e3   : > { %3593 = vst.msk [vmem:[#allocation3 + $0x68] sm:$0xff] %vm3579_vm11, %v3558_v36 }
 0x2e4   : > { %v1605_v45 = vpop.permute.xlu1 %1604 }
 0x2e5   : > { %1638 = vst.msk [vmem:[#allocation3 + $0x78] sm:$0xff] %vm1622_vm3, %v1605_v45 }
 0x2e6   : > { %v2442_v3 = vpop.permute.xlu0 %2441  ;;  %v3608_v31 = vld [vmem:[#allocation3 + $0x60] sm:$0xff] }
 0x2e7   : > { %2476 = vst.msk [vmem:[#allocation3 + $0x70] sm:$0xff] %vm2461_vm5, %v2442_v3  ;;  %5131 = vmatprep.mubr.msk.bf16.mxu0 %vm3627_vm12, %v3608_v31 }
 0x2e8   : > { %v2444_v61 = vpop.permute.xlu1 %2443 }
 0x2e9   : > { %2477 = vst.msk [vmem:[#allocation3 + $0x78] sm:$0xff] %vm2461_vm5, %v2444_v61 }
 0x2ea   : > { %v2673_v9 = vpop.permute.xlu0 %2672  ;;  %v3609_v25 = vld [vmem:[#allocation3 + $0x68] sm:$0xff] }
 0x2eb   : > { %2707 = vst.msk [vmem:[#allocation3 + $0x70] sm:$0xff] %vm2692_vm6, %v2673_v9  ;;  %5132 = vmatmul.mubr.msk.bf16.gmra.mrb[24].mxu0 %vm3627_vm12, %v3609_v25 }
 0x2ec   : > { %v2675_v21 = vpop.permute.xlu1 %2674 }
 0x2ed   : > { %2708 = vst.msk [vmem:[#allocation3 + $0x78] sm:$0xff] %vm2692_vm6, %v2675_v21 }
 0x2ee   : > { %v2770_v24 = vpop.permute.xlu0 %2769 }
 0x2ef   : > { %2804 = vst.msk [vmem:[#allocation3 + $0x70] sm:$0xff] %vm2789_vm7, %v2770_v24 }
 0x2f0   : > { %v2772_v35 = vpop.permute.xlu1 %2771 }
 0x2f1   : > { %2805 = vst.msk [vmem:[#allocation3 + $0x78] sm:$0xff] %vm2789_vm7, %v2772_v35 }
 0x2f2   : > { %v3001_v7 = vpop.permute.xlu0 %3000 }
 0x2f3   : > { %3035 = vst.msk [vmem:[#allocation3 + $0x70] sm:$0xff] %vm3020_vm8, %v3001_v7 }
 0x2f4   : > { %v3003_v47 = vpop.permute.xlu1 %3002 }
 0x2f5   : > { %3036 = vst.msk [vmem:[#allocation3 + $0x78] sm:$0xff] %vm3020_vm8, %v3003_v47 }
 0x2f6   : > { %v3232_v27 = vpop.permute.xlu0 %3231 }
 0x2f7   : > { %3266 = vst.msk [vmem:[#allocation3 + $0x70] sm:$0xff] %vm3251_vm9, %v3232_v27 }
 0x2f8   : > { %v3234_v26 = vpop.permute.xlu1 %3233 }
 0x2f9   : > { %v5109_v4 = vpop.f32.mrb[0].mxu0  ;;  %3267 = vst.msk [vmem:[#allocation3 + $0x78] sm:$0xff] %vm3251_vm9, %v3234_v26 }
 0x2fa   : > { %v5001_v2 = vpack.c.bf16 %v5109_v4, %v5109_v4  ;;  %v3714_v38 = vpop.f32.mrb[1].mxu0  ;;  %v3329_v41 = vpop.permute.xlu0 %3328  ;;  %v4076_v23 = vmul.f32 %v5109_v4, %v5109_v4  ;;  %v4006_v44 = vsel %vm4002_vm14, %v5109_v4, 0.0 }
 0x2fb   : > { %v4999_v8 = vpack.c.bf16 %v3714_v38, %v3714_v38  ;;  %3363 = vst.msk [vmem:[#allocation3 + $0x70] sm:$0xff] %vm3348_vm10, %v3329_v41  ;;  %v4074_v58 = vmul.f32 %v3714_v38, %v3714_v38  ;;  %v5110_v13 = vpop.f32.mrb[2].mxu0  ;;  %v4003_v63 = vsel %vm4002_vm14, %v3714_v38, 0.0 }
 0x2fc   : > { %3972 = vst.msk [vmem:[%s7851_s10 + $0x8] sm:$0xf] %vm3969_vm13, %v5001_v2  ;;  %v5002_v52 = vpack.c.bf16 %v5110_v13, %v5110_v13  ;;  %v3717_v14 = vpop.f32.mrb[3].mxu0  ;;  %v3331_v15 = vpop.permute.xlu1 %3330  ;;  %v4077_v43 = vmul.f32 %v5110_v13, %v5110_v13  ;;  %v4109_v28 = vsel %vm4002_vm14, %v4076_v23, 0.0  ;;  %v4008_v17 = vsel %vm4002_vm14, %v5110_v13, 0.0 }
 0x2fd   : > { %3970 = vst.msk [vmem:[%s7851_s10] sm:$0xf] %vm3969_vm13, %v4999_v8  ;;  %v5000_v20 = vpack.c.bf16 %v3717_v14, %v3717_v14  ;;  %v4004_v39 = vsel %vm4002_vm14, %v3717_v14, 0.0  ;;  %v4075_v48 = vmul.f32 %v3717_v14, %v3717_v14  ;;  %v4106_v29 = vsel %vm4002_vm14, %v4074_v58, 0.0 }
 0x2fe   : > { %v3560_v0 = vpop.permute.xlu0 %3559  ;;  %3973 = vst.msk [vmem:[%s7851_s10 + $0xc] sm:$0xf] %vm3969_vm13, %v5002_v52  ;;  %v4005_v57 = vadd.f32 %v4004_v39, %v4003_v63  ;;  %v4111_v19 = vsel %vm4002_vm14, %v4077_v43, 0.0 }
 0x2ff   : > { %3364 = vst.msk [vmem:[#allocation3 + $0x78] sm:$0xff] %vm3348_vm10, %v3331_v15  ;;  %v4107_v6 = vsel %vm4002_vm14, %v4075_v48, 0.0 }
 0x300   : > { %3594 = vst.msk [vmem:[#allocation3 + $0x70] sm:$0xff] %vm3579_vm11, %v3560_v0  ;;  %v4007_v16 = vadd.f32 %v4006_v44, %v4005_v57  ;;  %v4108_v42 = vadd.f32 %v4107_v6, %v4106_v29  ;;  %v3562_v50 = vpop.permute.xlu1 %3561 }
 0x301   : > { %3971 = vst.msk [vmem:[%s7851_s10 + $0x4] sm:$0xf] %vm3969_vm13, %v5000_v20 }
 0x302   : > { %v4110_v62 = vadd.f32 %v4109_v28, %v4108_v42  ;;  %v4009_v22 = vadd.f32 %v4008_v17, %v4007_v16  ;;  %3595 = vst.msk [vmem:[#allocation3 + $0x78] sm:$0xff] %vm3579_vm11, %v3562_v50 }
 0x304   : > { %v4112_v30 = vadd.f32 %v4111_v19, %v4110_v62 }
 0x307   : > { %v3610_v32 = vld [vmem:[#allocation3 + $0x70] sm:$0xff] }
 0x308   : > { %5135 = vmatprep.mubr.msk.bf16.mxu0 %vm3627_vm12, %v3610_v32 }
 0x309   : > { %v3611_v12 = vld [vmem:[#allocation3 + $0x78] sm:$0xff] }
 0x30a   : > { %5136 = vmatmul.mubr.msk.bf16.gmra.mrb[28].mxu0 %vm3627_vm12, %v3611_v12 }
 0x319   : > { %v5113_v59 = vpop.f32.mrb[4].mxu0 }
 0x31a   : > { %v5005_v10 = vpack.c.bf16 %v5113_v59, %v5113_v59  ;;  %v3730_v53 = vpop.f32.mrb[5].mxu0  ;;  %v4080_v60 = vmul.f32 %v5113_v59, %v5113_v59  ;;  %v4014_v5 = vsel %vm4002_vm14, %v5113_v59, 0.0 }
 0x31b   : > { %v5003_v49 = vpack.c.bf16 %v3730_v53, %v3730_v53  ;;  %v4010_v18 = vsel %vm4002_vm14, %v3730_v53, 0.0  ;;  %v4078_v54 = vmul.f32 %v3730_v53, %v3730_v53  ;;  %v5114_v33 = vpop.f32.mrb[6].mxu0 }
 0x31c   : > { %3976 = vst.msk [vmem:[%s7851_s10 + $0x18] sm:$0xf] %vm3969_vm13, %v5005_v10  ;;  %v4011_v51 = vadd.f32 %v4010_v18, %v4009_v22  ;;  %v5006_v56 = vpack.c.bf16 %v5114_v33, %v5114_v33  ;;  %v3733_v11 = vpop.f32.mrb[7].mxu0  ;;  %v4081_v36 = vmul.f32 %v5114_v33, %v5114_v33  ;;  %v4016_v31 = vsel %vm4002_vm14, %v5114_v33, 0.0 }
 0x31d   : > { %3974 = vst.msk [vmem:[%s7851_s10 + $0x10] sm:$0xf] %vm3969_vm13, %v5003_v49  ;;  %v4113_v55 = vsel %vm4002_vm14, %v4078_v54, 0.0  ;;  %v5004_v1 = vpack.c.bf16 %v3733_v11, %v3733_v11  ;;  %v4012_v34 = vsel %vm4002_vm14, %v3733_v11, 0.0  ;;  %v4079_v40 = vmul.f32 %v3733_v11, %v3733_v11 }
 0x31e   : > { %v4114_v37 = vadd.f32 %v4113_v55, %v4112_v30  ;;  %3977 = vst.msk [vmem:[%s7851_s10 + $0x1c] sm:$0xf] %vm3969_vm13, %v5006_v56  ;;  %v4013_v46 = vadd.f32 %v4012_v34, %v4011_v51  ;;  %v4117_v9 = vsel %vm4002_vm14, %v4080_v60, 0.0  ;;  %v4119_v24 = vsel %vm4002_vm14, %v4081_v36, 0.0 }
 0x31f   : > { %3975 = vst.msk [vmem:[%s7851_s10 + $0x14] sm:$0xf] %vm3969_vm13, %v5004_v1  ;;  %v4115_v3 = vsel %vm4002_vm14, %v4079_v40, 0.0 }
 0x320   : > { %v4015_v45 = vadd.f32 %v4014_v5, %v4013_v46  ;;  %v4116_v61 = vadd.f32 %v4115_v3, %v4114_v37 }
 0x322   : > { %v4017_v25 = vadd.f32 %v4016_v31, %v4015_v45  ;;  %v4118_v21 = vadd.f32 %v4117_v9, %v4116_v61 }
 0x324   : > { %v4120_v35 = vadd.f32 %v4119_v24, %v4118_v21 }
 0x334   : > { %v5143_v7 = vpop.f32.mrb[0].mxu1 }
 0x335   : > { %v5033_v47 = vpack.c.bf16 %v5143_v7, %v5143_v7  ;;  %v4262_v27 = vpop.f32.mrb[1].mxu1 }
 0x336   : > { %v5031_v4 = vpack.c.bf16 %v4262_v27, %v4262_v27  ;;  %v5144_v2 = vpop.f32.mrb[2].mxu1 }
 0x337   : > { %4519 = vst.msk [vmem:[%s7892_s24 + $0x8] sm:$0xf] %vm3969_vm13, %v5033_v47  ;;  %v5034_v38 = vpack.c.bf16 %v5144_v2, %v5144_v2  ;;  %v4265_v26 = vpop.f32.mrb[3].mxu1 }
 0x338   : > { %4517 = vst.msk [vmem:[%s7892_s24] sm:$0xf] %vm3969_vm13, %v5031_v4  ;;  %v5032_v41 = vpack.c.bf16 %v4265_v26, %v4265_v26 }
 0x339   : > { %4520 = vst.msk [vmem:[%s7892_s24 + $0xc] sm:$0xf] %vm3969_vm13, %v5034_v38 }
 0x33a   : > { %v5117_v8 = vpop.f32.mrb[8].mxu0  ;;  %4518 = vst.msk [vmem:[%s7892_s24 + $0x4] sm:$0xf] %vm3969_vm13, %v5032_v41 }
 0x33b   : > { %v5009_v58 = vpack.c.bf16 %v5117_v8, %v5117_v8  ;;  %v3746_v13 = vpop.f32.mrb[9].mxu0  ;;  %v4084_v57 = vmul.f32 %v5117_v8, %v5117_v8  ;;  %v4022_v62 = vsel %vm4002_vm14, %v5117_v8, 0.0 }
 0x33c   : > { %v5007_v23 = vpack.c.bf16 %v3746_v13, %v3746_v13  ;;  %v4018_v52 = vsel %vm4002_vm14, %v3746_v13, 0.0  ;;  %v4082_v14 = vmul.f32 %v3746_v13, %v3746_v13  ;;  %v5118_v63 = vpop.f32.mrb[10].mxu0  ;;  %v5147_v20 = vpop.f32.mrb[4].mxu1 }
 0x33d   : > { %3980 = vst.msk [vmem:[%s7851_s10 + $0x28] sm:$0xf] %vm3969_vm13, %v5009_v58  ;;  %v4019_v39 = vadd.f32 %v4018_v52, %v4017_v25  ;;  %v5010_v48 = vpack.c.bf16 %v5118_v63, %v5118_v63  ;;  %v3749_v15 = vpop.f32.mrb[11].mxu0  ;;  %v4278_v0 = vpop.f32.mrb[5].mxu1  ;;  %v5037_v17 = vpack.c.bf16 %v5147_v20, %v5147_v20  ;;  %v4085_v32 = vmul.f32 %v5118_v63, %v5118_v63 }
 0x33e   : > { %3978 = vst.msk [vmem:[%s7851_s10 + $0x20] sm:$0xf] %vm3969_vm13, %v5007_v23  ;;  %v4121_v44 = vsel %vm4002_vm14, %v4082_v14, 0.0  ;;  %v5008_v29 = vpack.c.bf16 %v3749_v15, %v3749_v15  ;;  %v4020_v43 = vsel %vm4002_vm14, %v3749_v15, 0.0  ;;  %v5148_v6 = vpop.f32.mrb[6].mxu1  ;;  %v4083_v28 = vmul.f32 %v3749_v15, %v3749_v15 }
 0x33f   : > { %v4122_v16 = vadd.f32 %v4121_v44, %v4120_v35  ;;  %3981 = vst.msk [vmem:[%s7851_s10 + $0x2c] sm:$0xf] %vm3969_vm13, %v5010_v48  ;;  %v4021_v42 = vadd.f32 %v4020_v43, %v4019_v39  ;;  %v4281_v50 = vpop.f32.mrb[7].mxu1  ;;  %v5035_v22 = vpack.c.bf16 %v4278_v0, %v4278_v0  ;;  %v5038_v19 = vpack.c.bf16 %v5148_v6, %v5148_v6 }
 0x340   : > { %3979 = vst.msk [vmem:[%s7851_s10 + $0x24] sm:$0xf] %vm3969_vm13, %v5008_v29  ;;  %v5036_v30 = vpack.c.bf16 %v4281_v50, %v4281_v50  ;;  %v4123_v59 = vsel %vm4002_vm14, %v4083_v28, 0.0  ;;  %4523 = vst.msk [vmem:[%s7892_s24 + $0x18] sm:$0xf] %vm3969_vm13, %v5037_v17  ;;  %v4024_v10 = vsel %vm4002_vm14, %v5118_v63, 0.0 }
 0x341   : > { %v4023_v12 = vadd.f32 %v4022_v62, %v4021_v42  ;;  %v4124_v53 = vadd.f32 %v4123_v59, %v4122_v16  ;;  %4521 = vst.msk [vmem:[%s7892_s24 + $0x10] sm:$0xf] %vm3969_vm13, %v5035_v22  ;;  %4524 = vst.msk [vmem:[%s7892_s24 + $0x1c] sm:$0xf] %vm3969_vm13, %v5038_v19  ;;  %v4125_v49 = vsel %vm4002_vm14, %v4084_v57, 0.0  ;;  %v4127_v51 = vsel %vm4002_vm14, %v4085_v32, 0.0 }
 0x342   : > { %4522 = vst.msk [vmem:[%s7892_s24 + $0x14] sm:$0xf] %vm3969_vm13, %v5036_v30 }
 0x343   : > { %v4025_v18 = vadd.f32 %v4024_v10, %v4023_v12  ;;  %v4126_v54 = vadd.f32 %v4125_v49, %v4124_v53 }
 0x344   : > { %v5151_v33 = vpop.f32.mrb[8].mxu1 }
 0x345   : > { %v5041_v56 = vpack.c.bf16 %v5151_v33, %v5151_v33  ;;  %v4294_v11 = vpop.f32.mrb[9].mxu1  ;;  %v4128_v55 = vadd.f32 %v4127_v51, %v4126_v54 }
 0x346   : > { %v5039_v1 = vpack.c.bf16 %v4294_v11, %v4294_v11  ;;  %v5152_v34 = vpop.f32.mrb[10].mxu1 }
 0x347   : > { %4527 = vst.msk [vmem:[%s7892_s24 + $0x28] sm:$0xf] %vm3969_vm13, %v5041_v56  ;;  %v5042_v60 = vpack.c.bf16 %v5152_v34, %v5152_v34  ;;  %v4297_v37 = vpop.f32.mrb[11].mxu1 }
 0x348   : > { %4525 = vst.msk [vmem:[%s7892_s24 + $0x20] sm:$0xf] %vm3969_vm13, %v5039_v1  ;;  %v5040_v46 = vpack.c.bf16 %v4297_v37, %v4297_v37 }
 0x349   : > { %4528 = vst.msk [vmem:[%s7892_s24 + $0x2c] sm:$0xf] %vm3969_vm13, %v5042_v60 }
 0x34a   : > { %4526 = vst.msk [vmem:[%s7892_s24 + $0x24] sm:$0xf] %vm3969_vm13, %v5040_v46 }
 0x34c   : > { %v5155_v40 = vpop.f32.mrb[12].mxu1 }
 0x34d   : > { %v5045_v5 = vpack.c.bf16 %v5155_v40, %v5155_v40  ;;  %v4310_v36 = vpop.f32.mrb[13].mxu1 }
 0x34e   : > { %v5043_v45 = vpack.c.bf16 %v4310_v36, %v4310_v36  ;;  %v5156_v3 = vpop.f32.mrb[14].mxu1 }
 0x34f   : > { %4531 = vst.msk [vmem:[%s7892_s24 + $0x38] sm:$0xf] %vm3969_vm13, %v5045_v5  ;;  %v5046_v31 = vpack.c.bf16 %v5156_v3, %v5156_v3  ;;  %v4313_v61 = vpop.f32.mrb[15].mxu1 }
 0x350   : > { %4529 = vst.msk [vmem:[%s7892_s24 + $0x30] sm:$0xf] %vm3969_vm13, %v5043_v45  ;;  %v5044_v9 = vpack.c.bf16 %v4313_v61, %v4313_v61 }
 0x351   : > { %4532 = vst.msk [vmem:[%s7892_s24 + $0x3c] sm:$0xf] %vm3969_vm13, %v5046_v31 }
 0x352   : > { %4530 = vst.msk [vmem:[%s7892_s24 + $0x34] sm:$0xf] %vm3969_vm13, %v5044_v9 }
 0x354   : > { %v5159_v25 = vpop.f32.mrb[16].mxu1 }
 0x355   : > { %v5049_v21 = vpack.c.bf16 %v5159_v25, %v5159_v25  ;;  %v4326_v24 = vpop.f32.mrb[17].mxu1 }
 0x356   : > { %v5047_v35 = vpack.c.bf16 %v4326_v24, %v4326_v24  ;;  %v5160_v7 = vpop.f32.mrb[18].mxu1 }
 0x357   : > { %4535 = vst.msk [vmem:[%s7892_s24 + $0x48] sm:$0xf] %vm3969_vm13, %v5049_v21  ;;  %v5050_v47 = vpack.c.bf16 %v5160_v7, %v5160_v7  ;;  %v4329_v27 = vpop.f32.mrb[19].mxu1 }
 0x358   : > { %4533 = vst.msk [vmem:[%s7892_s24 + $0x40] sm:$0xf] %vm3969_vm13, %v5047_v35  ;;  %v5048_v4 = vpack.c.bf16 %v4329_v27, %v4329_v27 }
 0x359   : > { %4536 = vst.msk [vmem:[%s7892_s24 + $0x4c] sm:$0xf] %vm3969_vm13, %v5050_v47 }
 0x35a   : > { %v5121_v2 = vpop.f32.mrb[12].mxu0  ;;  %4534 = vst.msk [vmem:[%s7892_s24 + $0x44] sm:$0xf] %vm3969_vm13, %v5048_v4 }
 0x35b   : > { %v5013_v38 = vpack.c.bf16 %v5121_v2, %v5121_v2  ;;  %v3762_v26 = vpop.f32.mrb[13].mxu0  ;;  %v4088_v39 = vmul.f32 %v5121_v2, %v5121_v2  ;;  %v4030_v16 = vsel %vm4002_vm14, %v5121_v2, 0.0 }
 0x35c   : > { %v5011_v41 = vpack.c.bf16 %v3762_v26, %v3762_v26  ;;  %v4026_v8 = vsel %vm4002_vm14, %v3762_v26, 0.0  ;;  %v4086_v58 = vmul.f32 %v3762_v26, %v3762_v26  ;;  %v5122_v13 = vpop.f32.mrb[14].mxu0  ;;  %v5163_v23 = vpop.f32.mrb[20].mxu1 }
 0x35d   : > { %3984 = vst.msk [vmem:[%s7851_s10 + $0x38] sm:$0xf] %vm3969_vm13, %v5013_v38  ;;  %v4027_v52 = vadd.f32 %v4026_v8, %v4025_v18  ;;  %v5014_v14 = vpack.c.bf16 %v5122_v13, %v5122_v13  ;;  %v3765_v63 = vpop.f32.mrb[15].mxu0  ;;  %v4342_v20 = vpop.f32.mrb[21].mxu1  ;;  %v5053_v43 = vpack.c.bf16 %v5163_v23, %v5163_v23  ;;  %v4089_v50 = vmul.f32 %v5122_v13, %v5122_v13 }
 0x35e   : > { %3982 = vst.msk [vmem:[%s7851_s10 + $0x30] sm:$0xf] %vm3969_vm13, %v5011_v41  ;;  %v4129_v48 = vsel %vm4002_vm14, %v4086_v58, 0.0  ;;  %v5012_v15 = vpack.c.bf16 %v3765_v63, %v3765_v63  ;;  %v4028_v0 = vsel %vm4002_vm14, %v3765_v63, 0.0  ;;  %v4087_v29 = vmul.f32 %v3765_v63, %v3765_v63  ;;  %v5164_v6 = vpop.f32.mrb[22].mxu1 }
 0x35f   : > { %v4130_v57 = vadd.f32 %v4129_v48, %v4128_v55  ;;  %3985 = vst.msk [vmem:[%s7851_s10 + $0x3c] sm:$0xf] %vm3969_vm13, %v5014_v14  ;;  %v4029_v44 = vadd.f32 %v4028_v0, %v4027_v52  ;;  %v5051_v42 = vpack.c.bf16 %v4342_v20, %v4342_v20  ;;  %v5054_v28 = vpack.c.bf16 %v5164_v6, %v5164_v6  ;;  %v4345_v17 = vpop.f32.mrb[23].mxu1 }
 0x360   : > { %3983 = vst.msk [vmem:[%s7851_s10 + $0x34] sm:$0xf] %vm3969_vm13, %v5012_v15  ;;  %v4131_v22 = vsel %vm4002_vm14, %v4087_v29, 0.0  ;;  %4539 = vst.msk [vmem:[%s7892_s24 + $0x58] sm:$0xf] %vm3969_vm13, %v5053_v43  ;;  %v5052_v19 = vpack.c.bf16 %v4345_v17, %v4345_v17  ;;  %v4032_v30 = vsel %vm4002_vm14, %v5122_v13, 0.0 }
 0x361   : > { %v4031_v62 = vadd.f32 %v4030_v16, %v4029_v44  ;;  %v4132_v32 = vadd.f32 %v4131_v22, %v4130_v57  ;;  %4537 = vst.msk [vmem:[%s7892_s24 + $0x50] sm:$0xf] %vm3969_vm13, %v5051_v42  ;;  %4540 = vst.msk [vmem:[%s7892_s24 + $0x5c] sm:$0xf] %vm3969_vm13, %v5054_v28  ;;  %v4133_v12 = vsel %vm4002_vm14, %v4088_v39, 0.0  ;;  %v4135_v53 = vsel %vm4002_vm14, %v4089_v50, 0.0 }
 0x362   : > { %4538 = vst.msk [vmem:[%s7892_s24 + $0x54] sm:$0xf] %vm3969_vm13, %v5052_v19 }
 0x363   : > { %v7971_v59 = vadd.f32 %v4032_v30, %v4031_v62  ;;  %v4134_v10 = vadd.f32 %v4133_v12, %v4132_v32 }
 0x364   : > { %v5167_v18 = vpop.f32.mrb[24].mxu1 }
 0x365   : > { %v7976_v49 = vadd.f32 %v4135_v53, %v4134_v10  ;;  %v5057_v54 = vpack.c.bf16 %v5167_v18, %v5167_v18  ;;  %v4358_v33 = vpop.f32.mrb[25].mxu1 }
 0x366   : > { %v5055_v51 = vpack.c.bf16 %v4358_v33, %v4358_v33  ;;  %v5168_v56 = vpop.f32.mrb[26].mxu1 }
 0x367   : > { %4543 = vst.msk [vmem:[%s7892_s24 + $0x68] sm:$0xf] %vm3969_vm13, %v5057_v54  ;;  %v5058_v11 = vpack.c.bf16 %v5168_v56, %v5168_v56  ;;  %v4361_v55 = vpop.f32.mrb[27].mxu1 }
 0x368   : > { %4541 = vst.msk [vmem:[%s7892_s24 + $0x60] sm:$0xf] %vm3969_vm13, %v5055_v51  ;;  %v5056_v1 = vpack.c.bf16 %v4361_v55, %v4361_v55 }
 0x369   : > { %4544 = vst.msk [vmem:[%s7892_s24 + $0x6c] sm:$0xf] %vm3969_vm13, %v5058_v11 }
 0x36a   : > { %4542 = vst.msk [vmem:[%s7892_s24 + $0x64] sm:$0xf] %vm3969_vm13, %v5056_v1 }
 0x36c   : > { %v5171_v34 = vpop.f32.mrb[28].mxu1 }
 0x36d   : > { %v5061_v60 = vpack.c.bf16 %v5171_v34, %v5171_v34  ;;  %v4374_v37 = vpop.f32.mrb[29].mxu1 }
 0x36e   : > { %v5059_v46 = vpack.c.bf16 %v4374_v37, %v4374_v37  ;;  %v5172_v40 = vpop.f32.mrb[30].mxu1 }
 0x36f   : > { %4547 = vst.msk [vmem:[%s7892_s24 + $0x78] sm:$0xf] %vm3969_vm13, %v5061_v60  ;;  %v5062_v5 = vpack.c.bf16 %v5172_v40, %v5172_v40  ;;  %v4377_v36 = vpop.f32.mrb[31].mxu1 }
 0x370   : > { %4545 = vst.msk [vmem:[%s7892_s24 + $0x70] sm:$0xf] %vm3969_vm13, %v5059_v46  ;;  %v5060_v45 = vpack.c.bf16 %v4377_v36, %v4377_v36 }
 0x371   : > { %4548 = vst.msk [vmem:[%s7892_s24 + $0x7c] sm:$0xf] %vm3969_vm13, %v5062_v5 }
 0x372   : > { %4546 = vst.msk [vmem:[%s7892_s24 + $0x74] sm:$0xf] %vm3969_vm13, %v5060_v45 }
 0x37e   : > { %v5125_v3 = vpop.f32.mrb[16].mxu0 }
 0x37f   : > { %v5017_v31 = vpack.c.bf16 %v5125_v3, %v5125_v3  ;;  %v3778_v61 = vpop.f32.mrb[17].mxu0 }
 0x380   : > { %5530 = shalt.err (!%p5527_p8)
}
 0x381   : > { %s5531_s24 = scalar_lea.hbm %s7998_s30, 2048  ;;  %s5535_s3 = scalar_lea.hbm %s8231_s8, 4096 }
 0x382   : > { %p5532_p10 = scmp.ne.s32.totalorder %s7998_s30, %s5531_s24  ;;  %p5536_p0 = scmp.lt.u32.totalorder %s7998_s30, %s8231_s8 }
 0x383   : > { %p5537_p5 = scmp.lt.u32.totalorder %s5535_s3, %s5531_s24  ;;  %p5539_p6 = scmp.lt.u32.totalorder %s5531_s24, %s7998_s30 }
 0x384   : > { %p5533_p11 = pnand %p5532_p10, %p8359_p9 }
 0x385   : > { %p5538_p7 = por %p5537_p5, %p5536_p0 }
 0x386   : > { %p5534_p12 = pneg %p5533_p11 }
 0x387   : > { %p5540_p4 = por %p5539_p6, %p5538_p7 }
 0x389   : > { %p5541_p13 = pnand %p5540_p4, %p5534_p12 }
 0x38b   : > { %5544 = shalt.err (!%p5541_p13)
}
 0x38c   : > { %s5711_s22 = smov 64   ;;  %v5015_v9 = vpack.c.bf16 %v3778_v61, %v3778_v61  ;;  %v4034_v25 = vsel %vm4002_vm14, %v3778_v61, 0.0  ;;  %v4090_v21 = vmul.f32 %v3778_v61, %v3778_v61  ;;  %v5126_v24 = vpop.f32.mrb[18].mxu0  ;;  %3988 = vst.msk [vmem:[%s7851_s10 + $0x48] sm:$0xf] %vm3969_vm13, %v5017_v31  ;;  %v4092_v38 = vmul.f32 %v5125_v3, %v5125_v3  ;;  %s4576_s23 = sshll.u32 %s7851_s10, 4  ;;  %s8098_s23 = int_to_ptr.vmem [resolvable:$true] %s4576_s23 }
 0x38d   : > { %5202 = dma.vmem_to_hbm [thread:$0]  (%p8359_p9), %s8000_s26, 2048, %s7998_s30, %s8006_s1, %s5711_s22, %s5711_s22, %s5702_s20   ;;  %v4035_v35 = vadd.f32 %v4034_v25, %v7971_v59  ;;  %v5018_v7 = vpack.c.bf16 %v5126_v24, %v5126_v24  ;;  %v3781_v47 = vpop.f32.mrb[19].mxu0  ;;  %v4038_v58 = vsel %vm4002_vm14, %v5125_v3, 0.0  ;;  %v4093_v13 = vmul.f32 %v5126_v24, %v5126_v24 }
 0x38e   : > { %3986 = vst.msk [vmem:[%s7851_s10 + $0x40] sm:$0xf] %vm3969_vm13, %v5015_v9  ;;  %v4137_v27 = vsel %vm4002_vm14, %v4090_v21, 0.0  ;;  %v5016_v4 = vpack.c.bf16 %v3781_v47, %v3781_v47  ;;  %v4036_v2 = vsel %vm4002_vm14, %v3781_v47, 0.0  ;;  %v4091_v8 = vmul.f32 %v3781_v47, %v3781_v47  ;;  %s8360_s29 = sshll.u32 %s5791_s19, 11  ;;  %s5545_s18 = scalar_lea.vmem %s8098_s23, 2048 }
 0x38f   : > { %v4138_v26 = vadd.f32 %v4137_v27, %v7976_v49  ;;  %3989 = vst.msk [vmem:[%s7851_s10 + $0x4c] sm:$0xf] %vm3969_vm13, %v5018_v7  ;;  %v4037_v41 = vadd.f32 %v4036_v2, %v4035_v35  ;;  %v4040_v14 = vsel %vm4002_vm14, %v5126_v24, 0.0  ;;  %v4141_v20 = vsel %vm4002_vm14, %v4092_v38, 0.0  ;;  %s8096_s25 = scalar_lea.hbm %s8230_s7, %s8360_s29  ;;  %p5546_p1 = scmp.ne.s32.totalorder %s8098_s23, %s5545_s18 }
 0x390   : > { %3987 = vst.msk [vmem:[%s7851_s10 + $0x44] sm:$0xf] %vm3969_vm13, %v5016_v4  ;;  %v4139_v52 = vsel %vm4002_vm14, %v4091_v8, 0.0  ;;  %v4143_v15 = vsel %vm4002_vm14, %v4093_v13, 0.0  ;;  %s5712_s3 = smov [#allocation16]  }
 0x391   : > { %v4039_v23 = vadd.f32 %v4038_v58, %v4037_v41  ;;  %v4140_v63 = vadd.f32 %v4139_v52, %v4138_v26  ;;  %p5547_p3 = pnand %p5546_p1, %p8359_p9  ;;  %s5549_s17 = sshll.u32 %s5712_s3, 4  ;;  %s5550_s17 = int_to_ptr.vmem [resolvable:$false] %s5549_s17 }
 0x392   : > { %s5551_s29 = scalar_lea.vmem %s5550_s17, 4096  ;;  %p5552_p8 = scmp.lt.s32.totalorder %s8098_s23, %s5550_s17 }
 0x393   : > { %v4041_v39 = vadd.f32 %v4040_v14, %v4039_v23  ;;  %v4142_v48 = vadd.f32 %v4141_v20, %v4140_v63  ;;  %p5548_p2 = pneg %p5547_p3  ;;  %p5553_p10 = scmp.lt.s32.totalorder %s5551_s29, %s5545_s18 }
 0x395   : > { %v4144_v0 = vadd.f32 %v4143_v15, %v4142_v48  ;;  %p5554_p11 = por %p5553_p10, %p5552_p8 }
 0x397   : > { %p5555_p12 = pnand %p5554_p11, %p5548_p2 }
 0x39e   : > { %v5129_v57 = vpop.f32.mrb[20].mxu0 }
 0x39f   : > { %v5021_v44 = vpack.c.bf16 %v5129_v57, %v5129_v57  ;;  %v3794_v29 = vpop.f32.mrb[21].mxu0  ;;  %v4096_v30 = vmul.f32 %v5129_v57, %v5129_v57  ;;  %v4046_v10 = vsel %vm4002_vm14, %v5129_v57, 0.0 }
 0x3a0   : > { %v5019_v43 = vpack.c.bf16 %v3794_v29, %v3794_v29  ;;  %v4042_v6 = vsel %vm4002_vm14, %v3794_v29, 0.0  ;;  %v4094_v16 = vmul.f32 %v3794_v29, %v3794_v29  ;;  %v5130_v42 = vpop.f32.mrb[22].mxu0 }
 0x3a1   : > { %3992 = vst.msk [vmem:[%s7851_s10 + $0x58] sm:$0xf] %vm3969_vm13, %v5021_v44  ;;  %v4043_v28 = vadd.f32 %v4042_v6, %v4041_v39  ;;  %v5022_v17 = vpack.c.bf16 %v5130_v42, %v5130_v42  ;;  %v3797_v50 = vpop.f32.mrb[23].mxu0  ;;  %v4097_v53 = vmul.f32 %v5130_v42, %v5130_v42  ;;  %v4048_v54 = vsel %vm4002_vm14, %v5130_v42, 0.0 }
 0x3a2   : > { %3990 = vst.msk [vmem:[%s7851_s10 + $0x50] sm:$0xf] %vm3969_vm13, %v5019_v43  ;;  %v4145_v62 = vsel %vm4002_vm14, %v4094_v16, 0.0  ;;  %v5020_v22 = vpack.c.bf16 %v3797_v50, %v3797_v50  ;;  %v4044_v19 = vsel %vm4002_vm14, %v3797_v50, 0.0  ;;  %v4095_v59 = vmul.f32 %v3797_v50, %v3797_v50 }
 0x3a3   : > { %v4146_v32 = vadd.f32 %v4145_v62, %v4144_v0  ;;  %3993 = vst.msk [vmem:[%s7851_s10 + $0x5c] sm:$0xf] %vm3969_vm13, %v5022_v17  ;;  %v4045_v12 = vadd.f32 %v4044_v19, %v4043_v28  ;;  %v4149_v51 = vsel %vm4002_vm14, %v4096_v30, 0.0  ;;  %v4151_v55 = vsel %vm4002_vm14, %v4097_v53, 0.0 }
 0x3a4   : > { %3991 = vst.msk [vmem:[%s7851_s10 + $0x54] sm:$0xf] %vm3969_vm13, %v5020_v22  ;;  %v4147_v18 = vsel %vm4002_vm14, %v4095_v59, 0.0 }
 0x3a5   : > { %v4047_v49 = vadd.f32 %v4046_v10, %v4045_v12  ;;  %v4148_v33 = vadd.f32 %v4147_v18, %v4146_v32 }
 0x3a7   : > { %v4049_v56 = vadd.f32 %v4048_v54, %v4047_v49  ;;  %v4150_v11 = vadd.f32 %v4149_v51, %v4148_v33 }
 0x3a9   : > { %v4152_v1 = vadd.f32 %v4151_v55, %v4150_v11 }
 0x3be   : > { %v5133_v34 = vpop.f32.mrb[24].mxu0 }
 0x3bf   : > { %v5025_v60 = vpack.c.bf16 %v5133_v34, %v5133_v34  ;;  %v3810_v37 = vpop.f32.mrb[25].mxu0  ;;  %v4100_v21 = vmul.f32 %v5133_v34, %v5133_v34  ;;  %v4054_v47 = vsel %vm4002_vm14, %v5133_v34, 0.0 }
 0x3c0   : > { %v5023_v46 = vpack.c.bf16 %v3810_v37, %v3810_v37  ;;  %v4050_v40 = vsel %vm4002_vm14, %v3810_v37, 0.0  ;;  %v4098_v5 = vmul.f32 %v3810_v37, %v3810_v37  ;;  %v5134_v36 = vpop.f32.mrb[26].mxu0 }
 0x3c1   : > { %3996 = vst.msk [vmem:[%s7851_s10 + $0x68] sm:$0xf] %vm3969_vm13, %v5025_v60  ;;  %v4051_v45 = vadd.f32 %v4050_v40, %v4049_v56  ;;  %v5026_v3 = vpack.c.bf16 %v5134_v36, %v5134_v36  ;;  %v3813_v31 = vpop.f32.mrb[27].mxu0  ;;  %v4101_v27 = vmul.f32 %v5134_v36, %v5134_v36  ;;  %v4056_v38 = vsel %vm4002_vm14, %v5134_v36, 0.0 }
 0x3c2   : > { %3994 = vst.msk [vmem:[%s7851_s10 + $0x60] sm:$0xf] %vm3969_vm13, %v5023_v46  ;;  %v4153_v61 = vsel %vm4002_vm14, %v4098_v5, 0.0  ;;  %v5024_v9 = vpack.c.bf16 %v3813_v31, %v3813_v31  ;;  %v4052_v25 = vsel %vm4002_vm14, %v3813_v31, 0.0  ;;  %v4099_v7 = vmul.f32 %v3813_v31, %v3813_v31 }
 0x3c3   : > { %v4154_v24 = vadd.f32 %v4153_v61, %v4152_v1  ;;  %3997 = vst.msk [vmem:[%s7851_s10 + $0x6c] sm:$0xf] %vm3969_vm13, %v5026_v3  ;;  %v4053_v35 = vadd.f32 %v4052_v25, %v4051_v45  ;;  %v4157_v41 = vsel %vm4002_vm14, %v4100_v21, 0.0  ;;  %v4159_v13 = vsel %vm4002_vm14, %v4101_v27, 0.0 }
 0x3c4   : > { %3995 = vst.msk [vmem:[%s7851_s10 + $0x64] sm:$0xf] %vm3969_vm13, %v5024_v9  ;;  %v4155_v2 = vsel %vm4002_vm14, %v4099_v7, 0.0 }
 0x3c5   : > { %v4055_v4 = vadd.f32 %v4054_v47, %v4053_v35  ;;  %v4156_v26 = vadd.f32 %v4155_v2, %v4154_v24 }
 0x3c7   : > { %v4057_v8 = vadd.f32 %v4056_v38, %v4055_v4  ;;  %v4158_v58 = vadd.f32 %v4157_v41, %v4156_v26 }
 0x3c9   : > { %v4160_v23 = vadd.f32 %v4159_v13, %v4158_v58 }
 0x3dd   : > { %v5137_v52 = vpop.f32.mrb[28].mxu0 }
 0x3de   : > { %v5029_v14 = vpack.c.bf16 %v5137_v52, %v5137_v52  ;;  %v3826_v63 = vpop.f32.mrb[29].mxu0  ;;  %v4104_v16 = vmul.f32 %v5137_v52, %v5137_v52  ;;  %v4062_v50 = vsel %vm4002_vm14, %v5137_v52, 0.0 }
 0x3df   : > { %v5027_v20 = vpack.c.bf16 %v3826_v63, %v3826_v63  ;;  %v4058_v39 = vsel %vm4002_vm14, %v3826_v63, 0.0  ;;  %v4102_v48 = vmul.f32 %v3826_v63, %v3826_v63  ;;  %v5138_v15 = vpop.f32.mrb[30].mxu0 }
 0x3e0   : > { %4000 = vst.msk [vmem:[%s7851_s10 + $0x78] sm:$0xf] %vm3969_vm13, %v5029_v14  ;;  %v4059_v0 = vadd.f32 %v4058_v39, %v4057_v8  ;;  %v5030_v57 = vpack.c.bf16 %v5138_v15, %v5138_v15  ;;  %v3829_v44 = vpop.f32.mrb[31].mxu0  ;;  %v4105_v62 = vmul.f32 %v5138_v15, %v5138_v15 }
 0x3e1   : > { %3998 = vst.msk [vmem:[%s7851_s10 + $0x70] sm:$0xf] %vm3969_vm13, %v5027_v20  ;;  %v4161_v29 = vsel %vm4002_vm14, %v4102_v48, 0.0  ;;  %v5028_v43 = vpack.c.bf16 %v3829_v44, %v3829_v44  ;;  %v4060_v6 = vsel %vm4002_vm14, %v3829_v44, 0.0  ;;  %v4103_v17 = vmul.f32 %v3829_v44, %v3829_v44 }
 0x3e2   : > { %v4162_v42 = vadd.f32 %v4161_v29, %v4160_v23  ;;  %4001 = vst.msk [vmem:[%s7851_s10 + $0x7c] sm:$0xf] %vm3969_vm13, %v5030_v57  ;;  %v4061_v28 = vadd.f32 %v4060_v6, %v4059_v0 }
 0x3e3   : > { %3999 = vst.msk [vmem:[%s7851_s10 + $0x74] sm:$0xf] %vm3969_vm13, %v5028_v43  ;;  %v4163_v19 = vsel %vm4002_vm14, %v4103_v17, 0.0 }
 0x3e4   : > { %v4063_v22 = vadd.f32 %v4062_v50, %v4061_v28 }
 0x3e5   : > { %5558 = shalt.err (!%p5555_p12)
}
 0x3e6   : > { %s5559_s10 = scalar_lea.hbm %s8096_s25, 2048  ;;  %s5563_s3 = scalar_lea.hbm %s8230_s7, 4096 }
 0x3e7   : > { %p5560_p0 = scmp.ne.s32.totalorder %s8096_s25, %s5559_s10  ;;  %p5564_p6 = scmp.lt.u32.totalorder %s8096_s25, %s8230_s7 }
 0x3e8   : > { %p5565_p4 = scmp.lt.u32.totalorder %s5563_s3, %s5559_s10  ;;  %p5567_p1 = scmp.lt.u32.totalorder %s5559_s10, %s8096_s25 }
 0x3e9   : > { %p5561_p5 = pnand %p5560_p0, %p8359_p9 }
 0x3ea   : > { %p5566_p13 = por %p5565_p4, %p5564_p6 }
 0x3eb   : > { %p5562_p7 = pneg %p5561_p5 }
 0x3ec   : > { %p5568_p3 = por %p5567_p1, %p5566_p13 }
 0x3ee   : > { %p5569_p2 = pnand %p5568_p3, %p5562_p7 }
 0x3f0   : > { %5572 = shalt.err (!%p5569_p2)
}
 0x3f1   : > { %s8361_s18 = scalar_lea.sflag [#allocation6], %s6037_s27  ;;  %v4064_v30 = vsel %vm4002_vm14, %v5138_v15, 0.0  ;;  %v4164_v32 = vadd.f32 %v4163_v19, %v4162_v42  ;;  %v4165_v12 = vsel %vm4002_vm14, %v4104_v16, 0.0  ;;  %v4167_v53 = vsel %vm4002_vm14, %v4105_v62, 0.0  ;;  %s8362_s3 = sld [smem:[#allocation65_spill]] }
 0x3f2   : > { %5201 = dma.vmem_to_hbm [thread:$0]  (%p8359_p9), %s8098_s23, 2048, %s8096_s25, %s8361_s18, %s5711_s22, %s5711_s22, %s5702_s20   ;;  %v4065_v59 = vadd.f32 %v4064_v30, %v4063_v22  ;;  %vm4072_vm15 = vcmask 57344  }
 0x3f3   : > { %v4166_v10 = vadd.f32 %v4165_v12, %v4164_v32  ;;  %s4994_s20 = sshll.u32 %s5791_s19, 4  ;;  %s478_s22 = scalar_lea.vmem [#allocation19], %s6037_s27 }
 0x3f4   : > { %v4066_v49 = vrot.slane %v4065_v59, 4  ;;  %s4608_s23 = sshll.u32 %s478_s22, 4  ;;  %s8259_s25 = scalar_lea.vmem [#allocation20], %s6037_s27  ;;  %s8146_s23 = int_to_ptr.vmem [resolvable:$true] %s4608_s23 }
 0x3f5   : > { %v4168_v18 = vadd.f32 %v4167_v53, %v4166_v10  ;;  %s4621_s24 = sshll.u32 %s8259_s25, 4  ;;  %s8144_s26 = scalar_lea.hbm %s8232_s9, %s4994_s20  ;;  %s8154_s24 = int_to_ptr.vmem [resolvable:$true] %s4621_s24 }
 0x3f6   : > { %v4067_v54 = vadd.f32 %v4066_v49, %v4065_v59  ;;  %s5573_s18 = scalar_lea.vmem %s8146_s23, 16  ;;  %s5713_s29 = smov [#allocation19]  }
 0x3f7   : > { %v4169_v33 = vrot.slane %v4168_v18, 4  ;;  %s8152_s17 = scalar_lea.hbm %s8362_s3, %s4994_s20  ;;  %p5574_p8 = scmp.ne.s32.totalorder %s8146_s23, %s5573_s18 }
 0x3f8   : > { %v4068_v51 = vrot.slane %v4067_v54, 2  ;;  %s5577_s10 = sshll.u32 %s5713_s29, 4  ;;  %s5578_s10 = int_to_ptr.vmem [resolvable:$false] %s5577_s10 }
 0x3f9   : > { %v4170_v56 = vadd.f32 %v4169_v33, %v4168_v18  ;;  %p5575_p10 = pnand %p5574_p8, %p8359_p9  ;;  %s5579_s25 = scalar_lea.vmem %s5578_s10, 32 }
 0x3fa   : > { %v4069_v11 = vadd.f32 %v4068_v51, %v4067_v54  ;;  %p5580_p12 = scmp.lt.s32.totalorder %s8146_s23, %s5578_s10  ;;  %p5581_p0 = scmp.lt.s32.totalorder %s5579_s25, %s5573_s18 }
 0x3fb   : > { %v4171_v55 = vrot.slane %v4170_v56, 2  ;;  %p5576_p11 = pneg %p5575_p10 }
 0x3fc   : > { %v4070_v1 = vrot.slane %v4069_v11, 1  ;;  %p5582_p5 = por %p5581_p0, %p5580_p12 }
 0x3fd   : > { %v4172_v34 = vadd.f32 %v4171_v55, %v4170_v56 }
 0x3fe   : > { %v4071_v60 = vadd.f32 %v4070_v1, %v4069_v11  ;;  %p5583_p7 = pnand %p5582_p5, %p5576_p11 }
 0x3ff   : > { %v4173_v37 = vrot.slane %v4172_v34, 1 }
 0x400   : > { %4073 = vst.msk [vmem:[%s478_s22] sm:$0x1] %vm4072_vm15, %v4071_v60 }
 0x401   : > { %5586 = shalt.err (!%p5583_p7)
}
 0x402   : > { %s5587_s20 = scalar_lea.hbm %s8144_s26, 16  ;;  %s5591_s30 = scalar_lea.hbm %s8232_s9, 32 }
 0x403   : > { %p5588_p6 = scmp.ne.s32.totalorder %s8144_s26, %s5587_s20  ;;  %p5592_p1 = scmp.lt.u32.totalorder %s8144_s26, %s8232_s9 }
 0x404   : > { %p5593_p3 = scmp.lt.u32.totalorder %s5591_s30, %s5587_s20  ;;  %p5595_p8 = scmp.lt.u32.totalorder %s5587_s20, %s8144_s26 }
 0x405   : > { %p5589_p4 = pnand %p5588_p6, %p8359_p9 }
 0x406   : > { %p5594_p2 = por %p5593_p3, %p5592_p1 }
 0x407   : > { %p5590_p13 = pneg %p5589_p4 }
 0x408   : > { %p5596_p10 = por %p5595_p8, %p5594_p2 }
 0x40a   : > { %p5597_p11 = pnand %p5596_p10, %p5590_p13 }
 0x40c   : > { %5600 = shalt.err (!%p5597_p11)
}
 0x40d   : > { %5203 = dma.vmem_to_hbm [thread:$0]  (%p8359_p9), %s8146_s23, 16, %s8144_s26, %s8006_s1   ;;  %v4174_v46 = vadd.f32 %v4173_v37, %v4172_v34 }
 0x40e   : > { %s8363_s25 = scalar_lea.vmem [#allocation20], %s6037_s27  ;;  %s4564_s18 = scalar_lea.sflag [#allocation21], %s6037_s27 }
 0x40f   : > { %4175 = vst.msk [vmem:[%s8363_s25] sm:$0x1] %vm4072_vm15, %v4174_v46  ;;  %s5601_s20 = scalar_lea.vmem %s8154_s24, 16  ;;  %s5714_s22 = smov [#allocation20]  }
 0x410   : > { %p5602_p12 = scmp.ne.s32.totalorder %s8154_s24, %s5601_s20  ;;  %s5605_s19 = sshll.u32 %s5714_s22, 4  ;;  %s5606_s19 = int_to_ptr.vmem [resolvable:$false] %s5605_s19 }
 0x411   : > { %s5607_s30 = scalar_lea.vmem %s5606_s19, 32  ;;  %p5608_p7 = scmp.lt.s32.totalorder %s8154_s24, %s5606_s19 }
 0x412   : > { %p5603_p0 = pnand %p5602_p12, %p8359_p9  ;;  %p5609_p6 = scmp.lt.s32.totalorder %s5607_s30, %s5601_s20 }
 0x414   : > { %p5604_p5 = pneg %p5603_p0  ;;  %p5610_p4 = por %p5609_p6, %p5608_p7 }
 0x416   : > { %p5611_p13 = pnand %p5610_p4, %p5604_p5 }
 0x418   : > { %5614 = shalt.err (!%p5611_p13)
}
 0x419   : > { %s5615_s27 = scalar_lea.hbm %s8152_s17, 16  ;;  %s5619_s26 = scalar_lea.hbm %s8362_s3, 32 }
 0x41a   : > { %p5616_p1 = scmp.ne.s32.totalorder %s8152_s17, %s5615_s27  ;;  %p5620_p8 = scmp.lt.u32.totalorder %s8152_s17, %s8362_s3 }
 0x41b   : > { %p5621_p10 = scmp.lt.u32.totalorder %s5619_s26, %s5615_s27  ;;  %p5623_p12 = scmp.lt.u32.totalorder %s5615_s27, %s8152_s17 }
 0x41c   : > { %p5617_p3 = pnand %p5616_p1, %p8359_p9 }
 0x41d   : > { %p5622_p11 = por %p5621_p10, %p5620_p8 }
 0x41e   : > { %p5618_p2 = pneg %p5617_p3 }
 0x41f   : > { %p5624_p0 = por %p5623_p12, %p5622_p11 }
 0x421   : > { %p5625_p5 = pnand %p5624_p0, %p5618_p2 }
 0x423   : > { %5628 = shalt.err (!%p5625_p5)
}
 0x424   : > { %5204 = dma.vmem_to_hbm [thread:$0]  (%p8359_p9), %s8154_s24, 16, %s8152_s17, %s4564_s18  }
 0x425 PF: > { %s4633_s25 = sand.u32 1, %s5675_s13   ;;  %p8364_p7 = scmp.ne.s32.totalorder %s8272_s21, 0 }
 0x426   : > { %p8365_p6 = scmp.ge.s32.totalorder %s5687_s16, 2  ;;  %s4634_s20 = scalar_lea.sflag [#allocation6], %s4633_s25 }
 0x428   : > { %p5233_p4 = pnand %p8365_p6, %p8364_p7 }
 0x42a   : > { %5662 = dma.done.wait (!%p5233_p4), %s4634_s20, 2048  }
 0x42b   : > { %5664 = vsyncadd (!%p5233_p4), %s4634_s20, 4294965248  ;;  %s8366_s22 = sadd.s32 4294967294, %s5687_s16  }
 0x42c   : > { %s4642_s19 = sand.u32 1, %s8366_s22  }
 0x42d   : > { %s4643_s30 = scalar_lea.sflag [#allocation18], %s4642_s19 }
 0x42e   : > { %5666 = dma.done.wait (!%p5233_p4), %s4643_s30, 2064  }
 0x42f   : > { %5668 = vsyncadd (!%p5233_p4), %s4643_s30, 4294965232  ;;  %s4660_s12 = scalar_lea.sflag [#allocation21], %s4633_s25 }
 0x430   : > { %5670 = dma.done.wait (!%p5233_p4), %s4660_s12, 16  }
 0x431   : > { %5672 = vsyncadd (!%p5233_p4), %s4660_s12, 4294967280  ;;  %p33_p9 = scmp.ge.s32.totalorder %s5956_s11, 4   ;;  %s8367_s13 = smov %s5679_s14 }
 0x432   : > { %s8368_s14 = smov %s5683_s15  ;;  %s8369_s15 = smov %s5967_s28 }
 0x433   : > { %s8370_s16 = smov %s5956_s11  ;;  %35 = sbr.rel (!%p33_p9) target bundleno = 16 (0x10), region = 166 }
 0x43a   :  { %4664 = vsyncpa [#allocation5], 1 }
 0x43b   :  { %4666 = vsyncpa [#allocation5 + $0x1], 1 }
 0x43c   :  { %4667 = vsyncpa [#allocation8], 1 }
 0x43d   :  { %4668 = vsyncpa [#allocation11], 1 }
 0x43e   :  { %4669 = vsyncpa [#allocation14], 1 }
 0x43f   :  { %4670 = vsyncpa [#allocation6], 1 }
 0x440   :  { %4672 = vsyncpa [#allocation6 + $0x1], 1 }
 0x441   :  { %4673 = vsyncpa [#allocation18], 1 }
 0x442   :  { %4675 = vsyncpa [#allocation18 + $0x1], 1 }
 0x443   :  { %4676 = vsyncpa [#allocation21], 1 }
 0x444   :  { %4678 = vsyncpa [#allocation21 + $0x1], 1 }

</bundles_post_ra>
